<compile_context>
chip_gen: v6e
topology: v6e:2x2x1
jax: 0.10.0
libtpu: 0.0.40
codegen_flags: <defaults>
</compile_context>

<pallas_src>
import functools
import numpy as np
import jax
import jax.numpy as jnp
from jax.experimental import pallas as pl
from jax.experimental.pallas import tpu as pltpu


_VMEM_LIMIT = 48 * 1024 * 1024   # leave headroom vs v7x's 64 MiB physical VMEM


def _round_up(a, m):
    return (a + m - 1) // m * m


def _pick_tm(n, cap=512):
    """Row tile: as large as possible (<=cap) but keep >=2 grid steps."""
    n8 = _round_up(max(n, 1), 8)
    if n8 <= 8:
        return n8
    tm = min(cap, n8)
    if tm == n8:                       # would be a single grid step -> split
        tm = _round_up((n8 + 1) // 2, 8)
    return tm


def _const_spec(shape):
    nd = len(shape)
    return pl.BlockSpec(shape, lambda i, _nd=nd: (0,) * _nd)


# ------------------ conv1_1: 1x1 conv with split (conv / trans) outputs ------------------

def _split_mm_kernel(x_ref, wc_ref, bc_ref, wt_ref, bt_ref, oc_ref, ot_ref):
    x = x_ref[...].astype(jnp.bfloat16)
    yc = jnp.dot(x, wc_ref[...], preferred_element_type=jnp.float32) + bc_ref[...]
    yt = jnp.dot(x, wt_ref[...], preferred_element_type=jnp.float32) + bt_ref[...]
    oc_ref[...] = yc.astype(oc_ref.dtype)
    ot_ref[...] = yt.astype(ot_ref.dtype)


def pallas_conv1x1_split(x, w_c, b_c, w_t, b_t, tm_cap=512):
    n, cin = x.shape
    cc, ctd = w_c.shape[1], w_t.shape[1]
    tm = _pick_tm(n, tm_cap)
    n_pad = _round_up(n, tm)
    if n_pad != n:
        x = jnp.pad(x, ((0, n_pad - n), (0, 0)))
    conv_rows, trans_rows = pl.pallas_call(
        _split_mm_kernel,
        out_shape=(jax.ShapeDtypeStruct((n_pad, cc), jnp.bfloat16),
                   jax.ShapeDtypeStruct((n_pad, ctd), jnp.bfloat16)),
        grid=(n_pad // tm,),
        in_specs=[pl.BlockSpec((tm, cin), lambda i: (i, 0)),
                  _const_spec(w_c.shape), _const_spec(b_c.shape),
                  _const_spec(w_t.shape), _const_spec(b_t.shape)],
        out_specs=(pl.BlockSpec((tm, cc), lambda i: (i, 0)),
                   pl.BlockSpec((tm, ctd), lambda i: (i, 0))),
        compiler_params=pltpu.CompilerParams(
            dimension_semantics=("parallel",), vmem_limit_bytes=_VMEM_LIMIT),
    )(x, w_c, b_c, w_t, b_t)
    if n_pad != n:
        conv_rows, trans_rows = conv_rows[:n], trans_rows[:n]
    return conv_rows, trans_rows


# ------------------ conv1_2: 1x1 conv over both branches + outer residual ------------------

def _merge_mm_kernel(c_ref, t_ref, wc_ref, wt_ref, b_ref, r_ref, o_ref):
    y = jnp.dot(c_ref[...].astype(jnp.bfloat16), wc_ref[...],
                preferred_element_type=jnp.float32)
    y = y + jnp.dot(t_ref[...].astype(jnp.bfloat16), wt_ref[...],
                    preferred_element_type=jnp.float32)
    y = y + b_ref[...] + r_ref[...].astype(jnp.float32)
    o_ref[...] = y.astype(o_ref.dtype)


def pallas_conv1x1_merge(c_rows, t_rows, w_c, w_t, b, res, tm_cap=512):
    n, cc = c_rows.shape
    ctd = t_rows.shape[1]
    cout = w_c.shape[1]
    tm = _pick_tm(n, tm_cap)
    n_pad = _round_up(n, tm)
    if n_pad != n:
        pad = ((0, n_pad - n), (0, 0))
        c_rows = jnp.pad(c_rows, pad)
        t_rows = jnp.pad(t_rows, pad)
        res = jnp.pad(res, pad)
    out = pl.pallas_call(
        _merge_mm_kernel,
        out_shape=jax.ShapeDtypeStruct((n_pad, cout), jnp.float32),
        grid=(n_pad // tm,),
        in_specs=[pl.BlockSpec((tm, cc), lambda i: (i, 0)),
                  pl.BlockSpec((tm, ctd), lambda i: (i, 0)),
                  _const_spec(w_c.shape), _const_spec(w_t.shape),
                  _const_spec(b.shape),
                  pl.BlockSpec((tm, cout), lambda i: (i, 0))],
        out_specs=pl.BlockSpec((tm, cout), lambda i: (i, 0)),
        compiler_params=pltpu.CompilerParams(
            dimension_semantics=("parallel",), vmem_limit_bytes=_VMEM_LIMIT),
    )(c_rows, t_rows, w_c, w_t, b, res)
    return out[:n] if n_pad != n else out


# ------------------ 3x3 conv (stride 1, pad 1, no bias) — halo slab, no HBM im2col ------------------

def _conv3x3_kernel(*refs, relu, has_res, H, W):
    it = iter(refs)
    xp_ref = next(it)                       # (1, H+2, W+2, Cin) padded slab
    w_ref = next(it)                        # (9*Cin, Cout)
    res_ref = next(it) if has_res else None  # (H*W, Cout)
    o_ref = next(it)                        # (H*W, Cout)
    # im2col built as VMEM values: 9 shifted loads, lane concat, one matmul.
    cols = [xp_ref[0, di:di + H, dj:dj + W, :]
            for di in range(3) for dj in range(3)]
    col = jnp.concatenate(cols, axis=-1)                    # (H, W, 9*Cin)
    col2 = col.reshape(H * W, col.shape[-1]).astype(jnp.bfloat16)
    y = jnp.dot(col2, w_ref[...], preferred_element_type=jnp.float32)
    if relu:
        y = jnp.maximum(y, 0.0)
    if has_res:
        y = y + res_ref[...].astype(jnp.float32)
    o_ref[...] = y.astype(o_ref.dtype)


def pallas_conv3x3(x_nhwc, w9, *, relu, residual_rows=None):
    """x: (B,H,W,Cin) (unpadded), w9: (9*Cin, Cout) -> rows (B*H*W, Cout) bf16."""
    B, H, W, Cin = x_nhwc.shape
    Cout = w9.shape[1]
    HW = H * W
    assert W % 8 == 0, "W must be a multiple of 8 for the in-kernel reshape"
    xp = jnp.pad(x_nhwc, ((0, 0), (1, 1), (1, 1), (0, 0)))
    kern = functools.partial(_conv3x3_kernel, relu=relu,
                             has_res=residual_rows is not None, H=H, W=W)
    inputs = [xp, w9]
    in_specs = [pl.BlockSpec((1, H + 2, W + 2, Cin), lambda i: (i, 0, 0, 0)),
                _const_spec(w9.shape)]
    if residual_rows is not None:
        inputs.append(residual_rows)
        in_specs.append(pl.BlockSpec((HW, Cout), lambda i: (i, 0)))
    # TODO(synk): for large H, tile rows with an explicit halo DMA
    #             (memory_space=pl.ANY + make_async_copy) instead of one
    #             full-image slab per batch element.
    return pl.pallas_call(
        kern,
        out_shape=jax.ShapeDtypeStruct((B * HW, Cout), jnp.bfloat16),
        grid=(B,),
        in_specs=in_specs,
        out_specs=pl.BlockSpec((HW, Cout), lambda i: (i, 0)),
        compiler_params=pltpu.CompilerParams(
            dimension_semantics=("parallel",), vmem_limit_bytes=_VMEM_LIMIT),
    )(*inputs)


# ------------------ fused Swin block (LN1->QKV->WMSA->proj->+res->LN2->MLP->+res) ------------------

def _swin_block_kernel(x_ref, ln1g_ref, ln1b_ref, wqkv_ref, bqkv_ref, rel_ref,
                       wproj_ref, bproj_ref, ln2g_ref, ln2b_ref,
                       w1_ref, b1_ref, w2_ref, b2_ref, o_ref,
                       *, wb, P, ct, nh, hd, eps):
    x = x_ref[...].astype(jnp.float32)                      # (wb*P, ct)
    # LN1 (padded zero rows: var=0 -> rsqrt(eps); finite, sliced off outside)
    mu = jnp.mean(x, axis=-1, keepdims=True)
    d = x - mu
    var = jnp.mean(d * d, axis=-1, keepdims=True)
    xn = d * jax.lax.rsqrt(var + eps) * ln1g_ref[...] + ln1b_ref[...]
    # QKV projection (attention scale is pre-folded into the q columns)
    qkv = jnp.dot(xn.astype(jnp.bfloat16), wqkv_ref[...],
                  preferred_element_type=jnp.float32) + bqkv_ref[...]
    qkv3 = qkv.reshape(wb, P, 3 * ct)
    # per-head windowed attention
    heads = []
    for h in range(nh):
        q = qkv3[:, :, h * hd:(h + 1) * hd].astype(jnp.bfloat16)
        k = qkv3[:, :, ct + h * hd:ct + (h + 1) * hd].astype(jnp.bfloat16)
        v = qkv3[:, :, 2 * ct + h * hd:2 * ct + (h + 1) * hd].astype(jnp.bfloat16)
        s = jnp.einsum("bpc,bqc->bpq", q, k,
                       preferred_element_type=jnp.float32)   # (wb, P, P)
        s = s + rel_ref[h][None, :, :]
        m = jnp.max(s, axis=-1, keepdims=True)
        e = jnp.exp(s - m)
        pr = e * pl.reciprocal(jnp.sum(e, axis=-1, keepdims=True), approx=True)
        heads.append(jnp.einsum("bpq,bqc->bpc", pr.astype(jnp.bfloat16), v,
                                preferred_element_type=jnp.float32))
    attn = jnp.concatenate(heads, axis=-1).reshape(wb * P, ct)
    # output projection + `t + msa` residual (fused, never touches HBM)
    t1 = x + jnp.dot(attn.astype(jnp.bfloat16), wproj_ref[...],
                     preferred_element_type=jnp.float32) + bproj_ref[...]
    # LN2 -> MLP(4x, exact GELU) -> MLP -> +residual
    mu2 = jnp.mean(t1, axis=-1, keepdims=True)
    d2 = t1 - mu2
    var2 = jnp.mean(d2 * d2, axis=-1, keepdims=True)
    x2 = d2 * jax.lax.rsqrt(var2 + eps) * ln2g_ref[...] + ln2b_ref[...]
    h1 = jnp.dot(x2.astype(jnp.bfloat16), w1_ref[...],
                 preferred_element_type=jnp.float32) + b1_ref[...]
    h1 = 0.5 * h1 * (1.0 + jax.lax.erf(h1 * (1.0 / np.sqrt(2.0))))
    y = jnp.dot(h1.astype(jnp.bfloat16), w2_ref[...],
                preferred_element_type=jnp.float32) + b2_ref[...]
    o_ref[...] = (t1 + y).astype(o_ref.dtype)


def pallas_swin_block(tw, prm, *, n_heads, head_dim, P, wb_cap=8):
    """tw: (G*P, ct) window-ordered rows -> (G*P, ct) bf16 rows."""
    rows, ct = tw.shape
    G = rows // P
    assert P % 8 == 0, "window token count must be a multiple of 8"
    wb = min(wb_cap, G)
    Gp = _round_up(G, wb)               # pad G instead of shrinking wb to 1
    if Gp != G:
        tw = jnp.pad(tw, ((0, (Gp - G) * P), (0, 0)))
    kern = functools.partial(_swin_block_kernel, wb=wb, P=P, ct=ct,
                             nh=n_heads, hd=head_dim, eps=1e-5)
    out = pl.pallas_call(
        kern,
        out_shape=jax.ShapeDtypeStruct((Gp * P, ct), jnp.bfloat16),
        grid=(Gp // wb,),
        in_specs=[pl.BlockSpec((wb * P, ct), lambda i: (i, 0)),
                  _const_spec(prm["ln1_g"].shape), _const_spec(prm["ln1_b"].shape),
                  _const_spec(prm["w_qkv"].shape), _const_spec(prm["b_qkv"].shape),
                  _const_spec(prm["rel"].shape),
                  _const_spec(prm["w_proj"].shape), _const_spec(prm["b_proj"].shape),
                  _const_spec(prm["ln2_g"].shape), _const_spec(prm["ln2_b"].shape),
                  _const_spec(prm["w_mlp1"].shape), _const_spec(prm["b_mlp1"].shape),
                  _const_spec(prm["w_mlp2"].shape), _const_spec(prm["b_mlp2"].shape)],
        out_specs=pl.BlockSpec((wb * P, ct), lambda i: (i, 0)),
        compiler_params=pltpu.CompilerParams(
            dimension_semantics=("parallel",), vmem_limit_bytes=_VMEM_LIMIT),
    )(tw, prm["ln1_g"], prm["ln1_b"], prm["w_qkv"], prm["b_qkv"], prm["rel"],
      prm["w_proj"], prm["b_proj"], prm["ln2_g"], prm["ln2_b"],
      prm["w_mlp1"], prm["b_mlp1"], prm["w_mlp2"], prm["b_mlp2"])
    if Gp != G:
        out = out[:G * P]
    return out


# ------------------ parameters ------------------

def init_params(key, conv_dim, trans_dim, head_dim, window_size):
    c = conv_dim + trans_dim
    ct = trans_dim
    nh = ct // head_dim
    ks = jax.random.split(key, 16)
    s = 0.02
    p = {}
    p["w11"] = jax.random.normal(ks[0], (c, c), jnp.float32) * s
    p["b11"] = jax.random.normal(ks[1], (c,), jnp.float32) * s
    p["w12"] = jax.random.normal(ks[2], (c, c), jnp.float32) * s
    p["b12"] = jax.random.normal(ks[3], (c,), jnp.float32) * s
    # 3x3 convs (bias=False), weight layout (3,3,Cin,Cout); loading real
    # PyTorch Conv2d weights ((Cout,Cin,3,3)) needs a matching transpose.
    p["wc1"] = jax.random.normal(ks[4], (3, 3, conv_dim, conv_dim), jnp.float32) * s
    p["wc2"] = jax.random.normal(ks[5], (3, 3, conv_dim, conv_dim), jnp.float32) * s
    p["ln1_g"] = jnp.ones((ct,), jnp.float32)
    p["ln1_b"] = jnp.zeros((ct,), jnp.float32)
    p["ln2_g"] = jnp.ones((ct,), jnp.float32)
    p["ln2_b"] = jnp.zeros((ct,), jnp.float32)
    p["w_qkv"] = jax.random.normal(ks[6], (ct, 3 * ct), jnp.float32) * s
    p["b_qkv"] = jax.random.normal(ks[7], (3 * ct,), jnp.float32) * s
    p["w_proj"] = jax.random.normal(ks[8], (ct, ct), jnp.float32) * s
    p["b_proj"] = jax.random.normal(ks[9], (ct,), jnp.float32) * s
    p["rel_pos"] = jax.random.normal(
        ks[10], (nh, 2 * window_size - 1, 2 * window_size - 1), jnp.float32) * s
    p["w_mlp1"] = jax.random.normal(ks[11], (ct, 4 * ct), jnp.float32) * s
    p["b_mlp1"] = jax.random.normal(ks[12], (4 * ct,), jnp.float32) * s
    p["w_mlp2"] = jax.random.normal(ks[13], (4 * ct, ct), jnp.float32) * s
    p["b_mlp2"] = jax.random.normal(ks[14], (ct,), jnp.float32) * s
    return p


def relative_embedding(rel_pos, window_size):
    coords = np.array([[i, j] for i in range(window_size) for j in range(window_size)])
    rel = coords[:, None, :] - coords[None, :, :] + window_size - 1   # (P, P, 2)
    return rel_pos[:, rel[..., 0], rel[..., 1]]                       # (nh, P, P)


def prepare_params(p, conv_dim, trans_dim, head_dim, window_size):
    """One-time, outside jit: split/reshape weights, pre-cast to bf16,
    fold attention scale into the q columns, gather the rel-pos table."""
    c = conv_dim + trans_dim
    ct = trans_dim
    scale = head_dim ** (-0.5)
    w_qkv = p["w_qkv"].at[:, :ct].multiply(scale)
    b_qkv = p["b_qkv"].at[:ct].multiply(scale)
    return dict(
        w11_c=p["w11"][:, :conv_dim].astype(jnp.bfloat16),
        b11_c=p["b11"][:conv_dim].reshape(1, conv_dim),
        w11_t=p["w11"][:, conv_dim:].astype(jnp.bfloat16),
        b11_t=p["b11"][conv_dim:].reshape(1, ct),
        w12_c=p["w12"][:conv_dim, :].astype(jnp.bfloat16),
        w12_t=p["w12"][conv_dim:, :].astype(jnp.bfloat16),
        b12=p["b12"].reshape(1, c),
        wc1=p["wc1"].reshape(9 * conv_dim, conv_dim).astype(jnp.bfloat16),
        wc2=p["wc2"].reshape(9 * conv_dim, conv_dim).astype(jnp.bfloat16),
        ln1_g=p["ln1_g"].reshape(1, ct), ln1_b=p["ln1_b"].reshape(1, ct),
        ln2_g=p["ln2_g"].reshape(1, ct), ln2_b=p["ln2_b"].reshape(1, ct),
        w_qkv=w_qkv.astype(jnp.bfloat16), b_qkv=b_qkv.reshape(1, 3 * ct),
        w_proj=p["w_proj"].astype(jnp.bfloat16), b_proj=p["b_proj"].reshape(1, ct),
        w_mlp1=p["w_mlp1"].astype(jnp.bfloat16), b_mlp1=p["b_mlp1"].reshape(1, 4 * ct),
        w_mlp2=p["w_mlp2"].astype(jnp.bfloat16), b_mlp2=p["b_mlp2"].reshape(1, ct),
        rel=relative_embedding(p["rel_pos"], window_size).astype(jnp.float32),
    )


# ------------------ forward pass ------------------

def conv_trans_block_forward(x_nchw, prm, *, conv_dim, trans_dim, head_dim, window_size):
    # drop_path = 0.0 -> Identity;  type = 'W' -> no cyclic shift / attention mask.
    # TODO(synk): 'SW' shifted-window masking branch not implemented (type='W' here).
    x = jnp.transpose(x_nchw, (0, 2, 3, 1)).astype(jnp.float32)       # -> NHWC
    B, H, W, C = x.shape
    ws = window_size
    ct = trans_dim
    nh = ct // head_dim
    assert H % ws == 0 and W % ws == 0
    N = B * H * W
    x_rows = x.reshape(N, C)

    # conv1_1 (1x1 conv) producing the two branches directly (no XLA split)
    conv_rows, trans_rows = pallas_conv1x1_split(
        x_rows, prm["w11_c"], prm["b11_c"], prm["w11_t"], prm["b11_t"])

    # ---- conv branch: conv3x3 -> ReLU -> conv3x3, + residual (halo-slab kernels) ----
    conv_x = conv_rows.reshape(B, H, W, conv_dim)
    c1_rows = pallas_conv3x3(conv_x, prm["wc1"], relu=True)
    conv_out_rows = pallas_conv3x3(c1_rows.reshape(B, H, W, conv_dim), prm["wc2"],
                                   relu=False, residual_rows=conv_rows)

    # ---- transformer branch: one fused Swin-block kernel over window chunks ----
    w1n, w2n = H // ws, W // ws
    P = ws * ws
    G = B * w1n * w2n
    # window partition (XLA-side; per-token ops commute with this permutation)
    tw = (trans_rows.reshape(B, w1n, ws, w2n, ws, ct)
          .transpose(0, 1, 3, 2, 4, 5)
          .reshape(G * P, ct))
    t_w = pallas_swin_block(tw, prm, n_heads=nh, head_dim=head_dim, P=P)
    t_rows = (t_w.reshape(B, w1n, w2n, ws, ws, ct)
              .transpose(0, 1, 3, 2, 4, 5)
              .reshape(N, ct))

    # conv1_2 (1x1 conv) over both branches, fused with the outer residual
    out_rows = pallas_conv1x1_merge(conv_out_rows, t_rows,
                                    prm["w12_c"], prm["w12_t"], prm["b12"], x_rows)
    return jnp.transpose(out_rows.reshape(B, H, W, C), (0, 3, 1, 2))   # back to NCHW


# ------------------ main ------------------

if __name__ == "__main__":
    B = 2
    conv_dim, trans_dim = 4, 4           # total channels = 8
    head_dim, window_size = 2, 4
    H = W = 16                           # input_resolution = 16 > window_size -> type 'W'

    key = jax.random.PRNGKey(0)
    kx, kp = jax.random.split(key)
    x = jax.random.normal(kx, (B, conv_dim + trans_dim, H, W), jnp.float32)  # NCHW
    raw = init_params(kp, conv_dim, trans_dim, head_dim, window_size)
    prm = prepare_params(raw, conv_dim, trans_dim, head_dim, window_size)

    fwd = jax.jit(functools.partial(
        conv_trans_block_forward,
        conv_dim=conv_dim, trans_dim=trans_dim,
        head_dim=head_dim, window_size=window_size))

    out = jax.block_until_ready(fwd(x, prm))
    assert out.shape == x.shape, out.shape
    assert bool(jnp.all(jnp.isfinite(out)))
    print("KERNEL_OK")
</pallas_src>

<mosaic_0001>
module attributes {stable_mosaic.version = 11 : i64} {
  func.func @_split_mm_kernel(%arg0: i32, %arg1: memref<256x8xf32, #tpu.memory_space<vmem>>, %arg2: memref<8x4xbf16, #tpu.memory_space<vmem>>, %arg3: memref<1x4xf32, #tpu.memory_space<vmem>>, %arg4: memref<8x4xbf16, #tpu.memory_space<vmem>>, %arg5: memref<1x4xf32, #tpu.memory_space<vmem>>, %arg6: memref<256x4xbf16, #tpu.memory_space<vmem>>, %arg7: memref<256x4xbf16, #tpu.memory_space<vmem>>) attributes {dimension_semantics = [#tpu.dimension_semantics<parallel>], iteration_bounds = array<i64: 2>, scalar_prefetch = 0 : i64, scratch_operands = 0 : i64, tpu.core_type = #tpu.core_type<tc>, window_params = [{transform_indices = @transform_0, window_bounds = array<i64: 256, 8>}, {pipeline_mode = #tpu.pipeline_mode<synchronous>, transform_indices = @transform_1, window_bounds = array<i64: 8, 4>}, {pipeline_mode = #tpu.pipeline_mode<synchronous>, transform_indices = @transform_2, window_bounds = array<i64: 1, 4>}, {pipeline_mode = #tpu.pipeline_mode<synchronous>, transform_indices = @transform_3, window_bounds = array<i64: 8, 4>}, {pipeline_mode = #tpu.pipeline_mode<synchronous>, transform_indices = @transform_4, window_bounds = array<i64: 1, 4>}, {transform_indices = @transform_5, window_bounds = array<i64: 256, 4>}, {transform_indices = @transform_6, window_bounds = array<i64: 256, 4>}]} {
    %c0 = arith.constant 0 : index
    %c0_0 = arith.constant 0 : index
    %0 = vector.load %arg1[%c0, %c0_0] : memref<256x8xf32, #tpu.memory_space<vmem>>, vector<256x8xf32>
    %1 = arith.truncf %0 : vector<256x8xf32> to vector<256x8xbf16>
    %c0_1 = arith.constant 0 : index
    %c0_2 = arith.constant 0 : index
    %2 = vector.load %arg2[%c0_1, %c0_2] : memref<8x4xbf16, #tpu.memory_space<vmem>>, vector<8x4xbf16>
    %cst = arith.constant dense<0.000000e+00> : vector<256x4xf32>
    %3 = tpu.matmul %1, %2, %cst {dimension_numbers = #tpu.dot_dimension_numbers<[1], [0], [0], [1], [0, 0, 1, 1], [], []>} : vector<256x8xbf16>, vector<8x4xbf16>, vector<256x4xf32> -> vector<256x4xf32>
    %c0_3 = arith.constant 0 : index
    %c0_4 = arith.constant 0 : index
    %4 = vector.load %arg3[%c0_3, %c0_4] : memref<1x4xf32, #tpu.memory_space<vmem>>, vector<1x4xf32>
    %5 = vector.broadcast %4 : vector<1x4xf32> to vector<256x4xf32>
    %6 = arith.addf %3, %5 : vector<256x4xf32>
    %c0_5 = arith.constant 0 : index
    %c0_6 = arith.constant 0 : index
    %7 = vector.load %arg4[%c0_5, %c0_6] : memref<8x4xbf16, #tpu.memory_space<vmem>>, vector<8x4xbf16>
    %cst_7 = arith.constant dense<0.000000e+00> : vector<256x4xf32>
    %8 = tpu.matmul %1, %7, %cst_7 {dimension_numbers = #tpu.dot_dimension_numbers<[1], [0], [0], [1], [0, 0, 1, 1], [], []>} : vector<256x8xbf16>, vector<8x4xbf16>, vector<256x4xf32> -> vector<256x4xf32>
    %c0_8 = arith.constant 0 : index
    %c0_9 = arith.constant 0 : index
    %9 = vector.load %arg5[%c0_8, %c0_9] : memref<1x4xf32, #tpu.memory_space<vmem>>, vector<1x4xf32>
    %10 = vector.broadcast %9 : vector<1x4xf32> to vector<256x4xf32>
    %11 = arith.addf %8, %10 : vector<256x4xf32>
    %12 = arith.truncf %6 : vector<256x4xf32> to vector<256x4xbf16>
    %c0_10 = arith.constant 0 : index
    %c0_11 = arith.constant 0 : index
    %13 = vector.load %arg6[%c0_10, %c0_11] : memref<256x4xbf16, #tpu.memory_space<vmem>>, vector<256x4xbf16>
    tpu.vector_store %arg6[%c0_10, %c0_11], %12 {strides = array<i32>} : memref<256x4xbf16, #tpu.memory_space<vmem>>, vector<256x4xbf16>,
    %14 = arith.truncf %11 : vector<256x4xf32> to vector<256x4xbf16>
    %c0_12 = arith.constant 0 : index
    %c0_13 = arith.constant 0 : index
    %15 = vector.load %arg7[%c0_12, %c0_13] : memref<256x4xbf16, #tpu.memory_space<vmem>>, vector<256x4xbf16>
    tpu.vector_store %arg7[%c0_12, %c0_13], %14 {strides = array<i32>} : memref<256x4xbf16, #tpu.memory_space<vmem>>, vector<256x4xbf16>,
    return
  }
  func.func @transform_0(%arg0: i32) -> (i32, i32) {
    %c0_i32 = arith.constant 0 : i32
    %c0_i32_0 = arith.constant 0 : i32
    return %arg0, %c0_i32 : i32, i32
  }
  func.func @transform_1(%arg0: i32) -> (i32, i32) {
    %c0_i32 = arith.constant 0 : i32
    %c0_i32_0 = arith.constant 0 : i32
    %c0_i32_1 = arith.constant 0 : i32
    return %c0_i32, %c0_i32_0 : i32, i32
  }
  func.func @transform_2(%arg0: i32) -> (i32, i32) {
    %c0_i32 = arith.constant 0 : i32
    %c0_i32_0 = arith.constant 0 : i32
    %c0_i32_1 = arith.constant 0 : i32
    return %c0_i32, %c0_i32_0 : i32, i32
  }
  func.func @transform_3(%arg0: i32) -> (i32, i32) {
    %c0_i32 = arith.constant 0 : i32
    %c0_i32_0 = arith.constant 0 : i32
    %c0_i32_1 = arith.constant 0 : i32
    return %c0_i32, %c0_i32_0 : i32, i32
  }
  func.func @transform_4(%arg0: i32) -> (i32, i32) {
    %c0_i32 = arith.constant 0 : i32
    %c0_i32_0 = arith.constant 0 : i32
    %c0_i32_1 = arith.constant 0 : i32
    return %c0_i32, %c0_i32_0 : i32, i32
  }
  func.func @transform_5(%arg0: i32) -> (i32, i32) {
    %c0_i32 = arith.constant 0 : i32
    %c0_i32_0 = arith.constant 0 : i32
    return %arg0, %c0_i32 : i32, i32
  }
  func.func @transform_6(%arg0: i32) -> (i32, i32) {
    %c0_i32 = arith.constant 0 : i32
    %c0_i32_0 = arith.constant 0 : i32
    return %arg0, %c0_i32 : i32, i32
  }
}

module attributes {stable_mosaic.version = 11 : i64} {
  func.func @_conv3x3_kernel(%arg0: i32, %arg1: memref<1x18x18x4xbf16, #tpu.memory_space<vmem>>, %arg2: memref<36x4xbf16, #tpu.memory_space<vmem>>, %arg3: memref<256x4xbf16, #tpu.memory_space<vmem>>) attributes {dimension_semantics = [#tpu.dimension_semantics<parallel>], iteration_bounds = array<i64: 2>, scalar_prefetch = 0 : i64, scratch_operands = 0 : i64, tpu.core_type = #tpu.core_type<tc>, window_params = [{transform_indices = @transform_0, window_bounds = array<i64: 1, 18, 18, 4>}, {pipeline_mode = #tpu.pipeline_mode<synchronous>, transform_indices = @transform_1, window_bounds = array<i64: 36, 4>}, {transform_indices = @transform_2, window_bounds = array<i64: 256, 4>}]} {
    %c0 = arith.constant 0 : index
    %c0_0 = arith.constant 0 : index
    %c0_1 = arith.constant 0 : index
    %c0_2 = arith.constant 0 : index
    %0 = vector.load %arg1[%c0, %c0_0, %c0_1, %c0_2] : memref<1x18x18x4xbf16, #tpu.memory_space<vmem>>, vector<1x16x16x4xbf16>
    %1 = vector.shape_cast %0 : vector<1x16x16x4xbf16> to vector<16x16x4xbf16>
    %c0_3 = arith.constant 0 : index
    %c0_4 = arith.constant 0 : index
    %c1 = arith.constant 1 : index
    %c0_5 = arith.constant 0 : index
    %2 = vector.load %arg1[%c0_3, %c0_4, %c1, %c0_5] : memref<1x18x18x4xbf16, #tpu.memory_space<vmem>>, vector<1x16x16x4xbf16>
    %3 = vector.shape_cast %2 : vector<1x16x16x4xbf16> to vector<16x16x4xbf16>
    %c0_6 = arith.constant 0 : index
    %c0_7 = arith.constant 0 : index
    %c2 = arith.constant 2 : index
    %c0_8 = arith.constant 0 : index
    %4 = vector.load %arg1[%c0_6, %c0_7, %c2, %c0_8] : memref<1x18x18x4xbf16, #tpu.memory_space<vmem>>, vector<1x16x16x4xbf16>
    %5 = vector.shape_cast %4 : vector<1x16x16x4xbf16> to vector<16x16x4xbf16>
    %c0_9 = arith.constant 0 : index
    %c1_10 = arith.constant 1 : index
    %c0_11 = arith.constant 0 : index
    %c0_12 = arith.constant 0 : index
    %6 = vector.load %arg1[%c0_9, %c1_10, %c0_11, %c0_12] : memref<1x18x18x4xbf16, #tpu.memory_space<vmem>>, vector<1x16x16x4xbf16>
    %7 = vector.shape_cast %6 : vector<1x16x16x4xbf16> to vector<16x16x4xbf16>
    %c0_13 = arith.constant 0 : index
    %c1_14 = arith.constant 1 : index
    %c1_15 = arith.constant 1 : index
    %c0_16 = arith.constant 0 : index
    %8 = vector.load %arg1[%c0_13, %c1_14, %c1_15, %c0_16] : memref<1x18x18x4xbf16, #tpu.memory_space<vmem>>, vector<1x16x16x4xbf16>
    %9 = vector.shape_cast %8 : vector<1x16x16x4xbf16> to vector<16x16x4xbf16>
    %c0_17 = arith.constant 0 : index
    %c1_18 = arith.constant 1 : index
    %c2_19 = arith.constant 2 : index
    %c0_20 = arith.constant 0 : index
    %10 = vector.load %arg1[%c0_17, %c1_18, %c2_19, %c0_20] : memref<1x18x18x4xbf16, #tpu.memory_space<vmem>>, vector<1x16x16x4xbf16>
    %11 = vector.shape_cast %10 : vector<1x16x16x4xbf16> to vector<16x16x4xbf16>
    %c0_21 = arith.constant 0 : index
    %c2_22 = arith.constant 2 : index
    %c0_23 = arith.constant 0 : index
    %c0_24 = arith.constant 0 : index
    %12 = vector.load %arg1[%c0_21, %c2_22, %c0_23, %c0_24] : memref<1x18x18x4xbf16, #tpu.memory_space<vmem>>, vector<1x16x16x4xbf16>
    %13 = vector.shape_cast %12 : vector<1x16x16x4xbf16> to vector<16x16x4xbf16>
    %c0_25 = arith.constant 0 : index
    %c2_26 = arith.constant 2 : index
    %c1_27 = arith.constant 1 : index
    %c0_28 = arith.constant 0 : index
    %14 = vector.load %arg1[%c0_25, %c2_26, %c1_27, %c0_28] : memref<1x18x18x4xbf16, #tpu.memory_space<vmem>>, vector<1x16x16x4xbf16>
    %15 = vector.shape_cast %14 : vector<1x16x16x4xbf16> to vector<16x16x4xbf16>
    %c0_29 = arith.constant 0 : index
    %c2_30 = arith.constant 2 : index
    %c2_31 = arith.constant 2 : index
    %c0_32 = arith.constant 0 : index
    %16 = vector.load %arg1[%c0_29, %c2_30, %c2_31, %c0_32] : memref<1x18x18x4xbf16, #tpu.memory_space<vmem>>, vector<1x16x16x4xbf16>
    %17 = vector.shape_cast %16 : vector<1x16x16x4xbf16> to vector<16x16x4xbf16>
    %18 = tpu.concatenate %1, %3, %5, %7, %9, %11, %13, %15, %17 in 2 : vector<16x16x4xbf16>, vector<16x16x4xbf16>, vector<16x16x4xbf16>, vector<16x16x4xbf16>, vector<16x16x4xbf16>, vector<16x16x4xbf16>, vector<16x16x4xbf16>, vector<16x16x4xbf16>, vector<16x16x4xbf16> -> vector<16x16x36xbf16>
    %19 = vector.shape_cast %18 : vector<16x16x36xbf16> to vector<256x36xbf16>
    %c0_33 = arith.constant 0 : index
    %c0_34 = arith.constant 0 : index
    %20 = vector.load %arg2[%c0_33, %c0_34] : memref<36x4xbf16, #tpu.memory_space<vmem>>, vector<36x4xbf16>
    %cst = arith.constant dense<0.000000e+00> : vector<256x4xf32>
    %21 = tpu.matmul %19, %20, %cst {dimension_numbers = #tpu.dot_dimension_numbers<[1], [0], [0], [1], [0, 0, 1, 1], [], []>} : vector<256x36xbf16>, vector<36x4xbf16>, vector<256x4xf32> -> vector<256x4xf32>
    %cst_35 = arith.constant 0.000000e+00 : f32
    %22 = vector.broadcast %cst_35 : f32 to vector<256x4xf32>
    %23 = arith.maximumf %21, %22 : vector<256x4xf32>
    %24 = arith.truncf %23 : vector<256x4xf32> to vector<256x4xbf16>
    %c0_36 = arith.constant 0 : index
    %c0_37 = arith.constant 0 : index
    %25 = vector.load %arg3[%c0_36, %c0_37] : memref<256x4xbf16, #tpu.memory_space<vmem>>, vector<256x4xbf16>
    tpu.vector_store %arg3[%c0_36, %c0_37], %24 {strides = array<i32>} : memref<256x4xbf16, #tpu.memory_space<vmem>>, vector<256x4xbf16>,
    return
  }
  func.func @transform_0(%arg0: i32) -> (i32, i32, i32, i32) {
    %c0_i32 = arith.constant 0 : i32
    %c0_i32_0 = arith.constant 0 : i32
    %c0_i32_1 = arith.constant 0 : i32
    %c0_i32_2 = arith.constant 0 : i32
    return %arg0, %c0_i32, %c0_i32_0, %c0_i32_1 : i32, i32, i32, i32
  }
  func.func @transform_1(%arg0: i32) -> (i32, i32) {
    %c0_i32 = arith.constant 0 : i32
    %c0_i32_0 = arith.constant 0 : i32
    %c0_i32_1 = arith.constant 0 : i32
    return %c0_i32, %c0_i32_0 : i32, i32
  }
  func.func @transform_2(%arg0: i32) -> (i32, i32) {
    %c0_i32 = arith.constant 0 : i32
    %c0_i32_0 = arith.constant 0 : i32
    return %arg0, %c0_i32 : i32, i32
  }
}

module attributes {stable_mosaic.version = 11 : i64} {
  func.func @_conv3x3_kernel(%arg0: i32, %arg1: memref<1x18x18x4xbf16, #tpu.memory_space<vmem>>, %arg2: memref<36x4xbf16, #tpu.memory_space<vmem>>, %arg3: memref<256x4xbf16, #tpu.memory_space<vmem>>, %arg4: memref<256x4xbf16, #tpu.memory_space<vmem>>) attributes {dimension_semantics = [#tpu.dimension_semantics<parallel>], iteration_bounds = array<i64: 2>, scalar_prefetch = 0 : i64, scratch_operands = 0 : i64, tpu.core_type = #tpu.core_type<tc>, window_params = [{transform_indices = @transform_0, window_bounds = array<i64: 1, 18, 18, 4>}, {pipeline_mode = #tpu.pipeline_mode<synchronous>, transform_indices = @transform_1, window_bounds = array<i64: 36, 4>}, {transform_indices = @transform_2, window_bounds = array<i64: 256, 4>}, {transform_indices = @transform_3, window_bounds = array<i64: 256, 4>}]} {
    %c0 = arith.constant 0 : index
    %c0_0 = arith.constant 0 : index
    %c0_1 = arith.constant 0 : index
    %c0_2 = arith.constant 0 : index
    %0 = vector.load %arg1[%c0, %c0_0, %c0_1, %c0_2] : memref<1x18x18x4xbf16, #tpu.memory_space<vmem>>, vector<1x16x16x4xbf16>
    %1 = vector.shape_cast %0 : vector<1x16x16x4xbf16> to vector<16x16x4xbf16>
    %c0_3 = arith.constant 0 : index
    %c0_4 = arith.constant 0 : index
    %c1 = arith.constant 1 : index
    %c0_5 = arith.constant 0 : index
    %2 = vector.load %arg1[%c0_3, %c0_4, %c1, %c0_5] : memref<1x18x18x4xbf16, #tpu.memory_space<vmem>>, vector<1x16x16x4xbf16>
    %3 = vector.shape_cast %2 : vector<1x16x16x4xbf16> to vector<16x16x4xbf16>
    %c0_6 = arith.constant 0 : index
    %c0_7 = arith.constant 0 : index
    %c2 = arith.constant 2 : index
    %c0_8 = arith.constant 0 : index
    %4 = vector.load %arg1[%c0_6, %c0_7, %c2, %c0_8] : memref<1x18x18x4xbf16, #tpu.memory_space<vmem>>, vector<1x16x16x4xbf16>
    %5 = vector.shape_cast %4 : vector<1x16x16x4xbf16> to vector<16x16x4xbf16>
    %c0_9 = arith.constant 0 : index
    %c1_10 = arith.constant 1 : index
    %c0_11 = arith.constant 0 : index
    %c0_12 = arith.constant 0 : index
    %6 = vector.load %arg1[%c0_9, %c1_10, %c0_11, %c0_12] : memref<1x18x18x4xbf16, #tpu.memory_space<vmem>>, vector<1x16x16x4xbf16>
    %7 = vector.shape_cast %6 : vector<1x16x16x4xbf16> to vector<16x16x4xbf16>
    %c0_13 = arith.constant 0 : index
    %c1_14 = arith.constant 1 : index
    %c1_15 = arith.constant 1 : index
    %c0_16 = arith.constant 0 : index
    %8 = vector.load %arg1[%c0_13, %c1_14, %c1_15, %c0_16] : memref<1x18x18x4xbf16, #tpu.memory_space<vmem>>, vector<1x16x16x4xbf16>
    %9 = vector.shape_cast %8 : vector<1x16x16x4xbf16> to vector<16x16x4xbf16>
    %c0_17 = arith.constant 0 : index
    %c1_18 = arith.constant 1 : index
    %c2_19 = arith.constant 2 : index
    %c0_20 = arith.constant 0 : index
    %10 = vector.load %arg1[%c0_17, %c1_18, %c2_19, %c0_20] : memref<1x18x18x4xbf16, #tpu.memory_space<vmem>>, vector<1x16x16x4xbf16>
    %11 = vector.shape_cast %10 : vector<1x16x16x4xbf16> to vector<16x16x4xbf16>
    %c0_21 = arith.constant 0 : index
    %c2_22 = arith.constant 2 : index
    %c0_23 = arith.constant 0 : index
    %c0_24 = arith.constant 0 : index
    %12 = vector.load %arg1[%c0_21, %c2_22, %c0_23, %c0_24] : memref<1x18x18x4xbf16, #tpu.memory_space<vmem>>, vector<1x16x16x4xbf16>
    %13 = vector.shape_cast %12 : vector<1x16x16x4xbf16> to vector<16x16x4xbf16>
    %c0_25 = arith.constant 0 : index
    %c2_26 = arith.constant 2 : index
    %c1_27 = arith.constant 1 : index
    %c0_28 = arith.constant 0 : index
    %14 = vector.load %arg1[%c0_25, %c2_26, %c1_27, %c0_28] : memref<1x18x18x4xbf16, #tpu.memory_space<vmem>>, vector<1x16x16x4xbf16>
    %15 = vector.shape_cast %14 : vector<1x16x16x4xbf16> to vector<16x16x4xbf16>
    %c0_29 = arith.constant 0 : index
    %c2_30 = arith.constant 2 : index
    %c2_31 = arith.constant 2 : index
    %c0_32 = arith.constant 0 : index
    %16 = vector.load %arg1[%c0_29, %c2_30, %c2_31, %c0_32] : memref<1x18x18x4xbf16, #tpu.memory_space<vmem>>, vector<1x16x16x4xbf16>
    %17 = vector.shape_cast %16 : vector<1x16x16x4xbf16> to vector<16x16x4xbf16>
    %18 = tpu.concatenate %1, %3, %5, %7, %9, %11, %13, %15, %17 in 2 : vector<16x16x4xbf16>, vector<16x16x4xbf16>, vector<16x16x4xbf16>, vector<16x16x4xbf16>, vector<16x16x4xbf16>, vector<16x16x4xbf16>, vector<16x16x4xbf16>, vector<16x16x4xbf16>, vector<16x16x4xbf16> -> vector<16x16x36xbf16>
    %19 = vector.shape_cast %18 : vector<16x16x36xbf16> to vector<256x36xbf16>
    %c0_33 = arith.constant 0 : index
    %c0_34 = arith.constant 0 : index
    %20 = vector.load %arg2[%c0_33, %c0_34] : memref<36x4xbf16, #tpu.memory_space<vmem>>, vector<36x4xbf16>
    %cst = arith.constant dense<0.000000e+00> : vector<256x4xf32>
    %21 = tpu.matmul %19, %20, %cst {dimension_numbers = #tpu.dot_dimension_numbers<[1], [0], [0], [1], [0, 0, 1, 1], [], []>} : vector<256x36xbf16>, vector<36x4xbf16>, vector<256x4xf32> -> vector<256x4xf32>
    %c0_35 = arith.constant 0 : index
    %c0_36 = arith.constant 0 : index
    %22 = vector.load %arg3[%c0_35, %c0_36] : memref<256x4xbf16, #tpu.memory_space<vmem>>, vector<256x4xbf16>
    %23 = arith.extf %22 : vector<256x4xbf16> to vector<256x4xf32>
    %24 = arith.addf %21, %23 : vector<256x4xf32>
    %25 = arith.truncf %24 : vector<256x4xf32> to vector<256x4xbf16>
    %c0_37 = arith.constant 0 : index
    %c0_38 = arith.constant 0 : index
    %26 = vector.load %arg4[%c0_37, %c0_38] : memref<256x4xbf16, #tpu.memory_space<vmem>>, vector<256x4xbf16>
    tpu.vector_store %arg4[%c0_37, %c0_38], %25 {strides = array<i32>} : memref<256x4xbf16, #tpu.memory_space<vmem>>, vector<256x4xbf16>,
    return
  }
  func.func @transform_0(%arg0: i32) -> (i32, i32, i32, i32) {
    %c0_i32 = arith.constant 0 : i32
    %c0_i32_0 = arith.constant 0 : i32
    %c0_i32_1 = arith.constant 0 : i32
    %c0_i32_2 = arith.constant 0 : i32
    return %arg0, %c0_i32, %c0_i32_0, %c0_i32_1 : i32, i32, i32, i32
  }
  func.func @transform_1(%arg0: i32) -> (i32, i32) {
    %c0_i32 = arith.constant 0 : i32
    %c0_i32_0 = arith.constant 0 : i32
    %c0_i32_1 = arith.constant 0 : i32
    return %c0_i32, %c0_i32_0 : i32, i32
  }
  func.func @transform_2(%arg0: i32) -> (i32, i32) {
    %c0_i32 = arith.constant 0 : i32
    %c0_i32_0 = arith.constant 0 : i32
    return %arg0, %c0_i32 : i32, i32
  }
  func.func @transform_3(%arg0: i32) -> (i32, i32) {
    %c0_i32 = arith.constant 0 : i32
    %c0_i32_0 = arith.constant 0 : i32
    return %arg0, %c0_i32 : i32, i32
  }
}

module attributes {stable_mosaic.version = 11 : i64} {
  func.func @_swin_block_kernel(%arg0: i32, %arg1: memref<128x4xbf16, #tpu.memory_space<vmem>>, %arg2: memref<1x4xf32, #tpu.memory_space<vmem>>, %arg3: memref<1x4xf32, #tpu.memory_space<vmem>>, %arg4: memref<4x12xbf16, #tpu.memory_space<vmem>>, %arg5: memref<1x12xf32, #tpu.memory_space<vmem>>, %arg6: memref<2x16x16xf32, #tpu.memory_space<vmem>>, %arg7: memref<4x4xbf16, #tpu.memory_space<vmem>>, %arg8: memref<1x4xf32, #tpu.memory_space<vmem>>, %arg9: memref<1x4xf32, #tpu.memory_space<vmem>>, %arg10: memref<1x4xf32, #tpu.memory_space<vmem>>, %arg11: memref<4x16xbf16, #tpu.memory_space<vmem>>, %arg12: memref<1x16xf32, #tpu.memory_space<vmem>>, %arg13: memref<16x4xbf16, #tpu.memory_space<vmem>>, %arg14: memref<1x4xf32, #tpu.memory_space<vmem>>, %arg15: memref<128x4xbf16, #tpu.memory_space<vmem>>) attributes {dimension_semantics = [#tpu.dimension_semantics<parallel>], iteration_bounds = array<i64: 4>, scalar_prefetch = 0 : i64, scratch_operands = 0 : i64, tpu.core_type = #tpu.core_type<tc>, window_params = [{transform_indices = @transform_0, window_bounds = array<i64: 128, 4>}, {pipeline_mode = #tpu.pipeline_mode<synchronous>, transform_indices = @transform_1, window_bounds = array<i64: 1, 4>}, {pipeline_mode = #tpu.pipeline_mode<synchronous>, transform_indices = @transform_2, window_bounds = array<i64: 1, 4>}, {pipeline_mode = #tpu.pipeline_mode<synchronous>, transform_indices = @transform_3, window_bounds = array<i64: 4, 12>}, {pipeline_mode = #tpu.pipeline_mode<synchronous>, transform_indices = @transform_4, window_bounds = array<i64: 1, 12>}, {pipeline_mode = #tpu.pipeline_mode<synchronous>, transform_indices = @transform_5, window_bounds = array<i64: 2, 16, 16>}, {pipeline_mode = #tpu.pipeline_mode<synchronous>, transform_indices = @transform_6, window_bounds = array<i64: 4, 4>}, {pipeline_mode = #tpu.pipeline_mode<synchronous>, transform_indices = @transform_7, window_bounds = array<i64: 1, 4>}, {pipeline_mode = #tpu.pipeline_mode<synchronous>, transform_indices = @transform_8, window_bounds = array<i64: 1, 4>}, {pipeline_mode = #tpu.pipeline_mode<synchronous>, transform_indices = @transform_9, window_bounds = array<i64: 1, 4>}, {pipeline_mode = #tpu.pipeline_mode<synchronous>, transform_indices = @transform_10, window_bounds = array<i64: 4, 16>}, {pipeline_mode = #tpu.pipeline_mode<synchronous>, transform_indices = @transform_11, window_bounds = array<i64: 1, 16>}, {pipeline_mode = #tpu.pipeline_mode<synchronous>, transform_indices = @transform_12, window_bounds = array<i64: 16, 4>}, {pipeline_mode = #tpu.pipeline_mode<synchronous>, transform_indices = @transform_13, window_bounds = array<i64: 1, 4>}, {transform_indices = @transform_14, window_bounds = array<i64: 128, 4>}]} {
    %c0 = arith.constant 0 : index
    %c0_0 = arith.constant 0 : index
    %0 = vector.load %arg1[%c0, %c0_0] : memref<128x4xbf16, #tpu.memory_space<vmem>>, vector<128x4xbf16>
    %1 = arith.extf %0 : vector<128x4xbf16> to vector<128x4xf32>
    %cst = arith.constant dense<0.000000e+00> : vector<128xf32>
    %2 = vector.multi_reduction <add>, %1, %cst [1] : vector<128x4xf32> to vector<128xf32>
    %3 = vector.shape_cast %2 : vector<128xf32> to vector<128x1xf32>
    %cst_1 = arith.constant 4.000000e+00 : f32
    %4 = vector.broadcast %cst_1 : f32 to vector<128x1xf32>
    %5 = arith.divf %3, %4 : vector<128x1xf32>
    %6 = vector.broadcast %5 : vector<128x1xf32> to vector<128x4xf32>
    %7 = arith.subf %1, %6 : vector<128x4xf32>
    %8 = arith.mulf %7, %7 : vector<128x4xf32>
    %cst_2 = arith.constant dense<0.000000e+00> : vector<128xf32>
    %9 = vector.multi_reduction <add>, %8, %cst_2 [1] : vector<128x4xf32> to vector<128xf32>
    %10 = vector.shape_cast %9 : vector<128xf32> to vector<128x1xf32>
    %cst_3 = arith.constant 4.000000e+00 : f32
    %11 = vector.broadcast %cst_3 : f32 to vector<128x1xf32>
    %12 = arith.divf %10, %11 : vector<128x1xf32>
    %cst_4 = arith.constant 9.99999974E-6 : f32
    %13 = vector.broadcast %cst_4 : f32 to vector<128x1xf32>
    %14 = arith.addf %12, %13 : vector<128x1xf32>
    %15 = math.rsqrt %14 : vector<128x1xf32>
    %16 = vector.broadcast %15 : vector<128x1xf32> to vector<128x4xf32>
    %17 = arith.mulf %7, %16 : vector<128x4xf32>
    %c0_5 = arith.constant 0 : index
    %c0_6 = arith.constant 0 : index
    %18 = vector.load %arg2[%c0_5, %c0_6] : memref<1x4xf32, #tpu.memory_space<vmem>>, vector<1x4xf32>
    %19 = vector.broadcast %18 : vector<1x4xf32> to vector<128x4xf32>
    %20 = arith.mulf %17, %19 : vector<128x4xf32>
    %c0_7 = arith.constant 0 : index
    %c0_8 = arith.constant 0 : index
    %21 = vector.load %arg3[%c0_7, %c0_8] : memref<1x4xf32, #tpu.memory_space<vmem>>, vector<1x4xf32>
    %22 = vector.broadcast %21 : vector<1x4xf32> to vector<128x4xf32>
    %23 = arith.addf %20, %22 : vector<128x4xf32>
    %24 = arith.truncf %23 : vector<128x4xf32> to vector<128x4xbf16>
    %c0_9 = arith.constant 0 : index
    %c0_10 = arith.constant 0 : index
    %25 = vector.load %arg4[%c0_9, %c0_10] : memref<4x12xbf16, #tpu.memory_space<vmem>>, vector<4x12xbf16>
    %cst_11 = arith.constant dense<0.000000e+00> : vector<128x12xf32>
    %26 = tpu.matmul %24, %25, %cst_11 {dimension_numbers = #tpu.dot_dimension_numbers<[1], [0], [0], [1], [0, 0, 1, 1], [], []>} : vector<128x4xbf16>, vector<4x12xbf16>, vector<128x12xf32> -> vector<128x12xf32>
    %c0_12 = arith.constant 0 : index
    %c0_13 = arith.constant 0 : index
    %27 = vector.load %arg5[%c0_12, %c0_13] : memref<1x12xf32, #tpu.memory_space<vmem>>, vector<1x12xf32>
    %28 = vector.broadcast %27 : vector<1x12xf32> to vector<128x12xf32>
    %29 = arith.addf %26, %28 : vector<128x12xf32>
    %30 = vector.shape_cast %29 : vector<128x12xf32> to vector<8x16x12xf32>
    %31 = vector.extract_strided_slice %30 {offsets = [0, 0, 0], sizes = [8, 16, 2], strides = [1, 1, 1]} : vector<8x16x12xf32> to vector<8x16x2xf32>
    %32 = arith.truncf %31 : vector<8x16x2xf32> to vector<8x16x2xbf16>
    %33 = vector.extract_strided_slice %30 {offsets = [0, 0, 4], sizes = [8, 16, 2], strides = [1, 1, 1]} : vector<8x16x12xf32> to vector<8x16x2xf32>
    %34 = arith.truncf %33 : vector<8x16x2xf32> to vector<8x16x2xbf16>
    %35 = vector.extract_strided_slice %30 {offsets = [0, 0, 8], sizes = [8, 16, 2], strides = [1, 1, 1]} : vector<8x16x12xf32> to vector<8x16x2xf32>
    %36 = arith.truncf %35 : vector<8x16x2xf32> to vector<8x16x2xbf16>
    "tpu.trace_start"() <{level = 10 : i32, message = "bpc,bqc->bpq"}> : () -> ()
    %cst_14 = arith.constant dense<0.000000e+00> : vector<8x16x16xf32>
    %37 = tpu.matmul %32, %34, %cst_14 {dimension_numbers = #tpu.dot_dimension_numbers<[2], [2], [1], [1], [0, 0, 0, 1, 1, 1], [0], [0]>} : vector<8x16x2xbf16>, vector<8x16x2xbf16>, vector<8x16x16xf32> -> vector<8x16x16xf32>
    "tpu.trace_stop"() : () -> ()
    %c0_15 = arith.constant 0 : index
    %c0_16 = arith.constant 0 : index
    %c0_17 = arith.constant 0 : index
    %38 = vector.load %arg6[%c0_15, %c0_16, %c0_17] : memref<2x16x16xf32, #tpu.memory_space<vmem>>, vector<1x16x16xf32>
    %39 = vector.shape_cast %38 : vector<1x16x16xf32> to vector<16x16xf32>
    %40 = vector.shape_cast %39 : vector<16x16xf32> to vector<1x16x16xf32>
    %41 = vector.broadcast %40 : vector<1x16x16xf32> to vector<8x16x16xf32>
    %42 = arith.addf %37, %41 : vector<8x16x16xf32>
    %cst_18 = arith.constant dense<0xFF800000> : vector<8x16xf32>
    %43 = vector.multi_reduction <maximumf>, %42, %cst_18 [2] : vector<8x16x16xf32> to vector<8x16xf32>
    %44 = vector.shape_cast %43 : vector<8x16xf32> to vector<8x16x1xf32>
    %45 = vector.broadcast %44 : vector<8x16x1xf32> to vector<8x16x16xf32>
    %46 = arith.subf %42, %45 : vector<8x16x16xf32>
    %47 = math.exp %46 : vector<8x16x16xf32>
    %cst_19 = arith.constant dense<0.000000e+00> : vector<8x16xf32>
    %48 = vector.multi_reduction <add>, %47, %cst_19 [2] : vector<8x16x16xf32> to vector<8x16xf32>
    %49 = vector.shape_cast %48 : vector<8x16xf32> to vector<8x16x1xf32>
    %50 = tpu.reciprocal %49 {approx = true} : vector<8x16x1xf32> -> vector<8x16x1xf32>
    %51 = vector.broadcast %50 : vector<8x16x1xf32> to vector<8x16x16xf32>
    %52 = arith.mulf %47, %51 : vector<8x16x16xf32>
    %53 = arith.truncf %52 : vector<8x16x16xf32> to vector<8x16x16xbf16>
    "tpu.trace_start"() <{level = 10 : i32, message = "bpq,bqc->bpc"}> : () -> ()
    %cst_20 = arith.constant dense<0.000000e+00> : vector<8x16x2xf32>
    %54 = tpu.matmul %53, %36, %cst_20 {dimension_numbers = #tpu.dot_dimension_numbers<[2], [1], [1], [2], [0, 0, 0, 1, 1, 2], [0], [0]>} : vector<8x16x16xbf16>, vector<8x16x2xbf16>, vector<8x16x2xf32> -> vector<8x16x2xf32>
    "tpu.trace_stop"() : () -> ()
    %55 = vector.extract_strided_slice %30 {offsets = [0, 0, 2], sizes = [8, 16, 2], strides = [1, 1, 1]} : vector<8x16x12xf32> to vector<8x16x2xf32>
    %56 = arith.truncf %55 : vector<8x16x2xf32> to vector<8x16x2xbf16>
    %57 = vector.extract_strided_slice %30 {offsets = [0, 0, 6], sizes = [8, 16, 2], strides = [1, 1, 1]} : vector<8x16x12xf32> to vector<8x16x2xf32>
    %58 = arith.truncf %57 : vector<8x16x2xf32> to vector<8x16x2xbf16>
    %59 = vector.extract_strided_slice %30 {offsets = [0, 0, 10], sizes = [8, 16, 2], strides = [1, 1, 1]} : vector<8x16x12xf32> to vector<8x16x2xf32>
    %60 = arith.truncf %59 : vector<8x16x2xf32> to vector<8x16x2xbf16>
    "tpu.trace_start"() <{level = 10 : i32, message = "bpc,bqc->bpq"}> : () -> ()
    %cst_21 = arith.constant dense<0.000000e+00> : vector<8x16x16xf32>
    %61 = tpu.matmul %56, %58, %cst_21 {dimension_numbers = #tpu.dot_dimension_numbers<[2], [2], [1], [1], [0, 0, 0, 1, 1, 1], [0], [0]>} : vector<8x16x2xbf16>, vector<8x16x2xbf16>, vector<8x16x16xf32> -> vector<8x16x16xf32>
    "tpu.trace_stop"() : () -> ()
    %c1 = arith.constant 1 : index
    %c0_22 = arith.constant 0 : index
    %c0_23 = arith.constant 0 : index
    %62 = vector.load %arg6[%c1, %c0_22, %c0_23] : memref<2x16x16xf32, #tpu.memory_space<vmem>>, vector<1x16x16xf32>
    %63 = vector.shape_cast %62 : vector<1x16x16xf32> to vector<16x16xf32>
    %64 = vector.shape_cast %63 : vector<16x16xf32> to vector<1x16x16xf32>
    %65 = vector.broadcast %64 : vector<1x16x16xf32> to vector<8x16x16xf32>
    %66 = arith.addf %61, %65 : vector<8x16x16xf32>
    %cst_24 = arith.constant dense<0xFF800000> : vector<8x16xf32>
    %67 = vector.multi_reduction <maximumf>, %66, %cst_24 [2] : vector<8x16x16xf32> to vector<8x16xf32>
    %68 = vector.shape_cast %67 : vector<8x16xf32> to vector<8x16x1xf32>
    %69 = vector.broadcast %68 : vector<8x16x1xf32> to vector<8x16x16xf32>
    %70 = arith.subf %66, %69 : vector<8x16x16xf32>
    %71 = math.exp %70 : vector<8x16x16xf32>
    %cst_25 = arith.constant dense<0.000000e+00> : vector<8x16xf32>
    %72 = vector.multi_reduction <add>, %71, %cst_25 [2] : vector<8x16x16xf32> to vector<8x16xf32>
    %73 = vector.shape_cast %72 : vector<8x16xf32> to vector<8x16x1xf32>
    %74 = tpu.reciprocal %73 {approx = true} : vector<8x16x1xf32> -> vector<8x16x1xf32>
    %75 = vector.broadcast %74 : vector<8x16x1xf32> to vector<8x16x16xf32>
    %76 = arith.mulf %71, %75 : vector<8x16x16xf32>
    %77 = arith.truncf %76 : vector<8x16x16xf32> to vector<8x16x16xbf16>
    "tpu.trace_start"() <{level = 10 : i32, message = "bpq,bqc->bpc"}> : () -> ()
    %cst_26 = arith.constant dense<0.000000e+00> : vector<8x16x2xf32>
    %78 = tpu.matmul %77, %60, %cst_26 {dimension_numbers = #tpu.dot_dimension_numbers<[2], [1], [1], [2], [0, 0, 0, 1, 1, 2], [0], [0]>} : vector<8x16x16xbf16>, vector<8x16x2xbf16>, vector<8x16x2xf32> -> vector<8x16x2xf32>
    "tpu.trace_stop"() : () -> ()
    %79 = tpu.concatenate %54, %78 in 2 : vector<8x16x2xf32>, vector<8x16x2xf32> -> vector<8x16x4xf32>
    %80 = vector.shape_cast %79 : vector<8x16x4xf32> to vector<128x4xf32>
    %81 = arith.truncf %80 : vector<128x4xf32> to vector<128x4xbf16>
    %c0_27 = arith.constant 0 : index
    %c0_28 = arith.constant 0 : index
    %82 = vector.load %arg7[%c0_27, %c0_28] : memref<4x4xbf16, #tpu.memory_space<vmem>>, vector<4x4xbf16>
    %cst_29 = arith.constant dense<0.000000e+00> : vector<128x4xf32>
    %83 = tpu.matmul %81, %82, %cst_29 {dimension_numbers = #tpu.dot_dimension_numbers<[1], [0], [0], [1], [0, 0, 1, 1], [], []>} : vector<128x4xbf16>, vector<4x4xbf16>, vector<128x4xf32> -> vector<128x4xf32>
    %84 = arith.addf %1, %83 : vector<128x4xf32>
    %c0_30 = arith.constant 0 : index
    %c0_31 = arith.constant 0 : index
    %85 = vector.load %arg8[%c0_30, %c0_31] : memref<1x4xf32, #tpu.memory_space<vmem>>, vector<1x4xf32>
    %86 = vector.broadcast %85 : vector<1x4xf32> to vector<128x4xf32>
    %87 = arith.addf %84, %86 : vector<128x4xf32>
    %cst_32 = arith.constant dense<0.000000e+00> : vector<128xf32>
    %88 = vector.multi_reduction <add>, %87, %cst_32 [1] : vector<128x4xf32> to vector<128xf32>
    %89 = vector.shape_cast %88 : vector<128xf32> to vector<128x1xf32>
    %cst_33 = arith.constant 4.000000e+00 : f32
    %90 = vector.broadcast %cst_33 : f32 to vector<128x1xf32>
    %91 = arith.divf %89, %90 : vector<128x1xf32>
    %92 = vector.broadcast %91 : vector<128x1xf32> to vector<128x4xf32>
    %93 = arith.subf %87, %92 : vector<128x4xf32>
    %94 = arith.mulf %93, %93 : vector<128x4xf32>
    %cst_34 = arith.constant dense<0.000000e+00> : vector<128xf32>
    %95 = vector.multi_reduction <add>, %94, %cst_34 [1] : vector<128x4xf32> to vector<128xf32>
    %96 = vector.shape_cast %95 : vector<128xf32> to vector<128x1xf32>
    %cst_35 = arith.constant 4.000000e+00 : f32
    %97 = vector.broadcast %cst_35 : f32 to vector<128x1xf32>
    %98 = arith.divf %96, %97 : vector<128x1xf32>
    %cst_36 = arith.constant 9.99999974E-6 : f32
    %99 = vector.broadcast %cst_36 : f32 to vector<128x1xf32>
    %100 = arith.addf %98, %99 : vector<128x1xf32>
    %101 = math.rsqrt %100 : vector<128x1xf32>
    %102 = vector.broadcast %101 : vector<128x1xf32> to vector<128x4xf32>
    %103 = arith.mulf %93, %102 : vector<128x4xf32>
    %c0_37 = arith.constant 0 : index
    %c0_38 = arith.constant 0 : index
    %104 = vector.load %arg9[%c0_37, %c0_38] : memref<1x4xf32, #tpu.memory_space<vmem>>, vector<1x4xf32>
    %105 = vector.broadcast %104 : vector<1x4xf32> to vector<128x4xf32>
    %106 = arith.mulf %103, %105 : vector<128x4xf32>
    %c0_39 = arith.constant 0 : index
    %c0_40 = arith.constant 0 : index
    %107 = vector.load %arg10[%c0_39, %c0_40] : memref<1x4xf32, #tpu.memory_space<vmem>>, vector<1x4xf32>
    %108 = vector.broadcast %107 : vector<1x4xf32> to vector<128x4xf32>
    %109 = arith.addf %106, %108 : vector<128x4xf32>
    %110 = arith.truncf %109 : vector<128x4xf32> to vector<128x4xbf16>
    %c0_41 = arith.constant 0 : index
    %c0_42 = arith.constant 0 : index
    %111 = vector.load %arg11[%c0_41, %c0_42] : memref<4x16xbf16, #tpu.memory_space<vmem>>, vector<4x16xbf16>
    %cst_43 = arith.constant dense<0.000000e+00> : vector<128x16xf32>
    %112 = tpu.matmul %110, %111, %cst_43 {dimension_numbers = #tpu.dot_dimension_numbers<[1], [0], [0], [1], [0, 0, 1, 1], [], []>} : vector<128x4xbf16>, vector<4x16xbf16>, vector<128x16xf32> -> vector<128x16xf32>
    %c0_44 = arith.constant 0 : index
    %c0_45 = arith.constant 0 : index
    %113 = vector.load %arg12[%c0_44, %c0_45] : memref<1x16xf32, #tpu.memory_space<vmem>>, vector<1x16xf32>
    %114 = vector.broadcast %113 : vector<1x16xf32> to vector<128x16xf32>
    %115 = arith.addf %112, %114 : vector<128x16xf32>
    %cst_46 = arith.constant 5.000000e-01 : f32
    %116 = vector.broadcast %cst_46 : f32 to vector<128x16xf32>
    %117 = arith.mulf %116, %115 : vector<128x16xf32>
    %cst_47 = arith.constant 0.707106769 : f32
    %118 = vector.broadcast %cst_47 : f32 to vector<128x16xf32>
    %119 = arith.mulf %115, %118 : vector<128x16xf32>
    %120 = math.erf %119 : vector<128x16xf32>
    %cst_48 = arith.constant 1.000000e+00 : f32
    %121 = vector.broadcast %cst_48 : f32 to vector<128x16xf32>
    %122 = arith.addf %121, %120 : vector<128x16xf32>
    %123 = arith.mulf %117, %122 : vector<128x16xf32>
    %124 = arith.truncf %123 : vector<128x16xf32> to vector<128x16xbf16>
    %c0_49 = arith.constant 0 : index
    %c0_50 = arith.constant 0 : index
    %125 = vector.load %arg13[%c0_49, %c0_50] : memref<16x4xbf16, #tpu.memory_space<vmem>>, vector<16x4xbf16>
    %cst_51 = arith.constant dense<0.000000e+00> : vector<128x4xf32>
    %126 = tpu.matmul %124, %125, %cst_51 {dimension_numbers = #tpu.dot_dimension_numbers<[1], [0], [0], [1], [0, 0, 1, 1], [], []>} : vector<128x16xbf16>, vector<16x4xbf16>, vector<128x4xf32> -> vector<128x4xf32>
    %c0_52 = arith.constant 0 : index
    %c0_53 = arith.constant 0 : index
    %127 = vector.load %arg14[%c0_52, %c0_53] : memref<1x4xf32, #tpu.memory_space<vmem>>, vector<1x4xf32>
    %128 = vector.broadcast %127 : vector<1x4xf32> to vector<128x4xf32>
    %129 = arith.addf %126, %128 : vector<128x4xf32>
    %130 = arith.addf %87, %129 : vector<128x4xf32>
    %131 = arith.truncf %130 : vector<128x4xf32> to vector<128x4xbf16>
    %c0_54 = arith.constant 0 : index
    %c0_55 = arith.constant 0 : index
    %132 = vector.load %arg15[%c0_54, %c0_55] : memref<128x4xbf16, #tpu.memory_space<vmem>>, vector<128x4xbf16>
    tpu.vector_store %arg15[%c0_54, %c0_55], %131 {strides = array<i32>} : memref<128x4xbf16, #tpu.memory_space<vmem>>, vector<128x4xbf16>,
    return
  }
  func.func @transform_0(%arg0: i32) -> (i32, i32) {
    %c0_i32 = arith.constant 0 : i32
    %c0_i32_0 = arith.constant 0 : i32
    return %arg0, %c0_i32 : i32, i32
  }
  func.func @transform_1(%arg0: i32) -> (i32, i32) {
    %c0_i32 = arith.constant 0 : i32
    %c0_i32_0 = arith.constant 0 : i32
    %c0_i32_1 = arith.constant 0 : i32
    return %c0_i32, %c0_i32_0 : i32, i32
  }
  func.func @transform_2(%arg0: i32) -> (i32, i32) {
    %c0_i32 = arith.constant 0 : i32
    %c0_i32_0 = arith.constant 0 : i32
    %c0_i32_1 = arith.constant 0 : i32
    return %c0_i32, %c0_i32_0 : i32, i32
  }
  func.func @transform_3(%arg0: i32) -> (i32, i32) {
    %c0_i32 = arith.constant 0 : i32
    %c0_i32_0 = arith.constant 0 : i32
    %c0_i32_1 = arith.constant 0 : i32
    return %c0_i32, %c0_i32_0 : i32, i32
  }
  func.func @transform_4(%arg0: i32) -> (i32, i32) {
    %c0_i32 = arith.constant 0 : i32
    %c0_i32_0 = arith.constant 0 : i32
    %c0_i32_1 = arith.constant 0 : i32
    return %c0_i32, %c0_i32_0 : i32, i32
  }
  func.func @transform_5(%arg0: i32) -> (i32, i32, i32) {
    %c0_i32 = arith.constant 0 : i32
    %c0_i32_0 = arith.constant 0 : i32
    %c0_i32_1 = arith.constant 0 : i32
    %c0_i32_2 = arith.constant 0 : i32
    return %c0_i32, %c0_i32_0, %c0_i32_1 : i32, i32, i32
  }
  func.func @transform_6(%arg0: i32) -> (i32, i32) {
    %c0_i32 = arith.constant 0 : i32
    %c0_i32_0 = arith.constant 0 : i32
    %c0_i32_1 = arith.constant 0 : i32
    return %c0_i32, %c0_i32_0 : i32, i32
  }
  func.func @transform_7(%arg0: i32) -> (i32, i32) {
    %c0_i32 = arith.constant 0 : i32
    %c0_i32_0 = arith.constant 0 : i32
    %c0_i32_1 = arith.constant 0 : i32
    return %c0_i32, %c0_i32_0 : i32, i32
  }
  func.func @transform_8(%arg0: i32) -> (i32, i32) {
    %c0_i32 = arith.constant 0 : i32
    %c0_i32_0 = arith.constant 0 : i32
    %c0_i32_1 = arith.constant 0 : i32
    return %c0_i32, %c0_i32_0 : i32, i32
  }
  func.func @transform_9(%arg0: i32) -> (i32, i32) {
    %c0_i32 = arith.constant 0 : i32
    %c0_i32_0 = arith.constant 0 : i32
    %c0_i32_1 = arith.constant 0 : i32
    return %c0_i32, %c0_i32_0 : i32, i32
  }
  func.func @transform_10(%arg0: i32) -> (i32, i32) {
    %c0_i32 = arith.constant 0 : i32
    %c0_i32_0 = arith.constant 0 : i32
    %c0_i32_1 = arith.constant 0 : i32
    return %c0_i32, %c0_i32_0 : i32, i32
  }
  func.func @transform_11(%arg0: i32) -> (i32, i32) {
    %c0_i32 = arith.constant 0 : i32
    %c0_i32_0 = arith.constant 0 : i32
    %c0_i32_1 = arith.constant 0 : i32
    return %c0_i32, %c0_i32_0 : i32, i32
  }
  func.func @transform_12(%arg0: i32) -> (i32, i32) {
    %c0_i32 = arith.constant 0 : i32
    %c0_i32_0 = arith.constant 0 : i32
    %c0_i32_1 = arith.constant 0 : i32
    return %c0_i32, %c0_i32_0 : i32, i32
  }
  func.func @transform_13(%arg0: i32) -> (i32, i32) {
    %c0_i32 = arith.constant 0 : i32
    %c0_i32_0 = arith.constant 0 : i32
    %c0_i32_1 = arith.constant 0 : i32
    return %c0_i32, %c0_i32_0 : i32, i32
  }
  func.func @transform_14(%arg0: i32) -> (i32, i32) {
    %c0_i32 = arith.constant 0 : i32
    %c0_i32_0 = arith.constant 0 : i32
    return %arg0, %c0_i32 : i32, i32
  }
}

module attributes {stable_mosaic.version = 11 : i64} {
  func.func @_merge_mm_kernel(%arg0: i32, %arg1: memref<256x4xbf16, #tpu.memory_space<vmem>>, %arg2: memref<256x4xbf16, #tpu.memory_space<vmem>>, %arg3: memref<4x8xbf16, #tpu.memory_space<vmem>>, %arg4: memref<4x8xbf16, #tpu.memory_space<vmem>>, %arg5: memref<1x8xf32, #tpu.memory_space<vmem>>, %arg6: memref<256x8xf32, #tpu.memory_space<vmem>>, %arg7: memref<256x8xf32, #tpu.memory_space<vmem>>) attributes {dimension_semantics = [#tpu.dimension_semantics<parallel>], iteration_bounds = array<i64: 2>, scalar_prefetch = 0 : i64, scratch_operands = 0 : i64, tpu.core_type = #tpu.core_type<tc>, window_params = [{transform_indices = @transform_0, window_bounds = array<i64: 256, 4>}, {transform_indices = @transform_1, window_bounds = array<i64: 256, 4>}, {pipeline_mode = #tpu.pipeline_mode<synchronous>, transform_indices = @transform_2, window_bounds = array<i64: 4, 8>}, {pipeline_mode = #tpu.pipeline_mode<synchronous>, transform_indices = @transform_3, window_bounds = array<i64: 4, 8>}, {pipeline_mode = #tpu.pipeline_mode<synchronous>, transform_indices = @transform_4, window_bounds = array<i64: 1, 8>}, {transform_indices = @transform_5, window_bounds = array<i64: 256, 8>}, {transform_indices = @transform_6, window_bounds = array<i64: 256, 8>}]} {
    %c0 = arith.constant 0 : index
    %c0_0 = arith.constant 0 : index
    %0 = vector.load %arg1[%c0, %c0_0] : memref<256x4xbf16, #tpu.memory_space<vmem>>, vector<256x4xbf16>
    %c0_1 = arith.constant 0 : index
    %c0_2 = arith.constant 0 : index
    %1 = vector.load %arg3[%c0_1, %c0_2] : memref<4x8xbf16, #tpu.memory_space<vmem>>, vector<4x8xbf16>
    %cst = arith.constant dense<0.000000e+00> : vector<256x8xf32>
    %2 = tpu.matmul %0, %1, %cst {dimension_numbers = #tpu.dot_dimension_numbers<[1], [0], [0], [1], [0, 0, 1, 1], [], []>} : vector<256x4xbf16>, vector<4x8xbf16>, vector<256x8xf32> -> vector<256x8xf32>
    %c0_3 = arith.constant 0 : index
    %c0_4 = arith.constant 0 : index
    %3 = vector.load %arg2[%c0_3, %c0_4] : memref<256x4xbf16, #tpu.memory_space<vmem>>, vector<256x4xbf16>
    %c0_5 = arith.constant 0 : index
    %c0_6 = arith.constant 0 : index
    %4 = vector.load %arg4[%c0_5, %c0_6] : memref<4x8xbf16, #tpu.memory_space<vmem>>, vector<4x8xbf16>
    %cst_7 = arith.constant dense<0.000000e+00> : vector<256x8xf32>
    %5 = tpu.matmul %3, %4, %cst_7 {dimension_numbers = #tpu.dot_dimension_numbers<[1], [0], [0], [1], [0, 0, 1, 1], [], []>} : vector<256x4xbf16>, vector<4x8xbf16>, vector<256x8xf32> -> vector<256x8xf32>
    %6 = arith.addf %2, %5 : vector<256x8xf32>
    %c0_8 = arith.constant 0 : index
    %c0_9 = arith.constant 0 : index
    %7 = vector.load %arg5[%c0_8, %c0_9] : memref<1x8xf32, #tpu.memory_space<vmem>>, vector<1x8xf32>
    %8 = vector.broadcast %7 : vector<1x8xf32> to vector<256x8xf32>
    %9 = arith.addf %6, %8 : vector<256x8xf32>
    %c0_10 = arith.constant 0 : index
    %c0_11 = arith.constant 0 : index
    %10 = vector.load %arg6[%c0_10, %c0_11] : memref<256x8xf32, #tpu.memory_space<vmem>>, vector<256x8xf32>
    %11 = arith.addf %9, %10 : vector<256x8xf32>
    %c0_12 = arith.constant 0 : index
    %c0_13 = arith.constant 0 : index
    %12 = vector.load %arg7[%c0_12, %c0_13] : memref<256x8xf32, #tpu.memory_space<vmem>>, vector<256x8xf32>
    tpu.vector_store %arg7[%c0_12, %c0_13], %11 {strides = array<i32>} : memref<256x8xf32, #tpu.memory_space<vmem>>, vector<256x8xf32>,
    return
  }
  func.func @transform_0(%arg0: i32) -> (i32, i32) {
    %c0_i32 = arith.constant 0 : i32
    %c0_i32_0 = arith.constant 0 : i32
    return %arg0, %c0_i32 : i32, i32
  }
  func.func @transform_1(%arg0: i32) -> (i32, i32) {
    %c0_i32 = arith.constant 0 : i32
    %c0_i32_0 = arith.constant 0 : i32
    return %arg0, %c0_i32 : i32, i32
  }
  func.func @transform_2(%arg0: i32) -> (i32, i32) {
    %c0_i32 = arith.constant 0 : i32
    %c0_i32_0 = arith.constant 0 : i32
    %c0_i32_1 = arith.constant 0 : i32
    return %c0_i32, %c0_i32_0 : i32, i32
  }
  func.func @transform_3(%arg0: i32) -> (i32, i32) {
    %c0_i32 = arith.constant 0 : i32
    %c0_i32_0 = arith.constant 0 : i32
    %c0_i32_1 = arith.constant 0 : i32
    return %c0_i32, %c0_i32_0 : i32, i32
  }
  func.func @transform_4(%arg0: i32) -> (i32, i32) {
    %c0_i32 = arith.constant 0 : i32
    %c0_i32_0 = arith.constant 0 : i32
    %c0_i32_1 = arith.constant 0 : i32
    return %c0_i32, %c0_i32_0 : i32, i32
  }
  func.func @transform_5(%arg0: i32) -> (i32, i32) {
    %c0_i32 = arith.constant 0 : i32
    %c0_i32_0 = arith.constant 0 : i32
    return %arg0, %c0_i32 : i32, i32
  }
  func.func @transform_6(%arg0: i32) -> (i32, i32) {
    %c0_i32 = arith.constant 0 : i32
    %c0_i32_0 = arith.constant 0 : i32
    return %arg0, %c0_i32 : i32, i32
  }
}

</mosaic_0001>

<bundles_post_ra>
// kernel: conv_trans_block_forward.5
= control target key start
LH: loop header
LB: loop body
LE: loop exit
PB: predicated region body
PF: predicated region fallthrough
CT: control target
= control target key end

     0   :  { %s1453_s21 = smov 0   ;;  %s1755_s0 = inlined_call_operand.vmem [shape: f32[512,8], index: 0, kind: input, shape index: {}]   ;;  %s1756_s1 = inlined_call_operand.vmem [shape: bf16[8,4], index: 1, kind: input, shape index: {}]   ;;  %s1757_s2 = inlined_call_operand.vmem [shape: f32[1,4], index: 2, kind: input, shape index: {}]   ;;  %s1758_s3 = inlined_call_operand.vmem [shape: bf16[8,4], index: 3, kind: input, shape index: {}]   ;;  %s1759_s4 = inlined_call_operand.vmem [shape: f32[1,4], index: 4, kind: input, shape index: {}]   ;;  %s1760_s5 = inlined_call_operand.vmem [shape: bf16[512,4], index: 5, kind: output, shape index: {0}]   ;;  %s1761_s6 = inlined_call_operand.vmem [shape: bf16[512,4], index: 6, kind: output, shape index: {1}]  }
   0x1 LB: > { %s1123_s22 = sadd.s32 4294967295, %s1416_s21   ;;  %p1127_p0 = scmp.ge.s32.totalorder %s1416_s21, 1  ;;  %s1416_s21 = sphi %s1453_s21, %s17_s21  }
   0x2   : > { %p216_p1 = scmp.lt.s32.totalorder %s1416_s21, 3 }
   0x4   : > { %p217_p2 = pnand %p1127_p0, %p216_p1 }
   0x5   : > { %s1128_s27 = sshll.u32 (!%p217_p2), %s1123_s22, 5 }
   0x6   : > { %220 = sbr.rel (%p217_p2) target bundleno = 278 (0x116), region = 40  ;;  %p252_p3 = scmp.lt.s32.totalorder (!%p217_p2), %s1128_s27, 63 }
   0xb   : > { %v318_v0 = vld [vmem:[%s1756_s1] sm:$0xf]  ;;  %vm375_vm0 = vcmask 1043456   ;;  %s1763_s27 = smov (!%p252_p3, %s1128_s27), 63  ;;  %vm326_vm1 = vcmask 64512   ;;  %vm840_vm2 = vcmask 27648  }
   0xc   : > { %v540_v1 = vld [vmem:[%s1758_s3] sm:$0xf]  ;;  %1400 = vmatprep.subr.msk.bf16.mxu0 %vm375_vm0, %v318_v0  ;;  %v377_v2 = vsel %vm375_vm0, %v318_v0, 0  ;;  %s1129_s28 = sshll.u32 %s1763_s27, 3  ;;  %s1131_s12 = sshll.u32 %s1763_s27, 2 }
   0xd   : > { %1401 = vmatprep.subr.msk.bf16.mxu1 %vm375_vm0, %v540_v1  ;;  %v549_v3 = vsel %vm375_vm0, %v540_v1, 0  ;;  %1333 = vmatpush3.bf16.msra.mxu0 %v377_v2  ;;  %s1473_s7 = scalar_lea.vmem %s1755_s0, %s1129_s28  ;;  %v1542_v52 = vld [vmem:[%s1757_s2] ss:$0 sm:$0xff]  ;;  %s1555_s15 = scalar_lea.vmem %s1760_s5, %s1131_s12 }
   0xe   : > { %1367 = vmatpush3.bf16.msra.mxu1 %v549_v3  ;;  %v270_v4 = vld [vmem:[%s1473_s7] sm:$0xff]  ;;  %v271_v5 = vld [vmem:[%s1473_s7 + $0x8] sm:$0xff]  ;;  %v272_v6 = vld [vmem:[%s1473_s7 + $0x10] sm:$0xff]  ;;  %s1560_s18 = scalar_lea.vmem %s1761_s6, %s1131_s12 }
   0xf   : > { %v302_v7 = vpack.c.bf16 %v271_v5, %v270_v4  ;;  %v273_v8 = vld [vmem:[%s1473_s7 + $0x18] sm:$0xff]  ;;  %v274_v9 = vld [vmem:[%s1473_s7 + $0x20] sm:$0xff]  ;;  %v275_v10 = vld [vmem:[%s1473_s7 + $0x28] sm:$0xff] }
  0x10   : > { %v303_v11 = vpack.c.bf16 %v273_v8, %v272_v6  ;;  %v304_v12 = vpack.c.bf16 %v275_v10, %v274_v9  ;;  %v276_v13 = vld [vmem:[%s1473_s7 + $0x30] sm:$0xff]  ;;  %v277_v14 = vld [vmem:[%s1473_s7 + $0x38] sm:$0xff]  ;;  %v278_v15 = vld [vmem:[%s1473_s7 + $0x40] sm:$0xff] }
  0x11   : > { %1334 = vmatprep.mubr.msk.bf16.mxu0 %vm326_vm1, %v302_v7  ;;  %1368 = vmatprep.mubr.msk.bf16.mxu1 %vm326_vm1, %v302_v7  ;;  %v279_v16 = vld [vmem:[%s1473_s7 + $0x48] sm:$0xff]  ;;  %v305_v17 = vpack.c.bf16 %v277_v14, %v276_v13  ;;  %v280_v19 = vld [vmem:[%s1473_s7 + $0x50] sm:$0xff]  ;;  %v281_v20 = vld [vmem:[%s1473_s7 + $0x58] sm:$0xff] }
  0x12   : > { %1335 = vmatmul.mubr.msk.bf16.vlgmr.msra.gmra.mxu0 %vm326_vm1, %v303_v11  ;;  %1369 = vmatmul.mubr.msk.bf16.vlgmr.msra.gmra.mxu1 %vm326_vm1, %v303_v11  ;;  %v306_v18 = vpack.c.bf16 %v279_v16, %v278_v15  ;;  %v282_v21 = vld [vmem:[%s1473_s7 + $0x60] sm:$0xff]  ;;  %v283_v22 = vld [vmem:[%s1473_s7 + $0x68] sm:$0xff]  ;;  %v307_v23 = vpack.c.bf16 %v281_v20, %v280_v19  ;;  %v284_v25 = vld [vmem:[%s1473_s7 + $0x70] sm:$0xff] }
  0x13   : > { %1338 = vmatprep.mubr.msk.bf16.mxu0 %vm326_vm1, %v304_v12  ;;  %1372 = vmatprep.mubr.msk.bf16.mxu1 %vm326_vm1, %v304_v12  ;;  %v308_v24 = vpack.c.bf16 %v283_v22, %v282_v21  ;;  %v285_v26 = vld [vmem:[%s1473_s7 + $0x78] sm:$0xff]  ;;  %v286_v27 = vld [vmem:[%s1473_s7 + $0x80] sm:$0xff]  ;;  %v287_v28 = vld [vmem:[%s1473_s7 + $0x88] sm:$0xff] }
  0x14   : > { %v309_v29 = vpack.c.bf16 %v285_v26, %v284_v25  ;;  %v310_v30 = vpack.c.bf16 %v287_v28, %v286_v27  ;;  %v288_v31 = vld [vmem:[%s1473_s7 + $0x90] sm:$0xff]  ;;  %v289_v32 = vld [vmem:[%s1473_s7 + $0x98] sm:$0xff]  ;;  %v290_v33 = vld [vmem:[%s1473_s7 + $0xa0] sm:$0xff] }
  0x15   : > { %v291_v34 = vld [vmem:[%s1473_s7 + $0xa8] sm:$0xff]  ;;  %v311_v35 = vpack.c.bf16 %v289_v32, %v288_v31  ;;  %v292_v37 = vld [vmem:[%s1473_s7 + $0xb0] sm:$0xff]  ;;  %v293_v38 = vld [vmem:[%s1473_s7 + $0xb8] sm:$0xff] }
  0x16   : > { %v312_v36 = vpack.c.bf16 %v291_v34, %v290_v33  ;;  %v294_v39 = vld [vmem:[%s1473_s7 + $0xc0] sm:$0xff]  ;;  %v295_v40 = vld [vmem:[%s1473_s7 + $0xc8] sm:$0xff]  ;;  %v313_v41 = vpack.c.bf16 %v293_v38, %v292_v37  ;;  %v296_v43 = vld [vmem:[%s1473_s7 + $0xd0] sm:$0xff] }
  0x17   : > { %v314_v42 = vpack.c.bf16 %v295_v40, %v294_v39  ;;  %v297_v44 = vld [vmem:[%s1473_s7 + $0xd8] sm:$0xff]  ;;  %v298_v45 = vld [vmem:[%s1473_s7 + $0xe0] sm:$0xff]  ;;  %v299_v46 = vld [vmem:[%s1473_s7 + $0xe8] sm:$0xff] }
  0x18   : > { %v315_v47 = vpack.c.bf16 %v297_v44, %v296_v43  ;;  %v316_v48 = vpack.c.bf16 %v299_v46, %v298_v45  ;;  %v300_v49 = vld [vmem:[%s1473_s7 + $0xf0] sm:$0xff]  ;;  %v301_v50 = vld [vmem:[%s1473_s7 + $0xf8] sm:$0xff]  ;;  %v1547_v53 = vld [vmem:[%s1759_s4] ss:$0 sm:$0xff] }
  0x19   : > { %v317_v51 = vpack.c.bf16 %v301_v50, %v300_v49 }
  0x1a   : > { %1339 = vmatmul.mubr.msk.bf16.gmra.mxu0 %vm326_vm1, %v305_v17  ;;  %1373 = vmatmul.mubr.msk.bf16.gmra.mxu1 %vm326_vm1, %v305_v17 }
  0x1b   : > { %1342 = vmatprep.mubr.msk.bf16.mxu0 %vm326_vm1, %v306_v18  ;;  %1376 = vmatprep.mubr.msk.bf16.mxu1 %vm326_vm1, %v306_v18 }
  0x22   : > { %1343 = vmatmul.mubr.msk.bf16.gmra.mxu0 %vm326_vm1, %v307_v23  ;;  %1377 = vmatmul.mubr.msk.bf16.gmra.mxu1 %vm326_vm1, %v307_v23 }
  0x23   : > { %1346 = vmatprep.mubr.msk.bf16.mxu0 %vm326_vm1, %v308_v24  ;;  %1380 = vmatprep.mubr.msk.bf16.mxu1 %vm326_vm1, %v308_v24 }
  0x2a   : > { %1347 = vmatmul.mubr.msk.bf16.gmra.mxu0 %vm326_vm1, %v309_v29  ;;  %1381 = vmatmul.mubr.msk.bf16.gmra.mxu1 %vm326_vm1, %v309_v29 }
  0x2b   : > { %1350 = vmatprep.mubr.msk.bf16.mxu0 %vm326_vm1, %v310_v30  ;;  %1384 = vmatprep.mubr.msk.bf16.mxu1 %vm326_vm1, %v310_v30 }
  0x32   : > { %1351 = vmatmul.mubr.msk.bf16.gmra.mxu0 %vm326_vm1, %v311_v35  ;;  %1385 = vmatmul.mubr.msk.bf16.gmra.mxu1 %vm326_vm1, %v311_v35 }
  0x33   : > { %1354 = vmatprep.mubr.msk.bf16.mxu0 %vm326_vm1, %v312_v36  ;;  %1388 = vmatprep.mubr.msk.bf16.mxu1 %vm326_vm1, %v312_v36 }
  0x3a   : > { %1355 = vmatmul.mubr.msk.bf16.gmra.mxu0 %vm326_vm1, %v313_v41  ;;  %1389 = vmatmul.mubr.msk.bf16.gmra.mxu1 %vm326_vm1, %v313_v41 }
  0x3b   : > { %1358 = vmatprep.mubr.msk.bf16.mxu0 %vm326_vm1, %v314_v42  ;;  %1392 = vmatprep.mubr.msk.bf16.mxu1 %vm326_vm1, %v314_v42 }
  0x42   : > { %1359 = vmatmul.mubr.msk.bf16.gmra.mxu0 %vm326_vm1, %v315_v47  ;;  %1393 = vmatmul.mubr.msk.bf16.gmra.mxu1 %vm326_vm1, %v315_v47 }
  0x43   : > { %1362 = vmatprep.mubr.msk.bf16.mxu0 %vm326_vm1, %v316_v48  ;;  %1396 = vmatprep.mubr.msk.bf16.mxu1 %vm326_vm1, %v316_v48 }
  0x4a   : > { %1363 = vmatmul.mubr.msk.bf16.gmra.mxu0 %vm326_vm1, %v317_v51  ;;  %1397 = vmatmul.mubr.msk.bf16.gmra.mxu1 %vm326_vm1, %v317_v51 }
  0xd2   : > { %v1336_v54 = vpop.f32.mrf.mxu0  ;;  %v1370_v55 = vpop.f32.mrf.mxu1 }
  0xd3   : > { %v422_v56 = vadd.f32 %v1336_v54, %v1542_v52  ;;  %v594_v57 = vadd.f32 %v1370_v55, %v1547_v53 }
  0xd4   : > { %v413_v58 = vpop.f32.mrf.mxu0  ;;  %v585_v59 = vpop.f32.mrf.mxu1 }
  0xd5   : > { %v1236_v60 = vpack.c.bf16 %v422_v56, %v422_v56  ;;  %v1268_v61 = vpack.c.bf16 %v594_v57, %v594_v57  ;;  %v414_v62 = vadd.f32 %v1542_v52, %v413_v58  ;;  %v586_v63 = vadd.f32 %v1547_v53, %v585_v59 }
  0xd6   : > { %v1337_v0 = vpop.f32.mrf.mxu0  ;;  %v1371_v1 = vpop.f32.mrf.mxu1 }
  0xd7   : > { %843 = vst.msk [vmem:[%s1555_s15 + $0x8] sm:$0xf] %vm840_vm2, %v1236_v60  ;;  %1003 = vst.msk [vmem:[%s1560_s18 + $0x8] sm:$0xf] %vm840_vm2, %v1268_v61  ;;  %v1234_v2 = vpack.c.bf16 %v414_v62, %v414_v62  ;;  %v1266_v3 = vpack.c.bf16 %v586_v63, %v586_v63  ;;  %v425_v4 = vadd.f32 %v1337_v0, %v1542_v52 }
  0xd8   : > { %v597_v5 = vadd.f32 %v1371_v1, %v1547_v53  ;;  %v416_v6 = vpop.f32.mrf.mxu0  ;;  %v588_v7 = vpop.f32.mrf.mxu1 }
  0xd9   : > { %841 = vst.msk [vmem:[%s1555_s15] sm:$0xf] %vm840_vm2, %v1234_v2  ;;  %1001 = vst.msk [vmem:[%s1560_s18] sm:$0xf] %vm840_vm2, %v1266_v3  ;;  %v1237_v8 = vpack.c.bf16 %v425_v4, %v425_v4  ;;  %v417_v10 = vadd.f32 %v1542_v52, %v416_v6  ;;  %v589_v11 = vadd.f32 %v1547_v53, %v588_v7 }
  0xda   : > { %v1269_v9 = vpack.c.bf16 %v597_v5, %v597_v5  ;;  %v1340_v12 = vpop.f32.mrf.mxu0  ;;  %v1374_v13 = vpop.f32.mrf.mxu1 }
  0xdb   : > { %844 = vst.msk [vmem:[%s1555_s15 + $0xc] sm:$0xf] %vm840_vm2, %v1237_v8  ;;  %v1235_v14 = vpack.c.bf16 %v417_v10, %v417_v10  ;;  %v1267_v15 = vpack.c.bf16 %v589_v11, %v589_v11  ;;  %v438_v16 = vadd.f32 %v1340_v12, %v1542_v52  ;;  %v610_v17 = vadd.f32 %v1374_v13, %v1547_v53 }
  0xdc   : > { %1004 = vst.msk [vmem:[%s1560_s18 + $0xc] sm:$0xf] %vm840_vm2, %v1269_v9  ;;  %v429_v18 = vpop.f32.mrf.mxu0  ;;  %v601_v19 = vpop.f32.mrf.mxu1 }
  0xdd   : > { %842 = vst.msk [vmem:[%s1555_s15 + $0x4] sm:$0xf] %vm840_vm2, %v1235_v14  ;;  %1002 = vst.msk [vmem:[%s1560_s18 + $0x4] sm:$0xf] %vm840_vm2, %v1267_v15  ;;  %v1240_v20 = vpack.c.bf16 %v438_v16, %v438_v16  ;;  %v1272_v21 = vpack.c.bf16 %v610_v17, %v610_v17  ;;  %v430_v22 = vadd.f32 %v1542_v52, %v429_v18 }
  0xde   : > { %v602_v23 = vadd.f32 %v1547_v53, %v601_v19  ;;  %v1341_v24 = vpop.f32.mrf.mxu0  ;;  %v1375_v25 = vpop.f32.mrf.mxu1 }
  0xdf   : > { %847 = vst.msk [vmem:[%s1555_s15 + $0x18] sm:$0xf] %vm840_vm2, %v1240_v20  ;;  %1007 = vst.msk [vmem:[%s1560_s18 + $0x18] sm:$0xf] %vm840_vm2, %v1272_v21  ;;  %v1238_v26 = vpack.c.bf16 %v430_v22, %v430_v22  ;;  %v441_v28 = vadd.f32 %v1341_v24, %v1542_v52  ;;  %v613_v29 = vadd.f32 %v1375_v25, %v1547_v53 }
  0xe0   : > { %v1270_v27 = vpack.c.bf16 %v602_v23, %v602_v23  ;;  %v432_v30 = vpop.f32.mrf.mxu0  ;;  %v604_v31 = vpop.f32.mrf.mxu1 }
  0xe1   : > { %845 = vst.msk [vmem:[%s1555_s15 + $0x10] sm:$0xf] %vm840_vm2, %v1238_v26  ;;  %v1241_v32 = vpack.c.bf16 %v441_v28, %v441_v28  ;;  %v1273_v33 = vpack.c.bf16 %v613_v29, %v613_v29  ;;  %v433_v34 = vadd.f32 %v1542_v52, %v432_v30  ;;  %v605_v35 = vadd.f32 %v1547_v53, %v604_v31 }
  0xe2   : > { %1005 = vst.msk [vmem:[%s1560_s18 + $0x10] sm:$0xf] %vm840_vm2, %v1270_v27  ;;  %v1344_v36 = vpop.f32.mrf.mxu0  ;;  %v1378_v37 = vpop.f32.mrf.mxu1 }
  0xe3   : > { %848 = vst.msk [vmem:[%s1555_s15 + $0x1c] sm:$0xf] %vm840_vm2, %v1241_v32  ;;  %1008 = vst.msk [vmem:[%s1560_s18 + $0x1c] sm:$0xf] %vm840_vm2, %v1273_v33  ;;  %v1239_v38 = vpack.c.bf16 %v433_v34, %v433_v34  ;;  %v1271_v39 = vpack.c.bf16 %v605_v35, %v605_v35  ;;  %v454_v40 = vadd.f32 %v1344_v36, %v1542_v52 }
  0xe4   : > { %v626_v41 = vadd.f32 %v1378_v37, %v1547_v53  ;;  %v445_v42 = vpop.f32.mrf.mxu0  ;;  %v617_v43 = vpop.f32.mrf.mxu1 }
  0xe5   : > { %846 = vst.msk [vmem:[%s1555_s15 + $0x14] sm:$0xf] %vm840_vm2, %v1239_v38  ;;  %1006 = vst.msk [vmem:[%s1560_s18 + $0x14] sm:$0xf] %vm840_vm2, %v1271_v39  ;;  %v1244_v44 = vpack.c.bf16 %v454_v40, %v454_v40  ;;  %v446_v46 = vadd.f32 %v1542_v52, %v445_v42  ;;  %v618_v47 = vadd.f32 %v1547_v53, %v617_v43 }
  0xe6   : > { %v1276_v45 = vpack.c.bf16 %v626_v41, %v626_v41  ;;  %v1345_v48 = vpop.f32.mrf.mxu0  ;;  %v1379_v49 = vpop.f32.mrf.mxu1 }
  0xe7   : > { %851 = vst.msk [vmem:[%s1555_s15 + $0x28] sm:$0xf] %vm840_vm2, %v1244_v44  ;;  %v1242_v50 = vpack.c.bf16 %v446_v46, %v446_v46  ;;  %v1274_v51 = vpack.c.bf16 %v618_v47, %v618_v47  ;;  %v457_v54 = vadd.f32 %v1345_v48, %v1542_v52  ;;  %v629_v55 = vadd.f32 %v1379_v49, %v1547_v53 }
  0xe8   : > { %1011 = vst.msk [vmem:[%s1560_s18 + $0x28] sm:$0xf] %vm840_vm2, %v1276_v45  ;;  %v448_v56 = vpop.f32.mrf.mxu0  ;;  %v620_v57 = vpop.f32.mrf.mxu1 }
  0xe9   : > { %849 = vst.msk [vmem:[%s1555_s15 + $0x20] sm:$0xf] %vm840_vm2, %v1242_v50  ;;  %1009 = vst.msk [vmem:[%s1560_s18 + $0x20] sm:$0xf] %vm840_vm2, %v1274_v51  ;;  %v1245_v58 = vpack.c.bf16 %v457_v54, %v457_v54  ;;  %v1277_v59 = vpack.c.bf16 %v629_v55, %v629_v55  ;;  %v449_v60 = vadd.f32 %v1542_v52, %v448_v56 }
  0xea   : > { %v621_v61 = vadd.f32 %v1547_v53, %v620_v57  ;;  %v1348_v62 = vpop.f32.mrf.mxu0  ;;  %v1382_v63 = vpop.f32.mrf.mxu1 }
  0xeb   : > { %852 = vst.msk [vmem:[%s1555_s15 + $0x2c] sm:$0xf] %vm840_vm2, %v1245_v58  ;;  %1012 = vst.msk [vmem:[%s1560_s18 + $0x2c] sm:$0xf] %vm840_vm2, %v1277_v59  ;;  %v1243_v0 = vpack.c.bf16 %v449_v60, %v449_v60  ;;  %v470_v2 = vadd.f32 %v1348_v62, %v1542_v52  ;;  %v642_v3 = vadd.f32 %v1382_v63, %v1547_v53 }
  0xec   : > { %v1275_v1 = vpack.c.bf16 %v621_v61, %v621_v61  ;;  %v461_v4 = vpop.f32.mrf.mxu0  ;;  %v633_v5 = vpop.f32.mrf.mxu1 }
  0xed   : > { %850 = vst.msk [vmem:[%s1555_s15 + $0x24] sm:$0xf] %vm840_vm2, %v1243_v0  ;;  %v1248_v6 = vpack.c.bf16 %v470_v2, %v470_v2  ;;  %v1280_v7 = vpack.c.bf16 %v642_v3, %v642_v3  ;;  %v462_v8 = vadd.f32 %v1542_v52, %v461_v4  ;;  %v634_v9 = vadd.f32 %v1547_v53, %v633_v5 }
  0xee   : > { %1010 = vst.msk [vmem:[%s1560_s18 + $0x24] sm:$0xf] %vm840_vm2, %v1275_v1  ;;  %v1349_v10 = vpop.f32.mrf.mxu0  ;;  %v1383_v11 = vpop.f32.mrf.mxu1 }
  0xef   : > { %855 = vst.msk [vmem:[%s1555_s15 + $0x38] sm:$0xf] %vm840_vm2, %v1248_v6  ;;  %1015 = vst.msk [vmem:[%s1560_s18 + $0x38] sm:$0xf] %vm840_vm2, %v1280_v7  ;;  %v1246_v12 = vpack.c.bf16 %v462_v8, %v462_v8  ;;  %v1278_v13 = vpack.c.bf16 %v634_v9, %v634_v9  ;;  %v473_v14 = vadd.f32 %v1349_v10, %v1542_v52 }
  0xf0   : > { %v645_v15 = vadd.f32 %v1383_v11, %v1547_v53  ;;  %v464_v16 = vpop.f32.mrf.mxu0  ;;  %v636_v17 = vpop.f32.mrf.mxu1 }
  0xf1   : > { %853 = vst.msk [vmem:[%s1555_s15 + $0x30] sm:$0xf] %vm840_vm2, %v1246_v12  ;;  %1013 = vst.msk [vmem:[%s1560_s18 + $0x30] sm:$0xf] %vm840_vm2, %v1278_v13  ;;  %v1249_v18 = vpack.c.bf16 %v473_v14, %v473_v14  ;;  %v465_v20 = vadd.f32 %v1542_v52, %v464_v16  ;;  %v637_v21 = vadd.f32 %v1547_v53, %v636_v17 }
  0xf2   : > { %v1281_v19 = vpack.c.bf16 %v645_v15, %v645_v15  ;;  %v1352_v22 = vpop.f32.mrf.mxu0  ;;  %v1386_v23 = vpop.f32.mrf.mxu1 }
  0xf3   : > { %856 = vst.msk [vmem:[%s1555_s15 + $0x3c] sm:$0xf] %vm840_vm2, %v1249_v18  ;;  %v1247_v24 = vpack.c.bf16 %v465_v20, %v465_v20  ;;  %v1279_v25 = vpack.c.bf16 %v637_v21, %v637_v21  ;;  %v486_v26 = vadd.f32 %v1352_v22, %v1542_v52  ;;  %v658_v27 = vadd.f32 %v1386_v23, %v1547_v53 }
  0xf4   : > { %1016 = vst.msk [vmem:[%s1560_s18 + $0x3c] sm:$0xf] %vm840_vm2, %v1281_v19  ;;  %v477_v28 = vpop.f32.mrf.mxu0  ;;  %v649_v29 = vpop.f32.mrf.mxu1 }
  0xf5   : > { %854 = vst.msk [vmem:[%s1555_s15 + $0x34] sm:$0xf] %vm840_vm2, %v1247_v24  ;;  %1014 = vst.msk [vmem:[%s1560_s18 + $0x34] sm:$0xf] %vm840_vm2, %v1279_v25  ;;  %v1252_v30 = vpack.c.bf16 %v486_v26, %v486_v26  ;;  %v1284_v31 = vpack.c.bf16 %v658_v27, %v658_v27  ;;  %v478_v32 = vadd.f32 %v1542_v52, %v477_v28 }
  0xf6   : > { %v650_v33 = vadd.f32 %v1547_v53, %v649_v29  ;;  %v1353_v34 = vpop.f32.mrf.mxu0  ;;  %v1387_v35 = vpop.f32.mrf.mxu1 }
  0xf7   : > { %859 = vst.msk [vmem:[%s1555_s15 + $0x48] sm:$0xf] %vm840_vm2, %v1252_v30  ;;  %1019 = vst.msk [vmem:[%s1560_s18 + $0x48] sm:$0xf] %vm840_vm2, %v1284_v31  ;;  %v1250_v36 = vpack.c.bf16 %v478_v32, %v478_v32  ;;  %v489_v38 = vadd.f32 %v1353_v34, %v1542_v52  ;;  %v661_v39 = vadd.f32 %v1387_v35, %v1547_v53 }
  0xf8   : > { %v1282_v37 = vpack.c.bf16 %v650_v33, %v650_v33  ;;  %v480_v40 = vpop.f32.mrf.mxu0  ;;  %v652_v41 = vpop.f32.mrf.mxu1 }
  0xf9   : > { %857 = vst.msk [vmem:[%s1555_s15 + $0x40] sm:$0xf] %vm840_vm2, %v1250_v36  ;;  %v1253_v42 = vpack.c.bf16 %v489_v38, %v489_v38  ;;  %v1285_v43 = vpack.c.bf16 %v661_v39, %v661_v39  ;;  %v481_v44 = vadd.f32 %v1542_v52, %v480_v40  ;;  %v653_v45 = vadd.f32 %v1547_v53, %v652_v41 }
  0xfa   : > { %1017 = vst.msk [vmem:[%s1560_s18 + $0x40] sm:$0xf] %vm840_vm2, %v1282_v37  ;;  %v1356_v46 = vpop.f32.mrf.mxu0  ;;  %v1390_v47 = vpop.f32.mrf.mxu1 }
  0xfb   : > { %860 = vst.msk [vmem:[%s1555_s15 + $0x4c] sm:$0xf] %vm840_vm2, %v1253_v42  ;;  %1020 = vst.msk [vmem:[%s1560_s18 + $0x4c] sm:$0xf] %vm840_vm2, %v1285_v43  ;;  %v1251_v48 = vpack.c.bf16 %v481_v44, %v481_v44  ;;  %v1283_v49 = vpack.c.bf16 %v653_v45, %v653_v45  ;;  %v502_v50 = vadd.f32 %v1356_v46, %v1542_v52 }
  0xfc   : > { %v674_v51 = vadd.f32 %v1390_v47, %v1547_v53  ;;  %v493_v54 = vpop.f32.mrf.mxu0  ;;  %v665_v55 = vpop.f32.mrf.mxu1 }
  0xfd   : > { %858 = vst.msk [vmem:[%s1555_s15 + $0x44] sm:$0xf] %vm840_vm2, %v1251_v48  ;;  %1018 = vst.msk [vmem:[%s1560_s18 + $0x44] sm:$0xf] %vm840_vm2, %v1283_v49  ;;  %v1256_v56 = vpack.c.bf16 %v502_v50, %v502_v50  ;;  %v494_v58 = vadd.f32 %v1542_v52, %v493_v54  ;;  %v666_v59 = vadd.f32 %v1547_v53, %v665_v55 }
  0xfe   : > { %v1288_v57 = vpack.c.bf16 %v674_v51, %v674_v51  ;;  %v1357_v60 = vpop.f32.mrf.mxu0  ;;  %v1391_v61 = vpop.f32.mrf.mxu1 }
  0xff   : > { %863 = vst.msk [vmem:[%s1555_s15 + $0x58] sm:$0xf] %vm840_vm2, %v1256_v56  ;;  %v1254_v62 = vpack.c.bf16 %v494_v58, %v494_v58  ;;  %v1286_v63 = vpack.c.bf16 %v666_v59, %v666_v59  ;;  %v505_v0 = vadd.f32 %v1357_v60, %v1542_v52  ;;  %v677_v1 = vadd.f32 %v1391_v61, %v1547_v53 }
 0x100   : > { %1023 = vst.msk [vmem:[%s1560_s18 + $0x58] sm:$0xf] %vm840_vm2, %v1288_v57  ;;  %v496_v2 = vpop.f32.mrf.mxu0  ;;  %v668_v3 = vpop.f32.mrf.mxu1 }
 0x101   : > { %861 = vst.msk [vmem:[%s1555_s15 + $0x50] sm:$0xf] %vm840_vm2, %v1254_v62  ;;  %1021 = vst.msk [vmem:[%s1560_s18 + $0x50] sm:$0xf] %vm840_vm2, %v1286_v63  ;;  %v1257_v4 = vpack.c.bf16 %v505_v0, %v505_v0  ;;  %v1289_v5 = vpack.c.bf16 %v677_v1, %v677_v1  ;;  %v497_v6 = vadd.f32 %v1542_v52, %v496_v2 }
 0x102   : > { %v669_v7 = vadd.f32 %v1547_v53, %v668_v3  ;;  %v1360_v8 = vpop.f32.mrf.mxu0  ;;  %v1394_v9 = vpop.f32.mrf.mxu1 }
 0x103   : > { %864 = vst.msk [vmem:[%s1555_s15 + $0x5c] sm:$0xf] %vm840_vm2, %v1257_v4  ;;  %1024 = vst.msk [vmem:[%s1560_s18 + $0x5c] sm:$0xf] %vm840_vm2, %v1289_v5  ;;  %v1255_v10 = vpack.c.bf16 %v497_v6, %v497_v6  ;;  %v518_v12 = vadd.f32 %v1360_v8, %v1542_v52  ;;  %v690_v13 = vadd.f32 %v1394_v9, %v1547_v53 }
 0x104   : > { %v1287_v11 = vpack.c.bf16 %v669_v7, %v669_v7  ;;  %v509_v14 = vpop.f32.mrf.mxu0  ;;  %v681_v15 = vpop.f32.mrf.mxu1 }
 0x105   : > { %862 = vst.msk [vmem:[%s1555_s15 + $0x54] sm:$0xf] %vm840_vm2, %v1255_v10  ;;  %v1260_v16 = vpack.c.bf16 %v518_v12, %v518_v12  ;;  %v1292_v17 = vpack.c.bf16 %v690_v13, %v690_v13  ;;  %v510_v18 = vadd.f32 %v1542_v52, %v509_v14  ;;  %v682_v19 = vadd.f32 %v1547_v53, %v681_v15 }
 0x106   : > { %1022 = vst.msk [vmem:[%s1560_s18 + $0x54] sm:$0xf] %vm840_vm2, %v1287_v11  ;;  %v1361_v20 = vpop.f32.mrf.mxu0  ;;  %v1395_v21 = vpop.f32.mrf.mxu1 }
 0x107   : > { %867 = vst.msk [vmem:[%s1555_s15 + $0x68] sm:$0xf] %vm840_vm2, %v1260_v16  ;;  %1027 = vst.msk [vmem:[%s1560_s18 + $0x68] sm:$0xf] %vm840_vm2, %v1292_v17  ;;  %v1258_v22 = vpack.c.bf16 %v510_v18, %v510_v18  ;;  %v1290_v23 = vpack.c.bf16 %v682_v19, %v682_v19  ;;  %v521_v24 = vadd.f32 %v1361_v20, %v1542_v52 }
 0x108   : > { %v693_v25 = vadd.f32 %v1395_v21, %v1547_v53  ;;  %v512_v26 = vpop.f32.mrf.mxu0  ;;  %v684_v27 = vpop.f32.mrf.mxu1 }
 0x109   : > { %865 = vst.msk [vmem:[%s1555_s15 + $0x60] sm:$0xf] %vm840_vm2, %v1258_v22  ;;  %1025 = vst.msk [vmem:[%s1560_s18 + $0x60] sm:$0xf] %vm840_vm2, %v1290_v23  ;;  %v1261_v28 = vpack.c.bf16 %v521_v24, %v521_v24  ;;  %v513_v30 = vadd.f32 %v1542_v52, %v512_v26  ;;  %v685_v31 = vadd.f32 %v1547_v53, %v684_v27 }
 0x10a   : > { %v1293_v29 = vpack.c.bf16 %v693_v25, %v693_v25  ;;  %v1364_v32 = vpop.f32.mrf.mxu0  ;;  %v1398_v33 = vpop.f32.mrf.mxu1 }
 0x10b   : > { %868 = vst.msk [vmem:[%s1555_s15 + $0x6c] sm:$0xf] %vm840_vm2, %v1261_v28  ;;  %v1259_v34 = vpack.c.bf16 %v513_v30, %v513_v30  ;;  %v1291_v35 = vpack.c.bf16 %v685_v31, %v685_v31  ;;  %v534_v36 = vadd.f32 %v1364_v32, %v1542_v52  ;;  %v706_v37 = vadd.f32 %v1398_v33, %v1547_v53 }
 0x10c   : > { %1028 = vst.msk [vmem:[%s1560_s18 + $0x6c] sm:$0xf] %vm840_vm2, %v1293_v29  ;;  %v525_v38 = vpop.f32.mrf.mxu0  ;;  %v697_v39 = vpop.f32.mrf.mxu1 }
 0x10d   : > { %866 = vst.msk [vmem:[%s1555_s15 + $0x64] sm:$0xf] %vm840_vm2, %v1259_v34  ;;  %1026 = vst.msk [vmem:[%s1560_s18 + $0x64] sm:$0xf] %vm840_vm2, %v1291_v35  ;;  %v1264_v40 = vpack.c.bf16 %v534_v36, %v534_v36  ;;  %v1296_v41 = vpack.c.bf16 %v706_v37, %v706_v37  ;;  %v526_v42 = vadd.f32 %v1542_v52, %v525_v38 }
 0x10e   : > { %v698_v43 = vadd.f32 %v1547_v53, %v697_v39  ;;  %v1365_v44 = vpop.f32.mrf.mxu0  ;;  %v1399_v45 = vpop.f32.mrf.mxu1 }
 0x10f   : > { %871 = vst.msk [vmem:[%s1555_s15 + $0x78] sm:$0xf] %vm840_vm2, %v1264_v40  ;;  %1031 = vst.msk [vmem:[%s1560_s18 + $0x78] sm:$0xf] %vm840_vm2, %v1296_v41  ;;  %v1262_v46 = vpack.c.bf16 %v526_v42, %v526_v42  ;;  %v537_v48 = vadd.f32 %v1365_v44, %v1542_v52  ;;  %v709_v49 = vadd.f32 %v1399_v45, %v1547_v53 }
 0x110   : > { %v1294_v47 = vpack.c.bf16 %v698_v43, %v698_v43  ;;  %v528_v50 = vpop.f32.mrf.mxu0  ;;  %v700_v51 = vpop.f32.mrf.mxu1 }
 0x111   : > { %869 = vst.msk [vmem:[%s1555_s15 + $0x70] sm:$0xf] %vm840_vm2, %v1262_v46  ;;  %v1265_v54 = vpack.c.bf16 %v537_v48, %v537_v48  ;;  %v1297_v55 = vpack.c.bf16 %v709_v49, %v709_v49  ;;  %v529_v56 = vadd.f32 %v1542_v52, %v528_v50  ;;  %v701_v57 = vadd.f32 %v1547_v53, %v700_v51 }
 0x112   : > { %1029 = vst.msk [vmem:[%s1560_s18 + $0x70] sm:$0xf] %vm840_vm2, %v1294_v47 }
 0x113   : > { %872 = vst.msk [vmem:[%s1555_s15 + $0x7c] sm:$0xf] %vm840_vm2, %v1265_v54  ;;  %1032 = vst.msk [vmem:[%s1560_s18 + $0x7c] sm:$0xf] %vm840_vm2, %v1297_v55  ;;  %v1263_v58 = vpack.c.bf16 %v529_v56, %v529_v56  ;;  %v1295_v59 = vpack.c.bf16 %v701_v57, %v701_v57 }
 0x115   : > { %870 = vst.msk [vmem:[%s1555_s15 + $0x74] sm:$0xf] %vm840_vm2, %v1263_v58  ;;  %1030 = vst.msk [vmem:[%s1560_s18 + $0x74] sm:$0xf] %vm840_vm2, %v1295_v59 }
 0x116 PF: > { %s17_s21 = sadd.s32 1, %s1416_s21  }
 0x117   : > { %p14_p4 = scmp.ge.s32.totalorder %s17_s21, 4  }
 0x119   :  { %16 = sbr.rel (!%p14_p4) target bundleno = 1 (0x1), region = 82 }

// kernel: conv_trans_block_forward.6
= control target key start
LH: loop header
LB: loop body
LE: loop exit
PB: predicated region body
PF: predicated region fallthrough
CT: control target
= control target key end

     0   :  { %s3202_s9 = smov 0   ;;  %s4512_s0 = inlined_call_operand.vmem [shape: bf16[2,18,18,4], index: 0, kind: input, shape index: {}]   ;;  %s4513_s1 = inlined_call_operand.vmem [shape: bf16[36,4], index: 1, kind: input, shape index: {}]   ;;  %s4514_s2 = inlined_call_operand.vmem [shape: bf16[512,4], index: 2, kind: output, shape index: {}]  }
   0x1 LB: > { %s3208_s10 = sadd.s32 4294967295, %s3177_s9   ;;  %p2581_p0 = scmp.ge.s32.totalorder %s3177_s9, 1  ;;  %s3177_s9 = sphi %s3202_s9, %s12_s9  }
   0x2   : > { %p112_p1 = scmp.lt.s32.totalorder %s3177_s9, 3 }
   0x4   : > { %p113_p2 = pnand %p2581_p0, %p112_p1 }
   0x6   : > { %116 = sbr.rel (%p113_p2) target bundleno = 596 (0x254), region = 28 }
   0xb   : > { %p134_p3 = scmp.lt.s32.totalorder %s3208_s10, 1  ;;  %s3179_s16 = smov 12   ;;  %vm741_vm0 = vcmask 1046528   ;;  %vm468_vm1 = vsmask.f32 7424  ;;  %vm2163_vm2 = vcmask 1041408  }
   0xc   : > { %s3180_s17 = smov 8   ;;  %s3181_s18 = smov 4   ;;  %vm1846_vm3 = vcmask 31744   ;;  %vm1879_vm4 = vcmask 64512   ;;  %vm1912_vm5 = vcmask 97280   ;;  %vm1945_vm6 = vcmask 130048  }
   0xd   : > { %s135_s11 = scalar_select %p134_p3, %s3208_s10, 1  ;;  %vm1978_vm7 = vcmask 162816   ;;  %vm2011_vm8 = vcmask 195584   ;;  %vm2044_vm9 = vcmask 228352   ;;  %vm2077_vm10 = vcmask 261120  }
   0xe   : > { %s3182_s19 = smov 16   ;;  %s3183_s20 = smov 20   ;;  %vm2130_vm11 = vcmask 293888   ;;  %vm2488_vm12 = vcmask 27648  }
   0xf   : > { %s3007_s12 = smul.u32 216, %s135_s11  ;;  %s3184_s21 = smov 24  }
  0x10   : > { %s3185_s22 = smov 28   ;;  %s3186_s23 = smov 32  }
  0x11   : > { %s3217_s15 = scalar_lea.vmem %s4512_s0, %s3007_s12  ;;  %s2583_s30 = sshll.u32 %s3208_s10, 5 }
  0x12   : > { %v2601_v0 = vld [vmem:[%s3217_s15 + $0x6c] sm:$0xf]  ;;  %v3221_v1 = vld [vmem:[%s3217_s15 + $0x70] sm:$0xf]  ;;  %v163_v6 = vld [vmem:[%s3217_s15 + $0x64] sm:$0xf] }
  0x13   : > { %v3224_v2 = vcombine.low %v2601_v0, %v3221_v1  ;;  %v2585_v3 = vld [vmem:[%s3217_s15 + $0xc] sm:$0xf]  ;;  %v3228_v4 = vld [vmem:[%s3217_s15 + $0x10] sm:$0xf]  ;;  %v202_v7 = vld [vmem:[%s3217_s15 + $0x60] sm:$0xe] }
  0x14   : > { %v3231_v5 = vcombine.low %v2585_v3, %v3228_v4  ;;  %v3238_v8 = vld [vmem:[%s3217_s15 + $0x68] ss:$0 sps:$4 sm:$0x11]   ;;  %v2753_v9 = vcombine.low %v202_v7, %v163_v6  ;;  %v162_v10 = vld [vmem:[%s3217_s15 + $0x60] sm:$0xf]  ;;  %p4420_p4 = scmp.lt.s32.totalorder %s2583_s30, 63 }
  0x15   : > { %918 = vrot.lane.b32.xlu1 %v3224_v2, %s3179_s16  ;;  %v1081_v11 = vshll.u32 %v3224_v2, 16  ;;  %v147_v12 = vld [vmem:[%s3217_s15 + $0x4] sm:$0xf]  ;;  %v767_v14 = vrot.slane %v3238_v8, 1  ;;  %v194_v15 = vld [vmem:[%s3217_s15] sm:$0xe]  ;;  %v3249_v18 = vcombine.low %v162_v10, %v163_v6 }
  0x16   : > { %902 = vrot.lane.b32.xlu0 %v3231_v5, %s3179_s16  ;;  %v766_v13 = vrot.slane %v2753_v9, 1  ;;  %v146_v16 = vld [vmem:[%s3217_s15] sm:$0xf]  ;;  %v985_v17 = vshll.u32 %v3231_v5, 16  ;;  %v2745_v20 = vcombine.low %v194_v15, %v147_v12  ;;  %v164_v21 = vld [vmem:[%s3217_s15 + $0x6c] sm:$0xf] }
  0x17   : > { %v3031_v19 = vld [vmem:[%s3217_s15 + $0x8] ss:$0 sps:$4 sm:$0x11]   ;;  %v3254_v23 = vcombine.low %v146_v16, %v147_v12  ;;  %v165_v24 = vld [vmem:[%s3217_s15 + $0x70] sm:$0xf]  ;;  %v566_v30 = vshrl.u32 %v3249_v18, 16 }
  0x18   : > { %v768_v22 = vsel %vm741_vm0, %v766_v13, %v767_v14  ;;  %v203_v25 = vld [vmem:[%s3217_s15 + $0x6c] sm:$0xe]  ;;  %v742_v26 = vrot.slane %v2745_v20, 1  ;;  %v743_v27 = vrot.slane %v3031_v19, 1  ;;  %v3261_v31 = vcombine.low %v164_v21, %v165_v24  ;;  %v149_v33 = vld [vmem:[%s3217_s15 + $0x10] sm:$0xf] }
  0x19   : > { %806 = vrot.lane.b32.xlu1 %v768_v22, %s3180_s17  ;;  %v3035_v28 = vld [vmem:[%s3217_s15 + $0x74] ss:$0 sps:$4 sm:$0x11]   ;;  %v2754_v29 = vcombine.low %v203_v25, %v165_v24  ;;  %v148_v32 = vld [vmem:[%s3217_s15 + $0xc] sm:$0xf]  ;;  %v470_v41 = vshrl.u32 %v3254_v23, 16 }
  0x1a   : > { %v744_v34 = vsel %vm741_vm0, %v742_v26, %v743_v27  ;;  %v770_v36 = vrot.slane %v3035_v28, 1  ;;  %v195_v37 = vld [vmem:[%s3217_s15 + $0xc] sm:$0xe]  ;;  %v3267_v38 = vcombine.low %v148_v32, %v149_v33  ;;  %v3038_v39 = vld [vmem:[%s3217_s15 + $0x14] ss:$0 sps:$4 sm:$0x11]  }
  0x1b   : > { %v769_v35 = vrot.slane %v2754_v29, 1  ;;  %790 = vrot.lane.b32.xlu0 %v744_v34, %s3180_s17  ;;  %v2746_v40 = vcombine.low %v195_v37, %v149_v33  ;;  %v472_v42 = vshll.u32 %v3254_v23, 16  ;;  %v477_v43 = vshll.u32 %v3031_v19, 16  ;;  %v2603_v52 = vld [vmem:[%s3217_s15 + $0x78] sm:$0xf]  ;;  %s4532_s30 = smov (!%p4420_p4, %s2583_s30), 63 }
  0x1c   : > { %v482_v45 = vshrl.u32 %v3267_v38, 16  ;;  %v484_v46 = vshll.u32 %v3267_v38, 16  ;;  %v578_v47 = vshrl.u32 %v3261_v31, 16  ;;  %v746_v49 = vrot.slane %v3038_v39, 1  ;;  %v3281_v57 = vld [vmem:[%s3217_s15 + $0x7c] sm:$0xf] }
  0x1d   : > { %v771_v44 = vsel %vm741_vm0, %v769_v35, %v770_v36  ;;  %v745_v48 = vrot.slane %v2746_v40, 1  ;;  %v489_v50 = vshll.u32 %v3038_v39, 16  ;;  %v474_v51 = vrot.slane %v472_v42, 1  ;;  %v2587_v62 = vld [vmem:[%s3217_s15 + $0x18] sm:$0xf]  ;;  %s2584_s4 = sshll.u32 %s4532_s30, 2 }
  0x1e   : > { %808 = vrot.lane.b32.xlu1 %v771_v44, %s3180_s17  ;;  %v486_v53 = vrot.slane %v484_v46, 1  ;;  %v479_v54 = vrot.slane %v477_v43, 1  ;;  %v580_v55 = vshll.u32 %v3261_v31, 16  ;;  %v585_v56 = vshll.u32 %v3035_v28, 16  ;;  %v3287_v63 = vld [vmem:[%s3217_s15 + $0x1c] sm:$0xf]  ;;  %s4443_s7 = scalar_lea.vmem %s4514_s2, %s2584_s4 }
  0x1f   : > { %v747_v58 = vsel %vm741_vm0, %v745_v48, %v746_v49  ;;  %v491_v59 = vrot.slane %v489_v50, 1  ;;  %v475_v60 = vor.u32 %v474_v51, %v470_v41  ;;  %v568_v61 = vshll.u32 %v3249_v18, 16  ;;  %v3294_v13 = vld [vmem:[%s3217_s15 + $0x74] ss:$0 sps:$4 sm:$0x11]  }
  0x20   : > { %792 = vrot.lane.b32.xlu0 %v747_v58, %s3180_s17  ;;  %v487_v0 = vor.u32 %v486_v53, %v482_v45  ;;  %v582_v3 = vrot.slane %v580_v55, 1  ;;  %v587_v6 = vrot.slane %v585_v56, 1  ;;  %v573_v7 = vshll.u32 %v3238_v8, 16  ;;  %v3299_v20 = vld [vmem:[%s3217_s15 + $0x14] ss:$0 sps:$4 sm:$0x11]  }
  0x21   : > { %v480_v9 = vsel %vm468_vm1, %v475_v60, %v479_v54  ;;  %v570_v10 = vrot.slane %v568_v61, 1  ;;  %v2770_v12 = vcombine.low %v2603_v52, %v3281_v57  ;;  %v2762_v19 = vcombine.low %v2587_v62, %v3287_v63  ;;  %v3306_v24 = vld [vmem:[%s3217_s15 + $0x80] ss:$0 sps:$4 sm:$0x11]   ;;  %v2641_v35 = vld [vmem:[%s3217_s15 + $0x6c] sm:$0xe] }
  0x22   : > { %v492_v14 = vsel %vm468_vm1, %v487_v0, %v491_v59  ;;  %v583_v15 = vor.u32 %v582_v3, %v578_v47  ;;  %v575_v16 = vrot.slane %v573_v7, 1  ;;  %v1079_v21 = vshrl.u32 %v3224_v2, 16  ;;  %v2633_v43 = vld [vmem:[%s3217_s15 + $0xc] sm:$0xe]  ;;  %v2642_v45 = vld [vmem:[%s3217_s15 + $0x78] sm:$0xe] }
  0x23   : > { %663 = vrot.lane.b32.xlu1 %v492_v14, %s3181_s18  ;;  %v571_v8 = vor.u32 %v570_v10, %v566_v30  ;;  %v1083_v22 = vrot.slane %v1081_v11, 1  ;;  %v1093_v26 = vshll.u32 %v2770_v12, 16  ;;  %v1086_v27 = vshll.u32 %v3294_v13, 16  ;;  %v3317_v11 = vld [vmem:[%s3217_s15 + $0x20] ss:$0 sps:$4 sm:$0x11]  }
  0x24   : > { %661 = vrot.lane.b32.xlu0 %v480_v9, %s3181_s18  ;;  %v588_v25 = vsel %vm468_vm1, %v583_v15, %v587_v6  ;;  %v983_v28 = vshrl.u32 %v3231_v5, 16  ;;  %v997_v30 = vshll.u32 %v2762_v19, 16  ;;  %v987_v32 = vrot.slane %v985_v17, 1  ;;  %v2634_v50 = vld [vmem:[%s3217_s15 + $0x18] sm:$0xe] }
  0x25   : > { %v576_v29 = vsel %vm468_vm1, %v571_v8, %v575_v16  ;;  %v990_v2 = vshll.u32 %v3299_v20, 16  ;;  %v1084_v33 = vor.u32 %v1083_v22, %v1079_v21  ;;  %v1088_v34 = vrot.slane %v1086_v27, 1  ;;  %v2665_v55 = vld [vmem:[%s3217_s15 + $0x78] sm:$0xf]  ;;  %v3337_v56 = vld [vmem:[%s3217_s15 + $0x7c] sm:$0xf] }
  0x26   : > { %v988_v36 = vor.u32 %v987_v32, %v983_v28  ;;  %v1091_v37 = vshrl.u32 %v2770_v12, 16  ;;  %v1095_v39 = vrot.slane %v1093_v26, 1  ;;  %v1098_v5 = vshll.u32 %v3306_v24, 16  ;;  %v2649_v3 = vld [vmem:[%s3217_s15 + $0x18] sm:$0xf] }
  0x27   : > { %679 = vrot.lane.b32.xlu1 %v588_v25, %s3181_s18  ;;  %v992_v17 = vrot.slane %v990_v2, 1  ;;  %v995_v40 = vshrl.u32 %v2762_v19, 16  ;;  %v999_v41 = vrot.slane %v997_v30, 1  ;;  %v1002_v42 = vshll.u32 %v3317_v11, 16  ;;  %v3348_v6 = vld [vmem:[%s3217_s15 + $0x1c] sm:$0xf] }
  0x28   : > { %677 = vrot.lane.b32.xlu0 %v576_v29, %s3181_s18  ;;  %v2801_v44 = vcombine.low %v2641_v35, %v3221_v1  ;;  %v1089_v46 = vsel %vm468_vm1, %v1084_v33, %v1088_v34  ;;  %v1096_v47 = vor.u32 %v1095_v39, %v1091_v37  ;;  %v1100_v48 = vrot.slane %v1098_v5, 1  ;;  %v2651_v16 = vld [vmem:[%s3217_s15 + $0x24] sm:$0xf]  ;;  %v3368_v21 = vld [vmem:[%s3217_s15 + $0x80] ss:$0 sps:$4 sm:$0x11]  }
  0x29   : > { %v2793_v49 = vcombine.low %v2633_v43, %v3228_v4  ;;  %v993_v51 = vsel %vm468_vm1, %v988_v36, %v992_v17  ;;  %v1000_v52 = vor.u32 %v999_v41, %v995_v40  ;;  %v1004_v53 = vrot.slane %v1002_v42, 1  ;;  %v3375_v27 = vld [vmem:[%s3217_s15 + $0x20] ss:$0 sps:$4 sm:$0x11]   ;;  %v166_v37 = vld [vmem:[%s3217_s15 + $0x78] sm:$0xf] }
  0x2a   : > { %v1278_v1 = vrot.slane %v2801_v44, 1  ;;  %v1279_v54 = vrot.slane %v3294_v13, 1  ;;  %v2802_v58 = vcombine.low %v2642_v45, %v3281_v57  ;;  %v2794_v4 = vcombine.low %v2634_v50, %v3287_v63  ;;  %v2667_v63 = vld [vmem:[%s3217_s15 + $0x84] sm:$0xf]  ;;  %v3357_v13 = vld [vmem:[%s3217_s15 + $0x88] sm:$0xf] }
  0x2b   : > { %920 = vrot.lane.b32.xlu1 %v2770_v12, %s3179_s16  ;;  %v1101_v59 = vsel %vm468_vm1, %v1096_v47, %v1100_v48  ;;  %v1005_v60 = vsel %vm468_vm1, %v1000_v52, %v1004_v53  ;;  %v1254_v61 = vrot.slane %v2793_v49, 1  ;;  %v1255_v62 = vrot.slane %v3299_v20, 1  ;;  %v3384_v34 = vld [vmem:[%s3217_s15 + $0x2c] ss:$0 sps:$4 sm:$0x11]  }
  0x2c   : > { %904 = vrot.lane.b32.xlu0 %v2762_v19, %s3179_s16  ;;  %v2817_v0 = vcombine.low %v2665_v55, %v3337_v56  ;;  %v1280_v57 = vsel %vm741_vm0, %v1278_v1, %v1279_v54  ;;  %v1281_v7 = vrot.slane %v2802_v58, 1  ;;  %v1282_v9 = vrot.slane %v3306_v24, 1  ;;  %v3363_v19 = vld [vmem:[%s3217_s15 + $0x28] sm:$0xf]  ;;  %v3389_v39 = vld [vmem:[%s3217_s15 + $0x7c] sm:$0xf] }
  0x2d   : > { %v1257_v10 = vrot.slane %v2794_v4, 1  ;;  %v1258_v12 = vrot.slane %v3317_v11, 1  ;;  %v1256_v14 = vsel %vm741_vm0, %v1254_v61, %v1255_v62  ;;  %v2809_v15 = vcombine.low %v2649_v3, %v3348_v6  ;;  %v3380_v11 = vld [vmem:[%s3217_s15 + $0x8c] ss:$0 sps:$4 sm:$0x11]  }
  0x2e   : > { %v1593_v20 = vshll.u32 %v2817_v0, 16  ;;  %v2818_v8 = vcombine.low %v2667_v63, %v3357_v13  ;;  %v1283_v22 = vsel %vm741_vm0, %v1281_v7, %v1282_v9  ;;  %v2810_v24 = vcombine.low %v2651_v16, %v3363_v19  ;;  %v150_v17 = vld [vmem:[%s3217_s15 + $0x18] sm:$0xf]  ;;  %v3393_v40 = vld [vmem:[%s3217_s15 + $0x1c] sm:$0xf] }
  0x2f   : > { %1190 = vrot.lane.b32.xlu1 %v1089_v46, %s3182_s19  ;;  %v1259_v25 = vsel %vm741_vm0, %v1257_v10, %v1258_v12  ;;  %v1497_v26 = vshll.u32 %v2809_v15, 16  ;;  %v1591_v28 = vshrl.u32 %v2817_v0, 16  ;;  %v1598_v32 = vshll.u32 %v3368_v21, 16  ;;  %v2705_v41 = vld [vmem:[%s3217_s15 + $0x78] sm:$0xe] }
  0x30   : > { %1174 = vrot.lane.b32.xlu0 %v993_v51, %s3182_s19  ;;  %v1595_v29 = vrot.slane %v1593_v20, 1  ;;  %v1605_v30 = vshll.u32 %v2818_v8, 16  ;;  %v1495_v2 = vshrl.u32 %v2809_v15, 16  ;;  %v1509_v33 = vshll.u32 %v2810_v24, 16  ;;  %v2697_v46 = vld [vmem:[%s3217_s15 + $0x18] sm:$0xe] }
  0x31   : > { %v1499_v35 = vrot.slane %v1497_v26, 1  ;;  %v1502_v36 = vshll.u32 %v3375_v27, 16  ;;  %v1600_v42 = vrot.slane %v1598_v32, 1  ;;  %v1603_v43 = vshrl.u32 %v2818_v8, 16  ;;  %v152_v9 = vld [vmem:[%s3217_s15 + $0x24] sm:$0xf] }
  0x32   : > { %v1596_v5 = vor.u32 %v1595_v29, %v1591_v28  ;;  %v1607_v44 = vrot.slane %v1605_v30, 1  ;;  %v1610_v45 = vshll.u32 %v3380_v11, 16  ;;  %v1507_v47 = vshrl.u32 %v2810_v24, 16  ;;  %v3411_v4 = vld [vmem:[%s3217_s15 + $0x80] ss:$0 sps:$4 sm:$0x11]  }
  0x33   : > { %1192 = vrot.lane.b32.xlu1 %v1101_v59, %s3182_s19  ;;  %v1511_v48 = vrot.slane %v1509_v33, 1  ;;  %v1514_v49 = vshll.u32 %v3384_v34, 16  ;;  %v3402_v50 = vcombine.low %v166_v37, %v3389_v39  ;;  %v1500_v51 = vor.u32 %v1499_v35, %v1495_v2  ;;  %v3428_v10 = vld [vmem:[%s3217_s15 + $0x28] sm:$0xf]  ;;  %v2706_v12 = vld [vmem:[%s3217_s15 + $0x84] sm:$0xe] }
  0x34   : > { %1176 = vrot.lane.b32.xlu0 %v1005_v60, %s3182_s19  ;;  %v1504_v52 = vrot.slane %v1502_v36, 1  ;;  %v3405_v53 = vcombine.low %v150_v17, %v3393_v40  ;;  %v2849_v1 = vcombine.low %v2705_v41, %v3337_v56  ;;  %v2841_v54 = vcombine.low %v2697_v46, %v3348_v6  ;;  %v3417_v56 = vld [vmem:[%s3217_s15 + $0x20] ss:$0 sps:$4 sm:$0x11]   ;;  %v168_v6 = vld [vmem:[%s3217_s15 + $0x84] sm:$0xf] }
  0x35   : > { %v1608_v55 = vor.u32 %v1607_v44, %v1603_v43  ;;  %v1612_v58 = vrot.slane %v1610_v45, 1  ;;  %v1601_v59 = vsel %vm468_vm1, %v1596_v5, %v1600_v42  ;;  %v1512_v60 = vor.u32 %v1511_v48, %v1507_v47  ;;  %v3453_v36 = vld [vmem:[%s3217_s15 + $0x8c] ss:$0 sps:$4 sm:$0x11]  }
  0x36   : > { %v1516_v61 = vrot.slane %v1514_v49, 1  ;;  %v592_v62 = vshll.u32 %v3402_v50, 16  ;;  %v496_v3 = vshll.u32 %v3405_v53, 16  ;;  %v1790_v63 = vrot.slane %v2849_v1, 1 }
  0x37   : > { %1318 = vrot.lane.b32.xlu1 %v1280_v57, %s3183_s20  ;;  %v3423_v57 = vld [vmem:[%s3217_s15 + $0x88] sm:$0xf]  ;;  %v1791_v7 = vrot.slane %v3368_v21, 1  ;;  %v1767_v16 = vrot.slane %v3375_v27, 1  ;;  %v597_v20 = vshll.u32 %v3411_v4, 16  ;;  %v494_v26 = vshrl.u32 %v3405_v53, 16 }
  0x38   : > { %1302 = vrot.lane.b32.xlu0 %v1256_v14, %s3183_s20  ;;  %v1613_v14 = vsel %vm468_vm1, %v1608_v55, %v1612_v58  ;;  %v1517_v21 = vsel %vm468_vm1, %v1512_v60, %v1516_v61  ;;  %v498_v28 = vrot.slane %v496_v3, 1  ;;  %v501_v27 = vshll.u32 %v3417_v56, 16 }
  0x39   : > { %v3445_v29 = vcombine.low %v152_v9, %v3428_v10  ;;  %v2850_v30 = vcombine.low %v2706_v12, %v3357_v13  ;;  %v599_v2 = vrot.slane %v597_v20, 1  ;;  %v1792_v33 = vsel %vm741_vm0, %v1790_v63, %v1791_v7  ;;  %v3458_v13 = vld [vmem:[%s3217_s15 + $0x2c] ss:$0 sps:$4 sm:$0x11]   ;;  %v197_v63 = vld [vmem:[%s3217_s15 + $0x24] sm:$0xe] }
  0x3a   : > { %v499_v17 = vor.u32 %v498_v28, %v494_v26  ;;  %v503_v41 = vrot.slane %v501_v27, 1  ;;  %v1794_v43 = vrot.slane %v3380_v11, 1  ;;  %v1770_v45 = vrot.slane %v3384_v34, 1  ;;  %v196_v34 = vld [vmem:[%s3217_s15 + $0x18] sm:$0xe] }
  0x3b   : > { %1320 = vrot.lane.b32.xlu1 %v1283_v22, %s3183_s20  ;;  %v590_v22 = vshrl.u32 %v3402_v50, 16  ;;  %4520 = vst [vmem:[#allocation2_spill] sm:$0xff] %v3445_v29  ;;  %v1793_v42 = vrot.slane %v2850_v30, 1  ;;  %v609_v49 = vshll.u32 %v3453_v36, 16  ;;  %v506_v1 = vshrl.u32 %v3445_v29, 16 }
  0x3c   : > { %1304 = vrot.lane.b32.xlu0 %v1259_v25, %s3183_s20  ;;  %v3440_v25 = vcombine.low %v168_v6, %v3423_v57  ;;  %v2747_v61 = vcombine.low %v196_v34, %v3393_v40  ;;  %v773_v7 = vrot.slane %v3411_v4, 1  ;;  %v749_v9 = vrot.slane %v3417_v56, 1  ;;  %v2589_v56 = vld [vmem:[%s3217_s15 + $0x24] sm:$0xf]  ;;  %v2607_v28 = vld [vmem:[%s3217_s15 + $0x90] sm:$0xf] }
  0x3d   : > { %v1795_v55 = vsel %vm741_vm0, %v1793_v42, %v1794_v43  ;;  %v2748_v4 = vcombine.low %v197_v63, %v3428_v10  ;;  %v3505_v10 = vld [vmem:[%s3217_s15 + $0x94] sm:$0xf] }
  0x3e   : > { %v604_v37 = vshll.u32 %v3440_v25, 16  ;;  %v602_v47 = vshrl.u32 %v3440_v25, 16 }
  0x3f   : > { %1430 = vrot.lane.b32.xlu1 %v2817_v0, %s3184_s21  ;;  %v1505_v0 = vsel %vm468_vm1, %v1500_v51, %v1504_v52  ;;  %v204_v51 = vld [vmem:[%s3217_s15 + $0x78] sm:$0xe]  ;;  %v504_v52 = vsel %vm468_vm1, %v499_v17, %v503_v41  ;;  %v751_v30 = vrot.slane %v2748_v4, 1  ;;  %v3519_v41 = vld [vmem:[%s3217_s15 + $0x8c] ss:$0 sps:$4 sm:$0x11]  }
  0x40   : > { %1414 = vrot.lane.b32.xlu0 %v2809_v15, %s3184_s21  ;;  %v1766_v15 = vrot.slane %v2841_v54, 1  ;;  %v606_v48 = vrot.slane %v604_v37, 1  ;;  %v513_v54 = vshll.u32 %v3458_v13, 16  ;;  %v2755_v60 = vcombine.low %v204_v51, %v3389_v39  ;;  %v2636_v4 = vld [vmem:[%s3217_s15 + $0x30] sm:$0xe] }
  0x42   : > { %v1768_v5 = vsel %vm741_vm0, %v1766_v15, %v1767_v16  ;;  %v607_v58 = vor.u32 %v606_v48, %v602_v47  ;;  %v515_v6 = vrot.slane %v513_v54, 1  ;;  %v772_v40 = vrot.slane %v2755_v60, 1  ;;  %v2605_v15 = vld [vmem:[%s3217_s15 + $0x84] sm:$0xf]  ;;  %v3489_v16 = vld [vmem:[%s3217_s15 + $0x88] sm:$0xf] }
  0x43   : > { %1432 = vrot.lane.b32.xlu1 %v2818_v8, %s3184_s21  ;;  %v2698_v8 = vld [vmem:[%s3217_s15 + $0x24] sm:$0xe]  ;;  %v1110_v47 = vshll.u32 %v3519_v41, 16 }
  0x44   : > { %1416 = vrot.lane.b32.xlu0 %v2810_v24, %s3184_s21  ;;  %v594_v24 = vrot.slane %v592_v62, 1  ;;  %v2842_v32 = vcombine.low %v2698_v8, %v3363_v19  ;;  %v508_v19 = vshll.u32 %v3445_v29, 16  ;;  %v205_v62 = vld [vmem:[%s3217_s15 + $0x84] sm:$0xe]  ;;  %v3495_v8 = vld [vmem:[%s3217_s15 + $0x28] sm:$0xf] }
  0x45   : > { %v2756_v12 = vcombine.low %v205_v62, %v3423_v57  ;;  %v2763_v26 = vcombine.low %v2589_v56, %v3495_v8  ;;  %v1112_v54 = vrot.slane %v1110_v47, 1  ;;  %v3120_v47 = vld [vmem:[%s4513_s1 + $0x10] ss:$0 sps:$4 sm:$0x33]   ;;  %v158_v29 = vld [vmem:[%s3217_s15 + $0x48] sm:$0xf] }
  0x46   : > { %v595_v35 = vor.u32 %v594_v24, %v590_v22  ;;  %v1769_v44 = vrot.slane %v2842_v32, 1  ;;  %v510_v11 = vrot.slane %v508_v19, 1  ;;  %v2771_v22 = vcombine.low %v2605_v15, %v3489_v16  ;;  %v3523_v19 = vld [vmem:[%s3217_s15 + $0x2c] ss:$0 sps:$4 sm:$0x11]   ;;  %3005 = vmatprep.subr.msk.bf16.mxu0 %vm2163_vm2, %v3120_v47  ;;  %3006 = vmatprep.subr.msk.bf16.mxu1 %vm2163_vm2, %v3120_v47 }
  0x47   : > { %1702 = vrot.lane.b32.xlu1 %v1601_v59, %s3185_s22  ;;  %v611_v59 = vrot.slane %v609_v49, 1  ;;  %v775_v57 = vrot.slane %v2756_v12, 1  ;;  %v774_v24 = vsel %vm741_vm0, %v772_v40, %v773_v7  ;;  %v752_v32 = vrot.slane %v3458_v13, 1  ;;  %v3529_v49 = vld [vmem:[%s3217_s15 + $0x98] ss:$0 sps:$4 sm:$0x11]  }
  0x48   : > { %1686 = vrot.lane.b32.xlu0 %v1505_v0, %s3185_s22  ;;  %v600_v46 = vsel %vm468_vm1, %v595_v35, %v599_v2  ;;  %v1771_v0 = vsel %vm741_vm0, %v1769_v44, %v1770_v45  ;;  %v511_v3 = vor.u32 %v510_v11, %v506_v1  ;;  %v2591_v2 = vld [vmem:[%s3217_s15 + $0x30] sm:$0xf]  ;;  %v1105_v35 = vshll.u32 %v2771_v22, 16 }
  0x49   : > { %v612_v39 = vsel %vm468_vm1, %v607_v58, %v611_v59  ;;  %v753_v13 = vsel %vm741_vm0, %v751_v30, %v752_v32  ;;  %v1103_v43 = vshrl.u32 %v2771_v22, 16  ;;  %v1007_v45 = vshrl.u32 %v2763_v26, 16  ;;  %v2643_v59 = vld [vmem:[%s3217_s15 + $0x84] sm:$0xe]  ;;  %v2653_v30 = vld [vmem:[%s3217_s15 + $0x30] sm:$0xf] }
  0x4a   : > { %v516_v20 = vsel %vm468_vm1, %v511_v3, %v515_v6  ;;  %v1107_v44 = vrot.slane %v1105_v35, 1  ;;  %v1014_v51 = vshll.u32 %v3523_v19, 16  ;;  %v1122_v58 = vshll.u32 %v3529_v49, 16  ;;  %v2635_v3 = vld [vmem:[%s3217_s15 + $0x24] sm:$0xe] }
  0x4b   : > { %1704 = vrot.lane.b32.xlu1 %v1613_v14, %s3185_s22  ;;  %v748_v14 = vrot.slane %v2747_v61, 1  ;;  %v2644_v6 = vld [vmem:[%s3217_s15 + $0x90] sm:$0xe]  ;;  %v2803_v63 = vcombine.low %v2643_v59, %v3489_v16  ;;  %v3564_v32 = vld [vmem:[%s3217_s15 + $0x34] sm:$0xf] }
  0x4c   : > { %1688 = vrot.lane.b32.xlu0 %v1517_v21, %s3185_s22  ;;  %v776_v21 = vrot.slane %v3453_v36, 1  ;;  %v2772_v36 = vcombine.low %v2607_v28, %v3505_v10  ;;  %v1108_v1 = vor.u32 %v1107_v44, %v1103_v43  ;;  %v1016_v60 = vrot.slane %v1014_v51, 1  ;;  %v2671_v35 = vld [vmem:[%s3217_s15 + $0x9c] sm:$0xf] }
  0x4d   : > { %v750_v27 = vsel %vm741_vm0, %v748_v14, %v749_v9  ;;  %v1124_v12 = vrot.slane %v1122_v58, 1  ;;  %v1284_v56 = vrot.slane %v2803_v63, 1  ;;  %v1261_v28 = vrot.slane %v3523_v19, 1  ;;  %v3594_v51 = vld [vmem:[%s3217_s15 + $0x38] ss:$0 sps:$4 sm:$0x11]  }
  0x4e   : > { %v777_v37 = vsel %vm741_vm0, %v775_v57, %v776_v21  ;;  %v1117_v42 = vshll.u32 %v2772_v36, 16  ;;  %v1115_v11 = vshrl.u32 %v2772_v36, 16  ;;  %v1113_v7 = vsel %vm468_vm1, %v1108_v1, %v1112_v54  ;;  %v2669_v57 = vld [vmem:[%s3217_s15 + $0x90] sm:$0xf]  ;;  %v3556_v21 = vld [vmem:[%s3217_s15 + $0x94] sm:$0xf] }
  0x4f   : > { %1830 = vrot.lane.b32.xlu1 %v1792_v33, %s3186_s23  ;;  %v3511_v33 = vld [vmem:[%s3217_s15 + $0x34] sm:$0xf]  ;;  %v2811_v19 = vcombine.low %v2653_v30, %v3564_v32  ;;  %v3597_v1 = vld [vmem:[%s3217_s15 + $0xa4] ss:$0 sps:$4 sm:$0x11]  }
  0x50   : > { %1814 = vrot.lane.b32.xlu0 %v1768_v5, %s3186_s23  ;;  %v1009_v5 = vshll.u32 %v2763_v26, 16  ;;  %v2764_v17 = vcombine.low %v2591_v2, %v3511_v33  ;;  %v2819_v2 = vcombine.low %v2669_v57, %v3556_v21  ;;  %v170_v63 = vld [vmem:[%s3217_s15 + $0x90] sm:$0xf] }
  0x52   : > { %v1011_v48 = vrot.slane %v1009_v5, 1  ;;  %v1019_v61 = vshrl.u32 %v2764_v17, 16  ;;  %v3576_v5 = vld [vmem:[%s3217_s15 + $0x40] sm:$0xf]  ;;  %v1617_v43 = vshll.u32 %v2819_v2, 16 }
  0x53   : > { %681 = vrot.lane.b32.xlu1 %v600_v46, %s3181_s18  ;;  %v1021_v46 = vshll.u32 %v2764_v17, 16 }
  0x54   : > { %665 = vrot.lane.b32.xlu0 %v504_v52, %s3181_s18  ;;  %v3533_v52 = vld [vmem:[%s3217_s15 + $0x38] ss:$0 sps:$4 sm:$0x11]   ;;  %v1012_v34 = vor.u32 %v1011_v48, %v1007_v45  ;;  %v1619_v58 = vrot.slane %v1617_v43, 1 }
  0x55   : > { %v1023_v62 = vrot.slane %v1021_v46, 1  ;;  %v3587_v46 = vld [vmem:[%s3217_s15 + $0x98] ss:$0 sps:$4 sm:$0x11]  }
  0x56   : > { %v1017_v40 = vsel %vm468_vm1, %v1012_v34, %v1016_v60  ;;  %v1615_v34 = vshrl.u32 %v2819_v2, 16  ;;  %v1622_v59 = vshll.u32 %v3587_v46, 16  ;;  %v1519_v60 = vshrl.u32 %v2811_v19, 16 }
  0x57   : > { %1832 = vrot.lane.b32.xlu1 %v1795_v55, %s3186_s23  ;;  %v1119_v55 = vrot.slane %v1117_v42, 1  ;;  %v1024_v14 = vor.u32 %v1023_v62, %v1019_v61  ;;  %v2165_v61 = vsel %vm2163_vm2, %v3120_v47, 0  ;;  %v3130_v62 = vld [vmem:[%s4513_s1] sm:$0xff]  }
  0x58   : > { %1816 = vrot.lane.b32.xlu0 %v1771_v0, %s3186_s23  ;;  %v1026_v0 = vshll.u32 %v3533_v52, 16  ;;  %2962 = vmatpush3.bf16.msra.mxu0 %v2165_v61  ;;  %v3655_v47 = vld [vmem:[%s3217_s15 + $0x40] sm:$0xf] }
  0x59   : > { %v1120_v9 = vor.u32 %v1119_v55, %v1115_v11  ;;  %v3125_v11 = vld [vmem:[%s4513_s1 + $0x8] sm:$0xff]   ;;  %v3604_v55 = vld [vmem:[%s3217_s15 + $0x44] ss:$0 sps:$4 sm:$0x11]   ;;  %3002 = vmatpush3.bf16.msra.mxu1 %v2165_v61 }
  0x5a   : > { %v1028_v15 = vrot.slane %v1026_v0, 1  ;;  %v2707_v0 = vld [vmem:[%s3217_s15 + $0x90] sm:$0xe]  ;;  %2963 = vmatprep.subr.bf16.mxu0 %v3125_v11  ;;  %3000 = vmatprep.subr.bf16.mxu1 %v3125_v11 }
  0x5b   : > { %683 = vrot.lane.b32.xlu1 %v612_v39, %s3181_s18  ;;  %v2795_v39 = vcombine.low %v2635_v3, %v3495_v8  ;;  %v1125_v16 = vsel %vm468_vm1, %v1120_v9, %v1124_v12  ;;  %v1285_v8 = vrot.slane %v3519_v41, 1  ;;  %v1634_v12 = vshll.u32 %v3597_v1, 16 }
  0x5c   : > { %667 = vrot.lane.b32.xlu0 %v516_v20, %s3181_s18  ;;  %v2804_v20 = vcombine.low %v2644_v6, %v3505_v10  ;;  %v1526_v6 = vshll.u32 %v3594_v51, 16  ;;  %2964 = vmatpush3.bf16.msra.mxu0 %v3125_v11 }
  0x5d   : > { %3003 = vmatpush3.bf16.msra.mxu1 %v3125_v11  ;;  %2965 = vmatprep.subr.bf16.mxu0 %v3130_v62 }
  0x5e   : > { %v1287_v10 = vrot.slane %v2804_v20, 1  ;;  %3001 = vmatprep.subr.bf16.mxu1 %v3130_v62 }
  0x5f   : > { %810 = vrot.lane.b32.xlu1 %v774_v24, %s3180_s17  ;;  %v1029_v24 = vsel %vm468_vm1, %v1024_v14, %v1028_v15 }
  0x60   : > { %794 = vrot.lane.b32.xlu0 %v750_v27, %s3180_s17  ;;  %v1288_v27 = vrot.slane %v3529_v49, 1  ;;  %v1521_v49 = vshll.u32 %v2811_v19, 16  ;;  %2966 = vmatpush3.bf16.msra.mxu0 %v3130_v62 }
  0x61   : > { %3004 = vmatpush3.bf16.msra.mxu1 %v3130_v62 }
  0x62   : > { %v1289_v45 = vsel %vm741_vm0, %v1287_v10, %v1288_v27  ;;  %v1523_v3 = vrot.slane %v1521_v49, 1  ;;  %v1636_v10 = vrot.slane %v1634_v12, 1  ;;  %v3682_v12 = vld [vmem:[%s3217_s15 + $0xa4] ss:$0 sps:$4 sm:$0x11]  }
  0x63   : > { %812 = vrot.lane.b32.xlu1 %v777_v37, %s3180_s17  ;;  %v2655_v37 = vld [vmem:[%s3217_s15 + $0x3c] sm:$0xf] }
  0x64   : > { %796 = vrot.lane.b32.xlu0 %v753_v13, %s3180_s17  ;;  %v1264_v13 = vrot.slane %v3533_v52, 1  ;;  %v2812_v44 = vcombine.low %v2655_v37, %v3576_v5 }
  0x66   : > { %v1533_v54 = vshll.u32 %v2812_v44, 16  ;;  %v1531_v15 = vshrl.u32 %v2812_v44, 16 }
  0x67   : > { %922 = vrot.lane.b32.xlu1 %v2771_v22, %s3179_s16  ;;  %v2796_v22 = vcombine.low %v2636_v4, %v3511_v33  ;;  %v1286_v33 = vsel %vm741_vm0, %v1284_v56, %v1285_v8  ;;  %v1538_v4 = vshll.u32 %v3604_v55, 16  ;;  %v1620_v56 = vor.u32 %v1619_v58, %v1615_v34  ;;  %v2700_v58 = vld [vmem:[%s3217_s15 + $0x3c] sm:$0xe] }
  0x68   : > { %906 = vrot.lane.b32.xlu0 %v2763_v26, %s3179_s16  ;;  %v1260_v26 = vrot.slane %v2795_v39, 1  ;;  %v154_v39 = vld [vmem:[%s3217_s15 + $0x30] sm:$0xf]  ;;  %v1535_v20 = vrot.slane %v1533_v54, 1  ;;  %v1624_v8 = vrot.slane %v1622_v59, 1  ;;  %v1773_v34 = vrot.slane %v3594_v51, 1 }
  0x69   : > { %v1263_v41 = vrot.slane %v2796_v22, 1  ;;  %v1524_v22 = vor.u32 %v1523_v3, %v1519_v60 }
  0x6b   : > { %924 = vrot.lane.b32.xlu1 %v2772_v36, %s3179_s16  ;;  %v3570_v36 = vld [vmem:[%s3217_s15 + $0xa0] sm:$0xf]  ;;  %v1265_v48 = vsel %vm741_vm0, %v1263_v41, %v1264_v13 }
  0x6c   : > { %908 = vrot.lane.b32.xlu0 %v2764_v17, %s3179_s16  ;;  %v1262_v17 = vsel %vm741_vm0, %v1260_v26, %v1261_v28  ;;  %v2820_v42 = vcombine.low %v2671_v35, %v3570_v36  ;;  %v2851_v28 = vcombine.low %v2707_v0, %v3556_v21  ;;  %v1540_v35 = vrot.slane %v1538_v4, 1 }
  0x6d   : > { %v1625_v21 = vsel %vm468_vm1, %v1620_v56, %v1624_v8  ;;  %v3691_v56 = vld [vmem:[%s3217_s15 + $0x44] ss:$0 sps:$4 sm:$0x11]  }
  0x6e   : > { %v1629_v52 = vshll.u32 %v2820_v42, 16  ;;  %v1627_v9 = vshrl.u32 %v2820_v42, 16  ;;  %v1796_v43 = vrot.slane %v2851_v28, 1  ;;  %v1800_v28 = vrot.slane %v3597_v1, 1 }
  0x6f   : > { %1194 = vrot.lane.b32.xlu1 %v1113_v7, %s3182_s19  ;;  %v3615_v7 = vld [vmem:[%s3217_s15 + $0x94] sm:$0xf] }
  0x70   : > { %1178 = vrot.lane.b32.xlu0 %v1017_v40, %s3182_s19  ;;  %v3620_v40 = vld [vmem:[%s3217_s15 + $0x34] sm:$0xf]  ;;  %v1631_v14 = vrot.slane %v1629_v52, 1  ;;  %v3627_v57 = vcombine.low %v170_v63, %v3615_v7 }
  0x71   : > { %v3630_v26 = vcombine.low %v154_v39, %v3620_v40 }
  0x72   : > { %4521 = vst [vmem:[#allocation3_spill] sm:$0xff] %v3627_v57  ;;  %v1632_v30 = vor.u32 %v1631_v14, %v1627_v9  ;;  %v616_v37 = vshll.u32 %v3627_v57, 16  ;;  %v2844_v9 = vcombine.low %v2700_v58, %v3576_v5 }
  0x73   : > { %1196 = vrot.lane.b32.xlu1 %v1125_v16, %s3182_s19  ;;  %v2699_v16 = vld [vmem:[%s3217_s15 + $0x30] sm:$0xe]  ;;  %4522 = vst [vmem:[#allocation4_spill] sm:$0xff] %v3630_v26  ;;  %v520_v13 = vshll.u32 %v3630_v26, 16  ;;  %v518_v62 = vshrl.u32 %v3630_v26, 16 }
  0x74   : > { %1180 = vrot.lane.b32.xlu0 %v1029_v24, %s3182_s19  ;;  %v1528_v24 = vrot.slane %v1526_v6, 1  ;;  %v2843_v27 = vcombine.low %v2699_v16, %v3564_v32  ;;  %v1637_v52 = vsel %vm468_vm1, %v1632_v30, %v1636_v10  ;;  %v618_v59 = vrot.slane %v616_v37, 1  ;;  %v206_v37 = vld [vmem:[%s3217_s15 + $0x90] sm:$0xe] }
  0x75   : > { %v522_v0 = vrot.slane %v520_v13, 1  ;;  %v1775_v10 = vrot.slane %v2844_v9, 1  ;;  %v633_v30 = vshll.u32 %v3682_v12, 16 }
  0x76   : > { %v1529_v32 = vsel %vm468_vm1, %v1524_v22, %v1528_v24  ;;  %v1772_v54 = vrot.slane %v2843_v27, 1  ;;  %v1776_v27 = vrot.slane %v3604_v55, 1 }
  0x77   : > { %1322 = vrot.lane.b32.xlu1 %v1286_v33, %s3183_s20  ;;  %v3636_v33 = vld [vmem:[%s3217_s15 + $0x98] ss:$0 sps:$4 sm:$0x11]   ;;  %v523_v16 = vor.u32 %v522_v0, %v518_v62  ;;  %v199_v62 = vld [vmem:[%s3217_s15 + $0x3c] sm:$0xe] }
  0x78   : > { %1306 = vrot.lane.b32.xlu0 %v1262_v17, %s3183_s20  ;;  %v3642_v17 = vld [vmem:[%s3217_s15 + $0x38] ss:$0 sps:$4 sm:$0x11]   ;;  %v621_v60 = vshll.u32 %v3636_v33, 16 }
  0x79   : > { %v525_v3 = vshll.u32 %v3642_v17, 16 }
  0x7b   : > { %1324 = vrot.lane.b32.xlu1 %v1289_v45, %s3183_s20  ;;  %v156_v45 = vld [vmem:[%s3217_s15 + $0x3c] sm:$0xf]  ;;  %v527_v5 = vrot.slane %v525_v3, 1 }
  0x7c   : > { %1308 = vrot.lane.b32.xlu0 %v1265_v48, %s3183_s20  ;;  %v2708_v48 = vld [vmem:[%s3217_s15 + $0x9c] sm:$0xe]  ;;  %v3674_v6 = vcombine.low %v156_v45, %v3655_v47 }
  0x7d   : > { %v2852_v51 = vcombine.low %v2708_v48, %v3570_v36  ;;  %v1774_v36 = vsel %vm741_vm0, %v1772_v54, %v1773_v34  ;;  %v528_v13 = vsel %vm468_vm1, %v523_v16, %v527_v5  ;;  %v1777_v34 = vsel %vm741_vm0, %v1775_v10, %v1776_v27  ;;  %v2595_v27 = vld [vmem:[%s3217_s15 + $0x48] sm:$0xf] }
  0x7e   : > { %4524 = vst [vmem:[#allocation6_spill] sm:$0xff] %v3674_v6  ;;  %v532_v8 = vshll.u32 %v3674_v6, 16  ;;  %v782_v10 = vrot.slane %v3682_v12, 1 }
  0x7f   : > { %1434 = vrot.lane.b32.xlu1 %v2819_v2, %s3184_s21  ;;  %v1536_v2 = vor.u32 %v1535_v20, %v1531_v15  ;;  %v623_v15 = vrot.slane %v621_v60, 1  ;;  %v1799_v22 = vrot.slane %v2852_v51, 1  ;;  %v2609_v51 = vld [vmem:[%s3217_s15 + $0x9c] sm:$0xf] }
  0x80   : > { %1418 = vrot.lane.b32.xlu0 %v2811_v19, %s3184_s21  ;;  %v172_v19 = vld [vmem:[%s3217_s15 + $0x9c] sm:$0xf]  ;;  %v534_v1 = vrot.slane %v532_v8, 1  ;;  %v3746_v8 = vld [vmem:[%s3217_s15 + $0xac] sm:$0xf] }
  0x81   : > { %v1541_v11 = vsel %vm468_vm1, %v1536_v2, %v1540_v35  ;;  %v1801_v48 = vsel %vm741_vm0, %v1799_v22, %v1800_v28 }
  0x83   : > { %1436 = vrot.lane.b32.xlu1 %v2820_v42, %s3184_s21  ;;  %v3650_v42 = vld [vmem:[%s3217_s15 + $0xa0] sm:$0xf] }
  0x84   : > { %1420 = vrot.lane.b32.xlu0 %v2812_v44, %s3184_s21  ;;  %v1797_v44 = vrot.slane %v3587_v46, 1  ;;  %v614_v46 = vshrl.u32 %v3627_v57, 16  ;;  %v3669_v61 = vcombine.low %v172_v19, %v3650_v42  ;;  %v530_v19 = vshrl.u32 %v3674_v6, 16 }
  0x86   : > { %4523 = vst [vmem:[#allocation5_spill] sm:$0xff] %v3669_v61  ;;  %v1798_v39 = vsel %vm741_vm0, %v1796_v43, %v1797_v44  ;;  %v619_v14 = vor.u32 %v618_v59, %v614_v46  ;;  %v628_v20 = vshll.u32 %v3669_v61, 16  ;;  %v626_v35 = vshrl.u32 %v3669_v61, 16  ;;  %v207_v59 = vld [vmem:[%s3217_s15 + $0x9c] sm:$0xe] }
  0x87   : > { %v3645_v41 = vpop.permute.xlu1 %918  ;;  %1706 = vrot.lane.b32.xlu1 %v1625_v21, %s3185_s22  ;;  %v537_v43 = vshll.u32 %v3691_v56, 16  ;;  %v2757_v44 = vcombine.low %v206_v37, %v3615_v7  ;;  %v535_v58 = vor.u32 %v534_v1, %v530_v19  ;;  %v779_v7 = vrot.slane %v3636_v33, 1  ;;  %v2593_v33 = vld [vmem:[%s3217_s15 + $0x3c] sm:$0xf] }
  0x88   : > { %v3659_v49 = vpop.permute.xlu0 %902  ;;  %1690 = vrot.lane.b32.xlu0 %v1529_v32, %s3185_s22  ;;  %v624_v2 = vsel %vm468_vm1, %v619_v14, %v623_v15  ;;  %v630_v21 = vrot.slane %v628_v20, 1  ;;  %v198_v32 = vld [vmem:[%s3217_s15 + $0x30] sm:$0xe]  ;;  %v3730_v14 = vld [vmem:[%s3217_s15 + $0xa0] sm:$0xf]  ;;  %v2750_v20 = vcombine.low %v199_v62, %v3655_v47  ;;  %v758_v37 = vrot.slane %v3691_v56, 1 }
  0x89   : > { %v2749_v45 = vcombine.low %v198_v32, %v3620_v40  ;;  %v539_v46 = vrot.slane %v537_v43, 1  ;;  %v755_v40 = vrot.slane %v3642_v17, 1  ;;  %v778_v0 = vrot.slane %v2757_v44, 1  ;;  %v3766_v1 = vld [vmem:[%s3217_s15 + $0xa4] ss:$0 sps:$4 sm:$0x11]  }
  0x8a   : > { %v2773_v5 = vcombine.low %v2609_v51, %v3730_v14  ;;  %v3782_v62 = vld [vmem:[%s3217_s15 + $0xb0] ss:$0 sps:$4 sm:$0x11]  }
  0x8b   : > { %v3677_v63 = vpop.permute.xlu1 %806  ;;  %1708 = vrot.lane.b32.xlu1 %v1637_v52, %s3185_s22  ;;  %v631_v52 = vor.u32 %v630_v21, %v626_v35  ;;  %v754_v3 = vrot.slane %v2749_v45, 1  ;;  %v540_v15 = vsel %vm468_vm1, %v535_v58, %v539_v46  ;;  %v780_v22 = vsel %vm741_vm0, %v778_v0, %v779_v7  ;;  %v3788_v51 = vld [vmem:[%s3217_s15 + $0x50] ss:$0 sps:$4 sm:$0x11]  }
  0x8c   : > { %1692 = vrot.lane.b32.xlu0 %v1541_v11, %s3185_s22  ;;  %v635_v11 = vrot.slane %v633_v30, 1  ;;  %v3754_v30 = vld [vmem:[%s3217_s15 + $0x4c] sm:$0xf]  ;;  %v757_v21 = vrot.slane %v2750_v20, 1  ;;  %v1129_v12 = vshll.u32 %v2773_v5, 16 }
  0x8d   : > { %v3687_v4 = vpop.permute.xlu0 %790  ;;  %v756_v35 = vsel %vm741_vm0, %v754_v3, %v755_v40  ;;  %v2766_v19 = vcombine.low %v2595_v27, %v3754_v30 }
  0x8e   : > { %v636_v9 = vsel %vm468_vm1, %v631_v52, %v635_v11  ;;  %v759_v56 = vsel %vm741_vm0, %v757_v21, %v758_v37  ;;  %v1131_v46 = vrot.slane %v1129_v12, 1  ;;  %v1050_v37 = vshll.u32 %v3788_v51, 16 }
  0x8f   : > { %1834 = vrot.lane.b32.xlu1 %v1798_v39, %s3186_s23  ;;  %v2758_v39 = vcombine.low %v207_v59, %v3650_v42  ;;  %v2611_v42 = vld [vmem:[%s3217_s15 + $0xa8] sm:$0xf]  ;;  %v1045_v58 = vshll.u32 %v2766_v19, 16  ;;  %v1134_v59 = vshll.u32 %v3766_v1, 16  ;;  %v1043_v21 = vshrl.u32 %v2766_v19, 16 }
  0x90   : > { %v3695_v24 = vpop.permute.xlu1 %808  ;;  %1818 = vrot.lane.b32.xlu0 %v1774_v36, %s3186_s23  ;;  %v3738_v36 = vld [vmem:[%s3217_s15 + $0x40] sm:$0xf] }
  0x91   : > { %v781_v28 = vrot.slane %v2758_v39, 1  ;;  %v2765_v47 = vcombine.low %v2593_v33, %v3738_v36  ;;  %v1136_v20 = vrot.slane %v1134_v59, 1  ;;  %v2638_v59 = vld [vmem:[%s3217_s15 + $0x48] sm:$0xe] }
  0x92   : > { %v3708_v55 = vpop.permute.xlu0 %792 }
  0x93   : > { %685 = vrot.lane.b32.xlu1 %v624_v2, %s3181_s18  ;;  %v783_v43 = vsel %vm741_vm0, %v781_v28, %v782_v10  ;;  %v1033_v44 = vshll.u32 %v2765_v47, 16  ;;  %v1031_v7 = vshrl.u32 %v2765_v47, 16  ;;  %v1146_v28 = vshll.u32 %v3782_v62, 16  ;;  %v2637_v10 = vld [vmem:[%s3217_s15 + $0x3c] sm:$0xe] }
  0x94   : > { %669 = vrot.lane.b32.xlu0 %v528_v13, %s3181_s18  ;;  %v2774_v13 = vcombine.low %v2611_v42, %v3746_v8 }
  0x95   : > { %v3715_v54 = vpop.permute.xlu1 %663  ;;  %v1035_v40 = vrot.slane %v1033_v44, 1  ;;  %v3806_v44 = vld [vmem:[%s3217_s15 + $0xac] sm:$0xf] }
  0x96   : > { %v3719_v60 = vpop.permute.xlu0 %661  ;;  %v1141_v11 = vshll.u32 %v2774_v13, 16  ;;  %v1139_v33 = vshrl.u32 %v2774_v13, 16 }
  0x97   : > { %1836 = vrot.lane.b32.xlu1 %v1801_v48, %s3186_s23  ;;  %v3774_v48 = vld [vmem:[%s3217_s15 + $0x44] ss:$0 sps:$4 sm:$0x11]   ;;  %v1036_v42 = vor.u32 %v1035_v40, %v1031_v7  ;;  %v1052_v40 = vrot.slane %v1050_v37, 1 }
  0x98   : > { %1820 = vrot.lane.b32.xlu0 %v1777_v34, %s3186_s23  ;;  %v1127_v34 = vshrl.u32 %v2773_v5, 16  ;;  %v1038_v3 = vshll.u32 %v3774_v48, 16  ;;  %v1267_v37 = vrot.slane %v3774_v48, 1 }
  0x99   : > { %v3733_v17 = vpop.permute.xlu1 %679 }
  0x9a   : > { %v3740_v16 = vpop.permute.xlu0 %677  ;;  %v1132_v39 = vor.u32 %v1131_v46, %v1127_v34  ;;  %v1148_v46 = vrot.slane %v1146_v28, 1 }
  0x9b   : > { %687 = vrot.lane.b32.xlu1 %v636_v9, %s3181_s18 }
  0x9c   : > { %671 = vrot.lane.b32.xlu0 %v540_v15, %s3181_s18  ;;  %v2645_v15 = vld [vmem:[%s3217_s15 + $0x9c] sm:$0xe]  ;;  %v1137_v34 = vsel %vm468_vm1, %v1132_v39, %v1136_v20  ;;  %v3827_v39 = vld [vmem:[%s3217_s15 + $0xb8] sm:$0xf] }
  0x9d   : > { %v3756_v2 = vpop.permute.xlu1 %920 }
  0x9e   : > { %v3760_v32 = vpop.permute.xlu0 %904 }
  0x9f   : > { %814 = vrot.lane.b32.xlu1 %v780_v22, %s3180_s17  ;;  %v1143_v22 = vrot.slane %v1141_v11, 1  ;;  %v2646_v11 = vld [vmem:[%s3217_s15 + $0xa8] sm:$0xe] }
  0xa0   : > { %798 = vrot.lane.b32.xlu0 %v756_v35, %s3180_s17  ;;  %v1040_v35 = vrot.slane %v1038_v3, 1  ;;  %v2657_v3 = vld [vmem:[%s3217_s15 + $0x48] sm:$0xf] }
  0xa1   : > { %v3770_v45 = vpop.permute.xlu1 %1190 }
  0xa2   : > { %v3776_v52 = vpop.permute.xlu0 %1174 }
  0xa3   : > { %816 = vrot.lane.b32.xlu1 %v783_v43, %s3180_s17  ;;  %v2673_v43 = vld [vmem:[%s3217_s15 + $0xa8] sm:$0xf] }
  0xa4   : > { %800 = vrot.lane.b32.xlu0 %v759_v56, %s3180_s17  ;;  %v2797_v56 = vcombine.low %v2637_v10, %v3738_v36  ;;  %v3820_v36 = vcombine.low %v2673_v43, %v3806_v44  ;;  %v3823_v10 = vld [vmem:[%s3217_s15 + $0x4c] sm:$0xf] }
  0xa5   : > { %v3784_v0 = vpop.permute.xlu1 %1192 }
  0xa6   : > { %v3790_v9 = vpop.permute.xlu0 %1176 }
  0xa7   : > { %926 = vrot.lane.b32.xlu1 %v2773_v5, %s3179_s16  ;;  %v1047_v5 = vrot.slane %v1045_v58, 1  ;;  %v1144_v58 = vor.u32 %v1143_v22, %v1139_v33  ;;  %v2806_v33 = vcombine.low %v2646_v11, %v3746_v8  ;;  %v2798_v22 = vcombine.low %v2638_v59, %v3754_v30  ;;  %v3847_v30 = vld [vmem:[%s3217_s15 + $0x58] sm:$0xf]  ;;  %v3853_v11 = vld [vmem:[%s3217_s15 + $0xb0] ss:$0 sps:$4 sm:$0x11]  }
  0xa8   : > { %910 = vrot.lane.b32.xlu0 %v2765_v47, %s3179_s16  ;;  %v2805_v47 = vcombine.low %v2645_v15, %v3730_v14  ;;  %v1041_v14 = vsel %vm468_vm1, %v1036_v42, %v1040_v35  ;;  %v1291_v42 = vrot.slane %v3766_v1, 1  ;;  %v1266_v35 = vrot.slane %v2797_v56, 1  ;;  %v2659_v1 = vld [vmem:[%s3217_s15 + $0x54] sm:$0xf] }
  0xa9   : > { %v3797_v27 = vpop.permute.xlu1 %1318  ;;  %v1149_v28 = vsel %vm468_vm1, %v1144_v58, %v1148_v46  ;;  %v3840_v8 = vcombine.low %v2657_v3, %v3823_v10  ;;  %v1641_v56 = vshll.u32 %v3820_v36, 16  ;;  %v1294_v58 = vrot.slane %v3782_v62, 1 }
  0xaa   : > { %v3800_v12 = vpop.permute.xlu0 %1302  ;;  %v1290_v20 = vrot.slane %v2805_v47, 1  ;;  %v1269_v46 = vrot.slane %v2798_v22, 1  ;;  %v1270_v59 = vrot.slane %v3788_v51, 1  ;;  %v1268_v3 = vsel %vm741_vm0, %v1266_v35, %v1267_v37  ;;  %v3879_v35 = vld [vmem:[%s3217_s15 + $0x50] ss:$0 sps:$4 sm:$0x11]  }
  0xab   : > { %928 = vrot.lane.b32.xlu1 %v2774_v13, %s3179_s16  ;;  %v1048_v13 = vor.u32 %v1047_v5, %v1043_v21  ;;  %v1639_v51 = vshrl.u32 %v3820_v36, 16  ;;  %v1864_v22 = vsel %vm1846_vm3, %v3249_v18, %v3740_v16  ;;  %v3889_v16 = vld [vmem:[%s3217_s15 + $0xbc] ss:$0 sps:$4 sm:$0x11]  }
  0xac   : > { %912 = vrot.lane.b32.xlu0 %v2766_v19, %s3179_s16  ;;  %v2675_v19 = vld [vmem:[%s3217_s15 + $0xb4] sm:$0xf]  ;;  %v1292_v48 = vsel %vm741_vm0, %v1290_v20, %v1291_v42  ;;  %v1643_v20 = vrot.slane %v1641_v56, 1  ;;  %v1646_v42 = vshll.u32 %v3853_v11, 16 }
  0xad   : > { %v3813_v7 = vpop.permute.xlu1 %1320  ;;  %v1053_v5 = vsel %vm468_vm1, %v1048_v13, %v1052_v40  ;;  %v3843_v47 = vcombine.low %v2675_v19, %v3827_v39  ;;  %v3862_v13 = vcombine.low %v2659_v1, %v3847_v30  ;;  %v1545_v19 = vshll.u32 %v3840_v8, 16 }
  0xae   : > { %v3817_v15 = vpop.permute.xlu0 %1304  ;;  %v1271_v1 = vsel %vm741_vm0, %v1269_v46, %v1270_v59  ;;  %v3897_v46 = vld [vmem:[%s3217_s15 + $0x5c] ss:$0 sps:$4 sm:$0x11]  }
  0xaf   : > { %1198 = vrot.lane.b32.xlu1 %v1137_v34, %s3182_s19  ;;  %v1293_v34 = vrot.slane %v2806_v33, 1  ;;  %v1653_v33 = vshll.u32 %v3843_v47, 16  ;;  %v1557_v18 = vshll.u32 %v3862_v13, 16  ;;  %v1651_v6 = vshrl.u32 %v3843_v47, 16 }
  0xb0   : > { %1182 = vrot.lane.b32.xlu0 %v1041_v14, %s3182_s19  ;;  %v2709_v14 = vld [vmem:[%s3217_s15 + $0xa8] sm:$0xe]  ;;  %v1562_v57 = vshll.u32 %v3897_v46, 16 }
  0xb1   : > { %v3835_v21 = vpop.permute.xlu1 %1430  ;;  %v1295_v37 = vsel %vm741_vm0, %v1293_v34, %v1294_v58  ;;  %v1655_v61 = vrot.slane %v1653_v33, 1  ;;  %v1644_v34 = vor.u32 %v1643_v20, %v1639_v51  ;;  %v1648_v58 = vrot.slane %v1646_v42, 1  ;;  %v174_v20 = vld [vmem:[%s3217_s15 + $0xa8] sm:$0xf]  ;;  %v3909_v42 = vld [vmem:[%s3217_s15 + $0xac] sm:$0xf] }
  0xb2   : > { %v3849_v43 = vpop.permute.xlu0 %1414  ;;  %v1658_v33 = vshll.u32 %v3889_v16, 16  ;;  %v1559_v51 = vrot.slane %v1557_v18, 1 }
  0xb3   : > { %1200 = vrot.lane.b32.xlu1 %v1149_v28, %s3182_s19  ;;  %v2853_v28 = vcombine.low %v2709_v14, %v3806_v44  ;;  %v1543_v44 = vshrl.u32 %v3840_v8, 16  ;;  %v1547_v14 = vrot.slane %v1545_v19, 1  ;;  %v1555_v19 = vshrl.u32 %v3862_v13, 16 }
  0xb4   : > { %1184 = vrot.lane.b32.xlu0 %v1053_v5, %s3182_s19  ;;  %v1848_v5 = vsel %vm1846_vm3, %v3254_v23, %v3719_v60  ;;  %v1897_v23 = vsel %vm1879_vm4, %v1864_v22, %v3677_v63  ;;  %v1649_v18 = vsel %vm468_vm1, %v1644_v34, %v1648_v58 }
  0xb5   : > { %v3864_v40 = vpop.permute.xlu1 %1432  ;;  %v1881_v59 = vsel %vm1879_vm4, %v1848_v5, %v3687_v4  ;;  %v1930_v4 = vsel %vm1912_vm5, %v1897_v23, %v3645_v41  ;;  %v1548_v5 = vor.u32 %v1547_v14, %v1543_v44  ;;  %v3915_v26 = vrot.slane %v2853_v28, 1  ;;  %v3927_v41 = vld [vmem:[%s3217_s15 + $0x4c] sm:$0xf] }
  0xb6   : > { %v3869_v62 = vpop.permute.xlu0 %1416  ;;  %v1560_v14 = vor.u32 %v1559_v51, %v1555_v19  ;;  %v3988_v51 = vld [vmem:[%s3217_s15 + $0xb8] sm:$0xf] }
  0xb7   : > { %1326 = vrot.lane.b32.xlu1 %v1292_v48, %s3183_s20  ;;  %v2701_v48 = vld [vmem:[%s3217_s15 + $0x48] sm:$0xe] }
  0xb8   : > { %1310 = vrot.lane.b32.xlu0 %v1268_v3, %s3183_s20  ;;  %v1550_v3 = vshll.u32 %v3879_v35, 16  ;;  %v2845_v63 = vcombine.low %v2701_v48, %v3823_v10  ;;  %v1914_v10 = vsel %vm1912_vm5, %v1881_v59, %v3659_v49  ;;  %v3936_v49 = vcombine.low %v174_v20, %v3909_v42 }
  0xb9   : > { %v1703_v56 = vpop.permute.xlu1 %1702 }
  0xba   : > { %v1687_v60 = vpop.permute.xlu0 %1686 }
  0xbb   : > { %1328 = vrot.lane.b32.xlu1 %v1295_v37, %s3183_s20  ;;  %v1656_v37 = vor.u32 %v1655_v61, %v1651_v6  ;;  %v1947_v61 = vsel %vm1945_vm6, %v1914_v10, %v3776_v52  ;;  %v1660_v52 = vrot.slane %v1658_v33, 1  ;;  %v176_v33 = vld [vmem:[%s3217_s15 + $0xb4] sm:$0xf] }
  0xbc   : > { %1312 = vrot.lane.b32.xlu0 %v1271_v1, %s3183_s20  ;;  %v1963_v1 = vsel %vm1945_vm6, %v1930_v4, %v3770_v45  ;;  %v1552_v45 = vrot.slane %v1550_v3, 1  ;;  %v1980_v28 = vsel %vm1978_vm7, %v1947_v61, %v3800_v12  ;;  %v3951_v12 = vcombine.low %v158_v29, %v3927_v41 }
  0xbd   : > { %v3913_v22 = vpop.permute.xlu1 %1704  ;;  %v1996_v6 = vsel %vm1978_vm7, %v1963_v1, %v3797_v27  ;;  %v1866_v27 = vsel %vm1846_vm3, %v3261_v31, %v3733_v17  ;;  %v1564_v31 = vrot.slane %v1562_v57, 1  ;;  %v3959_v17 = vld [vmem:[%s3217_s15 + $0xb0] ss:$0 sps:$4 sm:$0x11]   ;;  %v1803_v29 = vrot.slane %v3853_v11, 1 }
  0xbe   : > { %v3921_v48 = vpop.permute.xlu0 %1688  ;;  %v2029_v44 = vsel %vm2011_vm8, %v1996_v6, %v3835_v21  ;;  %v1850_v21 = vsel %vm1846_vm3, %v3267_v38, %v3715_v54  ;;  %v1778_v38 = vrot.slane %v2845_v63, 1  ;;  %v640_v54 = vshll.u32 %v3936_v49, 16 }
  0xbf   : > { %1438 = vrot.lane.b32.xlu1 %v3820_v36, %s3184_s21  ;;  %v2013_v36 = vsel %vm2011_vm8, %v1980_v28, %v3849_v43  ;;  %v2062_v23 = vsel %vm2044_vm9, %v2029_v44, %v1703_v56  ;;  %v1899_v56 = vsel %vm1879_vm4, %v1866_v27, %v3695_v24  ;;  %v1553_v57 = vsel %vm468_vm1, %v1548_v5, %v1552_v45  ;;  %v160_v5 = vld [vmem:[%s3217_s15 + $0x54] sm:$0xf] }
  0xc0   : > { %1422 = vrot.lane.b32.xlu0 %v3840_v8, %s3184_s21  ;;  %v2046_v8 = vsel %vm2044_vm9, %v2013_v36, %v1687_v60  ;;  %v1779_v11 = vrot.slane %v3879_v35, 1  ;;  %v3976_v60 = vld [vmem:[%s3217_s15 + $0x50] ss:$0 sps:$4 sm:$0x11]   ;;  %v1932_v3 = vsel %vm1912_vm5, %v1899_v56, %v3756_v2  ;;  %v1883_v24 = vsel %vm1879_vm4, %v1850_v21, %v3708_v55  ;;  %v2710_v45 = vld [vmem:[%s3217_s15 + $0xb4] sm:$0xe] }
  0xc1   : > { %v1831_v34 = vpop.permute.xlu1 %1830  ;;  %v544_v63 = vshll.u32 %v3951_v12, 16  ;;  %v1916_v35 = vsel %vm1912_vm5, %v1883_v24, %v3760_v32  ;;  %v1965_v2 = vsel %vm1945_vm6, %v1932_v3, %v3784_v0  ;;  %v1565_v55 = vsel %vm468_vm1, %v1560_v14, %v1564_v31  ;;  %v2702_v28 = vld [vmem:[%s3217_s15 + $0x54] sm:$0xe] }
  0xc2   : > { %v1815_v58 = vpop.permute.xlu0 %1814  ;;  %v2095_v59 = vsel %vm2077_vm10, %v2062_v23, %v1831_v34  ;;  %v645_v4 = vshll.u32 %v3959_v17, 16  ;;  %v1949_v1 = vsel %vm1945_vm6, %v1916_v35, %v3790_v9  ;;  %v1998_v10 = vsel %vm1978_vm7, %v1965_v2, %v3813_v7 }
  0xc3   : > { %1440 = vrot.lane.b32.xlu1 %v3843_v47, %s3184_s21  ;;  %v2079_v43 = vsel %vm2077_vm10, %v2046_v8, %v1815_v58  ;;  %2983 = vmatprep.mubr.msk.bf16.mxu1 %vm2130_vm11, %v2095_v59  ;;  %v1661_v47 = vsel %vm468_vm1, %v1656_v37, %v1660_v52  ;;  %v4000_v37 = vld [vmem:[%s3217_s15 + $0x58] sm:$0xf]  ;;  %v642_v32 = vrot.slane %v640_v54, 1  ;;  %v542_v0 = vshrl.u32 %v3951_v12, 16 }
  0xc4   : > { %1424 = vrot.lane.b32.xlu0 %v3862_v13, %s3184_s21  ;;  %2967 = vmatprep.mubr.msk.bf16.mxu0 %vm2130_vm11, %v2079_v43  ;;  %v638_v13 = vshrl.u32 %v3936_v49, 16  ;;  %v1982_v61 = vsel %vm1978_vm7, %v1949_v1, %v3817_v15  ;;  %v2031_v6 = vsel %vm2011_vm8, %v1998_v10, %v3864_v40  ;;  %v549_v9 = vshll.u32 %v3976_v60, 16  ;;  %v4039_v8 = vld [vmem:[%s3217_s15 + $0xbc] ss:$0 sps:$4 sm:$0x11]  }
  0xc5   : > { %v3982_v19 = vpop.permute.xlu1 %681  ;;  %v4017_v44 = vcombine.low %v176_v33, %v3988_v51  ;;  %v2015_v7 = vsel %vm2011_vm8, %v1982_v61, %v3869_v62  ;;  %v546_v15 = vrot.slane %v544_v63, 1  ;;  %v4024_v40 = vcombine.low %v160_v5, %v4000_v37  ;;  %v4046_v43 = vld [vmem:[%s3217_s15 + $0x5c] ss:$0 sps:$4 sm:$0x11]  }
  0xc6   : > { %v3994_v20 = vpop.permute.xlu0 %665  ;;  %v2048_v14 = vsel %vm2044_vm9, %v2015_v7, %v3921_v48  ;;  %v2854_v23 = vcombine.low %v2710_v45, %v3827_v39  ;;  %v2846_v62 = vcombine.low %v2702_v28, %v3847_v30  ;;  %v643_v48 = vor.u32 %v642_v32, %v638_v13  ;;  %v209_v28 = vld [vmem:[%s3217_s15 + $0xb4] sm:$0xe] }
  0xc7   : > { %1710 = vrot.lane.b32.xlu1 %v1649_v18, %s3185_s22  ;;  %v2064_v18 = vsel %vm2044_vm9, %v2031_v6, %v3913_v22  ;;  %v1804_v22 = vsel %vm741_vm0, %v3915_v26, %v1803_v29  ;;  %v647_v21 = vrot.slane %v645_v4, 1  ;;  %v652_v39 = vshll.u32 %v4017_v44, 16  ;;  %v201_v7 = vld [vmem:[%s3217_s15 + $0x54] sm:$0xe] }
  0xc8   : > { %1694 = vrot.lane.b32.xlu0 %v1553_v57, %s3185_s22  ;;  %v1780_v58 = vsel %vm741_vm0, %v1778_v38, %v1779_v11  ;;  %v547_v59 = vor.u32 %v546_v15, %v542_v0  ;;  %v551_v31 = vrot.slane %v549_v9, 1  ;;  %v556_v54 = vshll.u32 %v4024_v40, 16 }
  0xc9   : > { %v1833_v52 = vpop.permute.xlu1 %1832  ;;  %v1805_v26 = vrot.slane %v2854_v23, 1  ;;  %v1806_v29 = vrot.slane %v3889_v16, 1  ;;  %v1781_v57 = vrot.slane %v2846_v62, 1  ;;  %v648_v38 = vsel %vm468_vm1, %v643_v48, %v647_v21  ;;  %v2613_v62 = vld [vmem:[%s3217_s15 + $0xb4] sm:$0xf] }
  0xca   : > { %v2097_v27 = vsel %vm2077_vm10, %v2064_v18, %v1833_v52  ;;  %v1817_v36 = vpop.permute.xlu0 %1816  ;;  %v650_v11 = vshrl.u32 %v4017_v44, 16  ;;  %v654_v3 = vrot.slane %v652_v39, 1  ;;  %v657_v24 = vshll.u32 %v4039_v8, 16  ;;  %v2597_v48 = vld [vmem:[%s3217_s15 + $0x54] sm:$0xf] }
  0xcb   : > { %v2081_v34 = vsel %vm2077_vm10, %v2048_v14, %v1817_v36  ;;  %1712 = vrot.lane.b32.xlu1 %v1661_v47, %s3185_s22  ;;  %2984 = vmatmul.mubr.msk.bf16.vlgmr.msra.gmra.mxu1 %vm2130_vm11, %v2097_v27  ;;  %v1782_v47 = vrot.slane %v3897_v46, 1  ;;  %v552_v63 = vsel %vm468_vm1, %v547_v59, %v551_v31  ;;  %v554_v33 = vshrl.u32 %v4024_v40, 16  ;;  %v208_v46 = vld [vmem:[%s3217_s15 + $0xa8] sm:$0xe] }
  0xcc   : > { %1696 = vrot.lane.b32.xlu0 %v1565_v55, %s3185_s22  ;;  %2968 = vmatmul.mubr.msk.bf16.vlgmr.msra.gmra.mxu0 %vm2130_vm11, %v2081_v34  ;;  %v558_v35 = vrot.slane %v556_v54, 1  ;;  %v561_v16 = vshll.u32 %v4046_v43, 16  ;;  %v200_v55 = vld [vmem:[%s3217_s15 + $0x48] sm:$0xe]  ;;  %v1807_v4 = vsel %vm741_vm0, %v1805_v26, %v1806_v29  ;;  %v655_v5 = vor.u32 %v654_v3, %v650_v11  ;;  %v4091_v34 = vld [vmem:[%s3217_s15 + $0xb8] sm:$0xf] }
  0xcd   : > { %v4042_v30 = vpop.permute.xlu1 %683  ;;  %v659_v1 = vrot.slane %v657_v24, 1  ;;  %v2759_v10 = vcombine.low %v208_v46, %v3909_v42  ;;  %v1783_v0 = vsel %vm741_vm0, %v1781_v57, %v1782_v47  ;;  %v2751_v45 = vcombine.low %v200_v55, %v3927_v41  ;;  %v2615_v26 = vld [vmem:[%s3217_s15 + $0xc0] sm:$0xf]  ;;  %v4111_v29 = vld [vmem:[%s3217_s15 + $0xc4] sm:$0xf] }
  0xce   : > { %v4049_v56 = vpop.permute.xlu0 %667  ;;  %v559_v61 = vor.u32 %v558_v35, %v554_v33  ;;  %v563_v6 = vrot.slane %v561_v16, 1  ;;  %v785_v52 = vrot.slane %v3959_v17, 1  ;;  %v2760_v15 = vcombine.low %v209_v28, %v3988_v51  ;;  %v4097_v17 = vld [vmem:[%s3217_s15 + $0x58] sm:$0xf]  ;;  %v2599_v47 = vld [vmem:[%s3217_s15 + $0x60] sm:$0xf] }
  0xcf   : > { %1838 = vrot.lane.b32.xlu1 %v1804_v22, %s3186_s23  ;;  %v660_v42 = vsel %vm468_vm1, %v655_v5, %v659_v1  ;;  %v784_v18 = vrot.slane %v2759_v10, 1  ;;  %v760_v27 = vrot.slane %v2751_v45, 1  ;;  %v761_v36 = vrot.slane %v3976_v60, 1  ;;  %v4127_v24 = vld [vmem:[%s3217_s15 + $0x5c] ss:$0 sps:$4 sm:$0x11]  }
  0xd0   : > { %1822 = vrot.lane.b32.xlu0 %v1780_v58, %s3186_s23  ;;  %v564_v41 = vsel %vm468_vm1, %v559_v61, %v563_v6  ;;  %v2752_v23 = vcombine.low %v201_v7, %v4000_v37  ;;  %v787_v51 = vrot.slane %v2760_v15, 1  ;;  %v788_v37 = vrot.slane %v4039_v8, 1  ;;  %v4121_v8 = vld [vmem:[%s3217_s15 + $0xbc] ss:$0 sps:$4 sm:$0x11]  }
  0xd1   : > { %v4058_v13 = vpop.permute.xlu1 %810  ;;  %v786_v60 = vsel %vm741_vm0, %v784_v18, %v785_v52  ;;  %v2775_v21 = vcombine.low %v2613_v62, %v4091_v34  ;;  %v762_v58 = vsel %vm741_vm0, %v760_v27, %v761_v36  ;;  %v764_v31 = vrot.slane %v4046_v43, 1  ;;  %v4140_v10 = vld [vmem:[%s3217_s15 + $0xc8] ss:$0 sps:$4 sm:$0x11]  }
  0xd2   : > { %v4064_v2 = vpop.permute.xlu0 %794  ;;  %v763_v59 = vrot.slane %v2752_v23, 1  ;;  %v2767_v54 = vcombine.low %v2597_v48, %v4097_v17  ;;  %v789_v11 = vsel %vm741_vm0, %v787_v51, %v788_v37  ;;  %v2776_v43 = vcombine.low %v2615_v26, %v4111_v29  ;;  %v4145_v28 = vld [vmem:[%s3217_s15 + $0x68] ss:$0 sps:$4 sm:$0x11]   ;;  %v2647_v37 = vld [vmem:[%s3217_s15 + $0xb4] sm:$0xe] }
  0xd3   : > { %689 = vrot.lane.b32.xlu1 %v648_v38, %s3181_s18  ;;  %v4117_v38 = vld [vmem:[%s3217_s15 + $0x64] sm:$0xf]  ;;  %v1153_v3 = vshll.u32 %v2775_v21, 16  ;;  %v1151_v55 = vshrl.u32 %v2775_v21, 16  ;;  %v1062_v1 = vshll.u32 %v4127_v24, 16  ;;  %v1170_v36 = vshll.u32 %v4140_v10, 16 }
  0xd4   : > { %673 = vrot.lane.b32.xlu0 %v552_v63, %s3181_s18  ;;  %v765_v33 = vsel %vm741_vm0, %v763_v59, %v764_v31  ;;  %v2768_v35 = vcombine.low %v2599_v47, %v4117_v38  ;;  %v1057_v16 = vshll.u32 %v2767_v54, 16  ;;  %v1055_v6 = vshrl.u32 %v2767_v54, 16 }
  0xd5   : > { %v4071_v32 = vpop.permute.xlu1 %812  ;;  %v1155_v5 = vrot.slane %v1153_v3, 1  ;;  %v1163_v52 = vshrl.u32 %v2776_v43, 16  ;;  %v1074_v51 = vshll.u32 %v4145_v28, 16  ;;  %v2807_v26 = vcombine.low %v2647_v37, %v4091_v34 }
  0xd6   : > { %v4076_v9 = vpop.permute.xlu0 %796  ;;  %v1059_v45 = vrot.slane %v1057_v16, 1  ;;  %v1069_v7 = vshll.u32 %v2768_v35, 16  ;;  %v1067_v48 = vshrl.u32 %v2768_v35, 16 }
  0xd7   : > { %1840 = vrot.lane.b32.xlu1 %v1807_v4, %s3186_s23  ;;  %v1158_v4 = vshll.u32 %v4121_v8, 16  ;;  %v1156_v15 = vor.u32 %v1155_v5, %v1151_v55  ;;  %v2648_v55 = vld [vmem:[%s3217_s15 + $0xc0] sm:$0xe]  ;;  %v1297_v5 = vrot.slane %v4121_v8, 1 }
  0xd8   : > { %1824 = vrot.lane.b32.xlu0 %v1783_v0, %s3186_s23  ;;  %v1165_v0 = vshll.u32 %v2776_v43, 16  ;;  %v1060_v62 = vor.u32 %v1059_v45, %v1055_v6 }
  0xd9   : > { %v4084_v14 = vpop.permute.xlu1 %922  ;;  %v1160_v18 = vrot.slane %v1158_v4, 1  ;;  %v1296_v4 = vrot.slane %v2807_v26, 1 }
  0xda   : > { %v4093_v22 = vpop.permute.xlu0 %906  ;;  %v1167_v27 = vrot.slane %v1165_v0, 1  ;;  %v4178_v0 = vld [vmem:[%s3217_s15 + $0xc4] sm:$0xf] }
  0xdb   : > { %691 = vrot.lane.b32.xlu1 %v660_v42, %s3181_s18  ;;  %v1161_v59 = vsel %vm468_vm1, %v1156_v15, %v1160_v18  ;;  %v1273_v18 = vrot.slane %v4127_v24, 1  ;;  %v2661_v15 = vld [vmem:[%s3217_s15 + $0x60] sm:$0xf]  ;;  %v1298_v24 = vsel %vm741_vm0, %v1296_v4, %v1297_v5  ;;  %v4229_v4 = vld [vmem:[%s3217_s15 + $0xd4] ss:$0 sps:$4 sm:$0x11]  }
  0xdc   : > { %675 = vrot.lane.b32.xlu0 %v564_v41, %s3181_s18  ;;  %v1064_v41 = vrot.slane %v1062_v1, 1  ;;  %v1168_v31 = vor.u32 %v1167_v27, %v1163_v52  ;;  %v2808_v1 = vcombine.low %v2648_v55, %v4111_v29  ;;  %v2679_v27 = vld [vmem:[%s3217_s15 + $0xcc] sm:$0xf] }
  0xdd   : > { %v4104_v39 = vpop.permute.xlu1 %924 }
  0xde   : > { %v4113_v57 = vpop.permute.xlu0 %908 }
  0xdf   : > { %818 = vrot.lane.b32.xlu1 %v786_v60, %s3180_s17  ;;  %v1071_v60 = vrot.slane %v1069_v7, 1 }
  0xe0   : > { %802 = vrot.lane.b32.xlu0 %v762_v58, %s3180_s17  ;;  %v2639_v58 = vld [vmem:[%s3217_s15 + $0x54] sm:$0xe] }
  0xe1   : > { %v4129_v63 = vpop.permute.xlu1 %1194  ;;  %v1072_v3 = vor.u32 %v1071_v60, %v1067_v48  ;;  %v2799_v16 = vcombine.low %v2639_v58, %v4097_v17  ;;  %v2677_v17 = vld [vmem:[%s3217_s15 + $0xc0] sm:$0xf]  ;;  %v4202_v60 = vld [vmem:[%s3217_s15 + $0xc8] ss:$0 sps:$4 sm:$0x11]  }
  0xe2   : > { %v4133_v46 = vpop.permute.xlu0 %1178  ;;  %v2823_v29 = vcombine.low %v2677_v17, %v4178_v0 }
  0xe3   : > { %820 = vrot.lane.b32.xlu1 %v789_v11, %s3180_s17  ;;  %v1065_v11 = vsel %vm468_vm1, %v1060_v62, %v1064_v41  ;;  %v1272_v7 = vrot.slane %v2799_v16, 1  ;;  %v4187_v41 = vld [vmem:[%s3217_s15 + $0x64] sm:$0xf]  ;;  %v1300_v62 = vrot.slane %v4140_v10, 1  ;;  %v1670_v16 = vshll.u32 %v4202_v60, 16 }
  0xe4   : > { %804 = vrot.lane.b32.xlu0 %v765_v33, %s3180_s17  ;;  %v1076_v33 = vrot.slane %v1074_v51, 1  ;;  %v2815_v48 = vcombine.low %v2661_v15, %v4187_v41  ;;  %v4218_v10 = vld [vmem:[%s3217_s15 + $0x68] ss:$0 sps:$4 sm:$0x11]  }
  0xe5   : > { %v4142_v61 = vpop.permute.xlu1 %1196  ;;  %v1274_v37 = vsel %vm741_vm0, %v1272_v7, %v1273_v18  ;;  %v1574_v17 = vshll.u32 %v4218_v10, 16  ;;  %v1868_v7 = vsel %vm1846_vm3, %v3402_v50, %v3982_v19 }
  0xe6   : > { %v4147_v42 = vpop.permute.xlu0 %1180  ;;  %v1077_v45 = vsel %vm468_vm1, %v1072_v3, %v1076_v33  ;;  %v1665_v3 = vshll.u32 %v2823_v29, 16 }
  0xe7   : > { %930 = vrot.lane.b32.xlu1 %v2775_v21, %s3179_s16 }
  0xe8   : > { %914 = vrot.lane.b32.xlu0 %v2767_v54, %s3179_s16  ;;  %v1172_v54 = vrot.slane %v1170_v36, 1  ;;  %v4195_v36 = vld [vmem:[%s3217_s15 + $0xd0] sm:$0xf]  ;;  %v1667_v18 = vrot.slane %v1665_v3, 1  ;;  %v1576_v3 = vrot.slane %v1574_v17, 1 }
  0xe9   : > { %v4152_v23 = vpop.permute.xlu1 %1322  ;;  %v4212_v26 = vcombine.low %v2679_v27, %v4195_v36  ;;  %v1852_v27 = vsel %vm1846_vm3, %v3405_v53, %v3994_v20  ;;  %v1682_v53 = vshll.u32 %v4229_v4, 16 }
  0xea   : > { %v4156_v21 = vpop.permute.xlu0 %1306  ;;  %v1173_v34 = vsel %vm468_vm1, %v1168_v31, %v1172_v54  ;;  %v2663_v31 = vld [vmem:[%s3217_s15 + $0x6c] sm:$0xf]  ;;  %v1885_v50 = vsel %vm1879_vm4, %v1852_v27, %v4064_v2 }
  0xeb   : > { %932 = vrot.lane.b32.xlu1 %v2776_v43, %s3179_s16  ;;  %v1675_v15 = vshrl.u32 %v4212_v26, 16 }
  0xec   : > { %916 = vrot.lane.b32.xlu0 %v2768_v35, %s3179_s16  ;;  %v2640_v35 = vld [vmem:[%s3217_s15 + $0x60] sm:$0xe] }
  0xed   : > { %v4163_v47 = vpop.permute.xlu1 %1324  ;;  %v2800_v52 = vcombine.low %v2640_v35, %v4117_v38  ;;  %v1299_v38 = vrot.slane %v2808_v1, 1  ;;  %v1663_v1 = vshrl.u32 %v2823_v29, 16 }
  0xee   : > { %v4168_v43 = vpop.permute.xlu0 %1308 }
  0xef   : > { %1202 = vrot.lane.b32.xlu1 %v1161_v59, %s3182_s19  ;;  %v1275_v58 = vrot.slane %v2800_v52, 1  ;;  %v1276_v59 = vrot.slane %v4145_v28, 1  ;;  %v1301_v33 = vsel %vm741_vm0, %v1299_v38, %v1300_v62  ;;  %v1569_v28 = vshll.u32 %v2815_v48, 16 }
  0xf0   : > { %1186 = vrot.lane.b32.xlu0 %v1065_v11, %s3182_s19  ;;  %v4215_v11 = vld [vmem:[%s3217_s15 + $0x70] sm:$0xf]  ;;  %v1567_v52 = vshrl.u32 %v2815_v48, 16  ;;  %v1672_v38 = vrot.slane %v1670_v16, 1  ;;  %v1668_v16 = vor.u32 %v1667_v18, %v1663_v1 }
  0xf1   : > { %v4180_v6 = vpop.permute.xlu1 %1434  ;;  %v1277_v35 = vsel %vm741_vm0, %v1275_v58, %v1276_v59  ;;  %v1571_v62 = vrot.slane %v1569_v28, 1 }
  0xf2   : > { %v4189_v8 = vpop.permute.xlu0 %1418 }
  0xf3   : > { %1204 = vrot.lane.b32.xlu1 %v1173_v34, %s3182_s19  ;;  %v4226_v34 = vcombine.low %v2663_v31, %v4215_v11  ;;  %v1572_v17 = vor.u32 %v1571_v62, %v1567_v52  ;;  %v1870_v52 = vsel %vm1846_vm3, %v3440_v25, %v4042_v30 }
  0xf4   : > { %1188 = vrot.lane.b32.xlu0 %v1077_v45, %s3182_s19  ;;  %v1677_v45 = vshll.u32 %v4212_v26, 16 }
  0xf5   : > { %v4204_v51 = vpop.permute.xlu1 %1436  ;;  %v1581_v20 = vshll.u32 %v4226_v34, 16  ;;  %v1579_v28 = vshrl.u32 %v4226_v34, 16  ;;  %v1577_v25 = vsel %vm468_vm1, %v1572_v17, %v1576_v3 }
  0xf6   : > { %v4209_v54 = vpop.permute.xlu0 %1420 }
  0xf7   : > { %1330 = vrot.lane.b32.xlu1 %v1298_v24, %s3183_s20  ;;  %v1901_v24 = vsel %vm1879_vm4, %v1868_v7, %v4058_v13  ;;  %v1918_v13 = vsel %vm1912_vm5, %v1885_v50, %v4093_v22  ;;  %v1583_v7 = vrot.slane %v1581_v20, 1 }
  0xf8   : > { %1314 = vrot.lane.b32.xlu0 %v1274_v37, %s3183_s20  ;;  %v4245_v37 = vld [vmem:[%s3217_s15 + $0x74] ss:$0 sps:$4 sm:$0x11]   ;;  %v1934_v19 = vsel %vm1912_vm5, %v1901_v24, %v4084_v14  ;;  %v1951_v2 = vsel %vm1945_vm6, %v1918_v13, %v4133_v46 }
  0xf9   : > { %v1707_v55 = vpop.permute.xlu1 %1706  ;;  %v1967_v59 = vsel %vm1945_vm6, %v1934_v19, %v4129_v63  ;;  %v1984_v22 = vsel %vm1978_vm7, %v1951_v2, %v4156_v21  ;;  %v1586_v46 = vshll.u32 %v4245_v37, 16  ;;  %v2704_v19 = vld [vmem:[%s3217_s15 + $0x6c] sm:$0xe] }
  0xfa   : > { %v1691_v5 = vpop.permute.xlu0 %1690  ;;  %v2000_v14 = vsel %vm1978_vm7, %v1967_v59, %v4152_v23  ;;  %v2017_v23 = vsel %vm2011_vm8, %v1984_v22, %v4189_v8  ;;  %v1788_v22 = vrot.slane %v4245_v37, 1 }
  0xfb   : > { %1332 = vrot.lane.b32.xlu1 %v1301_v33, %s3183_s20  ;;  %v1679_v33 = vrot.slane %v1677_v45, 1  ;;  %v2033_v63 = vsel %vm2011_vm8, %v2000_v14, %v4180_v6  ;;  %v1684_v45 = vrot.slane %v1682_v53, 1  ;;  %v2050_v18 = vsel %vm2044_vm9, %v2017_v23, %v1691_v5  ;;  %v4525_v5 = vld [vmem:[#allocation2_spill] sm:$0xff] }
  0xfc   : > { %1316 = vrot.lane.b32.xlu0 %v1277_v35, %s3183_s20  ;;  %v2711_v35 = vld [vmem:[%s3217_s15 + $0xc0] sm:$0xe]  ;;  %v1588_v30 = vrot.slane %v1586_v46, 1 }
  0xfd   : > { %v4251_v58 = vpop.permute.xlu1 %1708  ;;  %v1680_v24 = vor.u32 %v1679_v33, %v1675_v15  ;;  %v2855_v6 = vcombine.low %v2711_v35, %v4178_v0  ;;  %v1854_v0 = vsel %vm1846_vm3, %v4525_v5, %v4049_v56  ;;  %v1903_v15 = vsel %vm1879_vm4, %v1870_v52, %v4071_v32  ;;  %v2712_v32 = vld [vmem:[%s3217_s15 + $0xcc] sm:$0xe] }
  0xfe   : > { %v4259_v31 = vpop.permute.xlu0 %1692  ;;  %v1584_v56 = vor.u32 %v1583_v7, %v1579_v28  ;;  %v2856_v33 = vcombine.low %v2712_v32, %v4195_v36 }
  0xff   : > { %1442 = vrot.lane.b32.xlu1 %v2823_v29, %s3184_s21  ;;  %v2066_v29 = vsel %vm2044_vm9, %v2033_v63, %v1707_v55  ;;  %v1673_v55 = vsel %vm468_vm1, %v1668_v16, %v1672_v38  ;;  %v1936_v38 = vsel %vm1912_vm5, %v1903_v15, %v4104_v39  ;;  %v1808_v13 = vrot.slane %v2855_v6, 1 }
 0x100   : > { %1426 = vrot.lane.b32.xlu0 %v2815_v48, %s3184_s21  ;;  %v2703_v48 = vld [vmem:[%s3217_s15 + $0x60] sm:$0xe]  ;;  %v1969_v53 = vsel %vm1945_vm6, %v1936_v38, %v4142_v61  ;;  %v4526_v38 = vld [vmem:[#allocation3_spill] sm:$0xff] }
 0x101   : > { %v1835_v1 = vpop.permute.xlu1 %1834  ;;  %v2847_v50 = vcombine.low %v2703_v48, %v4187_v41  ;;  %v2002_v59 = vsel %vm1978_vm7, %v1969_v53, %v4163_v47  ;;  %v1809_v41 = vrot.slane %v4202_v60, 1 }
 0x102   : > { %v2099_v21 = vsel %vm2077_vm10, %v2066_v29, %v1835_v1  ;;  %v1819_v27 = vpop.permute.xlu0 %1818  ;;  %v2035_v3 = vsel %vm2011_vm8, %v2002_v59, %v4204_v51 }
 0x103   : > { %v2083_v8 = vsel %vm2077_vm10, %v2050_v18, %v1819_v27  ;;  %1444 = vrot.lane.b32.xlu1 %v4212_v26, %s3184_s21  ;;  %2987 = vmatprep.mubr.msk.bf16.mxu1 %vm2130_vm11, %v2099_v21  ;;  %v1887_v26 = vsel %vm1879_vm4, %v1854_v0, %v4076_v9  ;;  %v1685_v9 = vsel %vm468_vm1, %v1680_v24, %v1684_v45  ;;  %v1784_v14 = vrot.slane %v2847_v50, 1  ;;  %v4527_v50 = vld [vmem:[#allocation4_spill] sm:$0xff] }
 0x104   : > { %1428 = vrot.lane.b32.xlu0 %v4226_v34, %s3184_s21  ;;  %2971 = vmatprep.mubr.msk.bf16.mxu0 %vm2130_vm11, %v2083_v8  ;;  %v1920_v34 = vsel %vm1912_vm5, %v1887_v26, %v4113_v57  ;;  %v1785_v57 = vrot.slane %v4218_v10, 1  ;;  %v2068_v60 = vsel %vm2044_vm9, %v2035_v3, %v4251_v58  ;;  %v1589_v10 = vsel %vm468_vm1, %v1584_v56, %v1588_v30 }
 0x105   : > { %v4302_v62 = vpop.permute.xlu1 %685  ;;  %v1953_v39 = vsel %vm1945_vm6, %v1920_v34, %v4147_v42  ;;  %v2848_v42 = vcombine.low %v2704_v19, %v4215_v11  ;;  %v1811_v11 = vrot.slane %v2856_v33, 1  ;;  %v1812_v58 = vrot.slane %v4229_v4, 1 }
 0x106   : > { %v4311_v20 = vpop.permute.xlu0 %669  ;;  %v1986_v61 = vsel %vm1978_vm7, %v1953_v39, %v4168_v43  ;;  %v1872_v56 = vsel %vm1846_vm3, %v4526_v38, %v4302_v62 }
 0x107   : > { %1714 = vrot.lane.b32.xlu1 %v1673_v55, %s3185_s22  ;;  %v2019_v47 = vsel %vm2011_vm8, %v1986_v61, %v4209_v54  ;;  %v1810_v54 = vsel %vm741_vm0, %v1808_v13, %v1809_v41  ;;  %v1787_v35 = vrot.slane %v2848_v42, 1  ;;  %v1813_v17 = vsel %vm741_vm0, %v1811_v11, %v1812_v58 }
 0x108   : > { %1698 = vrot.lane.b32.xlu0 %v1577_v25, %s3185_s22  ;;  %v2052_v43 = vsel %vm2044_vm9, %v2019_v47, %v4259_v31  ;;  %v1786_v31 = vsel %vm741_vm0, %v1784_v14, %v1785_v57  ;;  %v1856_v32 = vsel %vm1846_vm3, %v4527_v50, %v4311_v20 }
 0x109   : > { %v1837_v2 = vpop.permute.xlu1 %1836  ;;  %v1789_v23 = vsel %vm741_vm0, %v1787_v35, %v1788_v22 }
 0x10a   : > { %v2101_v51 = vsel %vm2077_vm10, %v2068_v60, %v1837_v2  ;;  %v1821_v16 = vpop.permute.xlu0 %1820  ;;  %v4528_v2 = vld [vmem:[#allocation5_spill] sm:$0xff] }
 0x10b   : > { %v2085_v36 = vsel %vm2077_vm10, %v2052_v43, %v1821_v16  ;;  %1716 = vrot.lane.b32.xlu1 %v1685_v9, %s3185_s22  ;;  %2988 = vmatmul.mubr.msk.bf16.gmra.mxu1 %vm2130_vm11, %v2101_v51  ;;  %v4529_v43 = vld [vmem:[#allocation6_spill] sm:$0xff] }
 0x10c   : > { %1700 = vrot.lane.b32.xlu0 %v1589_v10, %s3185_s22  ;;  %2972 = vmatmul.mubr.msk.bf16.gmra.mxu0 %vm2130_vm11, %v2085_v36 }
 0x10d   : > { %v688_v28 = vpop.permute.xlu1 %687 }
 0x10e   : > { %v672_v63 = vpop.permute.xlu0 %671  ;;  %v1874_v10 = vsel %vm1846_vm3, %v4528_v2, %v688_v28 }
 0x10f   : > { %1842 = vrot.lane.b32.xlu1 %v1810_v54, %s3186_s23  ;;  %v1858_v51 = vsel %vm1846_vm3, %v4529_v43, %v672_v63 }
 0x110   : > { %1826 = vrot.lane.b32.xlu0 %v1786_v31, %s3186_s23 }
 0x111   : > { %v815_v46 = vpop.permute.xlu1 %814 }
 0x112   : > { %v799_v29 = vpop.permute.xlu0 %798  ;;  %v1905_v19 = vsel %vm1879_vm4, %v1872_v56, %v815_v46 }
 0x113   : > { %1844 = vrot.lane.b32.xlu1 %v1813_v17, %s3186_s23  ;;  %v1889_v34 = vsel %vm1879_vm4, %v1856_v32, %v799_v29 }
 0x114   : > { %1828 = vrot.lane.b32.xlu0 %v1789_v23, %s3186_s23 }
 0x115   : > { %v817_v4 = vpop.permute.xlu1 %816 }
 0x116   : > { %v801_v1 = vpop.permute.xlu0 %800  ;;  %v1907_v16 = vsel %vm1879_vm4, %v1874_v10, %v817_v4 }
 0x117   : > { %v1891_v36 = vsel %vm1879_vm4, %v1858_v51, %v801_v1 }
 0x119   : > { %v927_v45 = vpop.permute.xlu1 %926 }
 0x11a   : > { %v911_v7 = vpop.permute.xlu0 %910  ;;  %v1938_v53 = vsel %vm1912_vm5, %v1905_v19, %v927_v45 }
 0x11b   : > { %v1922_v13 = vsel %vm1912_vm5, %v1889_v34, %v911_v7 }
 0x11d   : > { %v929_v37 = vpop.permute.xlu1 %928 }
 0x11e   : > { %v913_v18 = vpop.permute.xlu0 %912  ;;  %v1940_v54 = vsel %vm1912_vm5, %v1907_v16, %v929_v37 }
 0x11f   : > { %v1924_v58 = vsel %vm1912_vm5, %v1891_v36, %v913_v18 }
 0x121   : > { %v1199_v21 = vpop.permute.xlu1 %1198 }
 0x122   : > { %v1183_v27 = vpop.permute.xlu0 %1182  ;;  %v1971_v39 = vsel %vm1945_vm6, %v1938_v53, %v1199_v21 }
 0x123   : > { %v1955_v41 = vsel %vm1945_vm6, %v1922_v13, %v1183_v27 }
 0x125   : > { %v1201_v24 = vpop.permute.xlu1 %1200 }
 0x126   : > { %v1185_v6 = vpop.permute.xlu0 %1184  ;;  %v1973_v28 = vsel %vm1945_vm6, %v1940_v54, %v1201_v24 }
 0x127   : > { %v1957_v35 = vsel %vm1945_vm6, %v1924_v58, %v1185_v6 }
 0x129   : > { %v1327_v48 = vpop.permute.xlu1 %1326 }
 0x12a   : > { %v1311_v52 = vpop.permute.xlu0 %1310  ;;  %v2004_v62 = vsel %vm1978_vm7, %v1971_v39, %v1327_v48 }
 0x12b   : > { %v1988_v57 = vsel %vm1978_vm7, %v1955_v41, %v1311_v52 }
 0x12d   : > { %v1329_v8 = vpop.permute.xlu1 %1328 }
 0x12e   : > { %v1313_v55 = vpop.permute.xlu0 %1312  ;;  %v2006_v22 = vsel %vm1978_vm7, %v1973_v28, %v1329_v8 }
 0x12f   : > { %v1990_v63 = vsel %vm1978_vm7, %v1957_v35, %v1313_v55 }
 0x131   : > { %v1439_v5 = vpop.permute.xlu1 %1438 }
 0x132   : > { %v1423_v0 = vpop.permute.xlu0 %1422  ;;  %v2037_v20 = vsel %vm2011_vm8, %v2004_v62, %v1439_v5 }
 0x133   : > { %v2021_v61 = vsel %vm2011_vm8, %v1988_v57, %v1423_v0 }
 0x135   : > { %v1441_v15 = vpop.permute.xlu1 %1440 }
 0x136   : > { %v1425_v25 = vpop.permute.xlu0 %1424  ;;  %v2039_v17 = vsel %vm2011_vm8, %v2006_v22, %v1441_v15 }
 0x137   : > { %v2023_v46 = vsel %vm2011_vm8, %v1990_v63, %v1425_v25 }
 0x139   : > { %v1711_v30 = vpop.permute.xlu1 %1710 }
 0x13a   : > { %v1695_v26 = vpop.permute.xlu0 %1694  ;;  %v2070_v3 = vsel %vm2044_vm9, %v2037_v20, %v1711_v30 }
 0x13b   : > { %v2054_v42 = vsel %vm2044_vm9, %v2021_v61, %v1695_v26 }
 0x13d   : > { %v1713_v9 = vpop.permute.xlu1 %1712 }
 0x13e   : > { %v1697_v59 = vpop.permute.xlu0 %1696  ;;  %v2072_v23 = vsel %vm2044_vm9, %v2039_v17, %v1713_v9 }
 0x13f   : > { %v2056_v4 = vsel %vm2044_vm9, %v2023_v46, %v1697_v59 }
 0x141   : > { %v1839_v33 = vpop.permute.xlu1 %1838 }
 0x142   : > { %v2103_v47 = vsel %vm2077_vm10, %v2070_v3, %v1839_v33  ;;  %v1823_v60 = vpop.permute.xlu0 %1822 }
 0x143   : > { %v2087_v14 = vsel %vm2077_vm10, %v2054_v42, %v1823_v60  ;;  %2991 = vmatprep.mubr.msk.bf16.mxu1 %vm2130_vm11, %v2103_v47 }
 0x144   : > { %2975 = vmatprep.mubr.msk.bf16.mxu0 %vm2130_vm11, %v2087_v14 }
 0x145   : > { %v690_v11 = vpop.permute.xlu1 %689 }
 0x146   : > { %v674_v31 = vpop.permute.xlu0 %673  ;;  %v1876_v13 = vsel %vm1846_vm3, %v3936_v49, %v690_v11 }
 0x147   : > { %v1860_v39 = vsel %vm1846_vm3, %v3951_v12, %v674_v31 }
 0x149   : > { %v1841_v29 = vpop.permute.xlu1 %1840 }
 0x14a   : > { %v2105_v1 = vsel %vm2077_vm10, %v2072_v23, %v1841_v29  ;;  %v1825_v45 = vpop.permute.xlu0 %1824 }
 0x14b   : > { %v2089_v7 = vsel %vm2077_vm10, %v2056_v4, %v1825_v45  ;;  %2992 = vmatmul.mubr.msk.bf16.gmra.mxu1 %vm2130_vm11, %v2105_v1 }
 0x14c   : > { %2976 = vmatmul.mubr.msk.bf16.gmra.mxu0 %vm2130_vm11, %v2089_v7 }
 0x14d   : > { %v692_v37 = vpop.permute.xlu1 %691 }
 0x14e   : > { %v676_v18 = vpop.permute.xlu0 %675  ;;  %v1878_v33 = vsel %vm1846_vm3, %v4017_v44, %v692_v37 }
 0x14f   : > { %v1862_v12 = vsel %vm1846_vm3, %v4024_v40, %v676_v18 }
 0x151   : > { %v819_v21 = vpop.permute.xlu1 %818 }
 0x152   : > { %v803_v27 = vpop.permute.xlu0 %802  ;;  %v1909_v59 = vsel %vm1879_vm4, %v1876_v13, %v819_v21 }
 0x153   : > { %v1893_v41 = vsel %vm1879_vm4, %v1860_v39, %v803_v27 }
 0x155   : > { %v821_v24 = vpop.permute.xlu1 %820 }
 0x156   : > { %v805_v6 = vpop.permute.xlu0 %804  ;;  %v1911_v47 = vsel %vm1879_vm4, %v1878_v33, %v821_v24 }
 0x157   : > { %v1895_v10 = vsel %vm1879_vm4, %v1862_v12, %v805_v6 }
 0x159   : > { %v931_v48 = vpop.permute.xlu1 %930 }
 0x15a   : > { %v915_v52 = vpop.permute.xlu0 %914  ;;  %v1942_v62 = vsel %vm1912_vm5, %v1909_v59, %v931_v48 }
 0x15b   : > { %v1926_v20 = vsel %vm1912_vm5, %v1893_v41, %v915_v52 }
 0x15d   : > { %v933_v8 = vpop.permute.xlu1 %932 }
 0x15e   : > { %v917_v55 = vpop.permute.xlu0 %916  ;;  %v1944_v14 = vsel %vm1912_vm5, %v1911_v47, %v933_v8 }
 0x15f   : > { %v1928_v16 = vsel %vm1912_vm5, %v1895_v10, %v917_v55 }
 0x161   : > { %v1203_v5 = vpop.permute.xlu1 %1202 }
 0x162   : > { %v1187_v0 = vpop.permute.xlu0 %1186  ;;  %v1975_v61 = vsel %vm1945_vm6, %v1942_v62, %v1203_v5 }
 0x163   : > { %v1959_v49 = vsel %vm1945_vm6, %v1926_v20, %v1187_v0 }
 0x165   : > { %v1205_v15 = vpop.permute.xlu1 %1204 }
 0x166   : > { %v1189_v25 = vpop.permute.xlu0 %1188  ;;  %v1977_v36 = vsel %vm1945_vm6, %v1944_v14, %v1205_v15 }
 0x167   : > { %v1961_v58 = vsel %vm1945_vm6, %v1928_v16, %v1189_v25 }
 0x169   : > { %v1331_v30 = vpop.permute.xlu1 %1330 }
 0x16a   : > { %v1315_v26 = vpop.permute.xlu0 %1314  ;;  %v2008_v42 = vsel %vm1978_vm7, %v1975_v61, %v1331_v30 }
 0x16b   : > { %v1992_v60 = vsel %vm1978_vm7, %v1959_v49, %v1315_v26 }
 0x16d   : > { %v1333_v38 = vpop.permute.xlu1 %1332 }
 0x16e   : > { %v1317_v56 = vpop.permute.xlu0 %1316  ;;  %v2010_v28 = vsel %vm1978_vm7, %v1977_v36, %v1333_v38 }
 0x16f   : > { %v1994_v35 = vsel %vm1978_vm7, %v1961_v58, %v1317_v56 }
 0x171   : > { %v1443_v50 = vpop.permute.xlu1 %1442 }
 0x172   : > { %v1427_v32 = vpop.permute.xlu0 %1426  ;;  %v2041_v2 = vsel %vm2011_vm8, %v2008_v42, %v1443_v50 }
 0x173   : > { %v2025_v44 = vsel %vm2011_vm8, %v1992_v60, %v1427_v32 }
 0x175   : > { %v1445_v19 = vpop.permute.xlu1 %1444 }
 0x176   : > { %v1429_v34 = vpop.permute.xlu0 %1428  ;;  %v2043_v22 = vsel %vm2011_vm8, %v2010_v28, %v1445_v19 }
 0x177   : > { %v2027_v63 = vsel %vm2011_vm8, %v1994_v35, %v1429_v34 }
 0x179   : > { %v1715_v53 = vpop.permute.xlu1 %1714 }
 0x17a   : > { %v1699_v9 = vpop.permute.xlu0 %1698  ;;  %v2074_v43 = vsel %vm2044_vm9, %v2041_v2, %v1715_v53 }
 0x17b   : > { %v2058_v40 = vsel %vm2044_vm9, %v2025_v44, %v1699_v9 }
 0x17d   : > { %v1717_v57 = vpop.permute.xlu1 %1716 }
 0x17e   : > { %v1701_v3 = vpop.permute.xlu0 %1700  ;;  %v2076_v17 = vsel %vm2044_vm9, %v2043_v22, %v1717_v57 }
 0x17f   : > { %v2060_v23 = vsel %vm2044_vm9, %v2027_v63, %v1701_v3 }
 0x181   : > { %v1843_v51 = vpop.permute.xlu1 %1842 }
 0x182   : > { %v2107_v54 = vsel %vm2077_vm10, %v2074_v43, %v1843_v51  ;;  %v1827_v11 = vpop.permute.xlu0 %1826 }
 0x183   : > { %v2091_v31 = vsel %vm2077_vm10, %v2058_v40, %v1827_v11  ;;  %2995 = vmatprep.mubr.msk.bf16.mxu1 %vm2130_vm11, %v2107_v54 }
 0x184   : > { %2979 = vmatprep.mubr.msk.bf16.mxu0 %vm2130_vm11, %v2091_v31 }
 0x185   : > { %v1845_v46 = vpop.permute.xlu1 %1844 }
 0x186   : > { %v2109_v29 = vsel %vm2077_vm10, %v2076_v17, %v1845_v46  ;;  %v1829_v4 = vpop.permute.xlu0 %1828 }
 0x187   : > { %v2093_v1 = vsel %vm2077_vm10, %v2060_v23, %v1829_v4  ;;  %2996 = vmatmul.mubr.msk.bf16.gmra.mxu1 %vm2130_vm11, %v2109_v29 }
 0x188   : > { %2980 = vmatmul.mubr.msk.bf16.gmra.mxu0 %vm2130_vm11, %v2093_v1 }
 0x18b   : > { %v2985_v45 = vpop.f32.mrf.mxu1 }
 0x18c   : > { %v2969_v7 = vpop.f32.mrf.mxu0  ;;  %v2346_v37 = vmax.f32 %v2985_v45, 0.0 }
 0x18d   : > { %v2330_v18 = vmax.f32 %v2969_v7, 0.0  ;;  %v2265_v21 = vpop.f32.mrf.mxu1 }
 0x18e   : > { %v2928_v27 = vpack.c.bf16 %v2346_v37, %v2346_v37  ;;  %v2201_v24 = vpop.f32.mrf.mxu0  ;;  %v2344_v6 = vmax.f32 %v2265_v21, 0.0 }
 0x18f   : > { %v2912_v48 = vpack.c.bf16 %v2330_v18, %v2330_v18  ;;  %v2328_v52 = vmax.f32 %v2201_v24, 0.0  ;;  %v2986_v8 = vpop.f32.mrf.mxu1 }
 0x190   : > { %2507 = vst.msk [vmem:[%s4443_s7 + $0x48] sm:$0xf] %vm2488_vm12, %v2928_v27  ;;  %v2926_v55 = vpack.c.bf16 %v2344_v6, %v2344_v6  ;;  %v2970_v5 = vpop.f32.mrf.mxu0  ;;  %v2347_v0 = vmax.f32 %v2986_v8, 0.0 }
 0x191   : > { %2491 = vst.msk [vmem:[%s4443_s7 + $0x8] sm:$0xf] %vm2488_vm12, %v2912_v48  ;;  %v2910_v15 = vpack.c.bf16 %v2328_v52, %v2328_v52  ;;  %v2331_v25 = vmax.f32 %v2970_v5, 0.0  ;;  %v2268_v30 = vpop.f32.mrf.mxu1 }
 0x192   : > { %2505 = vst.msk [vmem:[%s4443_s7 + $0x40] sm:$0xf] %vm2488_vm12, %v2926_v55  ;;  %v2929_v26 = vpack.c.bf16 %v2347_v0, %v2347_v0  ;;  %v2204_v38 = vpop.f32.mrf.mxu0  ;;  %v2345_v56 = vmax.f32 %v2268_v30, 0.0 }
 0x193   : > { %2489 = vst.msk [vmem:[%s4443_s7] sm:$0xf] %vm2488_vm12, %v2910_v15  ;;  %v2913_v50 = vpack.c.bf16 %v2331_v25, %v2331_v25  ;;  %v2329_v32 = vmax.f32 %v2204_v38, 0.0 }
 0x194   : > { %2508 = vst.msk [vmem:[%s4443_s7 + $0x4c] sm:$0xf] %vm2488_vm12, %v2929_v26  ;;  %v2927_v19 = vpack.c.bf16 %v2345_v56, %v2345_v56 }
 0x195   : > { %2492 = vst.msk [vmem:[%s4443_s7 + $0xc] sm:$0xf] %vm2488_vm12, %v2913_v50  ;;  %v2911_v34 = vpack.c.bf16 %v2329_v32, %v2329_v32 }
 0x196   : > { %2506 = vst.msk [vmem:[%s4443_s7 + $0x44] sm:$0xf] %vm2488_vm12, %v2927_v19 }
 0x197   : > { %2490 = vst.msk [vmem:[%s4443_s7 + $0x4] sm:$0xf] %vm2488_vm12, %v2911_v34 }
 0x1cb   : > { %v2989_v53 = vpop.f32.mrf.mxu1 }
 0x1cc   : > { %v2973_v9 = vpop.f32.mrf.mxu0  ;;  %v2350_v13 = vmax.f32 %v2989_v53, 0.0 }
 0x1cd   : > { %v2334_v39 = vmax.f32 %v2973_v9, 0.0  ;;  %v2281_v59 = vpop.f32.mrf.mxu1 }
 0x1ce   : > { %v2932_v41 = vpack.c.bf16 %v2350_v13, %v2350_v13  ;;  %v2217_v62 = vpop.f32.mrf.mxu0  ;;  %v2348_v57 = vmax.f32 %v2281_v59, 0.0 }
 0x1cf   : > { %v2916_v20 = vpack.c.bf16 %v2334_v39, %v2334_v39  ;;  %v2332_v61 = vmax.f32 %v2217_v62, 0.0  ;;  %v2990_v3 = vpop.f32.mrf.mxu1 }
 0x1d0   : > { %2511 = vst.msk [vmem:[%s4443_s7 + $0x58] sm:$0xf] %vm2488_vm12, %v2932_v41  ;;  %v2930_v33 = vpack.c.bf16 %v2348_v57, %v2348_v57  ;;  %v2974_v49 = vpop.f32.mrf.mxu0  ;;  %v2351_v42 = vmax.f32 %v2990_v3, 0.0 }
 0x1d1   : > { %2495 = vst.msk [vmem:[%s4443_s7 + $0x18] sm:$0xf] %vm2488_vm12, %v2916_v20  ;;  %v2914_v12 = vpack.c.bf16 %v2332_v61, %v2332_v61  ;;  %v2335_v47 = vmax.f32 %v2974_v49, 0.0  ;;  %v2284_v60 = vpop.f32.mrf.mxu1 }
 0x1d2   : > { %2509 = vst.msk [vmem:[%s4443_s7 + $0x50] sm:$0xf] %vm2488_vm12, %v2930_v33  ;;  %v2933_v2 = vpack.c.bf16 %v2351_v42, %v2351_v42  ;;  %v2220_v10 = vpop.f32.mrf.mxu0  ;;  %v2349_v14 = vmax.f32 %v2284_v60, 0.0 }
 0x1d3   : > { %2493 = vst.msk [vmem:[%s4443_s7 + $0x10] sm:$0xf] %vm2488_vm12, %v2914_v12  ;;  %v2917_v44 = vpack.c.bf16 %v2335_v47, %v2335_v47  ;;  %v2333_v43 = vmax.f32 %v2220_v10, 0.0 }
 0x1d4   : > { %2512 = vst.msk [vmem:[%s4443_s7 + $0x5c] sm:$0xf] %vm2488_vm12, %v2933_v2  ;;  %v2931_v51 = vpack.c.bf16 %v2349_v14, %v2349_v14 }
 0x1d5   : > { %2496 = vst.msk [vmem:[%s4443_s7 + $0x1c] sm:$0xf] %vm2488_vm12, %v2917_v44  ;;  %v2915_v16 = vpack.c.bf16 %v2333_v43, %v2333_v43 }
 0x1d6   : > { %2510 = vst.msk [vmem:[%s4443_s7 + $0x54] sm:$0xf] %vm2488_vm12, %v2931_v51 }
 0x1d7   : > { %2494 = vst.msk [vmem:[%s4443_s7 + $0x14] sm:$0xf] %vm2488_vm12, %v2915_v16 }
 0x20b   : > { %v2993_v36 = vpop.f32.mrf.mxu1 }
 0x20c   : > { %v2977_v40 = vpop.f32.mrf.mxu0  ;;  %v2354_v54 = vmax.f32 %v2993_v36, 0.0 }
 0x20d   : > { %v2338_v11 = vmax.f32 %v2977_v40, 0.0  ;;  %v2297_v58 = vpop.f32.mrf.mxu1 }
 0x20e   : > { %v2936_v28 = vpack.c.bf16 %v2354_v54, %v2354_v54  ;;  %v2233_v31 = vpop.f32.mrf.mxu0  ;;  %v2352_v35 = vmax.f32 %v2297_v58, 0.0 }
 0x20f   : > { %v2920_v22 = vpack.c.bf16 %v2338_v11, %v2338_v11  ;;  %v2336_v63 = vmax.f32 %v2233_v31, 0.0  ;;  %v2994_v17 = vpop.f32.mrf.mxu1 }
 0x210   : > { %2515 = vst.msk [vmem:[%s4443_s7 + $0x68] sm:$0xf] %vm2488_vm12, %v2936_v28  ;;  %v2934_v46 = vpack.c.bf16 %v2352_v35, %v2352_v35  ;;  %v2978_v23 = vpop.f32.mrf.mxu0  ;;  %v2355_v29 = vmax.f32 %v2994_v17, 0.0 }
 0x211   : > { %2499 = vst.msk [vmem:[%s4443_s7 + $0x28] sm:$0xf] %vm2488_vm12, %v2920_v22  ;;  %v2918_v4 = vpack.c.bf16 %v2336_v63, %v2336_v63  ;;  %v2339_v1 = vmax.f32 %v2978_v23, 0.0  ;;  %v2300_v45 = vpop.f32.mrf.mxu1 }
 0x212   : > { %2513 = vst.msk [vmem:[%s4443_s7 + $0x60] sm:$0xf] %vm2488_vm12, %v2934_v46  ;;  %v2937_v7 = vpack.c.bf16 %v2355_v29, %v2355_v29  ;;  %v2236_v37 = vpop.f32.mrf.mxu0  ;;  %v2353_v18 = vmax.f32 %v2300_v45, 0.0 }
 0x213   : > { %2497 = vst.msk [vmem:[%s4443_s7 + $0x20] sm:$0xf] %vm2488_vm12, %v2918_v4  ;;  %v2921_v21 = vpack.c.bf16 %v2339_v1, %v2339_v1  ;;  %v2337_v27 = vmax.f32 %v2236_v37, 0.0 }
 0x214   : > { %2516 = vst.msk [vmem:[%s4443_s7 + $0x6c] sm:$0xf] %vm2488_vm12, %v2937_v7  ;;  %v2935_v24 = vpack.c.bf16 %v2353_v18, %v2353_v18 }
 0x215   : > { %2500 = vst.msk [vmem:[%s4443_s7 + $0x2c] sm:$0xf] %vm2488_vm12, %v2921_v21  ;;  %v2919_v6 = vpack.c.bf16 %v2337_v27, %v2337_v27 }
 0x216   : > { %2514 = vst.msk [vmem:[%s4443_s7 + $0x64] sm:$0xf] %vm2488_vm12, %v2935_v24 }
 0x217   : > { %2498 = vst.msk [vmem:[%s4443_s7 + $0x24] sm:$0xf] %vm2488_vm12, %v2919_v6 }
 0x247   : > { %v2997_v48 = vpop.f32.mrf.mxu1 }
 0x248   : > { %v2981_v52 = vpop.f32.mrf.mxu0  ;;  %v2358_v8 = vmax.f32 %v2997_v48, 0.0 }
 0x249   : > { %v2342_v55 = vmax.f32 %v2981_v52, 0.0  ;;  %v2313_v5 = vpop.f32.mrf.mxu1 }
 0x24a   : > { %v2940_v0 = vpack.c.bf16 %v2358_v8, %v2358_v8  ;;  %v2249_v15 = vpop.f32.mrf.mxu0  ;;  %v2356_v25 = vmax.f32 %v2313_v5, 0.0 }
 0x24b   : > { %v2924_v30 = vpack.c.bf16 %v2342_v55, %v2342_v55  ;;  %v2340_v26 = vmax.f32 %v2249_v15, 0.0  ;;  %v2998_v38 = vpop.f32.mrf.mxu1 }
 0x24c   : > { %2519 = vst.msk [vmem:[%s4443_s7 + $0x78] sm:$0xf] %vm2488_vm12, %v2940_v0  ;;  %v2938_v56 = vpack.c.bf16 %v2356_v25, %v2356_v25  ;;  %v2982_v50 = vpop.f32.mrf.mxu0  ;;  %v2359_v32 = vmax.f32 %v2998_v38, 0.0 }
 0x24d   : > { %2503 = vst.msk [vmem:[%s4443_s7 + $0x38] sm:$0xf] %vm2488_vm12, %v2924_v30  ;;  %v2922_v19 = vpack.c.bf16 %v2340_v26, %v2340_v26  ;;  %v2343_v34 = vmax.f32 %v2982_v50, 0.0  ;;  %v2316_v53 = vpop.f32.mrf.mxu1 }
 0x24e   : > { %2517 = vst.msk [vmem:[%s4443_s7 + $0x70] sm:$0xf] %vm2488_vm12, %v2938_v56  ;;  %v2941_v9 = vpack.c.bf16 %v2359_v32, %v2359_v32  ;;  %v2252_v13 = vpop.f32.mrf.mxu0  ;;  %v2357_v39 = vmax.f32 %v2316_v53, 0.0 }
 0x24f   : > { %2501 = vst.msk [vmem:[%s4443_s7 + $0x30] sm:$0xf] %vm2488_vm12, %v2922_v19  ;;  %v2925_v59 = vpack.c.bf16 %v2343_v34, %v2343_v34  ;;  %v2341_v41 = vmax.f32 %v2252_v13, 0.0 }
 0x250   : > { %2520 = vst.msk [vmem:[%s4443_s7 + $0x7c] sm:$0xf] %vm2488_vm12, %v2941_v9  ;;  %v2939_v62 = vpack.c.bf16 %v2357_v39, %v2357_v39 }
 0x251   : > { %2504 = vst.msk [vmem:[%s4443_s7 + $0x3c] sm:$0xf] %vm2488_vm12, %v2925_v59  ;;  %v2923_v57 = vpack.c.bf16 %v2341_v41, %v2341_v41 }
 0x252   : > { %2518 = vst.msk [vmem:[%s4443_s7 + $0x74] sm:$0xf] %vm2488_vm12, %v2939_v62 }
 0x253   : > { %2502 = vst.msk [vmem:[%s4443_s7 + $0x34] sm:$0xf] %vm2488_vm12, %v2923_v57 }
 0x254 PF: > { %s12_s9 = sadd.s32 1, %s3177_s9  }
 0x255   : > { %p9_p5 = scmp.ge.s32.totalorder %s12_s9, 4  }
 0x257   :  { %11 = sbr.rel (!%p9_p5) target bundleno = 1 (0x1), region = 60 }

// kernel: conv_trans_block_forward.9
= control target key start
LH: loop header
LB: loop body
LE: loop exit
PB: predicated region body
PF: predicated region fallthrough
CT: control target
= control target key end

     0   :  { %s1435_s21 = smov 0   ;;  %s1673_s0 = inlined_call_operand.vmem [shape: bf16[512,4], index: 0, kind: input, shape index: {}]   ;;  %s1674_s1 = inlined_call_operand.vmem [shape: bf16[512,4], index: 1, kind: input, shape index: {}]   ;;  %s1675_s2 = inlined_call_operand.vmem [shape: bf16[4,8], index: 2, kind: input, shape index: {}]   ;;  %s1676_s3 = inlined_call_operand.vmem [shape: bf16[4,8], index: 3, kind: input, shape index: {}]   ;;  %s1677_s4 = inlined_call_operand.vmem [shape: f32[1,8], index: 4, kind: input, shape index: {}]   ;;  %s1678_s5 = inlined_call_operand.vmem [shape: f32[512,8], index: 5, kind: input, shape index: {}]   ;;  %s1679_s6 = inlined_call_operand.vmem [shape: f32[512,8], index: 6, kind: output, shape index: {}]  }
   0x1 LB: > { %s1168_s22 = sadd.s32 4294967295, %s1398_s21   ;;  %p1172_p0 = scmp.ge.s32.totalorder %s1398_s21, 1  ;;  %s1398_s21 = sphi %s1435_s21, %s16_s21  }
   0x2   : > { %p235_p1 = scmp.lt.s32.totalorder %s1398_s21, 3 }
   0x4   : > { %p236_p2 = pnand %p1172_p0, %p235_p1 }
   0x5   : > { %s1173_s27 = sshll.u32 (!%p236_p2), %s1168_s22, 5 }
   0x6   : > { %239 = sbr.rel (%p236_p2) target bundleno = 279 (0x117), region = 44  ;;  %p276_p3 = scmp.lt.s32.totalorder (!%p236_p2), %s1173_s27, 63 }
   0xb   : > { %v365_v0 = vld [vmem:[%s1676_s3] sm:$0x3]  ;;  %vm495_vm0 = vcmask 1041408   ;;  %s1681_s27 = smov (!%p276_p3, %s1173_s27), 63  ;;  %vm446_vm1 = vcmask 31744   ;;  %vm1055_vm2 = vcmask 64512  }
   0xc   : > { %v332_v1 = vld [vmem:[%s1675_s2] sm:$0x3]  ;;  %1350 = vmatprep.subr.msk.bf16.mxu0 %vm495_vm0, %v365_v0  ;;  %v497_v2 = vsel %vm495_vm0, %v365_v0, 0  ;;  %s1174_s28 = sshll.u32 %s1681_s27, 2  ;;  %s1178_s11 = sshll.u32 %s1681_s27, 3 }
   0xd   : > { %1351 = vmatprep.subr.msk.bf16.mxu1 %vm495_vm0, %v332_v1  ;;  %v789_v3 = vsel %vm495_vm0, %v332_v1, 0  ;;  %1283 = vmatpush3.bf16.msra.mxu0 %v497_v2  ;;  %s1455_s7 = scalar_lea.vmem %s1674_s1, %s1174_s28  ;;  %s1460_s10 = scalar_lea.vmem %s1673_s0, %s1174_s28  ;;  %v1535_v38 = vld [vmem:[%s1677_s4] ss:$0 sm:$0xff] }
   0xe   : > { %1317 = vmatpush3.bf16.msra.mxu1 %v789_v3  ;;  %v1360_v4 = vld [vmem:[%s1455_s7] sm:$0xff]   ;;  %v1362_v6 = vld [vmem:[%s1455_s7 + $0x8] sm:$0xff]   ;;  %v1364_v8 = vld [vmem:[%s1455_s7 + $0x10] sm:$0xff]   ;;  %s1530_s14 = scalar_lea.vmem %s1678_s5, %s1178_s11  ;;  %s1542_s19 = scalar_lea.vmem %s1679_s6, %s1178_s11 }
   0xf   : > { %v1361_v5 = vld [vmem:[%s1460_s10] sm:$0xff]   ;;  %1284 = vmatprep.mubr.msk.bf16.mxu0 %vm446_vm1, %v1360_v4  ;;  %v1363_v7 = vld [vmem:[%s1460_s10 + $0x8] sm:$0xff]   ;;  %v1365_v9 = vld [vmem:[%s1460_s10 + $0x10] sm:$0xff]  }
  0x10   : > { %1318 = vmatprep.mubr.msk.bf16.mxu1 %vm446_vm1, %v1361_v5  ;;  %1285 = vmatmul.mubr.msk.bf16.vlgmr.msra.gmra.mxu0 %vm446_vm1, %v1362_v6  ;;  %v1366_v10 = vld [vmem:[%s1455_s7 + $0x18] sm:$0xff]   ;;  %v1368_v12 = vld [vmem:[%s1455_s7 + $0x20] sm:$0xff]   ;;  %v1370_v14 = vld [vmem:[%s1455_s7 + $0x28] sm:$0xff]  }
  0x11   : > { %1319 = vmatmul.mubr.msk.bf16.vlgmr.msra.gmra.mxu1 %vm446_vm1, %v1363_v7  ;;  %1288 = vmatprep.mubr.msk.bf16.mxu0 %vm446_vm1, %v1364_v8  ;;  %v1367_v11 = vld [vmem:[%s1460_s10 + $0x18] sm:$0xff]   ;;  %v1369_v13 = vld [vmem:[%s1460_s10 + $0x20] sm:$0xff]   ;;  %v1371_v15 = vld [vmem:[%s1460_s10 + $0x28] sm:$0xff]  }
  0x12   : > { %1322 = vmatprep.mubr.msk.bf16.mxu1 %vm446_vm1, %v1365_v9  ;;  %v1372_v16 = vld [vmem:[%s1455_s7 + $0x30] sm:$0xff]   ;;  %v1374_v18 = vld [vmem:[%s1455_s7 + $0x38] sm:$0xff]   ;;  %v1376_v20 = vld [vmem:[%s1455_s7 + $0x40] sm:$0xff]  }
  0x13   : > { %v1373_v17 = vld [vmem:[%s1460_s10 + $0x30] sm:$0xff]   ;;  %v1375_v19 = vld [vmem:[%s1460_s10 + $0x38] sm:$0xff]   ;;  %v1377_v21 = vld [vmem:[%s1460_s10 + $0x40] sm:$0xff]  }
  0x14   : > { %v1378_v22 = vld [vmem:[%s1455_s7 + $0x48] sm:$0xff]   ;;  %v1380_v24 = vld [vmem:[%s1455_s7 + $0x50] sm:$0xff]   ;;  %v1382_v26 = vld [vmem:[%s1455_s7 + $0x58] sm:$0xff]  }
  0x15   : > { %v1379_v23 = vld [vmem:[%s1460_s10 + $0x48] sm:$0xff]   ;;  %v1381_v25 = vld [vmem:[%s1460_s10 + $0x50] sm:$0xff]   ;;  %v1383_v27 = vld [vmem:[%s1460_s10 + $0x58] sm:$0xff]  }
  0x16   : > { %v1384_v28 = vld [vmem:[%s1455_s7 + $0x60] sm:$0xff]   ;;  %v1386_v30 = vld [vmem:[%s1455_s7 + $0x68] sm:$0xff]   ;;  %v1388_v32 = vld [vmem:[%s1455_s7 + $0x70] sm:$0xff]  }
  0x17   : > { %v1385_v29 = vld [vmem:[%s1460_s10 + $0x60] sm:$0xff]   ;;  %v1387_v31 = vld [vmem:[%s1460_s10 + $0x68] sm:$0xff]   ;;  %v1389_v33 = vld [vmem:[%s1460_s10 + $0x70] sm:$0xff]  }
  0x18   : > { %1289 = vmatmul.mubr.msk.bf16.gmra.mxu0 %vm446_vm1, %v1366_v10  ;;  %v1390_v34 = vld [vmem:[%s1455_s7 + $0x78] sm:$0xff]   ;;  %v993_v41 = vld [vmem:[%s1530_s14 + $0x10] sm:$0xff]  ;;  %v991_v46 = vld [vmem:[%s1530_s14] sm:$0xff] }
  0x19   : > { %1323 = vmatmul.mubr.msk.bf16.gmra.mxu1 %vm446_vm1, %v1367_v11  ;;  %1292 = vmatprep.mubr.msk.bf16.mxu0 %vm446_vm1, %v1368_v12  ;;  %v1391_v35 = vld [vmem:[%s1460_s10 + $0x78] sm:$0xff]   ;;  %v992_v58 = vld [vmem:[%s1530_s14 + $0x8] sm:$0xff]  ;;  %v997_v0 = vld [vmem:[%s1530_s14 + $0x30] sm:$0xff] }
  0x1a   : > { %1326 = vmatprep.mubr.msk.bf16.mxu1 %vm446_vm1, %v1369_v13  ;;  %v994_v52 = vld [vmem:[%s1530_s14 + $0x18] sm:$0xff]  ;;  %v995_v6 = vld [vmem:[%s1530_s14 + $0x20] sm:$0xff] }
  0x1b   : > { %v998_v12 = vld [vmem:[%s1530_s14 + $0x38] sm:$0xff] }
  0x20   : > { %1293 = vmatmul.mubr.msk.bf16.gmra.mxu0 %vm446_vm1, %v1370_v14 }
  0x21   : > { %1327 = vmatmul.mubr.msk.bf16.gmra.mxu1 %vm446_vm1, %v1371_v15  ;;  %1296 = vmatprep.mubr.msk.bf16.mxu0 %vm446_vm1, %v1372_v16 }
  0x22   : > { %1330 = vmatprep.mubr.msk.bf16.mxu1 %vm446_vm1, %v1373_v17 }
  0x28   : > { %1297 = vmatmul.mubr.msk.bf16.gmra.mxu0 %vm446_vm1, %v1374_v18  ;;  %v996_v18 = vld [vmem:[%s1530_s14 + $0x28] sm:$0xff] }
  0x29   : > { %1331 = vmatmul.mubr.msk.bf16.gmra.mxu1 %vm446_vm1, %v1375_v19  ;;  %1300 = vmatprep.mubr.msk.bf16.mxu0 %vm446_vm1, %v1376_v20 }
  0x2a   : > { %1334 = vmatprep.mubr.msk.bf16.mxu1 %vm446_vm1, %v1377_v21 }
  0x30   : > { %1301 = vmatmul.mubr.msk.bf16.gmra.mxu0 %vm446_vm1, %v1378_v22 }
  0x31   : > { %1335 = vmatmul.mubr.msk.bf16.gmra.mxu1 %vm446_vm1, %v1379_v23  ;;  %1304 = vmatprep.mubr.msk.bf16.mxu0 %vm446_vm1, %v1380_v24  ;;  %v1001_v24 = vld [vmem:[%s1530_s14 + $0x50] sm:$0xff] }
  0x32   : > { %1338 = vmatprep.mubr.msk.bf16.mxu1 %vm446_vm1, %v1381_v25 }
  0x38   : > { %1305 = vmatmul.mubr.msk.bf16.gmra.mxu0 %vm446_vm1, %v1382_v26 }
  0x39   : > { %1339 = vmatmul.mubr.msk.bf16.gmra.mxu1 %vm446_vm1, %v1383_v27  ;;  %1308 = vmatprep.mubr.msk.bf16.mxu0 %vm446_vm1, %v1384_v28 }
  0x3a   : > { %1342 = vmatprep.mubr.msk.bf16.mxu1 %vm446_vm1, %v1385_v29 }
  0x40   : > { %1309 = vmatmul.mubr.msk.bf16.gmra.mxu0 %vm446_vm1, %v1386_v30  ;;  %v999_v30 = vld [vmem:[%s1530_s14 + $0x40] sm:$0xff] }
  0x41   : > { %1343 = vmatmul.mubr.msk.bf16.gmra.mxu1 %vm446_vm1, %v1387_v31  ;;  %1312 = vmatprep.mubr.msk.bf16.mxu0 %vm446_vm1, %v1388_v32 }
  0x42   : > { %1346 = vmatprep.mubr.msk.bf16.mxu1 %vm446_vm1, %v1389_v33 }
  0x48   : > { %1313 = vmatmul.mubr.msk.bf16.gmra.mxu0 %vm446_vm1, %v1390_v34 }
  0x49   : > { %1347 = vmatmul.mubr.msk.bf16.gmra.mxu1 %vm446_vm1, %v1391_v35 }
  0xd0   : > { %v1286_v36 = vpop.f32.mrf.mxu0 }
  0xd1   : > { %v1320_v37 = vpop.f32.mrf.mxu1 }
  0xd2   : > { %v834_v39 = vadd.f32 %v1320_v37, %v1286_v36  ;;  %v533_v40 = vpop.f32.mrf.mxu0  ;;  %v1002_v36 = vld [vmem:[%s1530_s14 + $0x58] sm:$0xff] }
  0xd3   : > { %v825_v42 = vpop.f32.mrf.mxu1 }
  0xd4   : > { %v961_v43 = vadd.f32 %v1535_v38, %v834_v39  ;;  %v826_v44 = vadd.f32 %v825_v42, %v533_v40  ;;  %v1287_v45 = vpop.f32.mrf.mxu0 }
  0xd5   : > { %v1321_v47 = vpop.f32.mrf.mxu1 }
  0xd6   : > { %v1025_v48 = vadd.f32 %v993_v41, %v961_v43  ;;  %v959_v49 = vadd.f32 %v1535_v38, %v826_v44  ;;  %v837_v50 = vadd.f32 %v1321_v47, %v1287_v45  ;;  %v536_v51 = vpop.f32.mrf.mxu0  ;;  %v1000_v43 = vld [vmem:[%s1530_s14 + $0x48] sm:$0xff] }
  0xd7   : > { %v828_v53 = vpop.f32.mrf.mxu1 }
  0xd8   : > { %1058 = vst.msk [vmem:[%s1542_s19 + $0x10] sm:$0xff] %vm1055_vm2, %v1025_v48  ;;  %v1023_v54 = vadd.f32 %v991_v46, %v959_v49  ;;  %v962_v55 = vadd.f32 %v1535_v38, %v837_v50  ;;  %v829_v56 = vadd.f32 %v828_v53, %v536_v51  ;;  %v1290_v57 = vpop.f32.mrf.mxu0  ;;  %v1005_v49 = vld [vmem:[%s1530_s14 + $0x70] sm:$0xff] }
  0xd9   : > { %v1324_v59 = vpop.f32.mrf.mxu1 }
  0xda   : > { %1056 = vst.msk [vmem:[%s1542_s19] sm:$0xff] %vm1055_vm2, %v1023_v54  ;;  %v1026_v60 = vadd.f32 %v994_v52, %v962_v55  ;;  %v960_v61 = vadd.f32 %v1535_v38, %v829_v56  ;;  %v850_v62 = vadd.f32 %v1324_v59, %v1290_v57  ;;  %v549_v63 = vpop.f32.mrf.mxu0  ;;  %v1003_v55 = vld [vmem:[%s1530_s14 + $0x60] sm:$0xff] }
  0xdb   : > { %v841_v1 = vpop.f32.mrf.mxu1 }
  0xdc   : > { %1059 = vst.msk [vmem:[%s1542_s19 + $0x18] sm:$0xff] %vm1055_vm2, %v1026_v60  ;;  %v1024_v2 = vadd.f32 %v992_v58, %v960_v61  ;;  %v965_v3 = vadd.f32 %v1535_v38, %v850_v62  ;;  %v842_v4 = vadd.f32 %v841_v1, %v549_v63  ;;  %v1291_v5 = vpop.f32.mrf.mxu0  ;;  %v1006_v61 = vld [vmem:[%s1530_s14 + $0x78] sm:$0xff] }
  0xdd   : > { %v1325_v7 = vpop.f32.mrf.mxu1 }
  0xde   : > { %1057 = vst.msk [vmem:[%s1542_s19 + $0x8] sm:$0xff] %vm1055_vm2, %v1024_v2  ;;  %v1029_v8 = vadd.f32 %v997_v0, %v965_v3  ;;  %v963_v9 = vadd.f32 %v1535_v38, %v842_v4  ;;  %v853_v10 = vadd.f32 %v1325_v7, %v1291_v5  ;;  %v552_v11 = vpop.f32.mrf.mxu0  ;;  %v1004_v3 = vld [vmem:[%s1530_s14 + $0x68] sm:$0xff] }
  0xdf   : > { %v844_v13 = vpop.f32.mrf.mxu1 }
  0xe0   : > { %1062 = vst.msk [vmem:[%s1542_s19 + $0x30] sm:$0xff] %vm1055_vm2, %v1029_v8  ;;  %v1027_v14 = vadd.f32 %v995_v6, %v963_v9  ;;  %v966_v15 = vadd.f32 %v1535_v38, %v853_v10  ;;  %v845_v16 = vadd.f32 %v844_v13, %v552_v11  ;;  %v1294_v17 = vpop.f32.mrf.mxu0  ;;  %v1009_v9 = vld [vmem:[%s1530_s14 + $0x90] sm:$0xff] }
  0xe1   : > { %v1328_v19 = vpop.f32.mrf.mxu1 }
  0xe2   : > { %1060 = vst.msk [vmem:[%s1542_s19 + $0x20] sm:$0xff] %vm1055_vm2, %v1027_v14  ;;  %v1030_v20 = vadd.f32 %v998_v12, %v966_v15  ;;  %v964_v21 = vadd.f32 %v1535_v38, %v845_v16  ;;  %v866_v22 = vadd.f32 %v1328_v19, %v1294_v17  ;;  %v565_v23 = vpop.f32.mrf.mxu0  ;;  %v1007_v15 = vld [vmem:[%s1530_s14 + $0x80] sm:$0xff] }
  0xe3   : > { %v857_v25 = vpop.f32.mrf.mxu1 }
  0xe4   : > { %1063 = vst.msk [vmem:[%s1542_s19 + $0x38] sm:$0xff] %vm1055_vm2, %v1030_v20  ;;  %v1028_v26 = vadd.f32 %v996_v18, %v964_v21  ;;  %v969_v27 = vadd.f32 %v1535_v38, %v866_v22  ;;  %v858_v28 = vadd.f32 %v857_v25, %v565_v23  ;;  %v1295_v29 = vpop.f32.mrf.mxu0  ;;  %v1010_v21 = vld [vmem:[%s1530_s14 + $0x98] sm:$0xff] }
  0xe5   : > { %v1329_v31 = vpop.f32.mrf.mxu1 }
  0xe6   : > { %1061 = vst.msk [vmem:[%s1542_s19 + $0x28] sm:$0xff] %vm1055_vm2, %v1028_v26  ;;  %v1033_v32 = vadd.f32 %v1001_v24, %v969_v27  ;;  %v967_v33 = vadd.f32 %v1535_v38, %v858_v28  ;;  %v869_v34 = vadd.f32 %v1329_v31, %v1295_v29  ;;  %v568_v35 = vpop.f32.mrf.mxu0  ;;  %v1008_v27 = vld [vmem:[%s1530_s14 + $0x88] sm:$0xff] }
  0xe7   : > { %v860_v37 = vpop.f32.mrf.mxu1 }
  0xe8   : > { %1066 = vst.msk [vmem:[%s1542_s19 + $0x50] sm:$0xff] %vm1055_vm2, %v1033_v32  ;;  %v1031_v39 = vadd.f32 %v999_v30, %v967_v33  ;;  %v970_v40 = vadd.f32 %v1535_v38, %v869_v34  ;;  %v861_v41 = vadd.f32 %v860_v37, %v568_v35  ;;  %v1298_v42 = vpop.f32.mrf.mxu0  ;;  %v1013_v33 = vld [vmem:[%s1530_s14 + $0xb0] sm:$0xff] }
  0xe9   : > { %v1332_v44 = vpop.f32.mrf.mxu1 }
  0xea   : > { %1064 = vst.msk [vmem:[%s1542_s19 + $0x40] sm:$0xff] %vm1055_vm2, %v1031_v39  ;;  %v1034_v45 = vadd.f32 %v1002_v36, %v970_v40  ;;  %v968_v46 = vadd.f32 %v1535_v38, %v861_v41  ;;  %v882_v47 = vadd.f32 %v1332_v44, %v1298_v42  ;;  %v581_v48 = vpop.f32.mrf.mxu0  ;;  %v1011_v40 = vld [vmem:[%s1530_s14 + $0xa0] sm:$0xff] }
  0xeb   : > { %v873_v50 = vpop.f32.mrf.mxu1 }
  0xec   : > { %1067 = vst.msk [vmem:[%s1542_s19 + $0x58] sm:$0xff] %vm1055_vm2, %v1034_v45  ;;  %v1032_v51 = vadd.f32 %v1000_v43, %v968_v46  ;;  %v973_v52 = vadd.f32 %v1535_v38, %v882_v47  ;;  %v874_v53 = vadd.f32 %v873_v50, %v581_v48  ;;  %v1299_v54 = vpop.f32.mrf.mxu0  ;;  %v1014_v46 = vld [vmem:[%s1530_s14 + $0xb8] sm:$0xff] }
  0xed   : > { %v1333_v56 = vpop.f32.mrf.mxu1 }
  0xee   : > { %1065 = vst.msk [vmem:[%s1542_s19 + $0x48] sm:$0xff] %vm1055_vm2, %v1032_v51  ;;  %v1037_v57 = vadd.f32 %v1005_v49, %v973_v52  ;;  %v971_v58 = vadd.f32 %v1535_v38, %v874_v53  ;;  %v885_v59 = vadd.f32 %v1333_v56, %v1299_v54  ;;  %v584_v60 = vpop.f32.mrf.mxu0  ;;  %v1012_v52 = vld [vmem:[%s1530_s14 + $0xa8] sm:$0xff] }
  0xef   : > { %v876_v62 = vpop.f32.mrf.mxu1 }
  0xf0   : > { %1070 = vst.msk [vmem:[%s1542_s19 + $0x70] sm:$0xff] %vm1055_vm2, %v1037_v57  ;;  %v1035_v63 = vadd.f32 %v1003_v55, %v971_v58  ;;  %v974_v0 = vadd.f32 %v1535_v38, %v885_v59  ;;  %v877_v1 = vadd.f32 %v876_v62, %v584_v60  ;;  %v1302_v2 = vpop.f32.mrf.mxu0  ;;  %v1017_v58 = vld [vmem:[%s1530_s14 + $0xd0] sm:$0xff] }
  0xf1   : > { %v1336_v4 = vpop.f32.mrf.mxu1 }
  0xf2   : > { %1068 = vst.msk [vmem:[%s1542_s19 + $0x60] sm:$0xff] %vm1055_vm2, %v1035_v63  ;;  %v1038_v5 = vadd.f32 %v1006_v61, %v974_v0  ;;  %v972_v6 = vadd.f32 %v1535_v38, %v877_v1  ;;  %v898_v7 = vadd.f32 %v1336_v4, %v1302_v2  ;;  %v597_v8 = vpop.f32.mrf.mxu0  ;;  %v1015_v0 = vld [vmem:[%s1530_s14 + $0xc0] sm:$0xff] }
  0xf3   : > { %v889_v10 = vpop.f32.mrf.mxu1 }
  0xf4   : > { %1071 = vst.msk [vmem:[%s1542_s19 + $0x78] sm:$0xff] %vm1055_vm2, %v1038_v5  ;;  %v1036_v11 = vadd.f32 %v1004_v3, %v972_v6  ;;  %v977_v12 = vadd.f32 %v1535_v38, %v898_v7  ;;  %v890_v13 = vadd.f32 %v889_v10, %v597_v8  ;;  %v1303_v14 = vpop.f32.mrf.mxu0  ;;  %v1018_v6 = vld [vmem:[%s1530_s14 + $0xd8] sm:$0xff] }
  0xf5   : > { %v1337_v16 = vpop.f32.mrf.mxu1 }
  0xf6   : > { %1069 = vst.msk [vmem:[%s1542_s19 + $0x68] sm:$0xff] %vm1055_vm2, %v1036_v11  ;;  %v1041_v17 = vadd.f32 %v1009_v9, %v977_v12  ;;  %v975_v18 = vadd.f32 %v1535_v38, %v890_v13  ;;  %v901_v19 = vadd.f32 %v1337_v16, %v1303_v14  ;;  %v600_v20 = vpop.f32.mrf.mxu0  ;;  %v1016_v12 = vld [vmem:[%s1530_s14 + $0xc8] sm:$0xff] }
  0xf7   : > { %v892_v22 = vpop.f32.mrf.mxu1 }
  0xf8   : > { %1074 = vst.msk [vmem:[%s1542_s19 + $0x90] sm:$0xff] %vm1055_vm2, %v1041_v17  ;;  %v1039_v23 = vadd.f32 %v1007_v15, %v975_v18  ;;  %v978_v24 = vadd.f32 %v1535_v38, %v901_v19  ;;  %v893_v25 = vadd.f32 %v892_v22, %v600_v20  ;;  %v1306_v26 = vpop.f32.mrf.mxu0  ;;  %v1021_v18 = vld [vmem:[%s1530_s14 + $0xf0] sm:$0xff] }
  0xf9   : > { %v1340_v28 = vpop.f32.mrf.mxu1 }
  0xfa   : > { %1072 = vst.msk [vmem:[%s1542_s19 + $0x80] sm:$0xff] %vm1055_vm2, %v1039_v23  ;;  %v1042_v29 = vadd.f32 %v1010_v21, %v978_v24  ;;  %v976_v30 = vadd.f32 %v1535_v38, %v893_v25  ;;  %v914_v31 = vadd.f32 %v1340_v28, %v1306_v26  ;;  %v613_v32 = vpop.f32.mrf.mxu0  ;;  %v1019_v24 = vld [vmem:[%s1530_s14 + $0xe0] sm:$0xff] }
  0xfb   : > { %v905_v34 = vpop.f32.mrf.mxu1 }
  0xfc   : > { %1075 = vst.msk [vmem:[%s1542_s19 + $0x98] sm:$0xff] %vm1055_vm2, %v1042_v29  ;;  %v1040_v35 = vadd.f32 %v1008_v27, %v976_v30  ;;  %v981_v36 = vadd.f32 %v1535_v38, %v914_v31  ;;  %v906_v37 = vadd.f32 %v905_v34, %v613_v32  ;;  %v1307_v39 = vpop.f32.mrf.mxu0  ;;  %v1022_v30 = vld [vmem:[%s1530_s14 + $0xf8] sm:$0xff] }
  0xfd   : > { %v1341_v41 = vpop.f32.mrf.mxu1 }
  0xfe   : > { %1073 = vst.msk [vmem:[%s1542_s19 + $0x88] sm:$0xff] %vm1055_vm2, %v1040_v35  ;;  %v1045_v42 = vadd.f32 %v1013_v33, %v981_v36  ;;  %v979_v43 = vadd.f32 %v1535_v38, %v906_v37  ;;  %v917_v44 = vadd.f32 %v1341_v41, %v1307_v39  ;;  %v616_v45 = vpop.f32.mrf.mxu0  ;;  %v1020_v35 = vld [vmem:[%s1530_s14 + $0xe8] sm:$0xff] }
  0xff   : > { %v908_v47 = vpop.f32.mrf.mxu1 }
 0x100   : > { %1078 = vst.msk [vmem:[%s1542_s19 + $0xb0] sm:$0xff] %vm1055_vm2, %v1045_v42  ;;  %v1043_v48 = vadd.f32 %v1011_v40, %v979_v43  ;;  %v982_v49 = vadd.f32 %v1535_v38, %v917_v44  ;;  %v909_v50 = vadd.f32 %v908_v47, %v616_v45  ;;  %v1310_v51 = vpop.f32.mrf.mxu0 }
 0x101   : > { %v1344_v53 = vpop.f32.mrf.mxu1 }
 0x102   : > { %1076 = vst.msk [vmem:[%s1542_s19 + $0xa0] sm:$0xff] %vm1055_vm2, %v1043_v48  ;;  %v1046_v54 = vadd.f32 %v1014_v46, %v982_v49  ;;  %v980_v55 = vadd.f32 %v1535_v38, %v909_v50  ;;  %v930_v56 = vadd.f32 %v1344_v53, %v1310_v51  ;;  %v629_v57 = vpop.f32.mrf.mxu0 }
 0x103   : > { %v921_v59 = vpop.f32.mrf.mxu1 }
 0x104   : > { %1079 = vst.msk [vmem:[%s1542_s19 + $0xb8] sm:$0xff] %vm1055_vm2, %v1046_v54  ;;  %v1044_v60 = vadd.f32 %v1012_v52, %v980_v55  ;;  %v985_v61 = vadd.f32 %v1535_v38, %v930_v56  ;;  %v922_v62 = vadd.f32 %v921_v59, %v629_v57  ;;  %v1311_v63 = vpop.f32.mrf.mxu0 }
 0x105   : > { %v1345_v1 = vpop.f32.mrf.mxu1 }
 0x106   : > { %1077 = vst.msk [vmem:[%s1542_s19 + $0xa8] sm:$0xff] %vm1055_vm2, %v1044_v60  ;;  %v1049_v2 = vadd.f32 %v1017_v58, %v985_v61  ;;  %v983_v3 = vadd.f32 %v1535_v38, %v922_v62  ;;  %v933_v4 = vadd.f32 %v1345_v1, %v1311_v63  ;;  %v632_v5 = vpop.f32.mrf.mxu0 }
 0x107   : > { %v924_v7 = vpop.f32.mrf.mxu1 }
 0x108   : > { %1082 = vst.msk [vmem:[%s1542_s19 + $0xd0] sm:$0xff] %vm1055_vm2, %v1049_v2  ;;  %v1047_v8 = vadd.f32 %v1015_v0, %v983_v3  ;;  %v986_v9 = vadd.f32 %v1535_v38, %v933_v4  ;;  %v925_v10 = vadd.f32 %v924_v7, %v632_v5  ;;  %v1314_v11 = vpop.f32.mrf.mxu0 }
 0x109   : > { %v1348_v13 = vpop.f32.mrf.mxu1 }
 0x10a   : > { %1080 = vst.msk [vmem:[%s1542_s19 + $0xc0] sm:$0xff] %vm1055_vm2, %v1047_v8  ;;  %v1050_v14 = vadd.f32 %v1018_v6, %v986_v9  ;;  %v984_v15 = vadd.f32 %v1535_v38, %v925_v10  ;;  %v946_v16 = vadd.f32 %v1348_v13, %v1314_v11  ;;  %v645_v17 = vpop.f32.mrf.mxu0 }
 0x10b   : > { %v937_v19 = vpop.f32.mrf.mxu1 }
 0x10c   : > { %1083 = vst.msk [vmem:[%s1542_s19 + $0xd8] sm:$0xff] %vm1055_vm2, %v1050_v14  ;;  %v1048_v20 = vadd.f32 %v1016_v12, %v984_v15  ;;  %v989_v21 = vadd.f32 %v1535_v38, %v946_v16  ;;  %v938_v22 = vadd.f32 %v937_v19, %v645_v17  ;;  %v1315_v23 = vpop.f32.mrf.mxu0 }
 0x10d   : > { %v1349_v25 = vpop.f32.mrf.mxu1 }
 0x10e   : > { %1081 = vst.msk [vmem:[%s1542_s19 + $0xc8] sm:$0xff] %vm1055_vm2, %v1048_v20  ;;  %v1053_v26 = vadd.f32 %v1021_v18, %v989_v21  ;;  %v987_v27 = vadd.f32 %v1535_v38, %v938_v22  ;;  %v949_v28 = vadd.f32 %v1349_v25, %v1315_v23  ;;  %v648_v29 = vpop.f32.mrf.mxu0 }
 0x10f   : > { %v940_v31 = vpop.f32.mrf.mxu1 }
 0x110   : > { %1086 = vst.msk [vmem:[%s1542_s19 + $0xf0] sm:$0xff] %vm1055_vm2, %v1053_v26  ;;  %v1051_v32 = vadd.f32 %v1019_v24, %v987_v27  ;;  %v990_v33 = vadd.f32 %v1535_v38, %v949_v28  ;;  %v941_v34 = vadd.f32 %v940_v31, %v648_v29 }
 0x112   : > { %1084 = vst.msk [vmem:[%s1542_s19 + $0xe0] sm:$0xff] %vm1055_vm2, %v1051_v32  ;;  %v1054_v36 = vadd.f32 %v1022_v30, %v990_v33  ;;  %v988_v37 = vadd.f32 %v1535_v38, %v941_v34 }
 0x114   : > { %1087 = vst.msk [vmem:[%s1542_s19 + $0xf8] sm:$0xff] %vm1055_vm2, %v1054_v36  ;;  %v1052_v39 = vadd.f32 %v1020_v35, %v988_v37 }
 0x116   : > { %1085 = vst.msk [vmem:[%s1542_s19 + $0xe8] sm:$0xff] %vm1055_vm2, %v1052_v39 }
 0x117 PF: > { %s16_s21 = sadd.s32 1, %s1398_s21  }
 0x118   : > { %p13_p4 = scmp.ge.s32.totalorder %s16_s21, 4  }
 0x11a   :  { %15 = sbr.rel (!%p13_p4) target bundleno = 1 (0x1), region = 80 }

// kernel: conv_trans_block_forward.7
= control target key start
LH: loop header
LB: loop body
LE: loop exit
PB: predicated region body
PF: predicated region fallthrough
CT: control target
= control target key end

     0   :  { %s3381_s12 = smov 0   ;;  %s4713_s0 = inlined_call_operand.vmem [shape: bf16[2,18,18,4], index: 0, kind: input, shape index: {}]   ;;  %s4714_s1 = inlined_call_operand.vmem [shape: bf16[36,4], index: 1, kind: input, shape index: {}]   ;;  %s4715_s2 = inlined_call_operand.vmem [shape: bf16[512,4], index: 2, kind: input, shape index: {}]   ;;  %s4716_s3 = inlined_call_operand.vmem [shape: bf16[512,4], index: 3, kind: output, shape index: {}]  }
   0x1 LB: > { %s3387_s13 = sadd.s32 4294967295, %s3351_s12   ;;  %p2674_p0 = scmp.ge.s32.totalorder %s3351_s12, 1  ;;  %s3351_s12 = sphi %s3381_s12, %s13_s12  }
   0x2   : > { %p148_p1 = scmp.lt.s32.totalorder %s3351_s12, 3 }
   0x4   : > { %p149_p2 = pnand %p2674_p0, %p148_p1 }
   0x6   : > { %152 = sbr.rel (%p149_p2) target bundleno = 596 (0x254), region = 32 }
   0xb   : > { %p177_p3 = scmp.lt.s32.totalorder %s3387_s13, 1  ;;  %s3353_s19 = smov 12   ;;  %vm790_vm0 = vcmask 1046528   ;;  %vm517_vm1 = vsmask.f32 7424  ;;  %vm2276_vm2 = vcmask 1041408  }
   0xc   : > { %s3354_s20 = smov 8   ;;  %s3355_s21 = smov 4   ;;  %vm1895_vm3 = vcmask 31744   ;;  %vm1928_vm4 = vcmask 64512   ;;  %vm1961_vm5 = vcmask 97280   ;;  %vm1994_vm6 = vcmask 130048  }
   0xd   : > { %s178_s14 = scalar_select %p177_p3, %s3387_s13, 1  ;;  %vm2027_vm7 = vcmask 162816   ;;  %vm2060_vm8 = vcmask 195584   ;;  %vm2093_vm9 = vcmask 228352   ;;  %vm2126_vm10 = vcmask 261120  }
   0xe   : > { %s3356_s22 = smov 16   ;;  %s3357_s23 = smov 20   ;;  %vm2243_vm11 = vcmask 293888   ;;  %vm2569_vm12 = vcmask 27648  }
   0xf   : > { %s3181_s15 = smul.u32 216, %s178_s14  ;;  %s3358_s24 = smov 24  }
  0x10   : > { %s3359_s25 = smov 28   ;;  %s3360_s26 = smov 32  }
  0x11   : > { %s3396_s18 = scalar_lea.vmem %s4713_s0, %s3181_s15  ;;  %s2676_s6 = sshll.u32 %s3387_s13, 5 }
  0x12   : > { %v2696_v0 = vld [vmem:[%s3396_s18 + $0x6c] sm:$0xf]  ;;  %v3400_v1 = vld [vmem:[%s3396_s18 + $0x70] sm:$0xf]  ;;  %v212_v6 = vld [vmem:[%s3396_s18 + $0x64] sm:$0xf] }
  0x13   : > { %v3403_v2 = vcombine.low %v2696_v0, %v3400_v1  ;;  %v2680_v3 = vld [vmem:[%s3396_s18 + $0xc] sm:$0xf]  ;;  %v3407_v4 = vld [vmem:[%s3396_s18 + $0x10] sm:$0xf]  ;;  %v251_v7 = vld [vmem:[%s3396_s18 + $0x60] sm:$0xe] }
  0x14   : > { %v3410_v5 = vcombine.low %v2680_v3, %v3407_v4  ;;  %v3417_v8 = vld [vmem:[%s3396_s18 + $0x68] ss:$0 sps:$4 sm:$0x11]   ;;  %v2848_v9 = vcombine.low %v251_v7, %v212_v6  ;;  %v211_v10 = vld [vmem:[%s3396_s18 + $0x60] sm:$0xf]  ;;  %p183_p4 = scmp.lt.s32.totalorder %s2676_s6, 63 }
  0x15   : > { %967 = vrot.lane.b32.xlu1 %v3403_v2, %s3353_s19  ;;  %v1130_v11 = vshll.u32 %v3403_v2, 16  ;;  %v196_v12 = vld [vmem:[%s3396_s18 + $0x4] sm:$0xf]  ;;  %v816_v14 = vrot.slane %v3417_v8, 1  ;;  %v243_v15 = vld [vmem:[%s3396_s18] sm:$0xe]  ;;  %v3428_v18 = vcombine.low %v211_v10, %v212_v6 }
  0x16   : > { %951 = vrot.lane.b32.xlu0 %v3410_v5, %s3353_s19  ;;  %v815_v13 = vrot.slane %v2848_v9, 1  ;;  %v195_v16 = vld [vmem:[%s3396_s18] sm:$0xf]  ;;  %v1034_v17 = vshll.u32 %v3410_v5, 16  ;;  %v2840_v20 = vcombine.low %v243_v15, %v196_v12  ;;  %v213_v21 = vld [vmem:[%s3396_s18 + $0x6c] sm:$0xf] }
  0x17   : > { %v3205_v19 = vld [vmem:[%s3396_s18 + $0x8] ss:$0 sps:$4 sm:$0x11]   ;;  %v3433_v23 = vcombine.low %v195_v16, %v196_v12  ;;  %v214_v24 = vld [vmem:[%s3396_s18 + $0x70] sm:$0xf]  ;;  %v615_v30 = vshrl.u32 %v3428_v18, 16 }
  0x18   : > { %v817_v22 = vsel %vm790_vm0, %v815_v13, %v816_v14  ;;  %v252_v25 = vld [vmem:[%s3396_s18 + $0x6c] sm:$0xe]  ;;  %v791_v26 = vrot.slane %v2840_v20, 1  ;;  %v792_v27 = vrot.slane %v3205_v19, 1  ;;  %v3440_v31 = vcombine.low %v213_v21, %v214_v24  ;;  %v198_v33 = vld [vmem:[%s3396_s18 + $0x10] sm:$0xf] }
  0x19   : > { %855 = vrot.lane.b32.xlu1 %v817_v22, %s3354_s20  ;;  %v3209_v28 = vld [vmem:[%s3396_s18 + $0x74] ss:$0 sps:$4 sm:$0x11]   ;;  %v2849_v29 = vcombine.low %v252_v25, %v214_v24  ;;  %v197_v32 = vld [vmem:[%s3396_s18 + $0xc] sm:$0xf]  ;;  %v519_v41 = vshrl.u32 %v3433_v23, 16 }
  0x1a   : > { %v793_v34 = vsel %vm790_vm0, %v791_v26, %v792_v27  ;;  %v819_v36 = vrot.slane %v3209_v28, 1  ;;  %v244_v37 = vld [vmem:[%s3396_s18 + $0xc] sm:$0xe]  ;;  %v3446_v38 = vcombine.low %v197_v32, %v198_v33  ;;  %v3212_v39 = vld [vmem:[%s3396_s18 + $0x14] ss:$0 sps:$4 sm:$0x11]  }
  0x1b   : > { %v818_v35 = vrot.slane %v2849_v29, 1  ;;  %839 = vrot.lane.b32.xlu0 %v793_v34, %s3354_s20  ;;  %v2841_v40 = vcombine.low %v244_v37, %v198_v33  ;;  %v521_v42 = vshll.u32 %v3433_v23, 16  ;;  %v526_v43 = vshll.u32 %v3205_v19, 16  ;;  %v2698_v52 = vld [vmem:[%s3396_s18 + $0x78] sm:$0xf]  ;;  %s4733_s6 = smov (!%p183_p4, %s2676_s6), 63 }
  0x1c   : > { %v531_v45 = vshrl.u32 %v3446_v38, 16  ;;  %v533_v46 = vshll.u32 %v3446_v38, 16  ;;  %v627_v47 = vshrl.u32 %v3440_v31, 16  ;;  %v795_v49 = vrot.slane %v3212_v39, 1  ;;  %v3460_v57 = vld [vmem:[%s3396_s18 + $0x7c] sm:$0xf] }
  0x1d   : > { %v820_v44 = vsel %vm790_vm0, %v818_v35, %v819_v36  ;;  %v794_v48 = vrot.slane %v2841_v40, 1  ;;  %v538_v50 = vshll.u32 %v3212_v39, 16  ;;  %v523_v51 = vrot.slane %v521_v42, 1  ;;  %v2682_v62 = vld [vmem:[%s3396_s18 + $0x18] sm:$0xf]  ;;  %s2677_s7 = sshll.u32 %s4733_s6, 2 }
  0x1e   : > { %857 = vrot.lane.b32.xlu1 %v820_v44, %s3354_s20  ;;  %v535_v53 = vrot.slane %v533_v46, 1  ;;  %v528_v54 = vrot.slane %v526_v43, 1  ;;  %v629_v55 = vshll.u32 %v3440_v31, 16  ;;  %v634_v56 = vshll.u32 %v3209_v28, 16  ;;  %v3466_v63 = vld [vmem:[%s3396_s18 + $0x1c] sm:$0xf]  ;;  %s4607_s10 = scalar_lea.vmem %s4715_s2, %s2677_s7  ;;  %s4632_s14 = scalar_lea.vmem %s4716_s3, %s2677_s7 }
  0x1f   : > { %v796_v58 = vsel %vm790_vm0, %v794_v48, %v795_v49  ;;  %v540_v59 = vrot.slane %v538_v50, 1  ;;  %v524_v60 = vor.u32 %v523_v51, %v519_v41  ;;  %v617_v61 = vshll.u32 %v3428_v18, 16  ;;  %v3473_v13 = vld [vmem:[%s3396_s18 + $0x74] ss:$0 sps:$4 sm:$0x11]  }
  0x20   : > { %841 = vrot.lane.b32.xlu0 %v796_v58, %s3354_s20  ;;  %v536_v0 = vor.u32 %v535_v53, %v531_v45  ;;  %v631_v3 = vrot.slane %v629_v55, 1  ;;  %v636_v6 = vrot.slane %v634_v56, 1  ;;  %v622_v7 = vshll.u32 %v3417_v8, 16  ;;  %v3478_v20 = vld [vmem:[%s3396_s18 + $0x14] ss:$0 sps:$4 sm:$0x11]  }
  0x21   : > { %v529_v9 = vsel %vm517_vm1, %v524_v60, %v528_v54  ;;  %v619_v10 = vrot.slane %v617_v61, 1  ;;  %v2865_v12 = vcombine.low %v2698_v52, %v3460_v57  ;;  %v2857_v19 = vcombine.low %v2682_v62, %v3466_v63  ;;  %v3485_v24 = vld [vmem:[%s3396_s18 + $0x80] ss:$0 sps:$4 sm:$0x11]   ;;  %v2736_v35 = vld [vmem:[%s3396_s18 + $0x6c] sm:$0xe] }
  0x22   : > { %v541_v14 = vsel %vm517_vm1, %v536_v0, %v540_v59  ;;  %v632_v15 = vor.u32 %v631_v3, %v627_v47  ;;  %v624_v16 = vrot.slane %v622_v7, 1  ;;  %v1128_v21 = vshrl.u32 %v3403_v2, 16  ;;  %v2728_v43 = vld [vmem:[%s3396_s18 + $0xc] sm:$0xe]  ;;  %v2737_v45 = vld [vmem:[%s3396_s18 + $0x78] sm:$0xe] }
  0x23   : > { %712 = vrot.lane.b32.xlu1 %v541_v14, %s3355_s21  ;;  %v620_v8 = vor.u32 %v619_v10, %v615_v30  ;;  %v1132_v22 = vrot.slane %v1130_v11, 1  ;;  %v1142_v26 = vshll.u32 %v2865_v12, 16  ;;  %v1135_v27 = vshll.u32 %v3473_v13, 16  ;;  %v3496_v11 = vld [vmem:[%s3396_s18 + $0x20] ss:$0 sps:$4 sm:$0x11]  }
  0x24   : > { %710 = vrot.lane.b32.xlu0 %v529_v9, %s3355_s21  ;;  %v637_v25 = vsel %vm517_vm1, %v632_v15, %v636_v6  ;;  %v1032_v28 = vshrl.u32 %v3410_v5, 16  ;;  %v1046_v30 = vshll.u32 %v2857_v19, 16  ;;  %v1036_v32 = vrot.slane %v1034_v17, 1  ;;  %v2729_v50 = vld [vmem:[%s3396_s18 + $0x18] sm:$0xe] }
  0x25   : > { %v625_v29 = vsel %vm517_vm1, %v620_v8, %v624_v16  ;;  %v1039_v2 = vshll.u32 %v3478_v20, 16  ;;  %v1133_v33 = vor.u32 %v1132_v22, %v1128_v21  ;;  %v1137_v34 = vrot.slane %v1135_v27, 1  ;;  %v2760_v55 = vld [vmem:[%s3396_s18 + $0x78] sm:$0xf]  ;;  %v3516_v56 = vld [vmem:[%s3396_s18 + $0x7c] sm:$0xf] }
  0x26   : > { %v1037_v36 = vor.u32 %v1036_v32, %v1032_v28  ;;  %v1140_v37 = vshrl.u32 %v2865_v12, 16  ;;  %v1144_v39 = vrot.slane %v1142_v26, 1  ;;  %v1147_v5 = vshll.u32 %v3485_v24, 16  ;;  %v2744_v3 = vld [vmem:[%s3396_s18 + $0x18] sm:$0xf] }
  0x27   : > { %728 = vrot.lane.b32.xlu1 %v637_v25, %s3355_s21  ;;  %v1041_v17 = vrot.slane %v1039_v2, 1  ;;  %v1044_v40 = vshrl.u32 %v2857_v19, 16  ;;  %v1048_v41 = vrot.slane %v1046_v30, 1  ;;  %v1051_v42 = vshll.u32 %v3496_v11, 16  ;;  %v3527_v6 = vld [vmem:[%s3396_s18 + $0x1c] sm:$0xf] }
  0x28   : > { %726 = vrot.lane.b32.xlu0 %v625_v29, %s3355_s21  ;;  %v2896_v44 = vcombine.low %v2736_v35, %v3400_v1  ;;  %v1138_v46 = vsel %vm517_vm1, %v1133_v33, %v1137_v34  ;;  %v1145_v47 = vor.u32 %v1144_v39, %v1140_v37  ;;  %v1149_v48 = vrot.slane %v1147_v5, 1  ;;  %v2746_v16 = vld [vmem:[%s3396_s18 + $0x24] sm:$0xf]  ;;  %v3547_v21 = vld [vmem:[%s3396_s18 + $0x80] ss:$0 sps:$4 sm:$0x11]  }
  0x29   : > { %v2888_v49 = vcombine.low %v2728_v43, %v3407_v4  ;;  %v1042_v51 = vsel %vm517_vm1, %v1037_v36, %v1041_v17  ;;  %v1049_v52 = vor.u32 %v1048_v41, %v1044_v40  ;;  %v1053_v53 = vrot.slane %v1051_v42, 1  ;;  %v3554_v27 = vld [vmem:[%s3396_s18 + $0x20] ss:$0 sps:$4 sm:$0x11]   ;;  %v215_v37 = vld [vmem:[%s3396_s18 + $0x78] sm:$0xf] }
  0x2a   : > { %v1327_v1 = vrot.slane %v2896_v44, 1  ;;  %v1328_v54 = vrot.slane %v3473_v13, 1  ;;  %v2897_v58 = vcombine.low %v2737_v45, %v3460_v57  ;;  %v2889_v4 = vcombine.low %v2729_v50, %v3466_v63  ;;  %v2762_v63 = vld [vmem:[%s3396_s18 + $0x84] sm:$0xf]  ;;  %v3536_v13 = vld [vmem:[%s3396_s18 + $0x88] sm:$0xf] }
  0x2b   : > { %969 = vrot.lane.b32.xlu1 %v2865_v12, %s3353_s19  ;;  %v1150_v59 = vsel %vm517_vm1, %v1145_v47, %v1149_v48  ;;  %v1054_v60 = vsel %vm517_vm1, %v1049_v52, %v1053_v53  ;;  %v1303_v61 = vrot.slane %v2888_v49, 1  ;;  %v1304_v62 = vrot.slane %v3478_v20, 1  ;;  %v3563_v34 = vld [vmem:[%s3396_s18 + $0x2c] ss:$0 sps:$4 sm:$0x11]  }
  0x2c   : > { %953 = vrot.lane.b32.xlu0 %v2857_v19, %s3353_s19  ;;  %v2912_v0 = vcombine.low %v2760_v55, %v3516_v56  ;;  %v1329_v57 = vsel %vm790_vm0, %v1327_v1, %v1328_v54  ;;  %v1330_v7 = vrot.slane %v2897_v58, 1  ;;  %v1331_v9 = vrot.slane %v3485_v24, 1  ;;  %v3542_v19 = vld [vmem:[%s3396_s18 + $0x28] sm:$0xf]  ;;  %v3568_v39 = vld [vmem:[%s3396_s18 + $0x7c] sm:$0xf] }
  0x2d   : > { %v1306_v10 = vrot.slane %v2889_v4, 1  ;;  %v1307_v12 = vrot.slane %v3496_v11, 1  ;;  %v1305_v14 = vsel %vm790_vm0, %v1303_v61, %v1304_v62  ;;  %v2904_v15 = vcombine.low %v2744_v3, %v3527_v6  ;;  %v3559_v11 = vld [vmem:[%s3396_s18 + $0x8c] ss:$0 sps:$4 sm:$0x11]  }
  0x2e   : > { %v1642_v20 = vshll.u32 %v2912_v0, 16  ;;  %v2913_v8 = vcombine.low %v2762_v63, %v3536_v13  ;;  %v1332_v22 = vsel %vm790_vm0, %v1330_v7, %v1331_v9  ;;  %v2905_v24 = vcombine.low %v2746_v16, %v3542_v19  ;;  %v199_v17 = vld [vmem:[%s3396_s18 + $0x18] sm:$0xf]  ;;  %v3572_v40 = vld [vmem:[%s3396_s18 + $0x1c] sm:$0xf] }
  0x2f   : > { %1239 = vrot.lane.b32.xlu1 %v1138_v46, %s3356_s22  ;;  %v1308_v25 = vsel %vm790_vm0, %v1306_v10, %v1307_v12  ;;  %v1546_v26 = vshll.u32 %v2904_v15, 16  ;;  %v1640_v28 = vshrl.u32 %v2912_v0, 16  ;;  %v1647_v32 = vshll.u32 %v3547_v21, 16  ;;  %v2800_v41 = vld [vmem:[%s3396_s18 + $0x78] sm:$0xe] }
  0x30   : > { %1223 = vrot.lane.b32.xlu0 %v1042_v51, %s3356_s22  ;;  %v1644_v29 = vrot.slane %v1642_v20, 1  ;;  %v1654_v30 = vshll.u32 %v2913_v8, 16  ;;  %v1544_v2 = vshrl.u32 %v2904_v15, 16  ;;  %v1558_v33 = vshll.u32 %v2905_v24, 16  ;;  %v2792_v46 = vld [vmem:[%s3396_s18 + $0x18] sm:$0xe] }
  0x31   : > { %v1548_v35 = vrot.slane %v1546_v26, 1  ;;  %v1551_v36 = vshll.u32 %v3554_v27, 16  ;;  %v1649_v42 = vrot.slane %v1647_v32, 1  ;;  %v1652_v43 = vshrl.u32 %v2913_v8, 16  ;;  %v201_v9 = vld [vmem:[%s3396_s18 + $0x24] sm:$0xf] }
  0x32   : > { %v1645_v5 = vor.u32 %v1644_v29, %v1640_v28  ;;  %v1656_v44 = vrot.slane %v1654_v30, 1  ;;  %v1659_v45 = vshll.u32 %v3559_v11, 16  ;;  %v1556_v47 = vshrl.u32 %v2905_v24, 16  ;;  %v3590_v4 = vld [vmem:[%s3396_s18 + $0x80] ss:$0 sps:$4 sm:$0x11]  }
  0x33   : > { %1241 = vrot.lane.b32.xlu1 %v1150_v59, %s3356_s22  ;;  %v1560_v48 = vrot.slane %v1558_v33, 1  ;;  %v1563_v49 = vshll.u32 %v3563_v34, 16  ;;  %v3581_v50 = vcombine.low %v215_v37, %v3568_v39  ;;  %v1549_v51 = vor.u32 %v1548_v35, %v1544_v2  ;;  %v3607_v10 = vld [vmem:[%s3396_s18 + $0x28] sm:$0xf]  ;;  %v2801_v12 = vld [vmem:[%s3396_s18 + $0x84] sm:$0xe] }
  0x34   : > { %1225 = vrot.lane.b32.xlu0 %v1054_v60, %s3356_s22  ;;  %v1553_v52 = vrot.slane %v1551_v36, 1  ;;  %v3584_v53 = vcombine.low %v199_v17, %v3572_v40  ;;  %v2944_v1 = vcombine.low %v2800_v41, %v3516_v56  ;;  %v2936_v54 = vcombine.low %v2792_v46, %v3527_v6  ;;  %v3596_v56 = vld [vmem:[%s3396_s18 + $0x20] ss:$0 sps:$4 sm:$0x11]   ;;  %v217_v6 = vld [vmem:[%s3396_s18 + $0x84] sm:$0xf] }
  0x35   : > { %v1657_v55 = vor.u32 %v1656_v44, %v1652_v43  ;;  %v1661_v58 = vrot.slane %v1659_v45, 1  ;;  %v1650_v59 = vsel %vm517_vm1, %v1645_v5, %v1649_v42  ;;  %v1561_v60 = vor.u32 %v1560_v48, %v1556_v47  ;;  %v3632_v36 = vld [vmem:[%s3396_s18 + $0x8c] ss:$0 sps:$4 sm:$0x11]  }
  0x36   : > { %v1565_v61 = vrot.slane %v1563_v49, 1  ;;  %v641_v62 = vshll.u32 %v3581_v50, 16  ;;  %v545_v3 = vshll.u32 %v3584_v53, 16  ;;  %v1839_v63 = vrot.slane %v2944_v1, 1 }
  0x37   : > { %1367 = vrot.lane.b32.xlu1 %v1329_v57, %s3357_s23  ;;  %v3602_v57 = vld [vmem:[%s3396_s18 + $0x88] sm:$0xf]  ;;  %v1840_v7 = vrot.slane %v3547_v21, 1  ;;  %v1816_v16 = vrot.slane %v3554_v27, 1  ;;  %v646_v20 = vshll.u32 %v3590_v4, 16  ;;  %v543_v26 = vshrl.u32 %v3584_v53, 16 }
  0x38   : > { %1351 = vrot.lane.b32.xlu0 %v1305_v14, %s3357_s23  ;;  %v1662_v14 = vsel %vm517_vm1, %v1657_v55, %v1661_v58  ;;  %v1566_v21 = vsel %vm517_vm1, %v1561_v60, %v1565_v61  ;;  %v547_v28 = vrot.slane %v545_v3, 1  ;;  %v550_v27 = vshll.u32 %v3596_v56, 16 }
  0x39   : > { %v3624_v29 = vcombine.low %v201_v9, %v3607_v10  ;;  %v2945_v30 = vcombine.low %v2801_v12, %v3536_v13  ;;  %v648_v2 = vrot.slane %v646_v20, 1  ;;  %v1841_v33 = vsel %vm790_vm0, %v1839_v63, %v1840_v7  ;;  %v3637_v13 = vld [vmem:[%s3396_s18 + $0x2c] ss:$0 sps:$4 sm:$0x11]   ;;  %v246_v63 = vld [vmem:[%s3396_s18 + $0x24] sm:$0xe] }
  0x3a   : > { %v548_v17 = vor.u32 %v547_v28, %v543_v26  ;;  %v552_v41 = vrot.slane %v550_v27, 1  ;;  %v1843_v43 = vrot.slane %v3559_v11, 1  ;;  %v1819_v45 = vrot.slane %v3563_v34, 1  ;;  %v245_v34 = vld [vmem:[%s3396_s18 + $0x18] sm:$0xe] }
  0x3b   : > { %1369 = vrot.lane.b32.xlu1 %v1332_v22, %s3357_s23  ;;  %v639_v22 = vshrl.u32 %v3581_v50, 16  ;;  %4722 = vst [vmem:[#allocation2_spill] sm:$0xff] %v3624_v29  ;;  %v1842_v42 = vrot.slane %v2945_v30, 1  ;;  %v658_v49 = vshll.u32 %v3632_v36, 16  ;;  %v555_v1 = vshrl.u32 %v3624_v29, 16 }
  0x3c   : > { %1353 = vrot.lane.b32.xlu0 %v1308_v25, %s3357_s23  ;;  %v3619_v25 = vcombine.low %v217_v6, %v3602_v57  ;;  %v2842_v61 = vcombine.low %v245_v34, %v3572_v40  ;;  %v822_v7 = vrot.slane %v3590_v4, 1  ;;  %v798_v9 = vrot.slane %v3596_v56, 1  ;;  %v2684_v56 = vld [vmem:[%s3396_s18 + $0x24] sm:$0xf]  ;;  %v2702_v28 = vld [vmem:[%s3396_s18 + $0x90] sm:$0xf] }
  0x3d   : > { %v1844_v55 = vsel %vm790_vm0, %v1842_v42, %v1843_v43  ;;  %v2843_v4 = vcombine.low %v246_v63, %v3607_v10  ;;  %v3684_v10 = vld [vmem:[%s3396_s18 + $0x94] sm:$0xf] }
  0x3e   : > { %v653_v37 = vshll.u32 %v3619_v25, 16  ;;  %v651_v47 = vshrl.u32 %v3619_v25, 16 }
  0x3f   : > { %1479 = vrot.lane.b32.xlu1 %v2912_v0, %s3358_s24  ;;  %v1554_v0 = vsel %vm517_vm1, %v1549_v51, %v1553_v52  ;;  %v253_v51 = vld [vmem:[%s3396_s18 + $0x78] sm:$0xe]  ;;  %v553_v52 = vsel %vm517_vm1, %v548_v17, %v552_v41  ;;  %v800_v30 = vrot.slane %v2843_v4, 1  ;;  %v3698_v41 = vld [vmem:[%s3396_s18 + $0x8c] ss:$0 sps:$4 sm:$0x11]  }
  0x40   : > { %1463 = vrot.lane.b32.xlu0 %v2904_v15, %s3358_s24  ;;  %v1815_v15 = vrot.slane %v2936_v54, 1  ;;  %v655_v48 = vrot.slane %v653_v37, 1  ;;  %v562_v54 = vshll.u32 %v3637_v13, 16  ;;  %v2850_v60 = vcombine.low %v253_v51, %v3568_v39  ;;  %v2731_v4 = vld [vmem:[%s3396_s18 + $0x30] sm:$0xe] }
  0x42   : > { %v1817_v5 = vsel %vm790_vm0, %v1815_v15, %v1816_v16  ;;  %v656_v58 = vor.u32 %v655_v48, %v651_v47  ;;  %v564_v6 = vrot.slane %v562_v54, 1  ;;  %v821_v40 = vrot.slane %v2850_v60, 1  ;;  %v2700_v15 = vld [vmem:[%s3396_s18 + $0x84] sm:$0xf]  ;;  %v3668_v16 = vld [vmem:[%s3396_s18 + $0x88] sm:$0xf] }
  0x43   : > { %1481 = vrot.lane.b32.xlu1 %v2913_v8, %s3358_s24  ;;  %v2793_v8 = vld [vmem:[%s3396_s18 + $0x24] sm:$0xe]  ;;  %v1159_v47 = vshll.u32 %v3698_v41, 16 }
  0x44   : > { %1465 = vrot.lane.b32.xlu0 %v2905_v24, %s3358_s24  ;;  %v643_v24 = vrot.slane %v641_v62, 1  ;;  %v2937_v32 = vcombine.low %v2793_v8, %v3542_v19  ;;  %v557_v19 = vshll.u32 %v3624_v29, 16  ;;  %v254_v62 = vld [vmem:[%s3396_s18 + $0x84] sm:$0xe]  ;;  %v3674_v8 = vld [vmem:[%s3396_s18 + $0x28] sm:$0xf] }
  0x45   : > { %v2851_v12 = vcombine.low %v254_v62, %v3602_v57  ;;  %v2858_v26 = vcombine.low %v2684_v56, %v3674_v8  ;;  %v1161_v54 = vrot.slane %v1159_v47, 1  ;;  %v3294_v47 = vld [vmem:[%s4714_s1 + $0x10] ss:$0 sps:$4 sm:$0x33]   ;;  %v207_v29 = vld [vmem:[%s3396_s18 + $0x48] sm:$0xf] }
  0x46   : > { %v644_v35 = vor.u32 %v643_v24, %v639_v22  ;;  %v1818_v44 = vrot.slane %v2937_v32, 1  ;;  %v559_v11 = vrot.slane %v557_v19, 1  ;;  %v2866_v22 = vcombine.low %v2700_v15, %v3668_v16  ;;  %v3702_v19 = vld [vmem:[%s3396_s18 + $0x2c] ss:$0 sps:$4 sm:$0x11]   ;;  %3179 = vmatprep.subr.msk.bf16.mxu0 %vm2276_vm2, %v3294_v47  ;;  %3180 = vmatprep.subr.msk.bf16.mxu1 %vm2276_vm2, %v3294_v47 }
  0x47   : > { %1751 = vrot.lane.b32.xlu1 %v1650_v59, %s3359_s25  ;;  %v660_v59 = vrot.slane %v658_v49, 1  ;;  %v824_v57 = vrot.slane %v2851_v12, 1  ;;  %v823_v24 = vsel %vm790_vm0, %v821_v40, %v822_v7  ;;  %v801_v32 = vrot.slane %v3637_v13, 1  ;;  %v3708_v49 = vld [vmem:[%s3396_s18 + $0x98] ss:$0 sps:$4 sm:$0x11]  }
  0x48   : > { %1735 = vrot.lane.b32.xlu0 %v1554_v0, %s3359_s25  ;;  %v649_v46 = vsel %vm517_vm1, %v644_v35, %v648_v2  ;;  %v1820_v0 = vsel %vm790_vm0, %v1818_v44, %v1819_v45  ;;  %v560_v3 = vor.u32 %v559_v11, %v555_v1  ;;  %v2686_v2 = vld [vmem:[%s3396_s18 + $0x30] sm:$0xf]  ;;  %v1154_v35 = vshll.u32 %v2866_v22, 16 }
  0x49   : > { %v661_v39 = vsel %vm517_vm1, %v656_v58, %v660_v59  ;;  %v802_v13 = vsel %vm790_vm0, %v800_v30, %v801_v32  ;;  %v1152_v43 = vshrl.u32 %v2866_v22, 16  ;;  %v1056_v45 = vshrl.u32 %v2858_v26, 16  ;;  %v2738_v59 = vld [vmem:[%s3396_s18 + $0x84] sm:$0xe]  ;;  %v2748_v30 = vld [vmem:[%s3396_s18 + $0x30] sm:$0xf] }
  0x4a   : > { %v565_v20 = vsel %vm517_vm1, %v560_v3, %v564_v6  ;;  %v1156_v44 = vrot.slane %v1154_v35, 1  ;;  %v1063_v51 = vshll.u32 %v3702_v19, 16  ;;  %v1171_v58 = vshll.u32 %v3708_v49, 16  ;;  %v2730_v3 = vld [vmem:[%s3396_s18 + $0x24] sm:$0xe] }
  0x4b   : > { %1753 = vrot.lane.b32.xlu1 %v1662_v14, %s3359_s25  ;;  %v797_v14 = vrot.slane %v2842_v61, 1  ;;  %v2739_v6 = vld [vmem:[%s3396_s18 + $0x90] sm:$0xe]  ;;  %v2898_v63 = vcombine.low %v2738_v59, %v3668_v16  ;;  %v3743_v32 = vld [vmem:[%s3396_s18 + $0x34] sm:$0xf] }
  0x4c   : > { %1737 = vrot.lane.b32.xlu0 %v1566_v21, %s3359_s25  ;;  %v825_v21 = vrot.slane %v3632_v36, 1  ;;  %v2867_v36 = vcombine.low %v2702_v28, %v3684_v10  ;;  %v1157_v1 = vor.u32 %v1156_v44, %v1152_v43  ;;  %v1065_v60 = vrot.slane %v1063_v51, 1  ;;  %v2766_v35 = vld [vmem:[%s3396_s18 + $0x9c] sm:$0xf] }
  0x4d   : > { %v799_v27 = vsel %vm790_vm0, %v797_v14, %v798_v9  ;;  %v1173_v12 = vrot.slane %v1171_v58, 1  ;;  %v1333_v56 = vrot.slane %v2898_v63, 1  ;;  %v1310_v28 = vrot.slane %v3702_v19, 1  ;;  %v3773_v51 = vld [vmem:[%s3396_s18 + $0x38] ss:$0 sps:$4 sm:$0x11]  }
  0x4e   : > { %v826_v37 = vsel %vm790_vm0, %v824_v57, %v825_v21  ;;  %v1166_v42 = vshll.u32 %v2867_v36, 16  ;;  %v1164_v11 = vshrl.u32 %v2867_v36, 16  ;;  %v1162_v7 = vsel %vm517_vm1, %v1157_v1, %v1161_v54  ;;  %v2764_v57 = vld [vmem:[%s3396_s18 + $0x90] sm:$0xf]  ;;  %v3735_v21 = vld [vmem:[%s3396_s18 + $0x94] sm:$0xf] }
  0x4f   : > { %1879 = vrot.lane.b32.xlu1 %v1841_v33, %s3360_s26  ;;  %v3690_v33 = vld [vmem:[%s3396_s18 + $0x34] sm:$0xf]  ;;  %v2906_v19 = vcombine.low %v2748_v30, %v3743_v32  ;;  %v3776_v1 = vld [vmem:[%s3396_s18 + $0xa4] ss:$0 sps:$4 sm:$0x11]  }
  0x50   : > { %1863 = vrot.lane.b32.xlu0 %v1817_v5, %s3360_s26  ;;  %v1058_v5 = vshll.u32 %v2858_v26, 16  ;;  %v2859_v17 = vcombine.low %v2686_v2, %v3690_v33  ;;  %v2914_v2 = vcombine.low %v2764_v57, %v3735_v21  ;;  %v219_v63 = vld [vmem:[%s3396_s18 + $0x90] sm:$0xf] }
  0x52   : > { %v1060_v48 = vrot.slane %v1058_v5, 1  ;;  %v1068_v61 = vshrl.u32 %v2859_v17, 16  ;;  %v3755_v5 = vld [vmem:[%s3396_s18 + $0x40] sm:$0xf]  ;;  %v1666_v43 = vshll.u32 %v2914_v2, 16 }
  0x53   : > { %730 = vrot.lane.b32.xlu1 %v649_v46, %s3355_s21  ;;  %v1070_v46 = vshll.u32 %v2859_v17, 16 }
  0x54   : > { %714 = vrot.lane.b32.xlu0 %v553_v52, %s3355_s21  ;;  %v3712_v52 = vld [vmem:[%s3396_s18 + $0x38] ss:$0 sps:$4 sm:$0x11]   ;;  %v1061_v34 = vor.u32 %v1060_v48, %v1056_v45  ;;  %v1668_v58 = vrot.slane %v1666_v43, 1 }
  0x55   : > { %v1072_v62 = vrot.slane %v1070_v46, 1  ;;  %v3766_v46 = vld [vmem:[%s3396_s18 + $0x98] ss:$0 sps:$4 sm:$0x11]  }
  0x56   : > { %v1066_v40 = vsel %vm517_vm1, %v1061_v34, %v1065_v60  ;;  %v1664_v34 = vshrl.u32 %v2914_v2, 16  ;;  %v1671_v59 = vshll.u32 %v3766_v46, 16  ;;  %v1568_v60 = vshrl.u32 %v2906_v19, 16 }
  0x57   : > { %1881 = vrot.lane.b32.xlu1 %v1844_v55, %s3360_s26  ;;  %v1168_v55 = vrot.slane %v1166_v42, 1  ;;  %v1073_v14 = vor.u32 %v1072_v62, %v1068_v61  ;;  %v2278_v61 = vsel %vm2276_vm2, %v3294_v47, 0  ;;  %v3304_v62 = vld [vmem:[%s4714_s1] sm:$0xff]  }
  0x58   : > { %1865 = vrot.lane.b32.xlu0 %v1820_v0, %s3360_s26  ;;  %v1075_v0 = vshll.u32 %v3712_v52, 16  ;;  %3136 = vmatpush3.bf16.msra.mxu0 %v2278_v61  ;;  %v3834_v47 = vld [vmem:[%s3396_s18 + $0x40] sm:$0xf] }
  0x59   : > { %v1169_v9 = vor.u32 %v1168_v55, %v1164_v11  ;;  %v3299_v11 = vld [vmem:[%s4714_s1 + $0x8] sm:$0xff]   ;;  %v3783_v55 = vld [vmem:[%s3396_s18 + $0x44] ss:$0 sps:$4 sm:$0x11]   ;;  %3176 = vmatpush3.bf16.msra.mxu1 %v2278_v61 }
  0x5a   : > { %v1077_v15 = vrot.slane %v1075_v0, 1  ;;  %v2802_v0 = vld [vmem:[%s3396_s18 + $0x90] sm:$0xe]  ;;  %3137 = vmatprep.subr.bf16.mxu0 %v3299_v11  ;;  %3174 = vmatprep.subr.bf16.mxu1 %v3299_v11 }
  0x5b   : > { %732 = vrot.lane.b32.xlu1 %v661_v39, %s3355_s21  ;;  %v2890_v39 = vcombine.low %v2730_v3, %v3674_v8  ;;  %v1174_v16 = vsel %vm517_vm1, %v1169_v9, %v1173_v12  ;;  %v1334_v8 = vrot.slane %v3698_v41, 1  ;;  %v1683_v12 = vshll.u32 %v3776_v1, 16 }
  0x5c   : > { %716 = vrot.lane.b32.xlu0 %v565_v20, %s3355_s21  ;;  %v2899_v20 = vcombine.low %v2739_v6, %v3684_v10  ;;  %v1575_v6 = vshll.u32 %v3773_v51, 16  ;;  %3138 = vmatpush3.bf16.msra.mxu0 %v3299_v11 }
  0x5d   : > { %3177 = vmatpush3.bf16.msra.mxu1 %v3299_v11  ;;  %3139 = vmatprep.subr.bf16.mxu0 %v3304_v62 }
  0x5e   : > { %v1336_v10 = vrot.slane %v2899_v20, 1  ;;  %3175 = vmatprep.subr.bf16.mxu1 %v3304_v62 }
  0x5f   : > { %859 = vrot.lane.b32.xlu1 %v823_v24, %s3354_s20  ;;  %v1078_v24 = vsel %vm517_vm1, %v1073_v14, %v1077_v15 }
  0x60   : > { %843 = vrot.lane.b32.xlu0 %v799_v27, %s3354_s20  ;;  %v1337_v27 = vrot.slane %v3708_v49, 1  ;;  %v1570_v49 = vshll.u32 %v2906_v19, 16  ;;  %3140 = vmatpush3.bf16.msra.mxu0 %v3304_v62 }
  0x61   : > { %3178 = vmatpush3.bf16.msra.mxu1 %v3304_v62 }
  0x62   : > { %v1338_v45 = vsel %vm790_vm0, %v1336_v10, %v1337_v27  ;;  %v1572_v3 = vrot.slane %v1570_v49, 1  ;;  %v1685_v10 = vrot.slane %v1683_v12, 1  ;;  %v3861_v12 = vld [vmem:[%s3396_s18 + $0xa4] ss:$0 sps:$4 sm:$0x11]  }
  0x63   : > { %861 = vrot.lane.b32.xlu1 %v826_v37, %s3354_s20  ;;  %v2750_v37 = vld [vmem:[%s3396_s18 + $0x3c] sm:$0xf] }
  0x64   : > { %845 = vrot.lane.b32.xlu0 %v802_v13, %s3354_s20  ;;  %v1313_v13 = vrot.slane %v3712_v52, 1  ;;  %v2907_v44 = vcombine.low %v2750_v37, %v3755_v5 }
  0x66   : > { %v1582_v54 = vshll.u32 %v2907_v44, 16  ;;  %v1580_v15 = vshrl.u32 %v2907_v44, 16 }
  0x67   : > { %971 = vrot.lane.b32.xlu1 %v2866_v22, %s3353_s19  ;;  %v2891_v22 = vcombine.low %v2731_v4, %v3690_v33  ;;  %v1335_v33 = vsel %vm790_vm0, %v1333_v56, %v1334_v8  ;;  %v1587_v4 = vshll.u32 %v3783_v55, 16  ;;  %v1669_v56 = vor.u32 %v1668_v58, %v1664_v34  ;;  %v2795_v58 = vld [vmem:[%s3396_s18 + $0x3c] sm:$0xe] }
  0x68   : > { %955 = vrot.lane.b32.xlu0 %v2858_v26, %s3353_s19  ;;  %v1309_v26 = vrot.slane %v2890_v39, 1  ;;  %v203_v39 = vld [vmem:[%s3396_s18 + $0x30] sm:$0xf]  ;;  %v1584_v20 = vrot.slane %v1582_v54, 1  ;;  %v1673_v8 = vrot.slane %v1671_v59, 1  ;;  %v1822_v34 = vrot.slane %v3773_v51, 1 }
  0x69   : > { %v1312_v41 = vrot.slane %v2891_v22, 1  ;;  %v1573_v22 = vor.u32 %v1572_v3, %v1568_v60 }
  0x6b   : > { %973 = vrot.lane.b32.xlu1 %v2867_v36, %s3353_s19  ;;  %v3749_v36 = vld [vmem:[%s3396_s18 + $0xa0] sm:$0xf]  ;;  %v1314_v48 = vsel %vm790_vm0, %v1312_v41, %v1313_v13 }
  0x6c   : > { %957 = vrot.lane.b32.xlu0 %v2859_v17, %s3353_s19  ;;  %v1311_v17 = vsel %vm790_vm0, %v1309_v26, %v1310_v28  ;;  %v2915_v42 = vcombine.low %v2766_v35, %v3749_v36  ;;  %v2946_v28 = vcombine.low %v2802_v0, %v3735_v21  ;;  %v1589_v35 = vrot.slane %v1587_v4, 1 }
  0x6d   : > { %v1674_v21 = vsel %vm517_vm1, %v1669_v56, %v1673_v8  ;;  %v3870_v56 = vld [vmem:[%s3396_s18 + $0x44] ss:$0 sps:$4 sm:$0x11]  }
  0x6e   : > { %v1678_v52 = vshll.u32 %v2915_v42, 16  ;;  %v1676_v9 = vshrl.u32 %v2915_v42, 16  ;;  %v1845_v43 = vrot.slane %v2946_v28, 1  ;;  %v1849_v28 = vrot.slane %v3776_v1, 1 }
  0x6f   : > { %1243 = vrot.lane.b32.xlu1 %v1162_v7, %s3356_s22  ;;  %v3794_v7 = vld [vmem:[%s3396_s18 + $0x94] sm:$0xf] }
  0x70   : > { %1227 = vrot.lane.b32.xlu0 %v1066_v40, %s3356_s22  ;;  %v3799_v40 = vld [vmem:[%s3396_s18 + $0x34] sm:$0xf]  ;;  %v1680_v14 = vrot.slane %v1678_v52, 1  ;;  %v3806_v57 = vcombine.low %v219_v63, %v3794_v7 }
  0x71   : > { %v3809_v26 = vcombine.low %v203_v39, %v3799_v40 }
  0x72   : > { %4723 = vst [vmem:[#allocation3_spill] sm:$0xff] %v3806_v57  ;;  %v1681_v30 = vor.u32 %v1680_v14, %v1676_v9  ;;  %v665_v37 = vshll.u32 %v3806_v57, 16  ;;  %v2939_v9 = vcombine.low %v2795_v58, %v3755_v5 }
  0x73   : > { %1245 = vrot.lane.b32.xlu1 %v1174_v16, %s3356_s22  ;;  %v2794_v16 = vld [vmem:[%s3396_s18 + $0x30] sm:$0xe]  ;;  %4724 = vst [vmem:[#allocation4_spill] sm:$0xff] %v3809_v26  ;;  %v569_v13 = vshll.u32 %v3809_v26, 16  ;;  %v567_v62 = vshrl.u32 %v3809_v26, 16 }
  0x74   : > { %1229 = vrot.lane.b32.xlu0 %v1078_v24, %s3356_s22  ;;  %v1577_v24 = vrot.slane %v1575_v6, 1  ;;  %v2938_v27 = vcombine.low %v2794_v16, %v3743_v32  ;;  %v1686_v52 = vsel %vm517_vm1, %v1681_v30, %v1685_v10  ;;  %v667_v59 = vrot.slane %v665_v37, 1  ;;  %v255_v37 = vld [vmem:[%s3396_s18 + $0x90] sm:$0xe] }
  0x75   : > { %v571_v0 = vrot.slane %v569_v13, 1  ;;  %v1824_v10 = vrot.slane %v2939_v9, 1  ;;  %v682_v30 = vshll.u32 %v3861_v12, 16 }
  0x76   : > { %v1578_v32 = vsel %vm517_vm1, %v1573_v22, %v1577_v24  ;;  %v1821_v54 = vrot.slane %v2938_v27, 1  ;;  %v1825_v27 = vrot.slane %v3783_v55, 1 }
  0x77   : > { %1371 = vrot.lane.b32.xlu1 %v1335_v33, %s3357_s23  ;;  %v3815_v33 = vld [vmem:[%s3396_s18 + $0x98] ss:$0 sps:$4 sm:$0x11]   ;;  %v572_v16 = vor.u32 %v571_v0, %v567_v62  ;;  %v248_v62 = vld [vmem:[%s3396_s18 + $0x3c] sm:$0xe] }
  0x78   : > { %1355 = vrot.lane.b32.xlu0 %v1311_v17, %s3357_s23  ;;  %v3821_v17 = vld [vmem:[%s3396_s18 + $0x38] ss:$0 sps:$4 sm:$0x11]   ;;  %v670_v60 = vshll.u32 %v3815_v33, 16 }
  0x79   : > { %v574_v3 = vshll.u32 %v3821_v17, 16 }
  0x7b   : > { %1373 = vrot.lane.b32.xlu1 %v1338_v45, %s3357_s23  ;;  %v205_v45 = vld [vmem:[%s3396_s18 + $0x3c] sm:$0xf]  ;;  %v576_v5 = vrot.slane %v574_v3, 1 }
  0x7c   : > { %1357 = vrot.lane.b32.xlu0 %v1314_v48, %s3357_s23  ;;  %v2803_v48 = vld [vmem:[%s3396_s18 + $0x9c] sm:$0xe]  ;;  %v3853_v6 = vcombine.low %v205_v45, %v3834_v47 }
  0x7d   : > { %v2947_v51 = vcombine.low %v2803_v48, %v3749_v36  ;;  %v1823_v36 = vsel %vm790_vm0, %v1821_v54, %v1822_v34  ;;  %v577_v13 = vsel %vm517_vm1, %v572_v16, %v576_v5  ;;  %v1826_v34 = vsel %vm790_vm0, %v1824_v10, %v1825_v27  ;;  %v2690_v27 = vld [vmem:[%s3396_s18 + $0x48] sm:$0xf] }
  0x7e   : > { %4726 = vst [vmem:[#allocation6_spill] sm:$0xff] %v3853_v6  ;;  %v581_v8 = vshll.u32 %v3853_v6, 16  ;;  %v831_v10 = vrot.slane %v3861_v12, 1 }
  0x7f   : > { %1483 = vrot.lane.b32.xlu1 %v2914_v2, %s3358_s24  ;;  %v1585_v2 = vor.u32 %v1584_v20, %v1580_v15  ;;  %v672_v15 = vrot.slane %v670_v60, 1  ;;  %v1848_v22 = vrot.slane %v2947_v51, 1  ;;  %v2704_v51 = vld [vmem:[%s3396_s18 + $0x9c] sm:$0xf] }
  0x80   : > { %1467 = vrot.lane.b32.xlu0 %v2906_v19, %s3358_s24  ;;  %v221_v19 = vld [vmem:[%s3396_s18 + $0x9c] sm:$0xf]  ;;  %v583_v1 = vrot.slane %v581_v8, 1  ;;  %v3925_v8 = vld [vmem:[%s3396_s18 + $0xac] sm:$0xf] }
  0x81   : > { %v1590_v11 = vsel %vm517_vm1, %v1585_v2, %v1589_v35  ;;  %v1850_v48 = vsel %vm790_vm0, %v1848_v22, %v1849_v28 }
  0x83   : > { %1485 = vrot.lane.b32.xlu1 %v2915_v42, %s3358_s24  ;;  %v3829_v42 = vld [vmem:[%s3396_s18 + $0xa0] sm:$0xf] }
  0x84   : > { %1469 = vrot.lane.b32.xlu0 %v2907_v44, %s3358_s24  ;;  %v1846_v44 = vrot.slane %v3766_v46, 1  ;;  %v663_v46 = vshrl.u32 %v3806_v57, 16  ;;  %v3848_v61 = vcombine.low %v221_v19, %v3829_v42  ;;  %v579_v19 = vshrl.u32 %v3853_v6, 16 }
  0x86   : > { %4725 = vst [vmem:[#allocation5_spill] sm:$0xff] %v3848_v61  ;;  %v1847_v39 = vsel %vm790_vm0, %v1845_v43, %v1846_v44  ;;  %v668_v14 = vor.u32 %v667_v59, %v663_v46  ;;  %v677_v20 = vshll.u32 %v3848_v61, 16  ;;  %v675_v35 = vshrl.u32 %v3848_v61, 16  ;;  %v256_v59 = vld [vmem:[%s3396_s18 + $0x9c] sm:$0xe] }
  0x87   : > { %v3824_v41 = vpop.permute.xlu1 %967  ;;  %1755 = vrot.lane.b32.xlu1 %v1674_v21, %s3359_s25  ;;  %v586_v43 = vshll.u32 %v3870_v56, 16  ;;  %v2852_v44 = vcombine.low %v255_v37, %v3794_v7  ;;  %v584_v58 = vor.u32 %v583_v1, %v579_v19  ;;  %v828_v7 = vrot.slane %v3815_v33, 1  ;;  %v2688_v33 = vld [vmem:[%s3396_s18 + $0x3c] sm:$0xf] }
  0x88   : > { %v3838_v49 = vpop.permute.xlu0 %951  ;;  %1739 = vrot.lane.b32.xlu0 %v1578_v32, %s3359_s25  ;;  %v673_v2 = vsel %vm517_vm1, %v668_v14, %v672_v15  ;;  %v679_v21 = vrot.slane %v677_v20, 1  ;;  %v247_v32 = vld [vmem:[%s3396_s18 + $0x30] sm:$0xe]  ;;  %v3909_v14 = vld [vmem:[%s3396_s18 + $0xa0] sm:$0xf]  ;;  %v2845_v20 = vcombine.low %v248_v62, %v3834_v47  ;;  %v807_v37 = vrot.slane %v3870_v56, 1 }
  0x89   : > { %v2844_v45 = vcombine.low %v247_v32, %v3799_v40  ;;  %v588_v46 = vrot.slane %v586_v43, 1  ;;  %v804_v40 = vrot.slane %v3821_v17, 1  ;;  %v827_v0 = vrot.slane %v2852_v44, 1  ;;  %v3945_v1 = vld [vmem:[%s3396_s18 + $0xa4] ss:$0 sps:$4 sm:$0x11]  }
  0x8a   : > { %v2868_v5 = vcombine.low %v2704_v51, %v3909_v14  ;;  %v3961_v62 = vld [vmem:[%s3396_s18 + $0xb0] ss:$0 sps:$4 sm:$0x11]  }
  0x8b   : > { %v3856_v63 = vpop.permute.xlu1 %855  ;;  %1757 = vrot.lane.b32.xlu1 %v1686_v52, %s3359_s25  ;;  %v680_v52 = vor.u32 %v679_v21, %v675_v35  ;;  %v803_v3 = vrot.slane %v2844_v45, 1  ;;  %v589_v15 = vsel %vm517_vm1, %v584_v58, %v588_v46  ;;  %v829_v22 = vsel %vm790_vm0, %v827_v0, %v828_v7  ;;  %v3967_v51 = vld [vmem:[%s3396_s18 + $0x50] ss:$0 sps:$4 sm:$0x11]  }
  0x8c   : > { %1741 = vrot.lane.b32.xlu0 %v1590_v11, %s3359_s25  ;;  %v684_v11 = vrot.slane %v682_v30, 1  ;;  %v3933_v30 = vld [vmem:[%s3396_s18 + $0x4c] sm:$0xf]  ;;  %v806_v21 = vrot.slane %v2845_v20, 1  ;;  %v1178_v12 = vshll.u32 %v2868_v5, 16 }
  0x8d   : > { %v3866_v4 = vpop.permute.xlu0 %839  ;;  %v805_v35 = vsel %vm790_vm0, %v803_v3, %v804_v40  ;;  %v2861_v19 = vcombine.low %v2690_v27, %v3933_v30 }
  0x8e   : > { %v685_v9 = vsel %vm517_vm1, %v680_v52, %v684_v11  ;;  %v808_v56 = vsel %vm790_vm0, %v806_v21, %v807_v37  ;;  %v1180_v46 = vrot.slane %v1178_v12, 1  ;;  %v1099_v37 = vshll.u32 %v3967_v51, 16 }
  0x8f   : > { %1883 = vrot.lane.b32.xlu1 %v1847_v39, %s3360_s26  ;;  %v2853_v39 = vcombine.low %v256_v59, %v3829_v42  ;;  %v2706_v42 = vld [vmem:[%s3396_s18 + $0xa8] sm:$0xf]  ;;  %v1094_v58 = vshll.u32 %v2861_v19, 16  ;;  %v1183_v59 = vshll.u32 %v3945_v1, 16  ;;  %v1092_v21 = vshrl.u32 %v2861_v19, 16 }
  0x90   : > { %v3874_v24 = vpop.permute.xlu1 %857  ;;  %1867 = vrot.lane.b32.xlu0 %v1823_v36, %s3360_s26  ;;  %v3917_v36 = vld [vmem:[%s3396_s18 + $0x40] sm:$0xf] }
  0x91   : > { %v830_v28 = vrot.slane %v2853_v39, 1  ;;  %v2860_v47 = vcombine.low %v2688_v33, %v3917_v36  ;;  %v1185_v20 = vrot.slane %v1183_v59, 1  ;;  %v2733_v59 = vld [vmem:[%s3396_s18 + $0x48] sm:$0xe] }
  0x92   : > { %v3887_v55 = vpop.permute.xlu0 %841 }
  0x93   : > { %734 = vrot.lane.b32.xlu1 %v673_v2, %s3355_s21  ;;  %v832_v43 = vsel %vm790_vm0, %v830_v28, %v831_v10  ;;  %v1082_v44 = vshll.u32 %v2860_v47, 16  ;;  %v1080_v7 = vshrl.u32 %v2860_v47, 16  ;;  %v1195_v28 = vshll.u32 %v3961_v62, 16  ;;  %v2732_v10 = vld [vmem:[%s3396_s18 + $0x3c] sm:$0xe] }
  0x94   : > { %718 = vrot.lane.b32.xlu0 %v577_v13, %s3355_s21  ;;  %v2869_v13 = vcombine.low %v2706_v42, %v3925_v8 }
  0x95   : > { %v3894_v54 = vpop.permute.xlu1 %712  ;;  %v1084_v40 = vrot.slane %v1082_v44, 1  ;;  %v3985_v44 = vld [vmem:[%s3396_s18 + $0xac] sm:$0xf] }
  0x96   : > { %v3898_v60 = vpop.permute.xlu0 %710  ;;  %v1190_v11 = vshll.u32 %v2869_v13, 16  ;;  %v1188_v33 = vshrl.u32 %v2869_v13, 16 }
  0x97   : > { %1885 = vrot.lane.b32.xlu1 %v1850_v48, %s3360_s26  ;;  %v3953_v48 = vld [vmem:[%s3396_s18 + $0x44] ss:$0 sps:$4 sm:$0x11]   ;;  %v1085_v42 = vor.u32 %v1084_v40, %v1080_v7  ;;  %v1101_v40 = vrot.slane %v1099_v37, 1 }
  0x98   : > { %1869 = vrot.lane.b32.xlu0 %v1826_v34, %s3360_s26  ;;  %v1176_v34 = vshrl.u32 %v2868_v5, 16  ;;  %v1087_v3 = vshll.u32 %v3953_v48, 16  ;;  %v1316_v37 = vrot.slane %v3953_v48, 1 }
  0x99   : > { %v3912_v17 = vpop.permute.xlu1 %728 }
  0x9a   : > { %v3919_v16 = vpop.permute.xlu0 %726  ;;  %v1181_v39 = vor.u32 %v1180_v46, %v1176_v34  ;;  %v1197_v46 = vrot.slane %v1195_v28, 1 }
  0x9b   : > { %736 = vrot.lane.b32.xlu1 %v685_v9, %s3355_s21 }
  0x9c   : > { %720 = vrot.lane.b32.xlu0 %v589_v15, %s3355_s21  ;;  %v2740_v15 = vld [vmem:[%s3396_s18 + $0x9c] sm:$0xe]  ;;  %v1186_v34 = vsel %vm517_vm1, %v1181_v39, %v1185_v20  ;;  %v4006_v39 = vld [vmem:[%s3396_s18 + $0xb8] sm:$0xf] }
  0x9d   : > { %v3935_v2 = vpop.permute.xlu1 %969 }
  0x9e   : > { %v3939_v32 = vpop.permute.xlu0 %953 }
  0x9f   : > { %863 = vrot.lane.b32.xlu1 %v829_v22, %s3354_s20  ;;  %v1192_v22 = vrot.slane %v1190_v11, 1  ;;  %v2741_v11 = vld [vmem:[%s3396_s18 + $0xa8] sm:$0xe] }
  0xa0   : > { %847 = vrot.lane.b32.xlu0 %v805_v35, %s3354_s20  ;;  %v1089_v35 = vrot.slane %v1087_v3, 1  ;;  %v2752_v3 = vld [vmem:[%s3396_s18 + $0x48] sm:$0xf] }
  0xa1   : > { %v3949_v45 = vpop.permute.xlu1 %1239 }
  0xa2   : > { %v3955_v52 = vpop.permute.xlu0 %1223 }
  0xa3   : > { %865 = vrot.lane.b32.xlu1 %v832_v43, %s3354_s20  ;;  %v2768_v43 = vld [vmem:[%s3396_s18 + $0xa8] sm:$0xf] }
  0xa4   : > { %849 = vrot.lane.b32.xlu0 %v808_v56, %s3354_s20  ;;  %v2892_v56 = vcombine.low %v2732_v10, %v3917_v36  ;;  %v3999_v36 = vcombine.low %v2768_v43, %v3985_v44  ;;  %v4002_v10 = vld [vmem:[%s3396_s18 + $0x4c] sm:$0xf] }
  0xa5   : > { %v3963_v0 = vpop.permute.xlu1 %1241 }
  0xa6   : > { %v3969_v9 = vpop.permute.xlu0 %1225 }
  0xa7   : > { %975 = vrot.lane.b32.xlu1 %v2868_v5, %s3353_s19  ;;  %v1096_v5 = vrot.slane %v1094_v58, 1  ;;  %v1193_v58 = vor.u32 %v1192_v22, %v1188_v33  ;;  %v2901_v33 = vcombine.low %v2741_v11, %v3925_v8  ;;  %v2893_v22 = vcombine.low %v2733_v59, %v3933_v30  ;;  %v4026_v30 = vld [vmem:[%s3396_s18 + $0x58] sm:$0xf]  ;;  %v4032_v11 = vld [vmem:[%s3396_s18 + $0xb0] ss:$0 sps:$4 sm:$0x11]  }
  0xa8   : > { %959 = vrot.lane.b32.xlu0 %v2860_v47, %s3353_s19  ;;  %v2900_v47 = vcombine.low %v2740_v15, %v3909_v14  ;;  %v1090_v14 = vsel %vm517_vm1, %v1085_v42, %v1089_v35  ;;  %v1340_v42 = vrot.slane %v3945_v1, 1  ;;  %v1315_v35 = vrot.slane %v2892_v56, 1  ;;  %v2754_v1 = vld [vmem:[%s3396_s18 + $0x54] sm:$0xf] }
  0xa9   : > { %v3976_v27 = vpop.permute.xlu1 %1367  ;;  %v1198_v28 = vsel %vm517_vm1, %v1193_v58, %v1197_v46  ;;  %v4019_v8 = vcombine.low %v2752_v3, %v4002_v10  ;;  %v1690_v56 = vshll.u32 %v3999_v36, 16  ;;  %v1343_v58 = vrot.slane %v3961_v62, 1 }
  0xaa   : > { %v3979_v12 = vpop.permute.xlu0 %1351  ;;  %v1339_v20 = vrot.slane %v2900_v47, 1  ;;  %v1318_v46 = vrot.slane %v2893_v22, 1  ;;  %v1319_v59 = vrot.slane %v3967_v51, 1  ;;  %v1317_v3 = vsel %vm790_vm0, %v1315_v35, %v1316_v37  ;;  %v4058_v35 = vld [vmem:[%s3396_s18 + $0x50] ss:$0 sps:$4 sm:$0x11]  }
  0xab   : > { %977 = vrot.lane.b32.xlu1 %v2869_v13, %s3353_s19  ;;  %v1097_v13 = vor.u32 %v1096_v5, %v1092_v21  ;;  %v1688_v51 = vshrl.u32 %v3999_v36, 16  ;;  %v1913_v22 = vsel %vm1895_vm3, %v3428_v18, %v3919_v16  ;;  %v4068_v16 = vld [vmem:[%s3396_s18 + $0xbc] ss:$0 sps:$4 sm:$0x11]  }
  0xac   : > { %961 = vrot.lane.b32.xlu0 %v2861_v19, %s3353_s19  ;;  %v2770_v19 = vld [vmem:[%s3396_s18 + $0xb4] sm:$0xf]  ;;  %v1341_v48 = vsel %vm790_vm0, %v1339_v20, %v1340_v42  ;;  %v1692_v20 = vrot.slane %v1690_v56, 1  ;;  %v1695_v42 = vshll.u32 %v4032_v11, 16 }
  0xad   : > { %v3992_v7 = vpop.permute.xlu1 %1369  ;;  %v1102_v5 = vsel %vm517_vm1, %v1097_v13, %v1101_v40  ;;  %v4022_v47 = vcombine.low %v2770_v19, %v4006_v39  ;;  %v4041_v13 = vcombine.low %v2754_v1, %v4026_v30  ;;  %v1594_v19 = vshll.u32 %v4019_v8, 16 }
  0xae   : > { %v3996_v15 = vpop.permute.xlu0 %1353  ;;  %v1320_v1 = vsel %vm790_vm0, %v1318_v46, %v1319_v59  ;;  %v4076_v46 = vld [vmem:[%s3396_s18 + $0x5c] ss:$0 sps:$4 sm:$0x11]  }
  0xaf   : > { %1247 = vrot.lane.b32.xlu1 %v1186_v34, %s3356_s22  ;;  %v1342_v34 = vrot.slane %v2901_v33, 1  ;;  %v1702_v33 = vshll.u32 %v4022_v47, 16  ;;  %v1606_v18 = vshll.u32 %v4041_v13, 16  ;;  %v1700_v6 = vshrl.u32 %v4022_v47, 16 }
  0xb0   : > { %1231 = vrot.lane.b32.xlu0 %v1090_v14, %s3356_s22  ;;  %v2804_v14 = vld [vmem:[%s3396_s18 + $0xa8] sm:$0xe]  ;;  %v1611_v57 = vshll.u32 %v4076_v46, 16 }
  0xb1   : > { %v4014_v21 = vpop.permute.xlu1 %1479  ;;  %v1344_v37 = vsel %vm790_vm0, %v1342_v34, %v1343_v58  ;;  %v1704_v61 = vrot.slane %v1702_v33, 1  ;;  %v1693_v34 = vor.u32 %v1692_v20, %v1688_v51  ;;  %v1697_v58 = vrot.slane %v1695_v42, 1  ;;  %v223_v20 = vld [vmem:[%s3396_s18 + $0xa8] sm:$0xf]  ;;  %v4088_v42 = vld [vmem:[%s3396_s18 + $0xac] sm:$0xf] }
  0xb2   : > { %v4028_v43 = vpop.permute.xlu0 %1463  ;;  %v1707_v33 = vshll.u32 %v4068_v16, 16  ;;  %v1608_v51 = vrot.slane %v1606_v18, 1 }
  0xb3   : > { %1249 = vrot.lane.b32.xlu1 %v1198_v28, %s3356_s22  ;;  %v2948_v28 = vcombine.low %v2804_v14, %v3985_v44  ;;  %v1592_v44 = vshrl.u32 %v4019_v8, 16  ;;  %v1596_v14 = vrot.slane %v1594_v19, 1  ;;  %v1604_v19 = vshrl.u32 %v4041_v13, 16 }
  0xb4   : > { %1233 = vrot.lane.b32.xlu0 %v1102_v5, %s3356_s22  ;;  %v1897_v5 = vsel %vm1895_vm3, %v3433_v23, %v3898_v60  ;;  %v1946_v23 = vsel %vm1928_vm4, %v1913_v22, %v3856_v63  ;;  %v1698_v18 = vsel %vm517_vm1, %v1693_v34, %v1697_v58 }
  0xb5   : > { %v4043_v40 = vpop.permute.xlu1 %1481  ;;  %v1930_v59 = vsel %vm1928_vm4, %v1897_v5, %v3866_v4  ;;  %v1979_v4 = vsel %vm1961_vm5, %v1946_v23, %v3824_v41  ;;  %v1597_v5 = vor.u32 %v1596_v14, %v1592_v44  ;;  %v4094_v26 = vrot.slane %v2948_v28, 1  ;;  %v4106_v41 = vld [vmem:[%s3396_s18 + $0x4c] sm:$0xf] }
  0xb6   : > { %v4048_v62 = vpop.permute.xlu0 %1465  ;;  %v1609_v14 = vor.u32 %v1608_v51, %v1604_v19  ;;  %v4167_v51 = vld [vmem:[%s3396_s18 + $0xb8] sm:$0xf] }
  0xb7   : > { %1375 = vrot.lane.b32.xlu1 %v1341_v48, %s3357_s23  ;;  %v2796_v48 = vld [vmem:[%s3396_s18 + $0x48] sm:$0xe] }
  0xb8   : > { %1359 = vrot.lane.b32.xlu0 %v1317_v3, %s3357_s23  ;;  %v1599_v3 = vshll.u32 %v4058_v35, 16  ;;  %v2940_v63 = vcombine.low %v2796_v48, %v4002_v10  ;;  %v1963_v10 = vsel %vm1961_vm5, %v1930_v59, %v3838_v49  ;;  %v4115_v49 = vcombine.low %v223_v20, %v4088_v42 }
  0xb9   : > { %v1752_v56 = vpop.permute.xlu1 %1751 }
  0xba   : > { %v1736_v60 = vpop.permute.xlu0 %1735 }
  0xbb   : > { %1377 = vrot.lane.b32.xlu1 %v1344_v37, %s3357_s23  ;;  %v1705_v37 = vor.u32 %v1704_v61, %v1700_v6  ;;  %v1996_v61 = vsel %vm1994_vm6, %v1963_v10, %v3955_v52  ;;  %v1709_v52 = vrot.slane %v1707_v33, 1  ;;  %v225_v33 = vld [vmem:[%s3396_s18 + $0xb4] sm:$0xf] }
  0xbc   : > { %1361 = vrot.lane.b32.xlu0 %v1320_v1, %s3357_s23  ;;  %v2012_v1 = vsel %vm1994_vm6, %v1979_v4, %v3949_v45  ;;  %v1601_v45 = vrot.slane %v1599_v3, 1  ;;  %v2029_v28 = vsel %vm2027_vm7, %v1996_v61, %v3979_v12  ;;  %v4130_v12 = vcombine.low %v207_v29, %v4106_v41 }
  0xbd   : > { %v4092_v22 = vpop.permute.xlu1 %1753  ;;  %v2045_v6 = vsel %vm2027_vm7, %v2012_v1, %v3976_v27  ;;  %v1915_v27 = vsel %vm1895_vm3, %v3440_v31, %v3912_v17  ;;  %v1613_v31 = vrot.slane %v1611_v57, 1  ;;  %v4138_v17 = vld [vmem:[%s3396_s18 + $0xb0] ss:$0 sps:$4 sm:$0x11]   ;;  %v1852_v29 = vrot.slane %v4032_v11, 1 }
  0xbe   : > { %v4100_v48 = vpop.permute.xlu0 %1737  ;;  %v2078_v44 = vsel %vm2060_vm8, %v2045_v6, %v4014_v21  ;;  %v1899_v21 = vsel %vm1895_vm3, %v3446_v38, %v3894_v54  ;;  %v1827_v38 = vrot.slane %v2940_v63, 1  ;;  %v689_v54 = vshll.u32 %v4115_v49, 16 }
  0xbf   : > { %1487 = vrot.lane.b32.xlu1 %v3999_v36, %s3358_s24  ;;  %v2062_v36 = vsel %vm2060_vm8, %v2029_v28, %v4028_v43  ;;  %v2111_v23 = vsel %vm2093_vm9, %v2078_v44, %v1752_v56  ;;  %v1948_v56 = vsel %vm1928_vm4, %v1915_v27, %v3874_v24  ;;  %v1602_v57 = vsel %vm517_vm1, %v1597_v5, %v1601_v45  ;;  %v209_v5 = vld [vmem:[%s3396_s18 + $0x54] sm:$0xf] }
  0xc0   : > { %1471 = vrot.lane.b32.xlu0 %v4019_v8, %s3358_s24  ;;  %v2095_v8 = vsel %vm2093_vm9, %v2062_v36, %v1736_v60  ;;  %v1828_v11 = vrot.slane %v4058_v35, 1  ;;  %v4155_v60 = vld [vmem:[%s3396_s18 + $0x50] ss:$0 sps:$4 sm:$0x11]   ;;  %v1981_v3 = vsel %vm1961_vm5, %v1948_v56, %v3935_v2  ;;  %v1932_v24 = vsel %vm1928_vm4, %v1899_v21, %v3887_v55  ;;  %v2805_v45 = vld [vmem:[%s3396_s18 + $0xb4] sm:$0xe] }
  0xc1   : > { %v1880_v34 = vpop.permute.xlu1 %1879  ;;  %v593_v63 = vshll.u32 %v4130_v12, 16  ;;  %v1965_v35 = vsel %vm1961_vm5, %v1932_v24, %v3939_v32  ;;  %v2014_v2 = vsel %vm1994_vm6, %v1981_v3, %v3963_v0  ;;  %v1614_v55 = vsel %vm517_vm1, %v1609_v14, %v1613_v31  ;;  %v2797_v28 = vld [vmem:[%s3396_s18 + $0x54] sm:$0xe] }
  0xc2   : > { %v1864_v58 = vpop.permute.xlu0 %1863  ;;  %v2144_v59 = vsel %vm2126_vm10, %v2111_v23, %v1880_v34  ;;  %v694_v4 = vshll.u32 %v4138_v17, 16  ;;  %v1998_v1 = vsel %vm1994_vm6, %v1965_v35, %v3969_v9  ;;  %v2047_v10 = vsel %vm2027_vm7, %v2014_v2, %v3992_v7 }
  0xc3   : > { %1489 = vrot.lane.b32.xlu1 %v4022_v47, %s3358_s24  ;;  %v2128_v43 = vsel %vm2126_vm10, %v2095_v8, %v1864_v58  ;;  %3157 = vmatprep.mubr.msk.bf16.mxu1 %vm2243_vm11, %v2144_v59  ;;  %v1710_v47 = vsel %vm517_vm1, %v1705_v37, %v1709_v52  ;;  %v4179_v37 = vld [vmem:[%s3396_s18 + $0x58] sm:$0xf]  ;;  %v691_v32 = vrot.slane %v689_v54, 1  ;;  %v591_v0 = vshrl.u32 %v4130_v12, 16 }
  0xc4   : > { %1473 = vrot.lane.b32.xlu0 %v4041_v13, %s3358_s24  ;;  %3141 = vmatprep.mubr.msk.bf16.mxu0 %vm2243_vm11, %v2128_v43  ;;  %v687_v13 = vshrl.u32 %v4115_v49, 16  ;;  %v2031_v61 = vsel %vm2027_vm7, %v1998_v1, %v3996_v15  ;;  %v2080_v6 = vsel %vm2060_vm8, %v2047_v10, %v4043_v40  ;;  %v598_v9 = vshll.u32 %v4155_v60, 16  ;;  %v4218_v8 = vld [vmem:[%s3396_s18 + $0xbc] ss:$0 sps:$4 sm:$0x11]  }
  0xc5   : > { %v4161_v19 = vpop.permute.xlu1 %730  ;;  %v4196_v44 = vcombine.low %v225_v33, %v4167_v51  ;;  %v2064_v7 = vsel %vm2060_vm8, %v2031_v61, %v4048_v62  ;;  %v595_v15 = vrot.slane %v593_v63, 1  ;;  %v4203_v40 = vcombine.low %v209_v5, %v4179_v37  ;;  %v4225_v43 = vld [vmem:[%s3396_s18 + $0x5c] ss:$0 sps:$4 sm:$0x11]  }
  0xc6   : > { %v4173_v20 = vpop.permute.xlu0 %714  ;;  %v2097_v14 = vsel %vm2093_vm9, %v2064_v7, %v4100_v48  ;;  %v2949_v23 = vcombine.low %v2805_v45, %v4006_v39  ;;  %v2941_v62 = vcombine.low %v2797_v28, %v4026_v30  ;;  %v692_v48 = vor.u32 %v691_v32, %v687_v13  ;;  %v258_v28 = vld [vmem:[%s3396_s18 + $0xb4] sm:$0xe] }
  0xc7   : > { %1759 = vrot.lane.b32.xlu1 %v1698_v18, %s3359_s25  ;;  %v2113_v18 = vsel %vm2093_vm9, %v2080_v6, %v4092_v22  ;;  %v1853_v22 = vsel %vm790_vm0, %v4094_v26, %v1852_v29  ;;  %v696_v21 = vrot.slane %v694_v4, 1  ;;  %v701_v39 = vshll.u32 %v4196_v44, 16  ;;  %v250_v7 = vld [vmem:[%s3396_s18 + $0x54] sm:$0xe] }
  0xc8   : > { %1743 = vrot.lane.b32.xlu0 %v1602_v57, %s3359_s25  ;;  %v1829_v58 = vsel %vm790_vm0, %v1827_v38, %v1828_v11  ;;  %v596_v59 = vor.u32 %v595_v15, %v591_v0  ;;  %v600_v31 = vrot.slane %v598_v9, 1  ;;  %v605_v54 = vshll.u32 %v4203_v40, 16 }
  0xc9   : > { %v1882_v52 = vpop.permute.xlu1 %1881  ;;  %v1854_v26 = vrot.slane %v2949_v23, 1  ;;  %v1855_v29 = vrot.slane %v4068_v16, 1  ;;  %v1830_v57 = vrot.slane %v2941_v62, 1  ;;  %v697_v38 = vsel %vm517_vm1, %v692_v48, %v696_v21  ;;  %v2708_v62 = vld [vmem:[%s3396_s18 + $0xb4] sm:$0xf] }
  0xca   : > { %v2146_v27 = vsel %vm2126_vm10, %v2113_v18, %v1882_v52  ;;  %v1866_v36 = vpop.permute.xlu0 %1865  ;;  %v699_v11 = vshrl.u32 %v4196_v44, 16  ;;  %v703_v3 = vrot.slane %v701_v39, 1  ;;  %v706_v24 = vshll.u32 %v4218_v8, 16  ;;  %v2692_v48 = vld [vmem:[%s3396_s18 + $0x54] sm:$0xf] }
  0xcb   : > { %v2130_v34 = vsel %vm2126_vm10, %v2097_v14, %v1866_v36  ;;  %1761 = vrot.lane.b32.xlu1 %v1710_v47, %s3359_s25  ;;  %3158 = vmatmul.mubr.msk.bf16.vlgmr.msra.gmra.mxu1 %vm2243_vm11, %v2146_v27  ;;  %v1831_v47 = vrot.slane %v4076_v46, 1  ;;  %v601_v63 = vsel %vm517_vm1, %v596_v59, %v600_v31  ;;  %v603_v33 = vshrl.u32 %v4203_v40, 16  ;;  %v257_v46 = vld [vmem:[%s3396_s18 + $0xa8] sm:$0xe] }
  0xcc   : > { %1745 = vrot.lane.b32.xlu0 %v1614_v55, %s3359_s25  ;;  %3142 = vmatmul.mubr.msk.bf16.vlgmr.msra.gmra.mxu0 %vm2243_vm11, %v2130_v34  ;;  %v607_v35 = vrot.slane %v605_v54, 1  ;;  %v610_v16 = vshll.u32 %v4225_v43, 16  ;;  %v249_v55 = vld [vmem:[%s3396_s18 + $0x48] sm:$0xe]  ;;  %v1856_v4 = vsel %vm790_vm0, %v1854_v26, %v1855_v29  ;;  %v704_v5 = vor.u32 %v703_v3, %v699_v11  ;;  %v4270_v34 = vld [vmem:[%s3396_s18 + $0xb8] sm:$0xf] }
  0xcd   : > { %v4221_v30 = vpop.permute.xlu1 %732  ;;  %v708_v1 = vrot.slane %v706_v24, 1  ;;  %v2854_v10 = vcombine.low %v257_v46, %v4088_v42  ;;  %v1832_v0 = vsel %vm790_vm0, %v1830_v57, %v1831_v47  ;;  %v2846_v45 = vcombine.low %v249_v55, %v4106_v41  ;;  %v2710_v26 = vld [vmem:[%s3396_s18 + $0xc0] sm:$0xf]  ;;  %v4290_v29 = vld [vmem:[%s3396_s18 + $0xc4] sm:$0xf] }
  0xce   : > { %v4228_v56 = vpop.permute.xlu0 %716  ;;  %v608_v61 = vor.u32 %v607_v35, %v603_v33  ;;  %v612_v6 = vrot.slane %v610_v16, 1  ;;  %v834_v52 = vrot.slane %v4138_v17, 1  ;;  %v2855_v15 = vcombine.low %v258_v28, %v4167_v51  ;;  %v4276_v17 = vld [vmem:[%s3396_s18 + $0x58] sm:$0xf]  ;;  %v2694_v47 = vld [vmem:[%s3396_s18 + $0x60] sm:$0xf] }
  0xcf   : > { %1887 = vrot.lane.b32.xlu1 %v1853_v22, %s3360_s26  ;;  %v709_v42 = vsel %vm517_vm1, %v704_v5, %v708_v1  ;;  %v833_v18 = vrot.slane %v2854_v10, 1  ;;  %v809_v27 = vrot.slane %v2846_v45, 1  ;;  %v810_v36 = vrot.slane %v4155_v60, 1  ;;  %v4306_v24 = vld [vmem:[%s3396_s18 + $0x5c] ss:$0 sps:$4 sm:$0x11]  }
  0xd0   : > { %1871 = vrot.lane.b32.xlu0 %v1829_v58, %s3360_s26  ;;  %v613_v41 = vsel %vm517_vm1, %v608_v61, %v612_v6  ;;  %v2847_v23 = vcombine.low %v250_v7, %v4179_v37  ;;  %v836_v51 = vrot.slane %v2855_v15, 1  ;;  %v837_v37 = vrot.slane %v4218_v8, 1  ;;  %v4300_v8 = vld [vmem:[%s3396_s18 + $0xbc] ss:$0 sps:$4 sm:$0x11]  }
  0xd1   : > { %v4237_v13 = vpop.permute.xlu1 %859  ;;  %v835_v60 = vsel %vm790_vm0, %v833_v18, %v834_v52  ;;  %v2870_v21 = vcombine.low %v2708_v62, %v4270_v34  ;;  %v811_v58 = vsel %vm790_vm0, %v809_v27, %v810_v36  ;;  %v813_v31 = vrot.slane %v4225_v43, 1  ;;  %v4319_v10 = vld [vmem:[%s3396_s18 + $0xc8] ss:$0 sps:$4 sm:$0x11]  }
  0xd2   : > { %v4243_v2 = vpop.permute.xlu0 %843  ;;  %v812_v59 = vrot.slane %v2847_v23, 1  ;;  %v2862_v54 = vcombine.low %v2692_v48, %v4276_v17  ;;  %v838_v11 = vsel %vm790_vm0, %v836_v51, %v837_v37  ;;  %v2871_v43 = vcombine.low %v2710_v26, %v4290_v29  ;;  %v4324_v28 = vld [vmem:[%s3396_s18 + $0x68] ss:$0 sps:$4 sm:$0x11]   ;;  %v2742_v37 = vld [vmem:[%s3396_s18 + $0xb4] sm:$0xe] }
  0xd3   : > { %738 = vrot.lane.b32.xlu1 %v697_v38, %s3355_s21  ;;  %v4296_v38 = vld [vmem:[%s3396_s18 + $0x64] sm:$0xf]  ;;  %v1202_v3 = vshll.u32 %v2870_v21, 16  ;;  %v1200_v55 = vshrl.u32 %v2870_v21, 16  ;;  %v1111_v1 = vshll.u32 %v4306_v24, 16  ;;  %v1219_v36 = vshll.u32 %v4319_v10, 16 }
  0xd4   : > { %722 = vrot.lane.b32.xlu0 %v601_v63, %s3355_s21  ;;  %v814_v33 = vsel %vm790_vm0, %v812_v59, %v813_v31  ;;  %v2863_v35 = vcombine.low %v2694_v47, %v4296_v38  ;;  %v1106_v16 = vshll.u32 %v2862_v54, 16  ;;  %v1104_v6 = vshrl.u32 %v2862_v54, 16 }
  0xd5   : > { %v4250_v32 = vpop.permute.xlu1 %861  ;;  %v1204_v5 = vrot.slane %v1202_v3, 1  ;;  %v1212_v52 = vshrl.u32 %v2871_v43, 16  ;;  %v1123_v51 = vshll.u32 %v4324_v28, 16  ;;  %v2902_v26 = vcombine.low %v2742_v37, %v4270_v34 }
  0xd6   : > { %v4255_v9 = vpop.permute.xlu0 %845  ;;  %v1108_v45 = vrot.slane %v1106_v16, 1  ;;  %v1118_v7 = vshll.u32 %v2863_v35, 16  ;;  %v1116_v48 = vshrl.u32 %v2863_v35, 16 }
  0xd7   : > { %1889 = vrot.lane.b32.xlu1 %v1856_v4, %s3360_s26  ;;  %v1207_v4 = vshll.u32 %v4300_v8, 16  ;;  %v1205_v15 = vor.u32 %v1204_v5, %v1200_v55  ;;  %v2743_v55 = vld [vmem:[%s3396_s18 + $0xc0] sm:$0xe]  ;;  %v1346_v5 = vrot.slane %v4300_v8, 1 }
  0xd8   : > { %1873 = vrot.lane.b32.xlu0 %v1832_v0, %s3360_s26  ;;  %v1214_v0 = vshll.u32 %v2871_v43, 16  ;;  %v1109_v62 = vor.u32 %v1108_v45, %v1104_v6 }
  0xd9   : > { %v4263_v14 = vpop.permute.xlu1 %971  ;;  %v1209_v18 = vrot.slane %v1207_v4, 1  ;;  %v1345_v4 = vrot.slane %v2902_v26, 1 }
  0xda   : > { %v4272_v22 = vpop.permute.xlu0 %955  ;;  %v1216_v27 = vrot.slane %v1214_v0, 1  ;;  %v4357_v0 = vld [vmem:[%s3396_s18 + $0xc4] sm:$0xf] }
  0xdb   : > { %740 = vrot.lane.b32.xlu1 %v709_v42, %s3355_s21  ;;  %v1210_v59 = vsel %vm517_vm1, %v1205_v15, %v1209_v18  ;;  %v1322_v18 = vrot.slane %v4306_v24, 1  ;;  %v2756_v15 = vld [vmem:[%s3396_s18 + $0x60] sm:$0xf]  ;;  %v1347_v24 = vsel %vm790_vm0, %v1345_v4, %v1346_v5  ;;  %v4408_v4 = vld [vmem:[%s3396_s18 + $0xd4] ss:$0 sps:$4 sm:$0x11]  }
  0xdc   : > { %724 = vrot.lane.b32.xlu0 %v613_v41, %s3355_s21  ;;  %v1113_v41 = vrot.slane %v1111_v1, 1  ;;  %v1217_v31 = vor.u32 %v1216_v27, %v1212_v52  ;;  %v2903_v1 = vcombine.low %v2743_v55, %v4290_v29  ;;  %v2774_v27 = vld [vmem:[%s3396_s18 + $0xcc] sm:$0xf] }
  0xdd   : > { %v4283_v39 = vpop.permute.xlu1 %973 }
  0xde   : > { %v4292_v57 = vpop.permute.xlu0 %957 }
  0xdf   : > { %867 = vrot.lane.b32.xlu1 %v835_v60, %s3354_s20  ;;  %v1120_v60 = vrot.slane %v1118_v7, 1 }
  0xe0   : > { %851 = vrot.lane.b32.xlu0 %v811_v58, %s3354_s20  ;;  %v2734_v58 = vld [vmem:[%s3396_s18 + $0x54] sm:$0xe] }
  0xe1   : > { %v4308_v63 = vpop.permute.xlu1 %1243  ;;  %v1121_v3 = vor.u32 %v1120_v60, %v1116_v48  ;;  %v2894_v16 = vcombine.low %v2734_v58, %v4276_v17  ;;  %v2772_v17 = vld [vmem:[%s3396_s18 + $0xc0] sm:$0xf]  ;;  %v4381_v60 = vld [vmem:[%s3396_s18 + $0xc8] ss:$0 sps:$4 sm:$0x11]  }
  0xe2   : > { %v4312_v46 = vpop.permute.xlu0 %1227  ;;  %v2918_v29 = vcombine.low %v2772_v17, %v4357_v0 }
  0xe3   : > { %869 = vrot.lane.b32.xlu1 %v838_v11, %s3354_s20  ;;  %v1114_v11 = vsel %vm517_vm1, %v1109_v62, %v1113_v41  ;;  %v1321_v7 = vrot.slane %v2894_v16, 1  ;;  %v4366_v41 = vld [vmem:[%s3396_s18 + $0x64] sm:$0xf]  ;;  %v1349_v62 = vrot.slane %v4319_v10, 1  ;;  %v1719_v16 = vshll.u32 %v4381_v60, 16 }
  0xe4   : > { %853 = vrot.lane.b32.xlu0 %v814_v33, %s3354_s20  ;;  %v1125_v33 = vrot.slane %v1123_v51, 1  ;;  %v2910_v48 = vcombine.low %v2756_v15, %v4366_v41  ;;  %v4397_v10 = vld [vmem:[%s3396_s18 + $0x68] ss:$0 sps:$4 sm:$0x11]  }
  0xe5   : > { %v4321_v61 = vpop.permute.xlu1 %1245  ;;  %v1323_v37 = vsel %vm790_vm0, %v1321_v7, %v1322_v18  ;;  %v1623_v17 = vshll.u32 %v4397_v10, 16  ;;  %v1917_v7 = vsel %vm1895_vm3, %v3581_v50, %v4161_v19 }
  0xe6   : > { %v4326_v42 = vpop.permute.xlu0 %1229  ;;  %v1126_v45 = vsel %vm517_vm1, %v1121_v3, %v1125_v33  ;;  %v1714_v3 = vshll.u32 %v2918_v29, 16 }
  0xe7   : > { %979 = vrot.lane.b32.xlu1 %v2870_v21, %s3353_s19 }
  0xe8   : > { %963 = vrot.lane.b32.xlu0 %v2862_v54, %s3353_s19  ;;  %v1221_v54 = vrot.slane %v1219_v36, 1  ;;  %v4374_v36 = vld [vmem:[%s3396_s18 + $0xd0] sm:$0xf]  ;;  %v1716_v18 = vrot.slane %v1714_v3, 1  ;;  %v1625_v3 = vrot.slane %v1623_v17, 1 }
  0xe9   : > { %v4331_v23 = vpop.permute.xlu1 %1371  ;;  %v4391_v26 = vcombine.low %v2774_v27, %v4374_v36  ;;  %v1901_v27 = vsel %vm1895_vm3, %v3584_v53, %v4173_v20  ;;  %v1731_v53 = vshll.u32 %v4408_v4, 16 }
  0xea   : > { %v4335_v21 = vpop.permute.xlu0 %1355  ;;  %v1222_v34 = vsel %vm517_vm1, %v1217_v31, %v1221_v54  ;;  %v2758_v31 = vld [vmem:[%s3396_s18 + $0x6c] sm:$0xf]  ;;  %v1934_v50 = vsel %vm1928_vm4, %v1901_v27, %v4243_v2 }
  0xeb   : > { %981 = vrot.lane.b32.xlu1 %v2871_v43, %s3353_s19  ;;  %v1724_v15 = vshrl.u32 %v4391_v26, 16 }
  0xec   : > { %965 = vrot.lane.b32.xlu0 %v2863_v35, %s3353_s19  ;;  %v2735_v35 = vld [vmem:[%s3396_s18 + $0x60] sm:$0xe] }
  0xed   : > { %v4342_v47 = vpop.permute.xlu1 %1373  ;;  %v2895_v52 = vcombine.low %v2735_v35, %v4296_v38  ;;  %v1348_v38 = vrot.slane %v2903_v1, 1  ;;  %v1712_v1 = vshrl.u32 %v2918_v29, 16 }
  0xee   : > { %v4347_v43 = vpop.permute.xlu0 %1357 }
  0xef   : > { %1251 = vrot.lane.b32.xlu1 %v1210_v59, %s3356_s22  ;;  %v1324_v58 = vrot.slane %v2895_v52, 1  ;;  %v1325_v59 = vrot.slane %v4324_v28, 1  ;;  %v1350_v33 = vsel %vm790_vm0, %v1348_v38, %v1349_v62  ;;  %v1618_v28 = vshll.u32 %v2910_v48, 16 }
  0xf0   : > { %1235 = vrot.lane.b32.xlu0 %v1114_v11, %s3356_s22  ;;  %v4394_v11 = vld [vmem:[%s3396_s18 + $0x70] sm:$0xf]  ;;  %v1616_v52 = vshrl.u32 %v2910_v48, 16  ;;  %v1721_v38 = vrot.slane %v1719_v16, 1  ;;  %v1717_v16 = vor.u32 %v1716_v18, %v1712_v1 }
  0xf1   : > { %v4359_v6 = vpop.permute.xlu1 %1483  ;;  %v1326_v35 = vsel %vm790_vm0, %v1324_v58, %v1325_v59  ;;  %v1620_v62 = vrot.slane %v1618_v28, 1 }
  0xf2   : > { %v4368_v8 = vpop.permute.xlu0 %1467 }
  0xf3   : > { %1253 = vrot.lane.b32.xlu1 %v1222_v34, %s3356_s22  ;;  %v4405_v34 = vcombine.low %v2758_v31, %v4394_v11  ;;  %v1621_v17 = vor.u32 %v1620_v62, %v1616_v52  ;;  %v1919_v52 = vsel %vm1895_vm3, %v3619_v25, %v4221_v30 }
  0xf4   : > { %1237 = vrot.lane.b32.xlu0 %v1126_v45, %s3356_s22  ;;  %v1726_v45 = vshll.u32 %v4391_v26, 16 }
  0xf5   : > { %v4383_v51 = vpop.permute.xlu1 %1485  ;;  %v1630_v20 = vshll.u32 %v4405_v34, 16  ;;  %v1628_v28 = vshrl.u32 %v4405_v34, 16  ;;  %v1626_v25 = vsel %vm517_vm1, %v1621_v17, %v1625_v3 }
  0xf6   : > { %v4388_v54 = vpop.permute.xlu0 %1469 }
  0xf7   : > { %1379 = vrot.lane.b32.xlu1 %v1347_v24, %s3357_s23  ;;  %v1950_v24 = vsel %vm1928_vm4, %v1917_v7, %v4237_v13  ;;  %v1967_v13 = vsel %vm1961_vm5, %v1934_v50, %v4272_v22  ;;  %v1632_v7 = vrot.slane %v1630_v20, 1 }
  0xf8   : > { %1363 = vrot.lane.b32.xlu0 %v1323_v37, %s3357_s23  ;;  %v4424_v37 = vld [vmem:[%s3396_s18 + $0x74] ss:$0 sps:$4 sm:$0x11]   ;;  %v1983_v19 = vsel %vm1961_vm5, %v1950_v24, %v4263_v14  ;;  %v2000_v2 = vsel %vm1994_vm6, %v1967_v13, %v4312_v46 }
  0xf9   : > { %v1756_v55 = vpop.permute.xlu1 %1755  ;;  %v2016_v59 = vsel %vm1994_vm6, %v1983_v19, %v4308_v63  ;;  %v2033_v22 = vsel %vm2027_vm7, %v2000_v2, %v4335_v21  ;;  %v1635_v46 = vshll.u32 %v4424_v37, 16  ;;  %v2799_v19 = vld [vmem:[%s3396_s18 + $0x6c] sm:$0xe] }
  0xfa   : > { %v1740_v5 = vpop.permute.xlu0 %1739  ;;  %v2049_v14 = vsel %vm2027_vm7, %v2016_v59, %v4331_v23  ;;  %v2066_v23 = vsel %vm2060_vm8, %v2033_v22, %v4368_v8  ;;  %v1837_v22 = vrot.slane %v4424_v37, 1 }
  0xfb   : > { %1381 = vrot.lane.b32.xlu1 %v1350_v33, %s3357_s23  ;;  %v1728_v33 = vrot.slane %v1726_v45, 1  ;;  %v2082_v63 = vsel %vm2060_vm8, %v2049_v14, %v4359_v6  ;;  %v1733_v45 = vrot.slane %v1731_v53, 1  ;;  %v2099_v18 = vsel %vm2093_vm9, %v2066_v23, %v1740_v5  ;;  %v4727_v5 = vld [vmem:[#allocation2_spill] sm:$0xff] }
  0xfc   : > { %1365 = vrot.lane.b32.xlu0 %v1326_v35, %s3357_s23  ;;  %v2806_v35 = vld [vmem:[%s3396_s18 + $0xc0] sm:$0xe]  ;;  %v1637_v30 = vrot.slane %v1635_v46, 1 }
  0xfd   : > { %v4430_v58 = vpop.permute.xlu1 %1757  ;;  %v1729_v24 = vor.u32 %v1728_v33, %v1724_v15  ;;  %v2950_v6 = vcombine.low %v2806_v35, %v4357_v0  ;;  %v1903_v0 = vsel %vm1895_vm3, %v4727_v5, %v4228_v56  ;;  %v1952_v15 = vsel %vm1928_vm4, %v1919_v52, %v4250_v32  ;;  %v2807_v32 = vld [vmem:[%s3396_s18 + $0xcc] sm:$0xe] }
  0xfe   : > { %v4438_v31 = vpop.permute.xlu0 %1741  ;;  %v1633_v56 = vor.u32 %v1632_v7, %v1628_v28  ;;  %v2951_v33 = vcombine.low %v2807_v32, %v4374_v36 }
  0xff   : > { %1491 = vrot.lane.b32.xlu1 %v2918_v29, %s3358_s24  ;;  %v2115_v29 = vsel %vm2093_vm9, %v2082_v63, %v1756_v55  ;;  %v1722_v55 = vsel %vm517_vm1, %v1717_v16, %v1721_v38  ;;  %v1985_v38 = vsel %vm1961_vm5, %v1952_v15, %v4283_v39  ;;  %v1857_v13 = vrot.slane %v2950_v6, 1 }
 0x100   : > { %1475 = vrot.lane.b32.xlu0 %v2910_v48, %s3358_s24  ;;  %v2798_v48 = vld [vmem:[%s3396_s18 + $0x60] sm:$0xe]  ;;  %v2018_v53 = vsel %vm1994_vm6, %v1985_v38, %v4321_v61  ;;  %v4728_v38 = vld [vmem:[#allocation3_spill] sm:$0xff] }
 0x101   : > { %v1884_v1 = vpop.permute.xlu1 %1883  ;;  %v2942_v50 = vcombine.low %v2798_v48, %v4366_v41  ;;  %v2051_v59 = vsel %vm2027_vm7, %v2018_v53, %v4342_v47  ;;  %v1858_v41 = vrot.slane %v4381_v60, 1 }
 0x102   : > { %v2148_v21 = vsel %vm2126_vm10, %v2115_v29, %v1884_v1  ;;  %v1868_v27 = vpop.permute.xlu0 %1867  ;;  %v2084_v3 = vsel %vm2060_vm8, %v2051_v59, %v4383_v51 }
 0x103   : > { %v2132_v8 = vsel %vm2126_vm10, %v2099_v18, %v1868_v27  ;;  %1493 = vrot.lane.b32.xlu1 %v4391_v26, %s3358_s24  ;;  %3161 = vmatprep.mubr.msk.bf16.mxu1 %vm2243_vm11, %v2148_v21  ;;  %v1936_v26 = vsel %vm1928_vm4, %v1903_v0, %v4255_v9  ;;  %v1734_v9 = vsel %vm517_vm1, %v1729_v24, %v1733_v45  ;;  %v1833_v14 = vrot.slane %v2942_v50, 1  ;;  %v4729_v50 = vld [vmem:[#allocation4_spill] sm:$0xff] }
 0x104   : > { %1477 = vrot.lane.b32.xlu0 %v4405_v34, %s3358_s24  ;;  %3145 = vmatprep.mubr.msk.bf16.mxu0 %vm2243_vm11, %v2132_v8  ;;  %v1969_v34 = vsel %vm1961_vm5, %v1936_v26, %v4292_v57  ;;  %v1834_v57 = vrot.slane %v4397_v10, 1  ;;  %v2117_v60 = vsel %vm2093_vm9, %v2084_v3, %v4430_v58  ;;  %v1638_v10 = vsel %vm517_vm1, %v1633_v56, %v1637_v30 }
 0x105   : > { %v4481_v62 = vpop.permute.xlu1 %734  ;;  %v2002_v39 = vsel %vm1994_vm6, %v1969_v34, %v4326_v42  ;;  %v2943_v42 = vcombine.low %v2799_v19, %v4394_v11  ;;  %v1860_v11 = vrot.slane %v2951_v33, 1  ;;  %v1861_v58 = vrot.slane %v4408_v4, 1 }
 0x106   : > { %v4490_v20 = vpop.permute.xlu0 %718  ;;  %v2035_v61 = vsel %vm2027_vm7, %v2002_v39, %v4347_v43  ;;  %v1921_v56 = vsel %vm1895_vm3, %v4728_v38, %v4481_v62 }
 0x107   : > { %1763 = vrot.lane.b32.xlu1 %v1722_v55, %s3359_s25  ;;  %v2068_v47 = vsel %vm2060_vm8, %v2035_v61, %v4388_v54  ;;  %v1859_v54 = vsel %vm790_vm0, %v1857_v13, %v1858_v41  ;;  %v1836_v35 = vrot.slane %v2943_v42, 1  ;;  %v1862_v17 = vsel %vm790_vm0, %v1860_v11, %v1861_v58 }
 0x108   : > { %1747 = vrot.lane.b32.xlu0 %v1626_v25, %s3359_s25  ;;  %v2101_v43 = vsel %vm2093_vm9, %v2068_v47, %v4438_v31  ;;  %v1835_v31 = vsel %vm790_vm0, %v1833_v14, %v1834_v57  ;;  %v1905_v32 = vsel %vm1895_vm3, %v4729_v50, %v4490_v20 }
 0x109   : > { %v1886_v2 = vpop.permute.xlu1 %1885  ;;  %v1838_v23 = vsel %vm790_vm0, %v1836_v35, %v1837_v22 }
 0x10a   : > { %v2150_v51 = vsel %vm2126_vm10, %v2117_v60, %v1886_v2  ;;  %v1870_v16 = vpop.permute.xlu0 %1869  ;;  %v4730_v2 = vld [vmem:[#allocation5_spill] sm:$0xff] }
 0x10b   : > { %v2134_v36 = vsel %vm2126_vm10, %v2101_v43, %v1870_v16  ;;  %1765 = vrot.lane.b32.xlu1 %v1734_v9, %s3359_s25  ;;  %3162 = vmatmul.mubr.msk.bf16.gmra.mxu1 %vm2243_vm11, %v2150_v51  ;;  %v4731_v43 = vld [vmem:[#allocation6_spill] sm:$0xff] }
 0x10c   : > { %1749 = vrot.lane.b32.xlu0 %v1638_v10, %s3359_s25  ;;  %3146 = vmatmul.mubr.msk.bf16.gmra.mxu0 %vm2243_vm11, %v2134_v36 }
 0x10d   : > { %v737_v28 = vpop.permute.xlu1 %736 }
 0x10e   : > { %v721_v63 = vpop.permute.xlu0 %720  ;;  %v1923_v10 = vsel %vm1895_vm3, %v4730_v2, %v737_v28 }
 0x10f   : > { %1891 = vrot.lane.b32.xlu1 %v1859_v54, %s3360_s26  ;;  %v1907_v51 = vsel %vm1895_vm3, %v4731_v43, %v721_v63 }
 0x110   : > { %1875 = vrot.lane.b32.xlu0 %v1835_v31, %s3360_s26 }
 0x111   : > { %v864_v46 = vpop.permute.xlu1 %863 }
 0x112   : > { %v848_v29 = vpop.permute.xlu0 %847  ;;  %v1954_v19 = vsel %vm1928_vm4, %v1921_v56, %v864_v46 }
 0x113   : > { %1893 = vrot.lane.b32.xlu1 %v1862_v17, %s3360_s26  ;;  %v1938_v34 = vsel %vm1928_vm4, %v1905_v32, %v848_v29 }
 0x114   : > { %1877 = vrot.lane.b32.xlu0 %v1838_v23, %s3360_s26 }
 0x115   : > { %v866_v4 = vpop.permute.xlu1 %865 }
 0x116   : > { %v850_v1 = vpop.permute.xlu0 %849  ;;  %v1956_v16 = vsel %vm1928_vm4, %v1923_v10, %v866_v4 }
 0x117   : > { %v1940_v36 = vsel %vm1928_vm4, %v1907_v51, %v850_v1 }
 0x119   : > { %v976_v45 = vpop.permute.xlu1 %975 }
 0x11a   : > { %v960_v7 = vpop.permute.xlu0 %959  ;;  %v1987_v53 = vsel %vm1961_vm5, %v1954_v19, %v976_v45 }
 0x11b   : > { %v1971_v13 = vsel %vm1961_vm5, %v1938_v34, %v960_v7 }
 0x11d   : > { %v978_v37 = vpop.permute.xlu1 %977 }
 0x11e   : > { %v962_v18 = vpop.permute.xlu0 %961  ;;  %v1989_v54 = vsel %vm1961_vm5, %v1956_v16, %v978_v37 }
 0x11f   : > { %v1973_v58 = vsel %vm1961_vm5, %v1940_v36, %v962_v18 }
 0x121   : > { %v1248_v21 = vpop.permute.xlu1 %1247 }
 0x122   : > { %v1232_v27 = vpop.permute.xlu0 %1231  ;;  %v2020_v39 = vsel %vm1994_vm6, %v1987_v53, %v1248_v21 }
 0x123   : > { %v2004_v41 = vsel %vm1994_vm6, %v1971_v13, %v1232_v27 }
 0x125   : > { %v1250_v24 = vpop.permute.xlu1 %1249 }
 0x126   : > { %v1234_v6 = vpop.permute.xlu0 %1233  ;;  %v2022_v28 = vsel %vm1994_vm6, %v1989_v54, %v1250_v24 }
 0x127   : > { %v2006_v35 = vsel %vm1994_vm6, %v1973_v58, %v1234_v6 }
 0x129   : > { %v1376_v48 = vpop.permute.xlu1 %1375 }
 0x12a   : > { %v1360_v52 = vpop.permute.xlu0 %1359  ;;  %v2053_v62 = vsel %vm2027_vm7, %v2020_v39, %v1376_v48 }
 0x12b   : > { %v2037_v57 = vsel %vm2027_vm7, %v2004_v41, %v1360_v52 }
 0x12d   : > { %v1378_v8 = vpop.permute.xlu1 %1377 }
 0x12e   : > { %v1362_v55 = vpop.permute.xlu0 %1361  ;;  %v2055_v22 = vsel %vm2027_vm7, %v2022_v28, %v1378_v8 }
 0x12f   : > { %v2039_v63 = vsel %vm2027_vm7, %v2006_v35, %v1362_v55 }
 0x131   : > { %v1488_v5 = vpop.permute.xlu1 %1487 }
 0x132   : > { %v1472_v0 = vpop.permute.xlu0 %1471  ;;  %v2086_v20 = vsel %vm2060_vm8, %v2053_v62, %v1488_v5 }
 0x133   : > { %v2070_v61 = vsel %vm2060_vm8, %v2037_v57, %v1472_v0 }
 0x135   : > { %v1490_v15 = vpop.permute.xlu1 %1489 }
 0x136   : > { %v1474_v25 = vpop.permute.xlu0 %1473  ;;  %v2088_v17 = vsel %vm2060_vm8, %v2055_v22, %v1490_v15 }
 0x137   : > { %v2072_v46 = vsel %vm2060_vm8, %v2039_v63, %v1474_v25 }
 0x139   : > { %v1760_v30 = vpop.permute.xlu1 %1759 }
 0x13a   : > { %v1744_v26 = vpop.permute.xlu0 %1743  ;;  %v2119_v3 = vsel %vm2093_vm9, %v2086_v20, %v1760_v30 }
 0x13b   : > { %v2103_v42 = vsel %vm2093_vm9, %v2070_v61, %v1744_v26 }
 0x13d   : > { %v1762_v9 = vpop.permute.xlu1 %1761 }
 0x13e   : > { %v1746_v59 = vpop.permute.xlu0 %1745  ;;  %v2121_v23 = vsel %vm2093_vm9, %v2088_v17, %v1762_v9 }
 0x13f   : > { %v2105_v4 = vsel %vm2093_vm9, %v2072_v46, %v1746_v59 }
 0x141   : > { %v1888_v33 = vpop.permute.xlu1 %1887 }
 0x142   : > { %v2152_v47 = vsel %vm2126_vm10, %v2119_v3, %v1888_v33  ;;  %v1872_v60 = vpop.permute.xlu0 %1871 }
 0x143   : > { %v2136_v14 = vsel %vm2126_vm10, %v2103_v42, %v1872_v60  ;;  %3165 = vmatprep.mubr.msk.bf16.mxu1 %vm2243_vm11, %v2152_v47 }
 0x144   : > { %3149 = vmatprep.mubr.msk.bf16.mxu0 %vm2243_vm11, %v2136_v14 }
 0x145   : > { %v739_v11 = vpop.permute.xlu1 %738 }
 0x146   : > { %v723_v31 = vpop.permute.xlu0 %722  ;;  %v1925_v13 = vsel %vm1895_vm3, %v4115_v49, %v739_v11 }
 0x147   : > { %v1909_v39 = vsel %vm1895_vm3, %v4130_v12, %v723_v31 }
 0x149   : > { %v1890_v29 = vpop.permute.xlu1 %1889 }
 0x14a   : > { %v2154_v1 = vsel %vm2126_vm10, %v2121_v23, %v1890_v29  ;;  %v1874_v45 = vpop.permute.xlu0 %1873  ;;  %v3109_v23 = vld [vmem:[%s4607_s10 + $0x48] sm:$0xff]  }
 0x14b   : > { %v2138_v7 = vsel %vm2126_vm10, %v2105_v4, %v1874_v45  ;;  %3166 = vmatmul.mubr.msk.bf16.gmra.mxu1 %vm2243_vm11, %v2154_v1  ;;  %v3101_v45 = vld [vmem:[%s4607_s10 + $0x8] sm:$0xff]  }
 0x14c   : > { %3150 = vmatmul.mubr.msk.bf16.gmra.mxu0 %vm2243_vm11, %v2138_v7 }
 0x14d   : > { %v741_v37 = vpop.permute.xlu1 %740 }
 0x14e   : > { %v725_v18 = vpop.permute.xlu0 %724  ;;  %v1927_v49 = vsel %vm1895_vm3, %v4196_v44, %v741_v37  ;;  %v3108_v37 = vld [vmem:[%s4607_s10 + $0x40] sm:$0xff]  }
 0x14f   : > { %v1911_v12 = vsel %vm1895_vm3, %v4203_v40, %v725_v18  ;;  %v3075_v18 = vunpack.c.l.bf16 %v3109_v23 }
 0x151   : > { %v868_v21 = vpop.permute.xlu1 %867 }
 0x152   : > { %v852_v27 = vpop.permute.xlu0 %851  ;;  %v1958_v59 = vsel %vm1928_vm4, %v1925_v13, %v868_v21  ;;  %v3038_v21 = vld [vmem:[%s4607_s10] sm:$0xff]  }
 0x153   : > { %v1942_v41 = vsel %vm1928_vm4, %v1909_v39, %v852_v27  ;;  %v3043_v27 = vunpack.c.l.bf16 %v3101_v45 }
 0x155   : > { %v870_v24 = vpop.permute.xlu1 %869 }
 0x156   : > { %v854_v6 = vpop.permute.xlu0 %853  ;;  %v1960_v47 = vsel %vm1928_vm4, %v1927_v49, %v870_v24  ;;  %v3071_v24 = vunpack.c.l.bf16 %v3108_v37 }
 0x157   : > { %v1944_v10 = vsel %vm1928_vm4, %v1911_v12, %v854_v6  ;;  %v3110_v12 = vld [vmem:[%s4607_s10 + $0x50] sm:$0xff]  }
 0x159   : > { %v980_v48 = vpop.permute.xlu1 %979 }
 0x15a   : > { %v964_v52 = vpop.permute.xlu0 %963  ;;  %v1991_v62 = vsel %vm1961_vm5, %v1958_v59, %v980_v48  ;;  %v3039_v48 = vunpack.c.l.bf16 %v3038_v21 }
 0x15b   : > { %v1975_v20 = vsel %vm1961_vm5, %v1942_v41, %v964_v52 }
 0x15d   : > { %v982_v8 = vpop.permute.xlu1 %981 }
 0x15e   : > { %v966_v55 = vpop.permute.xlu0 %965  ;;  %v1993_v14 = vsel %vm1961_vm5, %v1960_v47, %v982_v8 }
 0x15f   : > { %v1977_v16 = vsel %vm1961_vm5, %v1944_v10, %v966_v55  ;;  %v3076_v55 = vunpack.c.h.bf16 %v3109_v23  ;;  %v3079_v10 = vunpack.c.l.bf16 %v3110_v12 }
 0x161   : > { %v1252_v5 = vpop.permute.xlu1 %1251 }
 0x162   : > { %v1236_v0 = vpop.permute.xlu0 %1235  ;;  %v2024_v61 = vsel %vm1994_vm6, %v1991_v62, %v1252_v5 }
 0x163   : > { %v2008_v33 = vsel %vm1994_vm6, %v1975_v20, %v1236_v0 }
 0x165   : > { %v1254_v15 = vpop.permute.xlu1 %1253 }
 0x166   : > { %v1238_v25 = vpop.permute.xlu0 %1237  ;;  %v2026_v36 = vsel %vm1994_vm6, %v1993_v14, %v1254_v15  ;;  %v3044_v15 = vunpack.c.h.bf16 %v3101_v45 }
 0x167   : > { %v2010_v58 = vsel %vm1994_vm6, %v1977_v16, %v1238_v25 }
 0x169   : > { %v1380_v30 = vpop.permute.xlu1 %1379 }
 0x16a   : > { %v1364_v26 = vpop.permute.xlu0 %1363  ;;  %v2057_v42 = vsel %vm2027_vm7, %v2024_v61, %v1380_v30 }
 0x16b   : > { %v2041_v60 = vsel %vm2027_vm7, %v2008_v33, %v1364_v26  ;;  %v3111_v33 = vld [vmem:[%s4607_s10 + $0x58] sm:$0xff]  }
 0x16c   : > { %v3083_v47 = vunpack.c.l.bf16 %v3111_v33  ;;  %v3084_v16 = vunpack.c.h.bf16 %v3111_v33 }
 0x16d   : > { %v1382_v38 = vpop.permute.xlu1 %1381 }
 0x16e   : > { %v1366_v56 = vpop.permute.xlu0 %1365  ;;  %v2059_v28 = vsel %vm2027_vm7, %v2026_v36, %v1382_v38  ;;  %v3072_v38 = vunpack.c.h.bf16 %v3108_v37 }
 0x16f   : > { %v2043_v35 = vsel %vm2027_vm7, %v2010_v58, %v1366_v56 }
 0x171   : > { %v1492_v50 = vpop.permute.xlu1 %1491 }
 0x172   : > { %v1476_v32 = vpop.permute.xlu0 %1475  ;;  %v2090_v2 = vsel %vm2060_vm8, %v2057_v42, %v1492_v50  ;;  %v3103_v42 = vld [vmem:[%s4607_s10 + $0x18] sm:$0xff]  }
 0x173   : > { %v2074_v44 = vsel %vm2060_vm8, %v2041_v60, %v1476_v32  ;;  %v3102_v60 = vld [vmem:[%s4607_s10 + $0x10] sm:$0xff]  }
 0x175   : > { %v1494_v19 = vpop.permute.xlu1 %1493 }
 0x176   : > { %v1478_v34 = vpop.permute.xlu0 %1477  ;;  %v2092_v22 = vsel %vm2060_vm8, %v2059_v28, %v1494_v19  ;;  %v3040_v19 = vunpack.c.h.bf16 %v3038_v21 }
 0x177   : > { %v2076_v63 = vsel %vm2060_vm8, %v2043_v35, %v1478_v34 }
 0x179   : > { %v1764_v53 = vpop.permute.xlu1 %1763 }
 0x17a   : > { %v1748_v9 = vpop.permute.xlu0 %1747  ;;  %v2123_v43 = vsel %vm2093_vm9, %v2090_v2, %v1764_v53  ;;  %v3051_v2 = vunpack.c.l.bf16 %v3103_v42 }
 0x17b   : > { %v2107_v40 = vsel %vm2093_vm9, %v2074_v44, %v1748_v9  ;;  %v3047_v44 = vunpack.c.l.bf16 %v3102_v60 }
 0x17d   : > { %v1766_v57 = vpop.permute.xlu1 %1765 }
 0x17e   : > { %v1750_v3 = vpop.permute.xlu0 %1749  ;;  %v2125_v17 = vsel %vm2093_vm9, %v2092_v22, %v1766_v57 }
 0x17f   : > { %v2109_v29 = vsel %vm2093_vm9, %v2076_v63, %v1750_v3 }
 0x181   : > { %v1892_v51 = vpop.permute.xlu1 %1891 }
 0x182   : > { %v2156_v54 = vsel %vm2126_vm10, %v2123_v43, %v1892_v51  ;;  %v1876_v11 = vpop.permute.xlu0 %1875 }
 0x183   : > { %v2140_v31 = vsel %vm2126_vm10, %v2107_v40, %v1876_v11  ;;  %3169 = vmatprep.mubr.msk.bf16.mxu1 %vm2243_vm11, %v2156_v54  ;;  %v3052_v54 = vunpack.c.h.bf16 %v3103_v42 }
 0x184   : > { %3153 = vmatprep.mubr.msk.bf16.mxu0 %vm2243_vm11, %v2140_v31  ;;  %v3080_v31 = vunpack.c.h.bf16 %v3110_v12 }
 0x185   : > { %v1894_v46 = vpop.permute.xlu1 %1893 }
 0x186   : > { %v2158_v4 = vsel %vm2126_vm10, %v2125_v17, %v1894_v46  ;;  %v1878_v1 = vpop.permute.xlu0 %1877  ;;  %v3048_v17 = vunpack.c.h.bf16 %v3102_v60 }
 0x187   : > { %v2142_v7 = vsel %vm2126_vm10, %v2109_v29, %v1878_v1  ;;  %3170 = vmatmul.mubr.msk.bf16.gmra.mxu1 %vm2243_vm11, %v2158_v4 }
 0x188   : > { %3154 = vmatmul.mubr.msk.bf16.gmra.mxu0 %vm2243_vm11, %v2142_v7 }
 0x18b   : > { %v3159_v6 = vpop.f32.mrf.mxu1 }
 0x18c   : > { %v3143_v52 = vpop.f32.mrf.mxu0  ;;  %v2387_v8 = vadd.f32 %v3159_v6, %v3075_v18 }
 0x18d   : > { %v2323_v5 = vadd.f32 %v3143_v52, %v3043_v27  ;;  %v2378_v0 = vpop.f32.mrf.mxu1  ;;  %v3105_v52 = vld [vmem:[%s4607_s10 + $0x28] sm:$0xff]  }
 0x18e   : > { %v3023_v25 = vpack.c.bf16 %v2387_v8, %v2387_v8  ;;  %v2314_v30 = vpop.f32.mrf.mxu0  ;;  %v2379_v26 = vadd.f32 %v3071_v24, %v2378_v0  ;;  %v3112_v8 = vld [vmem:[%s4607_s10 + $0x60] sm:$0xff]   ;;  %v3059_v0 = vunpack.c.l.bf16 %v3105_v52 }
 0x18f   : > { %v3007_v56 = vpack.c.bf16 %v2323_v5, %v2323_v5  ;;  %v2315_v50 = vadd.f32 %v3039_v48, %v2314_v30  ;;  %v3160_v32 = vpop.f32.mrf.mxu1  ;;  %v3113_v48 = vld [vmem:[%s4607_s10 + $0x68] sm:$0xff]   ;;  %v3104_v5 = vld [vmem:[%s4607_s10 + $0x20] sm:$0xff]  }
 0x190   : > { %2588 = vst.msk [vmem:[%s4632_s14 + $0x48] sm:$0xf] %vm2569_vm12, %v3023_v25  ;;  %v3021_v34 = vpack.c.bf16 %v2379_v26, %v2379_v26  ;;  %v3144_v53 = vpop.f32.mrf.mxu0  ;;  %v2390_v9 = vadd.f32 %v3160_v32, %v3076_v55  ;;  %v3091_v55 = vunpack.c.l.bf16 %v3113_v48  ;;  %v3055_v30 = vunpack.c.l.bf16 %v3104_v5 }
 0x191   : > { %2572 = vst.msk [vmem:[%s4632_s14 + $0x8] sm:$0xf] %vm2569_vm12, %v3007_v56  ;;  %v3005_v13 = vpack.c.bf16 %v2315_v50, %v2315_v50  ;;  %v2326_v39 = vadd.f32 %v3144_v53, %v3044_v15  ;;  %v2381_v59 = vpop.f32.mrf.mxu1  ;;  %v3087_v15 = vunpack.c.l.bf16 %v3112_v8  ;;  %v3092_v56 = vunpack.c.h.bf16 %v3113_v48 }
 0x192   : > { %2586 = vst.msk [vmem:[%s4632_s14 + $0x40] sm:$0xf] %vm2569_vm12, %v3021_v34  ;;  %v3024_v41 = vpack.c.bf16 %v2390_v9, %v2390_v9  ;;  %v2317_v62 = vpop.f32.mrf.mxu0  ;;  %v2382_v57 = vadd.f32 %v3072_v38, %v2381_v59 }
 0x193   : > { %2570 = vst.msk [vmem:[%s4632_s14] sm:$0xf] %vm2569_vm12, %v3005_v13  ;;  %v3008_v20 = vpack.c.bf16 %v2326_v39, %v2326_v39  ;;  %v2318_v61 = vadd.f32 %v3040_v19, %v2317_v62  ;;  %v3060_v19 = vunpack.c.h.bf16 %v3105_v52  ;;  %v3088_v13 = vunpack.c.h.bf16 %v3112_v8 }
 0x194   : > { %2589 = vst.msk [vmem:[%s4632_s14 + $0x4c] sm:$0xf] %vm2569_vm12, %v3024_v41  ;;  %v3022_v3 = vpack.c.bf16 %v2382_v57, %v2382_v57  ;;  %v3056_v62 = vunpack.c.h.bf16 %v3104_v5 }
 0x195   : > { %2573 = vst.msk [vmem:[%s4632_s14 + $0xc] sm:$0xf] %vm2569_vm12, %v3008_v20  ;;  %v3006_v49 = vpack.c.bf16 %v2318_v61, %v2318_v61 }
 0x196   : > { %2587 = vst.msk [vmem:[%s4632_s14 + $0x44] sm:$0xf] %vm2569_vm12, %v3022_v3 }
 0x197   : > { %2571 = vst.msk [vmem:[%s4632_s14 + $0x4] sm:$0xf] %vm2569_vm12, %v3006_v49 }
 0x1cb   : > { %v3163_v14 = vpop.f32.mrf.mxu1 }
 0x1cc   : > { %v3147_v43 = vpop.f32.mrf.mxu0  ;;  %v2403_v51 = vadd.f32 %v3163_v14, %v3083_v47 }
 0x1cd   : > { %v2339_v36 = vadd.f32 %v3147_v43, %v3051_v2  ;;  %v2394_v40 = vpop.f32.mrf.mxu1  ;;  %v3107_v43 = vld [vmem:[%s4607_s10 + $0x38] sm:$0xff]  }
 0x1ce   : > { %v3027_v11 = vpack.c.bf16 %v2403_v51, %v2403_v51  ;;  %v2330_v58 = vpop.f32.mrf.mxu0  ;;  %v2395_v28 = vadd.f32 %v3079_v10, %v2394_v40  ;;  %v3114_v51 = vld [vmem:[%s4607_s10 + $0x70] sm:$0xff]   ;;  %v3067_v40 = vunpack.c.l.bf16 %v3107_v43 }
 0x1cf   : > { %v3011_v35 = vpack.c.bf16 %v2339_v36, %v2339_v36  ;;  %v2331_v22 = vadd.f32 %v3047_v44, %v2330_v58  ;;  %v3164_v63 = vpop.f32.mrf.mxu1  ;;  %v3115_v44 = vld [vmem:[%s4607_s10 + $0x78] sm:$0xff]   ;;  %v3106_v36 = vld [vmem:[%s4607_s10 + $0x30] sm:$0xff]  }
 0x1d0   : > { %2592 = vst.msk [vmem:[%s4632_s14 + $0x58] sm:$0xf] %vm2569_vm12, %v3027_v11  ;;  %v3025_v46 = vpack.c.bf16 %v2395_v28, %v2395_v28  ;;  %v3148_v23 = vpop.f32.mrf.mxu0  ;;  %v2406_v29 = vadd.f32 %v3164_v63, %v3084_v16  ;;  %v3099_v16 = vunpack.c.l.bf16 %v3115_v44  ;;  %v3063_v58 = vunpack.c.l.bf16 %v3106_v36 }
 0x1d1   : > { %2576 = vst.msk [vmem:[%s4632_s14 + $0x18] sm:$0xf] %vm2569_vm12, %v3011_v35  ;;  %v3009_v4 = vpack.c.bf16 %v2331_v22, %v2331_v22  ;;  %v2342_v1 = vadd.f32 %v3148_v23, %v3052_v54  ;;  %v2397_v45 = vpop.f32.mrf.mxu1  ;;  %v3095_v54 = vunpack.c.l.bf16 %v3114_v51  ;;  %v3100_v35 = vunpack.c.h.bf16 %v3115_v44 }
 0x1d2   : > { %2590 = vst.msk [vmem:[%s4632_s14 + $0x50] sm:$0xf] %vm2569_vm12, %v3025_v46  ;;  %v3028_v7 = vpack.c.bf16 %v2406_v29, %v2406_v29  ;;  %v2333_v37 = vpop.f32.mrf.mxu0  ;;  %v2398_v18 = vadd.f32 %v3080_v31, %v2397_v45 }
 0x1d3   : > { %2574 = vst.msk [vmem:[%s4632_s14 + $0x10] sm:$0xf] %vm2569_vm12, %v3009_v4  ;;  %v3012_v21 = vpack.c.bf16 %v2342_v1, %v2342_v1  ;;  %v2334_v27 = vadd.f32 %v3048_v17, %v2333_v37  ;;  %v3068_v17 = vunpack.c.h.bf16 %v3107_v43  ;;  %v3096_v4 = vunpack.c.h.bf16 %v3114_v51 }
 0x1d4   : > { %2593 = vst.msk [vmem:[%s4632_s14 + $0x5c] sm:$0xf] %vm2569_vm12, %v3028_v7  ;;  %v3026_v24 = vpack.c.bf16 %v2398_v18, %v2398_v18  ;;  %v3064_v37 = vunpack.c.h.bf16 %v3106_v36 }
 0x1d5   : > { %2577 = vst.msk [vmem:[%s4632_s14 + $0x1c] sm:$0xf] %vm2569_vm12, %v3012_v21  ;;  %v3010_v6 = vpack.c.bf16 %v2334_v27, %v2334_v27 }
 0x1d6   : > { %2591 = vst.msk [vmem:[%s4632_s14 + $0x54] sm:$0xf] %vm2569_vm12, %v3026_v24 }
 0x1d7   : > { %2575 = vst.msk [vmem:[%s4632_s14 + $0x14] sm:$0xf] %vm2569_vm12, %v3010_v6 }
 0x20b   : > { %v3167_v25 = vpop.f32.mrf.mxu1 }
 0x20c   : > { %v3151_v26 = vpop.f32.mrf.mxu0  ;;  %v2419_v38 = vadd.f32 %v3167_v25, %v3091_v55 }
 0x20d   : > { %v2355_v50 = vadd.f32 %v3151_v26, %v3059_v0  ;;  %v2410_v32 = vpop.f32.mrf.mxu1 }
 0x20e   : > { %v3031_v34 = vpack.c.bf16 %v2419_v38, %v2419_v38  ;;  %v2346_v53 = vpop.f32.mrf.mxu0  ;;  %v2411_v9 = vadd.f32 %v3087_v15, %v2410_v32 }
 0x20f   : > { %v3015_v39 = vpack.c.bf16 %v2355_v50, %v2355_v50  ;;  %v2347_v59 = vadd.f32 %v3055_v30, %v2346_v53  ;;  %v3168_v41 = vpop.f32.mrf.mxu1 }
 0x210   : > { %2596 = vst.msk [vmem:[%s4632_s14 + $0x68] sm:$0xf] %vm2569_vm12, %v3031_v34  ;;  %v3029_v57 = vpack.c.bf16 %v2411_v9, %v2411_v9  ;;  %v3152_v20 = vpop.f32.mrf.mxu0  ;;  %v2422_v61 = vadd.f32 %v3168_v41, %v3092_v56 }
 0x211   : > { %2580 = vst.msk [vmem:[%s4632_s14 + $0x28] sm:$0xf] %vm2569_vm12, %v3015_v39  ;;  %v3013_v3 = vpack.c.bf16 %v2347_v59, %v2347_v59  ;;  %v2358_v49 = vadd.f32 %v3152_v20, %v3060_v19  ;;  %v2413_v33 = vpop.f32.mrf.mxu1 }
 0x212   : > { %2594 = vst.msk [vmem:[%s4632_s14 + $0x60] sm:$0xf] %vm2569_vm12, %v3029_v57  ;;  %v3032_v42 = vpack.c.bf16 %v2422_v61, %v2422_v61  ;;  %v2349_v12 = vpop.f32.mrf.mxu0  ;;  %v2414_v47 = vadd.f32 %v3088_v13, %v2413_v33 }
 0x213   : > { %2578 = vst.msk [vmem:[%s4632_s14 + $0x20] sm:$0xf] %vm2569_vm12, %v3013_v3  ;;  %v3016_v60 = vpack.c.bf16 %v2358_v49, %v2358_v49  ;;  %v2350_v2 = vadd.f32 %v3056_v62, %v2349_v12 }
 0x214   : > { %2597 = vst.msk [vmem:[%s4632_s14 + $0x6c] sm:$0xf] %vm2569_vm12, %v3032_v42  ;;  %v3030_v10 = vpack.c.bf16 %v2414_v47, %v2414_v47 }
 0x215   : > { %2581 = vst.msk [vmem:[%s4632_s14 + $0x2c] sm:$0xf] %vm2569_vm12, %v3016_v60  ;;  %v3014_v14 = vpack.c.bf16 %v2350_v2, %v2350_v2 }
 0x216   : > { %2595 = vst.msk [vmem:[%s4632_s14 + $0x64] sm:$0xf] %vm2569_vm12, %v3030_v10 }
 0x217   : > { %2579 = vst.msk [vmem:[%s4632_s14 + $0x24] sm:$0xf] %vm2569_vm12, %v3014_v14 }
 0x247   : > { %v3171_v11 = vpop.f32.mrf.mxu1 }
 0x248   : > { %v3155_v28 = vpop.f32.mrf.mxu0  ;;  %v2435_v31 = vadd.f32 %v3171_v11, %v3099_v16 }
 0x249   : > { %v2371_v22 = vadd.f32 %v3155_v28, %v3067_v40  ;;  %v2426_v63 = vpop.f32.mrf.mxu1 }
 0x24a   : > { %v3035_v46 = vpack.c.bf16 %v2435_v31, %v2435_v31  ;;  %v2362_v23 = vpop.f32.mrf.mxu0  ;;  %v2427_v29 = vadd.f32 %v3095_v54, %v2426_v63 }
 0x24b   : > { %v3019_v1 = vpack.c.bf16 %v2371_v22, %v2371_v22  ;;  %v2363_v45 = vadd.f32 %v3063_v58, %v2362_v23  ;;  %v3172_v7 = vpop.f32.mrf.mxu1 }
 0x24c   : > { %2600 = vst.msk [vmem:[%s4632_s14 + $0x78] sm:$0xf] %vm2569_vm12, %v3035_v46  ;;  %v3033_v18 = vpack.c.bf16 %v2427_v29, %v2427_v29  ;;  %v3156_v21 = vpop.f32.mrf.mxu0  ;;  %v2438_v27 = vadd.f32 %v3172_v7, %v3100_v35 }
 0x24d   : > { %2584 = vst.msk [vmem:[%s4632_s14 + $0x38] sm:$0xf] %vm2569_vm12, %v3019_v1  ;;  %v3017_v24 = vpack.c.bf16 %v2363_v45, %v2363_v45  ;;  %v2374_v6 = vadd.f32 %v3156_v21, %v3068_v17  ;;  %v2429_v48 = vpop.f32.mrf.mxu1 }
 0x24e   : > { %2598 = vst.msk [vmem:[%s4632_s14 + $0x70] sm:$0xf] %vm2569_vm12, %v3033_v18  ;;  %v3036_v52 = vpack.c.bf16 %v2438_v27, %v2438_v27  ;;  %v2365_v8 = vpop.f32.mrf.mxu0  ;;  %v2430_v55 = vadd.f32 %v3096_v4, %v2429_v48 }
 0x24f   : > { %2582 = vst.msk [vmem:[%s4632_s14 + $0x30] sm:$0xf] %vm2569_vm12, %v3017_v24  ;;  %v3020_v5 = vpack.c.bf16 %v2374_v6, %v2374_v6  ;;  %v2366_v0 = vadd.f32 %v3064_v37, %v2365_v8 }
 0x250   : > { %2601 = vst.msk [vmem:[%s4632_s14 + $0x7c] sm:$0xf] %vm2569_vm12, %v3036_v52  ;;  %v3034_v15 = vpack.c.bf16 %v2430_v55, %v2430_v55 }
 0x251   : > { %2585 = vst.msk [vmem:[%s4632_s14 + $0x3c] sm:$0xf] %vm2569_vm12, %v3020_v5  ;;  %v3018_v25 = vpack.c.bf16 %v2366_v0, %v2366_v0 }
 0x252   : > { %2599 = vst.msk [vmem:[%s4632_s14 + $0x74] sm:$0xf] %vm2569_vm12, %v3034_v15 }
 0x253   : > { %2583 = vst.msk [vmem:[%s4632_s14 + $0x34] sm:$0xf] %vm2569_vm12, %v3018_v25 }
 0x254 PF: > { %s13_s12 = sadd.s32 1, %s3351_s12  }
 0x255   : > { %p10_p5 = scmp.ge.s32.totalorder %s13_s12, 4  }
 0x257   :  { %12 = sbr.rel (!%p10_p5) target bundleno = 1 (0x1), region = 67 }

// kernel: conv_trans_block_forward.8
= control target key start
LH: loop header
LB: loop body
LE: loop exit
PB: predicated region body
PF: predicated region fallthrough
CT: control target
= control target key end

     0   :  { %s4766_s29 = smov 0   ;;  %s6130_s0 = inlined_call_operand.vmem [shape: bf16[512,4], index: 0, kind: input, shape index: {}]   ;;  %s6131_s1 = inlined_call_operand.vmem [shape: f32[1,4], index: 1, kind: input, shape index: {}]   ;;  %s6132_s2 = inlined_call_operand.vmem [shape: f32[1,4], index: 2, kind: input, shape index: {}]   ;;  %s6133_s3 = inlined_call_operand.vmem [shape: bf16[4,12], index: 3, kind: input, shape index: {}]   ;;  %s6134_s4 = inlined_call_operand.vmem [shape: f32[1,12], index: 4, kind: input, shape index: {}]   ;;  %s6135_s5 = inlined_call_operand.vmem [shape: f32[2,16,16], index: 5, kind: input, shape index: {}]   ;;  %s6136_s6 = inlined_call_operand.vmem [shape: bf16[4,4], index: 6, kind: input, shape index: {}]   ;;  %s6137_s7 = inlined_call_operand.vmem [shape: f32[1,4], index: 7, kind: input, shape index: {}]   ;;  %s6138_s8 = inlined_call_operand.vmem [shape: f32[1,4], index: 8, kind: input, shape index: {}]   ;;  %s6139_s9 = inlined_call_operand.vmem [shape: f32[1,4], index: 9, kind: input, shape index: {}]   ;;  %s6140_s10 = inlined_call_operand.vmem [shape: bf16[4,16], index: 10, kind: input, shape index: {}]   ;;  %s6141_s11 = inlined_call_operand.vmem [shape: f32[1,16], index: 11, kind: input, shape index: {}]   ;;  %s6142_s12 = inlined_call_operand.vmem [shape: bf16[16,4], index: 12, kind: input, shape index: {}]   ;;  %s6143_s13 = inlined_call_operand.vmem [shape: f32[1,4], index: 13, kind: input, shape index: {}]   ;;  %s6144_s14 = inlined_call_operand.vmem [shape: bf16[512,4], index: 14, kind: output, shape index: {}]  }
   0x1 LB: > { %s3867_s30 = sadd.s32 4294967295, %s4681_s29   ;;  %p3871_p0 = scmp.ge.s32.totalorder %s4681_s29, 1  ;;  %s4681_s29 = sphi %s4766_s29, %s24_s29  }
   0x2   : > { %p413_p1 = scmp.lt.s32.totalorder %s4681_s29, 5 }
   0x4   : > { %p414_p2 = pnand %p3871_p0, %p413_p1 }
   0x6   : > { %417 = sbr.rel (%p414_p2) target bundleno = 3187 (0xc73), region = 76 }
   0xb   : > { %s3872_s15 = sshll.u32 %s3867_s30, 4  ;;  %vm504_vm0 = vcmask 31744   ;;  %vm800_vm1 = vcmask 1041408   ;;  %vm4684_vm2 = vmmov 0   ;;  %s4685_s28 = smov 124   ;;  %vm914_vm3 = vcmask 15360  }
   0xc   : > { %p460_p3 = scmp.lt.s32.totalorder %s3872_s15, 63  ;;  %s4686_s30 = smov 120   ;;  %vm1312_vm4 = vcmask 130048   ;;  %vm3794_vm5 = vcmask 27648  }
   0xd   : > { %s4687_s21 = smov 122   ;;  %s4688_s22 = smov 126  }
   0xe   : > { %s6155_s15 = smov (!%p460_p3, %s3872_s15), 63  ;;  %s4689_s27 = smov 118  }
   0xf   : > { %s3873_s16 = sshll.u32 %s6155_s15, 2 }
  0x10   : > { %s4782_s19 = scalar_lea.vmem %s6130_s0, %s3873_s16 }
  0x11   : > { %v3986_v0 = vld [vmem:[%s4782_s19] sm:$0xff]   ;;  %v4017_v1 = vld [vmem:[%s4782_s19 + $0x8] sm:$0xff]   ;;  %v4018_v6 = vld [vmem:[%s4782_s19 + $0x10] sm:$0xff]  }
  0x12   : > { %v4786_v2 = vunpack.c.l.bf16 %v3986_v0  ;;  %v4788_v3 = vunpack.c.l.bf16 %v4017_v1  ;;  %v4790_v4 = vunpack.c.h.bf16 %v3986_v0  ;;  %v4792_v5 = vunpack.c.h.bf16 %v4017_v1  ;;  %v4019_v13 = vld [vmem:[%s4782_s19 + $0x18] sm:$0xff]   ;;  %v4020_v18 = vld [vmem:[%s4782_s19 + $0x20] sm:$0xff]   ;;  %v4021_v23 = vld [vmem:[%s4782_s19 + $0x28] sm:$0xff]  }
  0x13   : > { %v4803_v11 = vunpack.c.l.bf16 %v4018_v6  ;;  %v4805_v12 = vunpack.c.h.bf16 %v4018_v6  ;;  %v4812_v16 = vunpack.c.l.bf16 %v4019_v13  ;;  %v4814_v17 = vunpack.c.h.bf16 %v4019_v13  ;;  %v4022_v28 = vld [vmem:[%s4782_s19 + $0x30] sm:$0xff]   ;;  %v4023_v33 = vld [vmem:[%s4782_s19 + $0x38] sm:$0xff]  }
  0x14   : > { %v505_v7 = vsel %vm504_vm0, %v4786_v2, 0.0  ;;  %v511_v8 = vsel %vm504_vm0, %v4788_v3, 0.0  ;;  %v508_v9 = vsel %vm504_vm0, %v4790_v4, 0.0  ;;  %v514_v10 = vsel %vm504_vm0, %v4792_v5, 0.0 }
  0x15   : > { %506 = vadd.xlane.f32.xlu0 %v505_v7  ;;  %512 = vadd.xlane.f32.xlu1 %v511_v8  ;;  %v517_v14 = vsel %vm504_vm0, %v4803_v11, 0.0  ;;  %v520_v15 = vsel %vm504_vm0, %v4805_v12, 0.0  ;;  %v523_v19 = vsel %vm504_vm0, %v4812_v16, 0.0  ;;  %v526_v20 = vsel %vm504_vm0, %v4814_v17, 0.0 }
  0x16   : > { %v4821_v21 = vunpack.c.l.bf16 %v4020_v18  ;;  %v4823_v22 = vunpack.c.h.bf16 %v4020_v18  ;;  %v4830_v26 = vunpack.c.l.bf16 %v4021_v23  ;;  %v4832_v27 = vunpack.c.h.bf16 %v4021_v23 }
  0x17   : > { %v4839_v31 = vunpack.c.l.bf16 %v4022_v28  ;;  %v4841_v32 = vunpack.c.h.bf16 %v4022_v28  ;;  %v4848_v36 = vunpack.c.l.bf16 %v4023_v33  ;;  %v4850_v37 = vunpack.c.h.bf16 %v4023_v33 }
  0x18   : > { %v529_v24 = vsel %vm504_vm0, %v4821_v21, 0.0  ;;  %v532_v25 = vsel %vm504_vm0, %v4823_v22, 0.0  ;;  %v535_v29 = vsel %vm504_vm0, %v4830_v26, 0.0  ;;  %v538_v30 = vsel %vm504_vm0, %v4832_v27, 0.0 }
  0x19   : > { %509 = vadd.xlane.f32.xlu0 %v508_v9  ;;  %515 = vadd.xlane.f32.xlu1 %v514_v10  ;;  %6149 = vst [vmem:[#allocation2_spill] sm:$0xff] %v4841_v32  ;;  %v541_v34 = vsel %vm504_vm0, %v4839_v31, 0.0  ;;  %v544_v35 = vsel %vm504_vm0, %v4841_v32, 0.0  ;;  %6150 = vst [vmem:[#allocation3_spill] sm:$0xff] %v4850_v37  ;;  %v547_v38 = vsel %vm504_vm0, %v4848_v36, 0.0  ;;  %v550_v39 = vsel %vm504_vm0, %v4850_v37, 0.0 }
  0x1d   : > { %518 = vadd.xlane.f32.xlu0 %v517_v14  ;;  %521 = vadd.xlane.f32.xlu1 %v520_v15 }
  0x21   : > { %524 = vadd.xlane.f32.xlu0 %v523_v19  ;;  %527 = vadd.xlane.f32.xlu1 %v526_v20 }
  0x25   : > { %530 = vadd.xlane.f32.xlu0 %v529_v24  ;;  %533 = vadd.xlane.f32.xlu1 %v532_v25 }
  0x29   : > { %536 = vadd.xlane.f32.xlu0 %v535_v29  ;;  %539 = vadd.xlane.f32.xlu1 %v538_v30 }
  0x2d   : > { %542 = vadd.xlane.f32.xlu0 %v541_v34  ;;  %545 = vadd.xlane.f32.xlu1 %v544_v35 }
  0x31   : > { %548 = vadd.xlane.f32.xlu0 %v547_v38  ;;  %551 = vadd.xlane.f32.xlu1 %v550_v39 }
  0x9e   : > { %v507_v40 = vpop.xlane.xlu0 %506  ;;  %v513_v41 = vpop.xlane.xlu1 %512 }
  0x9f   : > { %v554_v42 = vmul.f32 0.25, %v507_v40  ;;  %v556_v43 = vmul.f32 0.25, %v513_v41 }
  0xa1   : > { %v4857_v44 = vsub.f32 %v4786_v2, %v554_v42  ;;  %v4860_v45 = vsub.f32 %v4788_v3, %v556_v43 }
  0xa2   : > { %v510_v46 = vpop.xlane.xlu0 %509  ;;  %v516_v47 = vpop.xlane.xlu1 %515 }
  0xa3   : > { %v555_v48 = vmul.f32 0.25, %v510_v46  ;;  %v557_v49 = vmul.f32 0.25, %v516_v47  ;;  %v586_v50 = vmul.f32 %v4857_v44, %v4857_v44  ;;  %v588_v51 = vmul.f32 %v4860_v45, %v4860_v45 }
  0xa5   : > { %v4867_v52 = vsub.f32 %v4790_v4, %v555_v48  ;;  %v4870_v53 = vsub.f32 %v4792_v5, %v557_v49  ;;  %v602_v54 = vsel %vm504_vm0, %v586_v50, 0.0  ;;  %v608_v57 = vsel %vm504_vm0, %v588_v51, 0.0 }
  0xa6   : > { %603 = vadd.xlane.f32.xlu0 %v602_v54  ;;  %v519_v55 = vpop.xlane.xlu0 %518  ;;  %v522_v56 = vpop.xlane.xlu1 %521 }
  0xa7   : > { %v558_v58 = vmul.f32 0.25, %v519_v55  ;;  %v559_v59 = vmul.f32 0.25, %v522_v56  ;;  %v587_v60 = vmul.f32 %v4867_v52, %v4867_v52  ;;  %v589_v61 = vmul.f32 %v4870_v53, %v4870_v53 }
  0xa9   : > { %v4879_v62 = vsub.f32 %v4803_v11, %v558_v58  ;;  %v4882_v63 = vsub.f32 %v4805_v12, %v559_v59  ;;  %v605_v0 = vsel %vm504_vm0, %v587_v60, 0.0  ;;  %v611_v7 = vsel %vm504_vm0, %v589_v61, 0.0 }
  0xaa   : > { %609 = vadd.xlane.f32.xlu0 %v608_v57  ;;  %606 = vadd.xlane.f32.xlu1 %v605_v0  ;;  %v525_v1 = vpop.xlane.xlu0 %524  ;;  %v528_v6 = vpop.xlane.xlu1 %527 }
  0xab   : > { %v560_v8 = vmul.f32 0.25, %v525_v1  ;;  %v561_v9 = vmul.f32 0.25, %v528_v6  ;;  %v590_v10 = vmul.f32 %v4879_v62, %v4879_v62  ;;  %v591_v13 = vmul.f32 %v4882_v63, %v4882_v63 }
  0xad   : > { %v4891_v14 = vsub.f32 %v4812_v16, %v560_v8  ;;  %v4894_v15 = vsub.f32 %v4814_v17, %v561_v9  ;;  %v614_v18 = vsel %vm504_vm0, %v590_v10, 0.0  ;;  %v617_v23 = vsel %vm504_vm0, %v591_v13, 0.0 }
  0xae   : > { %612 = vadd.xlane.f32.xlu1 %v611_v7  ;;  %615 = vadd.xlane.f32.xlu0 %v614_v18  ;;  %v531_v19 = vpop.xlane.xlu0 %530  ;;  %v534_v20 = vpop.xlane.xlu1 %533 }
  0xaf   : > { %v562_v24 = vmul.f32 0.25, %v531_v19  ;;  %v563_v25 = vmul.f32 0.25, %v534_v20  ;;  %v592_v28 = vmul.f32 %v4891_v14, %v4891_v14  ;;  %v593_v29 = vmul.f32 %v4894_v15, %v4894_v15 }
  0xb1   : > { %v4903_v30 = vsub.f32 %v4821_v21, %v562_v24  ;;  %v4906_v33 = vsub.f32 %v4823_v22, %v563_v25  ;;  %v620_v34 = vsel %vm504_vm0, %v592_v28, 0.0  ;;  %v623_v39 = vsel %vm504_vm0, %v593_v29, 0.0  ;;  %v768_v28 = vld [vmem:[%s6133_s3] sm:$0x3] }
  0xb2   : > { %618 = vadd.xlane.f32.xlu1 %v617_v23  ;;  %621 = vadd.xlane.f32.xlu0 %v620_v34  ;;  %v537_v35 = vpop.xlane.xlu0 %536  ;;  %v540_v38 = vpop.xlane.xlu1 %539  ;;  %v802_v29 = vsel %vm800_vm1, %v768_v28, 0 }
  0xb3   : > { %v564_v40 = vmul.f32 0.25, %v537_v35  ;;  %v565_v41 = vmul.f32 0.25, %v540_v38  ;;  %v594_v42 = vmul.f32 %v4903_v30, %v4903_v30  ;;  %v595_v43 = vmul.f32 %v4906_v33, %v4906_v33  ;;  %4390 = vmatprep.subr.msk.bf16.mxu0 %vm800_vm1, %v768_v28  ;;  %4391 = vmatprep.subr.msk.bf16.mxu1 %vm800_vm1, %v768_v28 }
  0xb4   : > { %4125 = vmatpush3.bf16.msra.mxu0 %v802_v29  ;;  %4389 = vmatpush3.bf16.msra.mxu1 %v802_v29 }
  0xb5   : > { %v4915_v46 = vsub.f32 %v4830_v26, %v564_v40  ;;  %v4918_v47 = vsub.f32 %v4832_v27, %v565_v41  ;;  %v626_v48 = vsel %vm504_vm0, %v594_v42, 0.0  ;;  %v629_v51 = vsel %vm504_vm0, %v595_v43, 0.0 }
  0xb6   : > { %624 = vadd.xlane.f32.xlu1 %v623_v39  ;;  %627 = vadd.xlane.f32.xlu0 %v626_v48  ;;  %v543_v49 = vpop.xlane.xlu0 %542  ;;  %v546_v50 = vpop.xlane.xlu1 %545 }
  0xb7   : > { %v566_v54 = vmul.f32 0.25, %v543_v49  ;;  %v567_v55 = vmul.f32 0.25, %v546_v50  ;;  %v596_v56 = vmul.f32 %v4915_v46, %v4915_v46  ;;  %v597_v57 = vmul.f32 %v4918_v47, %v4918_v47 }
  0xb9   : > { %v4927_v58 = vsub.f32 %v4839_v31, %v566_v54  ;;  %v4930_v59 = vsub.f32 %v4841_v32, %v567_v55  ;;  %v632_v60 = vsel %vm504_vm0, %v596_v56, 0.0  ;;  %v635_v1 = vsel %vm504_vm0, %v597_v57, 0.0 }
  0xba   : > { %630 = vadd.xlane.f32.xlu1 %v629_v51  ;;  %633 = vadd.xlane.f32.xlu0 %v632_v60  ;;  %v549_v61 = vpop.xlane.xlu0 %548  ;;  %v552_v0 = vpop.xlane.xlu1 %551 }
  0xbb   : > { %v568_v6 = vmul.f32 0.25, %v549_v61  ;;  %v569_v7 = vmul.f32 0.25, %v552_v0  ;;  %v598_v8 = vmul.f32 %v4927_v58, %v4927_v58  ;;  %v599_v9 = vmul.f32 %v4930_v59, %v4930_v59 }
  0xbd   : > { %v4939_v10 = vsub.f32 %v4848_v36, %v568_v6  ;;  %v4942_v13 = vsub.f32 %v4850_v37, %v569_v7  ;;  %v638_v18 = vsel %vm504_vm0, %v598_v8, 0.0  ;;  %v641_v19 = vsel %vm504_vm0, %v599_v9, 0.0 }
  0xbe   : > { %636 = vadd.xlane.f32.xlu1 %v635_v1  ;;  %639 = vadd.xlane.f32.xlu0 %v638_v18 }
  0xbf   : > { %v600_v20 = vmul.f32 %v4939_v10, %v4939_v10  ;;  %v601_v23 = vmul.f32 %v4942_v13, %v4942_v13 }
  0xc1   : > { %v644_v24 = vsel %vm504_vm0, %v600_v20, 0.0  ;;  %v647_v25 = vsel %vm504_vm0, %v601_v23, 0.0 }
  0xc2   : > { %642 = vadd.xlane.f32.xlu1 %v641_v19  ;;  %645 = vadd.xlane.f32.xlu0 %v644_v24 }
  0xc6   : > { %648 = vadd.xlane.f32.xlu1 %v647_v25  ;;  %v4962_v25 = vld [vmem:[%s6131_s1] ss:$0 sm:$0xff] }
 0x12f   : > { %v604_v34 = vpop.xlane.xlu0 %603 }
 0x130   : > { %v650_v35 = vmul.f32 0.25, %v604_v34 }
 0x132   : > { %v666_v38 = vadd.f32 1e-05, %v650_v35 }
 0x133   : > { %v607_v39 = vpop.xlane.xlu1 %606  ;;  %v610_v40 = vpop.xlane.xlu0 %609 }
 0x134   : > { %4451 = vrsqrt.f32 %v666_v38  ;;  %v651_v41 = vmul.f32 0.25, %v607_v39  ;;  %v652_v42 = vmul.f32 0.25, %v610_v40 }
 0x136   : > { %v667_v43 = vadd.f32 1e-05, %v651_v41  ;;  %v668_v48 = vadd.f32 1e-05, %v652_v42 }
 0x137   : > { %v613_v49 = vpop.xlane.xlu1 %612  ;;  %v616_v50 = vpop.xlane.xlu0 %615 }
 0x138   : > { %4453 = vrsqrt.f32 %v667_v43  ;;  %v653_v51 = vmul.f32 0.25, %v613_v49  ;;  %v654_v54 = vmul.f32 0.25, %v616_v50 }
 0x139   : > { %4455 = vrsqrt.f32 %v668_v48 }
 0x13a   : > { %v669_v55 = vadd.f32 1e-05, %v653_v51  ;;  %v670_v56 = vadd.f32 1e-05, %v654_v54 }
 0x13b   : > { %v619_v57 = vpop.xlane.xlu1 %618  ;;  %v622_v60 = vpop.xlane.xlu0 %621 }
 0x13c   : > { %4457 = vrsqrt.f32 %v669_v55  ;;  %v655_v61 = vmul.f32 0.25, %v619_v57  ;;  %v656_v0 = vmul.f32 0.25, %v622_v60 }
 0x13d   : > { %4459 = vrsqrt.f32 %v670_v56 }
 0x13e   : > { %v671_v1 = vadd.f32 1e-05, %v655_v61  ;;  %v672_v6 = vadd.f32 1e-05, %v656_v0 }
 0x13f   : > { %v625_v7 = vpop.xlane.xlu1 %624  ;;  %v628_v8 = vpop.xlane.xlu0 %627 }
 0x140   : > { %4461 = vrsqrt.f32 %v671_v1  ;;  %v657_v9 = vmul.f32 0.25, %v625_v7  ;;  %v658_v18 = vmul.f32 0.25, %v628_v8 }
 0x141   : > { %v4452_v19 = vpop.eup %4451  ;;  %4463 = vrsqrt.f32 %v672_v6 }
 0x142   : > { %v673_v20 = vadd.f32 1e-05, %v657_v9  ;;  %v674_v23 = vadd.f32 1e-05, %v658_v18  ;;  %v698_v24 = vmul.f32 %v4452_v19, %v4857_v44  ;;  %v4969_v44 = vld [vmem:[%s6132_s2] ss:$0 sm:$0xff] }
 0x143   : > { %v631_v28 = vpop.xlane.xlu1 %630  ;;  %v634_v29 = vpop.xlane.xlu0 %633 }
 0x144   : > { %4465 = vrsqrt.f32 %v673_v20  ;;  %v659_v34 = vmul.f32 0.25, %v631_v28  ;;  %v660_v35 = vmul.f32 0.25, %v634_v29  ;;  %v721_v39 = vmul.f32 %v4962_v25, %v698_v24 }
 0x145   : > { %v4454_v38 = vpop.eup %4453  ;;  %4467 = vrsqrt.f32 %v674_v23 }
 0x146   : > { %v4456_v40 = vpop.eup %4455  ;;  %v675_v41 = vadd.f32 1e-05, %v659_v34  ;;  %v676_v42 = vadd.f32 1e-05, %v660_v35  ;;  %v699_v43 = vmul.f32 %v4454_v38, %v4867_v52  ;;  %v744_v57 = vadd.f32 %v4969_v44, %v721_v39 }
 0x147   : > { %v637_v48 = vpop.xlane.xlu1 %636  ;;  %v640_v49 = vpop.xlane.xlu0 %639  ;;  %v700_v50 = vmul.f32 %v4456_v40, %v4860_v45 }
 0x148   : > { %4469 = vrsqrt.f32 %v675_v41  ;;  %v661_v51 = vmul.f32 0.25, %v637_v48  ;;  %v662_v54 = vmul.f32 0.25, %v640_v49  ;;  %v722_v55 = vmul.f32 %v4962_v25, %v699_v43 }
 0x149   : > { %v4458_v56 = vpop.eup %4457  ;;  %4471 = vrsqrt.f32 %v676_v42  ;;  %v723_v45 = vmul.f32 %v4962_v25, %v700_v50 }
 0x14a   : > { %v4460_v60 = vpop.eup %4459  ;;  %v677_v52 = vadd.f32 1e-05, %v661_v51  ;;  %v678_v61 = vadd.f32 1e-05, %v662_v54  ;;  %v745_v0 = vadd.f32 %v4969_v44, %v722_v55  ;;  %v701_v1 = vmul.f32 %v4458_v56, %v4870_v53 }
 0x14b   : > { %v643_v6 = vpop.xlane.xlu1 %642  ;;  %v646_v7 = vpop.xlane.xlu0 %645  ;;  %v702_v8 = vmul.f32 %v4460_v60, %v4879_v62  ;;  %v746_v62 = vadd.f32 %v4969_v44, %v723_v45 }
 0x14c   : > { %4473 = vrsqrt.f32 %v677_v52  ;;  %v663_v9 = vmul.f32 0.25, %v643_v6  ;;  %v664_v18 = vmul.f32 0.25, %v646_v7  ;;  %v760_v19 = vpack.c.bf16 %v745_v0, %v744_v57 }
 0x14d   : > { %v4462_v20 = vpop.eup %4461  ;;  %4475 = vrsqrt.f32 %v678_v61  ;;  %v724_v23 = vmul.f32 %v4962_v25, %v701_v1  ;;  %v725_v24 = vmul.f32 %v4962_v25, %v702_v8 }
 0x14e   : > { %v4464_v28 = vpop.eup %4463  ;;  %v679_v29 = vadd.f32 1e-05, %v663_v9  ;;  %v680_v34 = vadd.f32 1e-05, %v664_v18  ;;  %4126 = vmatprep.mubr.msk.bf16.mxu0 %vm504_vm0, %v760_v19  ;;  %v703_v53 = vmul.f32 %v4462_v20, %v4882_v63 }
 0x14f   : > { %v649_v35 = vpop.xlane.xlu1 %648  ;;  %v747_v38 = vadd.f32 %v4969_v44, %v724_v23  ;;  %v704_v39 = vmul.f32 %v4464_v28, %v4891_v14  ;;  %v748_v48 = vadd.f32 %v4969_v44, %v725_v24 }
 0x150   : > { %4477 = vrsqrt.f32 %v679_v29  ;;  %v665_v40 = vmul.f32 0.25, %v649_v35  ;;  %v726_v41 = vmul.f32 %v4962_v25, %v703_v53 }
 0x151   : > { %v4466_v42 = vpop.eup %4465  ;;  %4479 = vrsqrt.f32 %v680_v34  ;;  %v761_v43 = vpack.c.bf16 %v747_v38, %v746_v62  ;;  %v727_v54 = vmul.f32 %v4962_v25, %v704_v39 }
 0x152   : > { %v4468_v49 = vpop.eup %4467  ;;  %v681_v50 = vadd.f32 1e-05, %v665_v40  ;;  %v749_v63 = vadd.f32 %v4969_v44, %v726_v41  ;;  %v705_v51 = vmul.f32 %v4466_v42, %v4894_v15 }
 0x153   : > { %4127 = vmatmul.mubr.msk.bf16.vlgmr.msra.gmra.mxu0 %vm504_vm0, %v761_v43  ;;  %v706_v14 = vmul.f32 %v4468_v49, %v4903_v30  ;;  %v750_v52 = vadd.f32 %v4969_v44, %v727_v54  ;;  %v6145_v49 = vmov 0.0  }
 0x154   : > { %4481 = vrsqrt.f32 %v681_v50  ;;  %v762_v55 = vpack.c.bf16 %v749_v63, %v748_v48  ;;  %v728_v56 = vmul.f32 %v4962_v25, %v705_v51  ;;  %4142 = vmatprep.subr.bf16.mxu1 %v6145_v49  ;;  %4166 = vmatprep.subr.bf16.mxu0 %v6145_v49  ;;  %v3878_v50 = vld [vmem:[%s6134_s4] ss:$0 sm:$0xff] }
 0x155   : > { %v4470_v57 = vpop.eup %4469  ;;  %v729_v0 = vmul.f32 %v4962_v25, %v706_v14 }
 0x156   : > { %v4472_v60 = vpop.eup %4471  ;;  %4130 = vmatprep.mubr.msk.bf16.mxu0 %vm504_vm0, %v762_v55  ;;  %v751_v61 = vadd.f32 %v4969_v44, %v728_v56  ;;  %v707_v15 = vmul.f32 %v4470_v57, %v4906_v33 }
 0x157   : > { %v708_v1 = vmul.f32 %v4472_v60, %v4915_v46  ;;  %v752_v8 = vadd.f32 %v4969_v44, %v729_v0 }
 0x158   : > { %v763_v6 = vpack.c.bf16 %v751_v61, %v750_v52  ;;  %v730_v30 = vmul.f32 %v4962_v25, %v707_v15 }
 0x159   : > { %v4474_v7 = vpop.eup %4473  ;;  %v731_v19 = vmul.f32 %v4962_v25, %v708_v1 }
 0x15a   : > { %v4476_v45 = vpop.eup %4475  ;;  %v753_v9 = vadd.f32 %v4969_v44, %v730_v30  ;;  %v709_v18 = vmul.f32 %v4474_v7, %v4918_v47 }
 0x15b   : > { %4131 = vmatmul.mubr.msk.bf16.gmra.mxu0 %vm504_vm0, %v763_v6  ;;  %v710_v33 = vmul.f32 %v4476_v45, %v4927_v58  ;;  %v754_v28 = vadd.f32 %v4969_v44, %v731_v19 }
 0x15c   : > { %v764_v20 = vpack.c.bf16 %v753_v9, %v752_v8  ;;  %v732_v46 = vmul.f32 %v4962_v25, %v709_v18  ;;  %4168 = vmatprep.mubr.msk.bf16.mxu0 %vm4684_vm2, %v6145_v49 }
 0x15d   : > { %v4478_v23 = vpop.eup %4477  ;;  %v733_v47 = vmul.f32 %v4962_v25, %v710_v33 }
 0x15e   : > { %v4480_v24 = vpop.eup %4479  ;;  %4134 = vmatprep.mubr.msk.bf16.mxu1 %vm504_vm0, %v764_v20  ;;  %v755_v29 = vadd.f32 %v4969_v44, %v732_v46  ;;  %v711_v34 = vmul.f32 %v4478_v23, %v4930_v59 }
 0x15f   : > { %v712_v53 = vmul.f32 %v4480_v24, %v4939_v10  ;;  %v756_v38 = vadd.f32 %v4969_v44, %v733_v47 }
 0x160   : > { %v765_v35 = vpack.c.bf16 %v755_v29, %v754_v28  ;;  %v734_v58 = vmul.f32 %v4962_v25, %v711_v34 }
 0x161   : > { %v4482_v62 = vpop.eup %4481  ;;  %v735_v41 = vmul.f32 %v4962_v25, %v712_v53 }
 0x162   : > { %4135 = vmatmul.mubr.msk.bf16.vlgmr.msra.gmra.mxu1 %vm504_vm0, %v765_v35  ;;  %v757_v39 = vadd.f32 %v4969_v44, %v734_v58  ;;  %v713_v40 = vmul.f32 %v4482_v62, %v4942_v13 }
 0x163   : > { %v758_v10 = vadd.f32 %v4969_v44, %v735_v41 }
 0x164   : > { %v766_v42 = vpack.c.bf16 %v757_v39, %v756_v38  ;;  %v736_v59 = vmul.f32 %v4962_v25, %v713_v40 }
 0x166   : > { %4138 = vmatprep.mubr.msk.bf16.mxu1 %vm504_vm0, %v766_v42  ;;  %v759_v43 = vadd.f32 %v4969_v44, %v736_v59 }
 0x168   : > { %v767_v48 = vpack.c.bf16 %v759_v43, %v758_v10 }
 0x16a   : > { %4139 = vmatmul.mubr.msk.bf16.gmra.mxu1 %vm504_vm0, %v767_v48 }
 0x16b   : > { %4144 = vmatprep.mubr.msk.bf16.mxu1 %vm4684_vm2, %v6145_v49 }
 0x213   : > { %v4128_v13 = vpop.f32.mrf.mxu0 }
 0x214   : > { %v847_v51 = vadd.f32 %v4128_v13, %v3878_v50 }
 0x215   : > { %v838_v25 = vpop.f32.mrf.mxu0 }
 0x216   : > { %v839_v14 = vadd.f32 %v3878_v50, %v838_v25 }
 0x217   : > { %v4129_v63 = vpop.f32.mrf.mxu0 }
 0x218   : > { %v850_v54 = vadd.f32 %v4129_v63, %v3878_v50 }
 0x219   : > { %v841_v44 = vpop.f32.mrf.mxu0 }
 0x21a   : > { %v5033_v55 = vpack.c.bf16 %v850_v54, %v847_v51  ;;  %v842_v56 = vadd.f32 %v3878_v50, %v841_v44 }
 0x21b   : > { %v4132_v57 = vpop.f32.mrf.mxu0 }
 0x21c   : > { %v5035_v60 = vpack.c.bf16 %v842_v56, %v839_v14  ;;  %963 = vrot.lane.b32.xlu1 %v5033_v55, %s4685_s28  ;;  %v863_v8 = vadd.f32 %v4132_v57, %v3878_v50 }
 0x21d   : > { %v854_v52 = vpop.f32.mrf.mxu0 }
 0x21e   : > { %912 = vrot.lane.b32.xlu0 %v5035_v60, %s4685_s28  ;;  %v855_v0 = vadd.f32 %v3878_v50, %v854_v52 }
 0x21f   : > { %v4133_v61 = vpop.f32.mrf.mxu0 }
 0x220   : > { %v866_v30 = vadd.f32 %v4133_v61, %v3878_v50 }
 0x221   : > { %v857_v15 = vpop.f32.mrf.mxu0 }
 0x222   : > { %v858_v1 = vadd.f32 %v3878_v50, %v857_v15  ;;  %v4136_v6 = vpop.f32.mrf.mxu1  ;;  %v5045_v18 = vpack.c.bf16 %v866_v30, %v863_v8  ;;  %v5126_v15 = vld [vmem:[%s6135_s5] sm:$0xff]  ;;  %v5134_v30 = vld [vmem:[%s6135_s5 + $0x8] sm:$0xff] }
 0x223   : > { %v879_v23 = vadd.f32 %v4136_v6, %v3878_v50 }
 0x224   : > { %v5041_v7 = vpack.c.bf16 %v858_v1, %v855_v0  ;;  %v870_v45 = vpop.f32.mrf.mxu1 }
 0x225   : > { %v871_v20 = vadd.f32 %v3878_v50, %v870_v45 }
 0x226   : > { %1013 = vrot.lane.b32.xlu1 %v5041_v7, %s4685_s28  ;;  %v4137_v9 = vpop.f32.mrf.mxu1 }
 0x227   : > { %v882_v19 = vadd.f32 %v4137_v9, %v3878_v50 }
 0x228   : > { %v873_v33 = vpop.f32.mrf.mxu1 }
 0x229   : > { %v874_v46 = vadd.f32 %v3878_v50, %v873_v33  ;;  %v5051_v29 = vpack.c.bf16 %v882_v19, %v879_v23 }
 0x22a   : > { %1063 = vrot.lane.b32.xlu1 %v5045_v18, %s4685_s28  ;;  %v4140_v24 = vpop.f32.mrf.mxu1 }
 0x22b   : > { %v5049_v28 = vpack.c.bf16 %v874_v46, %v871_v20  ;;  %v895_v53 = vadd.f32 %v4140_v24, %v3878_v50 }
 0x22c   : > { %v886_v34 = vpop.f32.mrf.mxu1 }
 0x22d   : > { %1113 = vrot.lane.b32.xlu0 %v5049_v28, %s4685_s28  ;;  %v887_v62 = vadd.f32 %v3878_v50, %v886_v34 }
 0x22e   : > { %1163 = vrot.lane.b32.xlu1 %v5051_v29, %s4685_s28  ;;  %v4141_v47 = vpop.f32.mrf.mxu1 }
 0x22f   : > { %v898_v35 = vadd.f32 %v4141_v47, %v3878_v50 }
 0x230   : > { %v889_v58 = vpop.f32.mrf.mxu1 }
 0x231   : > { %v5057_v38 = vpack.c.bf16 %v898_v35, %v895_v53  ;;  %v890_v39 = vadd.f32 %v3878_v50, %v889_v58 }
 0x233   : > { %v5059_v40 = vpack.c.bf16 %v890_v39, %v887_v62  ;;  %1263 = vrot.lane.b32.xlu1 %v5057_v38, %s4685_s28 }
 0x235   : > { %1213 = vrot.lane.b32.xlu0 %v5059_v40, %s4685_s28  ;;  %s4690_s28 = smov 2  }
 0x237   : > { %1544 = vrot.lane.b32.xlu1 %v5033_v55, %s4686_s30 }
 0x239   : > { %1497 = vrot.lane.b32.xlu0 %v5035_v60, %s4686_s30 }
 0x23b   : > { %1638 = vrot.lane.b32.xlu1 %v5045_v18, %s4686_s30 }
 0x23f   : > { %1591 = vrot.lane.b32.xlu1 %v5041_v7, %s4686_s30 }
 0x28e   : > { %v964_v59 = vpop.permute.xlu1 %963 }
 0x28f   : > { %v969_v10 = vsel %vm914_vm3, %v964_v59, 0 }
 0x290   : > { %v913_v41 = vpop.permute.xlu0 %912 }
 0x291   : > { %v919_v42 = vsel %vm914_vm3, %v913_v41, 0 }
 0x292   : > { %4143 = vmatpush3.bf16.xpose.msra.mxu1 %v919_v42 }
 0x293   : > { %4148 = vmatprep.subr.bf16.mxu1 %v6145_v49 }
 0x298   : > { %v1014_v43 = vpop.permute.xlu1 %1013 }
 0x299   : > { %4145 = vmatmul.mubr.msk.bf16.vlgmr.msra.gmra.mxu1 %vm914_vm3, %v5035_v60  ;;  %v1019_v50 = vsel %vm914_vm3, %v1014_v43, 0 }
 0x29a   : > { %4149 = vmatpush3.bf16.xpose.msra.mxu1 %v969_v10  ;;  %4150 = vmatprep.mubr.msk.bf16.mxu1 %vm4684_vm2, %v6145_v49 }
 0x29b   : > { %4154 = vmatprep.subr.bf16.mxu1 %v6145_v49 }
 0x29c   : > { %v1064_v25 = vpop.permute.xlu1 %1063 }
 0x29d   : > { %v1069_v54 = vsel %vm914_vm3, %v1064_v25, 0 }
 0x29f   : > { %v1114_v48 = vpop.permute.xlu0 %1113 }
 0x2a0   : > { %v1119_v13 = vsel %vm914_vm3, %v1114_v48, 0  ;;  %v1164_v44 = vpop.permute.xlu1 %1163 }
 0x2a1   : > { %4151 = vmatmul.mubr.msk.bf16.vlgmr.msra.gmra.mxu1 %vm914_vm3, %v5033_v55  ;;  %4167 = vmatpush3.bf16.xpose.msra.mxu0 %v1119_v13  ;;  %v1169_v56 = vsel %vm914_vm3, %v1164_v44, 0 }
 0x2a2   : > { %4155 = vmatpush3.bf16.xpose.msra.mxu1 %v1019_v50  ;;  %4156 = vmatprep.mubr.msk.bf16.mxu1 %vm4684_vm2, %v6145_v49 }
 0x2a3   : > { %4160 = vmatprep.subr.bf16.mxu1 %v6145_v49  ;;  %4178 = vmatprep.subr.bf16.mxu0 %v6145_v49 }
 0x2a5   : > { %v1264_v57 = vpop.permute.xlu1 %1263 }
 0x2a6   : > { %v1269_v52 = vsel %vm914_vm3, %v1264_v57, 0 }
 0x2a7   : > { %v1214_v63 = vpop.permute.xlu0 %1213 }
 0x2a8   : > { %v1219_v51 = vsel %vm914_vm3, %v1214_v63, 0  ;;  %4169 = vmatmul.mubr.msk.bf16.vlgmr.msra.gmra.mxu0 %vm914_vm3, %v5049_v28 }
 0x2a9   : > { %4157 = vmatmul.mubr.msk.bf16.vlgmr.msra.gmra.mxu1 %vm914_vm3, %v5041_v7  ;;  %4179 = vmatpush3.bf16.xpose.msra.mxu0 %v1219_v51  ;;  %v1545_v61 = vpop.permute.xlu1 %1544 }
 0x2aa   : > { %4161 = vmatpush3.bf16.xpose.msra.mxu1 %v1069_v54  ;;  %4162 = vmatprep.mubr.msk.bf16.mxu1 %vm4684_vm2, %v6145_v49 }
 0x2ab   : > { %4180 = vmatprep.mubr.msk.bf16.mxu0 %vm4684_vm2, %v6145_v49  ;;  %4172 = vmatprep.subr.bf16.mxu1 %v6145_v49  ;;  %v1498_v14 = vpop.permute.xlu0 %1497 }
 0x2ac   : > { %4190 = vmatprep.subr.bf16.mxu0 %v6145_v49 }
 0x2b0   : > { %4181 = vmatmul.mubr.msk.bf16.vlgmr.msra.gmra.mxu0 %vm914_vm3, %v5059_v40 }
 0x2b1   : > { %4163 = vmatmul.mubr.msk.bf16.vlgmr.msra.gmra.mxu1 %vm914_vm3, %v5045_v18  ;;  %4191 = vmatpush3.bf16.msra.mxu0 %v1498_v14 }
 0x2b2   : > { %4173 = vmatpush3.bf16.xpose.msra.mxu1 %v1169_v56  ;;  %4174 = vmatprep.mubr.msk.bf16.mxu1 %vm4684_vm2, %v6145_v49 }
 0x2b3   : > { %4184 = vmatprep.subr.bf16.mxu1 %v6145_v49  ;;  %4192 = vmatprep.mubr.msk.bf16.mxu0 %vm4684_vm2, %v6145_v49 }
 0x2b4   : > { %4202 = vmatprep.subr.bf16.mxu0 %v6145_v49 }
 0x2b9   : > { %4175 = vmatmul.mubr.msk.bf16.vlgmr.msra.gmra.mxu1 %vm914_vm3, %v5051_v29 }
 0x2ba   : > { %4185 = vmatpush3.bf16.xpose.msra.mxu1 %v1269_v52  ;;  %4186 = vmatprep.mubr.msk.bf16.mxu1 %vm4684_vm2, %v6145_v49 }
 0x2bb   : > { %4196 = vmatprep.subr.bf16.mxu1 %v6145_v49 }
 0x2c1   : > { %4187 = vmatmul.mubr.msk.bf16.vlgmr.msra.gmra.mxu1 %vm914_vm3, %v5057_v38 }
 0x2c2   : > { %4197 = vmatpush3.bf16.msra.mxu1 %v1545_v61  ;;  %4198 = vmatprep.mubr.msk.bf16.mxu1 %vm4684_vm2, %v6145_v49 }
 0x2c3   : > { %4208 = vmatprep.subr.bf16.mxu1 %v6145_v49 }
 0x359   : > { %v955_v0 = vpop.f32.mrf.mxu1 }
 0x35a   : > { %v5129_v1 = vadd.f32 %v955_v0, %v5126_v15 }
 0x35b   : > { %v4146_v6 = vpop.f32.mrf.mxu1 }
 0x35c   : > { %v1313_v45 = vsel %vm1312_vm4, %v5129_v1, -inf }
 0x35d   : > { %1314 = vmax.xlane.f32.xlu0 %v1313_v45  ;;  %v958_v8 = vpop.f32.mrf.mxu1 }
 0x35e   : > { %v5139_v9 = vadd.f32 %v958_v8, %v5134_v30 }
 0x35f   : > { %v4147_v19 = vpop.f32.mrf.mxu1 }
 0x360   : > { %v1316_v33 = vsel %vm1312_vm4, %v5139_v9, -inf }
 0x361   : > { %1317 = vmax.xlane.f32.xlu1 %v1316_v33  ;;  %v1005_v20 = vpop.f32.mrf.mxu1 }
 0x362   : > { %v5147_v58 = vadd.f32 %v1005_v20, %v5126_v15 }
 0x363   : > { %v4152_v46 = vpop.f32.mrf.mxu1 }
 0x364   : > { %v1319_v48 = vsel %vm1312_vm4, %v5147_v58, -inf }
 0x365   : > { %v1008_v23 = vpop.f32.mrf.mxu1 }
 0x366   : > { %v5162_v54 = vadd.f32 %v1008_v23, %v5134_v30 }
 0x367   : > { %v4153_v24 = vpop.f32.mrf.mxu1 }
 0x368   : > { %v1155_v34 = vpop.f32.mrf.mxu0  ;;  %v1322_v8 = vsel %vm1312_vm4, %v5162_v54, -inf }
 0x369   : > { %v1055_v47 = vpop.f32.mrf.mxu1  ;;  %v5144_v53 = vadd.f32 %v1155_v34, %v5126_v15 }
 0x36a   : > { %v4170_v35 = vpop.f32.mrf.mxu0  ;;  %v5170_v0 = vadd.f32 %v1055_v47, %v5126_v15 }
 0x36b   : > { %v4158_v62 = vpop.f32.mrf.mxu1  ;;  %v1337_v39 = vsel %vm1312_vm4, %v5144_v53, -inf }
 0x36c   : > { %1338 = vmax.xlane.f32.xlu0 %v1337_v39  ;;  %v1158_v41 = vpop.f32.mrf.mxu0  ;;  %v1325_v24 = vsel %vm1312_vm4, %v5170_v0, -inf }
 0x36d   : > { %v1058_v42 = vpop.f32.mrf.mxu1  ;;  %v5152_v59 = vadd.f32 %v1158_v41, %v5134_v30 }
 0x36e   : > { %v4171_v10 = vpop.f32.mrf.mxu0  ;;  %v5173_v6 = vadd.f32 %v1058_v42, %v5134_v30 }
 0x36f   : > { %v4159_v43 = vpop.f32.mrf.mxu1  ;;  %v1340_v13 = vsel %vm1312_vm4, %v5152_v59, -inf }
 0x370   : > { %1320 = vmax.xlane.f32.xlu0 %v1319_v48  ;;  %1341 = vmax.xlane.f32.xlu1 %v1340_v13  ;;  %v1255_v50 = vpop.f32.mrf.mxu0  ;;  %v1328_v34 = vsel %vm1312_vm4, %v5173_v6, -inf }
 0x371   : > { %v1105_v25 = vpop.f32.mrf.mxu1  ;;  %v5159_v63 = vadd.f32 %v1255_v50, %v5126_v15 }
 0x372   : > { %v4182_v51 = vpop.f32.mrf.mxu0  ;;  %v5180_v20 = vadd.f32 %v1105_v25, %v5126_v15 }
 0x373   : > { %v4164_v44 = vpop.f32.mrf.mxu1  ;;  %v1349_v14 = vsel %vm1312_vm4, %v5159_v63, -inf }
 0x374   : > { %1350 = vmax.xlane.f32.xlu0 %v1349_v14  ;;  %v1258_v56 = vpop.f32.mrf.mxu0  ;;  %v1331_v41 = vsel %vm1312_vm4, %v5180_v20, -inf }
 0x375   : > { %v1108_v57 = vpop.f32.mrf.mxu1  ;;  %v5167_v52 = vadd.f32 %v1258_v56, %v5134_v30  ;;  %v5217_v56 = vpop.permute.xlu1 %1638 }
 0x376   : > { %v4183_v61 = vpop.f32.mrf.mxu0  ;;  %v5183_v46 = vadd.f32 %v1108_v57, %v5134_v30 }
 0x377   : > { %v4165_v45 = vpop.f32.mrf.mxu1  ;;  %v1352_v19 = vsel %vm1312_vm4, %v5167_v52, -inf }
 0x378   : > { %1323 = vmax.xlane.f32.xlu0 %v1322_v8  ;;  %1353 = vmax.xlane.f32.xlu1 %v1352_v19  ;;  %v1334_v42 = vsel %vm1312_vm4, %v5183_v46, -inf }
 0x379   : > { %v1205_v33 = vpop.f32.mrf.mxu1  ;;  %v5219_v57 = vpop.permute.xlu1 %1591 }
 0x37a   : > { %v5190_v35 = vadd.f32 %v1205_v33, %v5126_v15 }
 0x37b   : > { %v4176_v23 = vpop.f32.mrf.mxu1 }
 0x37c   : > { %1326 = vmax.xlane.f32.xlu0 %v1325_v24  ;;  %1329 = vmax.xlane.f32.xlu1 %v1328_v34  ;;  %v1343_v13 = vsel %vm1312_vm4, %v5190_v35, -inf }
 0x37d   : > { %v1208_v47 = vpop.f32.mrf.mxu1 }
 0x37e   : > { %v5193_v62 = vadd.f32 %v1208_v47, %v5134_v30 }
 0x37f   : > { %v4177_v39 = vpop.f32.mrf.mxu1 }
 0x380   : > { %1332 = vmax.xlane.f32.xlu0 %v1331_v41  ;;  %1335 = vmax.xlane.f32.xlu1 %v1334_v42  ;;  %v1346_v50 = vsel %vm1312_vm4, %v5193_v62, -inf }
 0x381   : > { %v1305_v10 = vpop.f32.mrf.mxu1 }
 0x382   : > { %v5200_v43 = vadd.f32 %v1305_v10, %v5126_v15 }
 0x383   : > { %v4188_v48 = vpop.f32.mrf.mxu1 }
 0x384   : > { %1344 = vmax.xlane.f32.xlu0 %v1343_v13  ;;  %1347 = vmax.xlane.f32.xlu1 %v1346_v50  ;;  %v1355_v44 = vsel %vm1312_vm4, %v5200_v43, -inf }
 0x385   : > { %v1308_v25 = vpop.f32.mrf.mxu1 }
 0x386   : > { %v5213_v15 = vadd.f32 %v1308_v25, %v5134_v30 }
 0x387   : > { %v4189_v51 = vpop.f32.mrf.mxu1 }
 0x388   : > { %1356 = vmax.xlane.f32.xlu0 %v1355_v44  ;;  %v1358_v14 = vsel %vm1312_vm4, %v5213_v15, -inf }
 0x395   : > { %1732 = vrot.lane.b32.xlu1 %v5051_v29, %s4686_s30 }
 0x39e   : > { %1685 = vrot.lane.b32.xlu0 %v5049_v28, %s4686_s30 }
 0x3b9   : > { %1359 = vmax.xlane.f32.xlu1 %v1358_v14 }
 0x3e6   : > { %v1315_v61 = vpop.xlane.xlu0 %1314 }
 0x3e7   : > { %v1361_v45 = vsub.f32 %v5129_v1, %v1315_v61 }
 0x3e9   : > { %v1377_v8 = vmul.f32 1.442695, %v1361_v45 }
 0x3ea   : > { %v1318_v19 = vpop.xlane.xlu1 %1317 }
 0x3eb   : > { %4483 = vpow2.f32 %v1377_v8  ;;  %v1362_v33 = vsub.f32 %v5139_v9, %v1318_v19 }
 0x3ed   : > { %v1379_v23 = vmul.f32 1.442695, %v1362_v33 }
 0x3ef   : > { %4485 = vpow2.f32 %v1379_v23 }
 0x3f5   : > { %v1339_v30 = vpop.xlane.xlu0 %1338 }
 0x3f6   : > { %v1369_v24 = vsub.f32 %v5144_v53, %v1339_v30 }
 0x3f8   : > { %v5224_v34 = vpop.eup %4483  ;;  %v1393_v47 = vmul.f32 1.442695, %v1369_v24 }
 0x3f9   : > { %v1342_v39 = vpop.xlane.xlu1 %1341  ;;  %v1409_v41 = vsel %vm1312_vm4, %v5224_v34, 0.0  ;;  %v1321_v42 = vpop.xlane.xlu0 %1320 }
 0x3fa   : > { %4487 = vpow2.f32 %v1393_v47  ;;  %v1370_v1 = vsub.f32 %v5152_v59, %v1342_v39  ;;  %1410 = vadd.xlane.f32.xlu0 %v1409_v41  ;;  %v1363_v10 = vsub.f32 %v5147_v58, %v1321_v42 }
 0x3fc   : > { %v5230_v9 = vpop.eup %4485  ;;  %v1395_v48 = vmul.f32 1.442695, %v1370_v1  ;;  %v1381_v13 = vmul.f32 1.442695, %v1363_v10 }
 0x3fd   : > { %v1412_v53 = vsel %vm1312_vm4, %v5230_v9, 0.0  ;;  %v1351_v50 = vpop.xlane.xlu0 %1350 }
 0x3fe   : > { %4489 = vpow2.f32 %v1395_v48  ;;  %1413 = vadd.xlane.f32.xlu1 %v1412_v53  ;;  %v1373_v25 = vsub.f32 %v5159_v63, %v1351_v50 }
 0x3ff   : > { %4491 = vpow2.f32 %v1381_v13 }
 0x400   : > { %v1401_v51 = vmul.f32 1.442695, %v1373_v25 }
 0x401   : > { %v1354_v44 = vpop.xlane.xlu1 %1353  ;;  %v1324_v14 = vpop.xlane.xlu0 %1323 }
 0x402   : > { %4493 = vpow2.f32 %v1401_v51  ;;  %v1374_v59 = vsub.f32 %v5167_v52, %v1354_v44  ;;  %v1364_v58 = vsub.f32 %v5162_v54, %v1324_v14 }
 0x404   : > { %v1383_v61 = vmul.f32 1.442695, %v1364_v58  ;;  %v1403_v45 = vmul.f32 1.442695, %v1374_v59 }
 0x405   : > { %v1330_v8 = vpop.xlane.xlu1 %1329  ;;  %v1327_v19 = vpop.xlane.xlu0 %1326 }
 0x406   : > { %v1366_v33 = vsub.f32 %v5173_v6, %v1330_v8  ;;  %v1365_v23 = vsub.f32 %v5170_v0, %v1327_v19  ;;  %4495 = vpow2.f32 %v1383_v61 }
 0x407   : > { %v5239_v30 = vpop.eup %4487  ;;  %4497 = vpow2.f32 %v1403_v45 }
 0x408   : > { %v1385_v63 = vmul.f32 1.442695, %v1365_v23  ;;  %v1433_v24 = vsel %vm1312_vm4, %v5239_v30, 0.0  ;;  %v1387_v47 = vmul.f32 1.442695, %v1366_v33 }
 0x409   : > { %v1336_v52 = vpop.xlane.xlu1 %1335  ;;  %1434 = vadd.xlane.f32.xlu0 %v1433_v24  ;;  %v1333_v54 = vpop.xlane.xlu0 %1332 }
 0x40a   : > { %v1368_v39 = vsub.f32 %v5183_v46, %v1336_v52  ;;  %v1367_v41 = vsub.f32 %v5180_v20, %v1333_v54  ;;  %4499 = vpow2.f32 %v1385_v63 }
 0x40b   : > { %v5245_v42 = vpop.eup %4489  ;;  %4501 = vpow2.f32 %v1387_v47 }
 0x40c   : > { %v5247_v0 = vpop.eup %4491  ;;  %v1389_v6 = vmul.f32 1.442695, %v1367_v41  ;;  %v1436_v1 = vsel %vm1312_vm4, %v5245_v42, 0.0  ;;  %v1391_v10 = vmul.f32 1.442695, %v1368_v39 }
 0x40d   : > { %1437 = vadd.xlane.f32.xlu1 %v1436_v1  ;;  %v1415_v48 = vsel %vm1312_vm4, %v5247_v0, 0.0  ;;  %v1345_v13 = vpop.xlane.xlu0 %1344  ;;  %v1348_v24 = vpop.xlane.xlu1 %1347 }
 0x40e   : > { %1416 = vadd.xlane.f32.xlu0 %v1415_v48  ;;  %v1371_v46 = vsub.f32 %v5190_v35, %v1345_v13  ;;  %4503 = vpow2.f32 %v1389_v6  ;;  %v1372_v52 = vsub.f32 %v5193_v62, %v1348_v24 }
 0x40f   : > { %v5254_v20 = vpop.eup %4493  ;;  %4505 = vpow2.f32 %v1391_v10 }
 0x410   : > { %v1397_v53 = vmul.f32 1.442695, %v1371_v46  ;;  %v1445_v50 = vsel %vm1312_vm4, %v5254_v20, 0.0  ;;  %v1399_v39 = vmul.f32 1.442695, %v1372_v52 }
 0x411   : > { %v1357_v47 = vpop.xlane.xlu0 %1356  ;;  %v5302_v62 = vpop.permute.xlu1 %1732 }
 0x412   : > { %1446 = vadd.xlane.f32.xlu0 %v1445_v50  ;;  %4507 = vpow2.f32 %v1397_v53  ;;  %v1375_v54 = vsub.f32 %v5200_v43, %v1357_v47 }
 0x413   : > { %v5258_v25 = vpop.eup %4495  ;;  %4509 = vpow2.f32 %v1399_v39 }
 0x414   : > { %v1418_v51 = vsel %vm1312_vm4, %v5258_v25, 0.0  ;;  %v5262_v44 = vpop.eup %4497  ;;  %v1405_v41 = vmul.f32 1.442695, %v1375_v54 }
 0x415   : > { %1419 = vadd.xlane.f32.xlu1 %v1418_v51  ;;  %v1448_v35 = vsel %vm1312_vm4, %v5262_v44, 0.0  ;;  %v5315_v53 = vpop.permute.xlu0 %1685 }
 0x416   : > { %4511 = vpow2.f32 %v1405_v41 }
 0x417   : > { %v5264_v14 = vpop.eup %4499 }
 0x418   : > { %v1421_v59 = vsel %vm1312_vm4, %v5264_v14, 0.0  ;;  %v5270_v58 = vpop.eup %4501 }
 0x419   : > { %1449 = vadd.xlane.f32.xlu1 %v1448_v35  ;;  %1422 = vadd.xlane.f32.xlu0 %v1421_v59  ;;  %v1424_v45 = vsel %vm1312_vm4, %v5270_v58, 0.0 }
 0x41b   : > { %v5272_v61 = vpop.eup %4503 }
 0x41c   : > { %v1427_v8 = vsel %vm1312_vm4, %v5272_v61, 0.0  ;;  %v5278_v19 = vpop.eup %4505 }
 0x41d   : > { %1425 = vadd.xlane.f32.xlu1 %v1424_v45  ;;  %1428 = vadd.xlane.f32.xlu0 %v1427_v8  ;;  %v1430_v23 = vsel %vm1312_vm4, %v5278_v19, 0.0 }
 0x41f   : > { %v5280_v33 = vpop.eup %4507 }
 0x420   : > { %v1439_v63 = vsel %vm1312_vm4, %v5280_v33, 0.0  ;;  %v5292_v6 = vpop.eup %4509 }
 0x421   : > { %1431 = vadd.xlane.f32.xlu1 %v1430_v23  ;;  %1440 = vadd.xlane.f32.xlu0 %v1439_v63  ;;  %v1442_v10 = vsel %vm1312_vm4, %v5292_v6, 0.0 }
 0x423   : > { %v5294_v1 = vpop.eup %4511 }
 0x424   : > { %v1451_v48 = vsel %vm1312_vm4, %v5294_v1, 0.0 }
 0x432   : > { %1826 = vrot.lane.b32.xlu1 %v5057_v38, %s4686_s30 }
 0x437   : > { %1779 = vrot.lane.b32.xlu0 %v5059_v40, %s4686_s30 }
 0x442   : > { %v1360_v43 = vpop.xlane.xlu1 %1359 }
 0x443   : > { %v1376_v13 = vsub.f32 %v5213_v15, %v1360_v43 }
 0x445   : > { %v1407_v46 = vmul.f32 1.442695, %v1376_v13 }
 0x447   : > { %4513 = vpow2.f32 %v1407_v46 }
 0x454   : > { %v5321_v51 = vpop.eup %4513 }
 0x455   : > { %v1454_v35 = vsel %vm1312_vm4, %v5321_v51, 0.0 }
 0x456   : > { %1443 = vadd.xlane.f32.xlu1 %v1442_v10  ;;  %1452 = vadd.xlane.f32.xlu0 %v1451_v48 }
 0x467   : > { %1929 = vrot.lane.b32.xlu1 %v5033_v55, %s4687_s21 }
 0x46c   : > { %1878 = vrot.lane.b32.xlu0 %v5035_v60, %s4687_s21 }
 0x470   : > { %1876 = vrot.lane.b32.xlu0 %v5035_v60, %s4688_s22 }
 0x474   : > { %1927 = vrot.lane.b32.xlu0 %v5033_v55, %s4688_s22 }
 0x478   : > { %1978 = vrot.lane.b32.xlu0 %v5041_v7, %s4688_s22 }
 0x47c   : > { %2029 = vrot.lane.b32.xlu0 %v5045_v18, %s4688_s22 }
 0x480   : > { %2080 = vrot.lane.b32.xlu0 %v5049_v28, %s4688_s22 }
 0x483   : > { %v1411_v50 = vpop.xlane.xlu0 %1410 }
 0x484   : > { %2131 = vrot.lane.b32.xlu0 %v5051_v29, %s4688_s22  ;;  %4515 = vrcp.f32 %v1411_v50 }
 0x487   : > { %v1414_v15 = vpop.xlane.xlu1 %1413 }
 0x488   : > { %4517 = vrcp.f32 %v1414_v15  ;;  %2182 = vrot.lane.b32.xlu0 %v5059_v40, %s4688_s22 }
 0x48b   : > { %1455 = vadd.xlane.f32.xlu1 %v1454_v35 }
 0x491   : > { %v4516_v59 = vpop.eup %4515 }
 0x492   : > { %v1435_v45 = vpop.xlane.xlu0 %1434  ;;  %v1473_v23 = vmul.f32 %v4516_v59, %v5224_v34 }
 0x495   : > { %v4518_v8 = vpop.eup %4517 }
 0x496   : > { %v1474_v63 = vmul.f32 %v4518_v8, %v5230_v9  ;;  %v1438_v52 = vpop.xlane.xlu1 %1437 }
 0x497   : > { %v1417_v47 = vpop.xlane.xlu0 %1416 }
 0x498   : > { %v1489_v24 = vpack.c.bf16 %v1474_v63, %v1473_v23  ;;  %4519 = vrcp.f32 %v1417_v47 }
 0x49a   : > { %4193 = vmatmul.mubr.msk.bf16.vlgmr.msra.gmra.mxu0 %vm1312_vm4, %v1489_v24 }
 0x49b   : > { %4203 = vmatpush3.bf16.msra.mxu0 %v5219_v57  ;;  %4204 = vmatprep.mubr.msk.bf16.mxu0 %vm4684_vm2, %v6145_v49  ;;  %v1447_v54 = vpop.xlane.xlu0 %1446 }
 0x49c   : > { %4214 = vmatprep.subr.bf16.mxu0 %v6145_v49  ;;  %1980 = vrot.lane.b32.xlu1 %v5041_v7, %s4687_s21 }
 0x49e   : > { %v1420_v34 = vpop.xlane.xlu1 %1419 }
 0x49f   : > { %4521 = vrcp.f32 %v1420_v34 }
 0x4a0   : > { %2031 = vrot.lane.b32.xlu1 %v5045_v18, %s4687_s21 }
 0x4a2   : > { %v1450_v9 = vpop.xlane.xlu1 %1449  ;;  %v1423_v39 = vpop.xlane.xlu0 %1422 }
 0x4a3   : > { %4523 = vrcp.f32 %v1423_v39 }
 0x4a4   : > { %2082 = vrot.lane.b32.xlu1 %v5049_v28, %s4687_s21 }
 0x4a5   : > { %v4520_v10 = vpop.eup %4519 }
 0x4a6   : > { %v1426_v57 = vpop.xlane.xlu1 %1425  ;;  %v1429_v41 = vpop.xlane.xlu0 %1428  ;;  %v1475_v13 = vmul.f32 %v4520_v10, %v5247_v0 }
 0x4a7   : > { %4525 = vrcp.f32 %v1426_v57 }
 0x4a8   : > { %2133 = vrot.lane.b32.xlu1 %v5051_v29, %s4687_s21  ;;  %4527 = vrcp.f32 %v1429_v41 }
 0x4a9   : > { %4529 = vrcp.f32 %v1438_v52 }
 0x4aa   : > { %v1432_v48 = vpop.xlane.xlu1 %1431  ;;  %v1441_v47 = vpop.xlane.xlu0 %1440 }
 0x4ab   : > { %4531 = vrcp.f32 %v1432_v48 }
 0x4ac   : > { %v4522_v43 = vpop.eup %4521  ;;  %2184 = vrot.lane.b32.xlu1 %v5059_v40, %s4687_s21  ;;  %4533 = vrcp.f32 %v1435_v45 }
 0x4ad   : > { %v1476_v46 = vmul.f32 %v4522_v43, %v5258_v25  ;;  %4535 = vrcp.f32 %v1450_v9 }
 0x4ae   : > { %4537 = vrcp.f32 %v1447_v54  ;;  %v1827_v34 = vpop.permute.xlu1 %1826 }
 0x4af   : > { %v1490_v50 = vpack.c.bf16 %v1476_v46, %v1475_v13  ;;  %4539 = vrcp.f32 %v1441_v47 }
 0x4b0   : > { %2235 = vrot.lane.b32.xlu1 %v5057_v38, %s4687_s21  ;;  %v4524_v15 = vpop.eup %4523  ;;  %s6064_s21 = scalar_lea.vmem %s6144_s14, %s3873_s16 }
 0x4b1   : > { %4199 = vmatmul.mubr.msk.bf16.vlgmr.msra.gmra.mxu1 %vm1312_vm4, %v1490_v50  ;;  %v1477_v0 = vmul.f32 %v4524_v15, %v5264_v14 }
 0x4b2   : > { %4209 = vmatpush3.bf16.msra.mxu1 %v5217_v56  ;;  %4210 = vmatprep.mubr.msk.bf16.mxu1 %vm4684_vm2, %v6145_v49 }
 0x4b3   : > { %4220 = vmatprep.subr.bf16.mxu1 %v6145_v49 }
 0x4b4   : > { %v4526_v35 = vpop.eup %4525  ;;  %2233 = vrot.lane.b32.xlu1 %v5057_v38, %s4688_s22 }
 0x4b5   : > { %v1478_v25 = vmul.f32 %v4526_v35, %v5270_v58  ;;  %v4528_v59 = vpop.eup %4527 }
 0x4b6   : > { %v4530_v45 = vpop.eup %4529  ;;  %v1479_v56 = vmul.f32 %v4528_v59, %v5272_v61 }
 0x4b7   : > { %v1491_v8 = vpack.c.bf16 %v1478_v25, %v1477_v0  ;;  %v1482_v58 = vmul.f32 %v4530_v45, %v5245_v42 }
 0x4b8   : > { %v4532_v23 = vpop.eup %4531 }
 0x4b9   : > { %4205 = vmatmul.mubr.msk.bf16.vlgmr.msra.gmra.mxu0 %vm1312_vm4, %v1491_v8  ;;  %v1480_v63 = vmul.f32 %v4532_v23, %v5278_v19  ;;  %v4534_v24 = vpop.eup %4533 }
 0x4ba   : > { %4215 = vmatpush3.bf16.msra.mxu0 %v5315_v53  ;;  %4216 = vmatprep.mubr.msk.bf16.mxu0 %vm4684_vm2, %v6145_v49  ;;  %v1481_v52 = vmul.f32 %v4534_v24, %v5239_v30  ;;  %v4536_v19 = vpop.eup %4535  ;;  %v1780_v53 = vpop.permute.xlu0 %1779 }
 0x4bb   : > { %v1492_v14 = vpack.c.bf16 %v1480_v63, %v1479_v56  ;;  %4226 = vmatprep.subr.bf16.mxu0 %v6145_v49  ;;  %v4538_v54 = vpop.eup %4537  ;;  %v1486_v42 = vmul.f32 %v4536_v19, %v5262_v44 }
 0x4bc   : > { %v1493_v61 = vpack.c.bf16 %v1482_v58, %v1481_v52  ;;  %v1485_v30 = vmul.f32 %v4538_v54, %v5254_v20  ;;  %v4540_v44 = vpop.eup %4539 }
 0x4bd   : > { %4211 = vmatmul.mubr.msk.bf16.vlgmr.msra.gmra.mxu1 %vm1312_vm4, %v1492_v14  ;;  %v1483_v48 = vmul.f32 %v4540_v44, %v5280_v33 }
 0x4be   : > { %4221 = vmatpush3.bf16.msra.mxu1 %v5302_v62  ;;  %4222 = vmatprep.mubr.msk.bf16.mxu1 %vm4684_vm2, %v6145_v49  ;;  %v1495_v62 = vpack.c.bf16 %v1486_v42, %v1485_v30 }
 0x4bf   : > { %4232 = vmatprep.subr.bf16.mxu1 %v6145_v49 }
 0x4c1   : > { %4217 = vmatmul.mubr.msk.bf16.vlgmr.msra.gmra.mxu0 %vm1312_vm4, %v1493_v61 }
 0x4c2   : > { %4227 = vmatpush3.bf16.msra.mxu0 %v1780_v53  ;;  %4228 = vmatprep.mubr.msk.bf16.mxu0 %vm4684_vm2, %v6145_v49 }
 0x4c3   : > { %4238 = vmatprep.subr.bf16.mxu0 %v6145_v49 }
 0x4c9   : > { %4229 = vmatmul.mubr.msk.bf16.vlgmr.msra.gmra.mxu0 %vm1312_vm4, %v1495_v62 }
 0x4ca   : > { %4240 = vmatprep.mubr.msk.bf16.mxu0 %vm4684_vm2, %v6145_v49 }
 0x4df   : > { %v1444_v9 = vpop.xlane.xlu1 %1443  ;;  %v1453_v39 = vpop.xlane.xlu0 %1452 }
 0x4e0   : > { %4541 = vrcp.f32 %v1444_v9 }
 0x4e1   : > { %4543 = vrcp.f32 %v1453_v39 }
 0x4e3   : > { %v1879_v57 = vpop.permute.xlu0 %1878  ;;  %v1930_v46 = vpop.permute.xlu1 %1929 }
 0x4e4   : > { %v1884_v41 = vsel %vm914_vm3, %v1879_v57, 0  ;;  %v1935_v58 = vsel %vm914_vm3, %v1930_v46, 0 }
 0x4e5   : > { %4239 = vmatpush3.bf16.xpose.msra.mxu0 %v1884_v41 }
 0x4e6   : > { %4250 = vmatprep.subr.bf16.mxu0 %v6145_v49 }
 0x4e7   : > { %v1877_v10 = vpop.permute.xlu0 %1876 }
 0x4eb   : > { %v1928_v50 = vpop.permute.xlu0 %1927 }
 0x4ec   : > { %4241 = vmatmul.mubr.msk.bf16.vlgmr.msra.gmra.mxu0 %vm914_vm3, %v1877_v10 }
 0x4ed   : > { %v4542_v20 = vpop.eup %4541  ;;  %4252 = vmatprep.mubr.msk.bf16.mxu0 %vm4684_vm2, %v6145_v49 }
 0x4ee   : > { %v1484_v43 = vmul.f32 %v4542_v20, %v5292_v6  ;;  %v4544_v59 = vpop.eup %4543 }
 0x4ef   : > { %v1979_v35 = vpop.permute.xlu0 %1978  ;;  %v1487_v56 = vmul.f32 %v4544_v59, %v5294_v1 }
 0x4f0   : > { %v1494_v13 = vpack.c.bf16 %v1484_v43, %v1483_v48 }
 0x4f2   : > { %4223 = vmatmul.mubr.msk.bf16.vlgmr.msra.gmra.mxu1 %vm1312_vm4, %v1494_v13 }
 0x4f3   : > { %4233 = vmatpush3.bf16.msra.mxu1 %v1827_v34  ;;  %4234 = vmatprep.mubr.msk.bf16.mxu1 %vm4684_vm2, %v6145_v49  ;;  %v2030_v25 = vpop.permute.xlu0 %2029 }
 0x4f4   : > { %4244 = vmatprep.subr.bf16.mxu1 %v6145_v49 }
 0x4f7   : > { %v2081_v24 = vpop.permute.xlu0 %2080 }
 0x4fb   : > { %v2132_v1 = vpop.permute.xlu0 %2131 }
 0x4ff   : > { %v2183_v19 = vpop.permute.xlu0 %2182 }
 0x514   : > { %v1456_v15 = vpop.xlane.xlu1 %1455 }
 0x515   : > { %4545 = vrcp.f32 %v1456_v15 }
 0x518   : > { %v1981_v0 = vpop.permute.xlu1 %1980 }
 0x519   : > { %v1986_v33 = vsel %vm914_vm3, %v1981_v0, 0 }
 0x51a   : > { %4251 = vmatpush3.bf16.xpose.msra.mxu0 %v1986_v33 }
 0x51b   : > { %4262 = vmatprep.subr.bf16.mxu0 %v6145_v49 }
 0x51c   : > { %v2032_v6 = vpop.permute.xlu1 %2031 }
 0x520   : > { %v2083_v45 = vpop.permute.xlu1 %2082 }
 0x521   : > { %v2088_v8 = vsel %vm914_vm3, %v2083_v45, 0  ;;  %4253 = vmatmul.mubr.msk.bf16.vlgmr.msra.gmra.mxu0 %vm914_vm3, %v1979_v35 }
 0x522   : > { %v4546_v23 = vpop.eup %4545  ;;  %4263 = vmatpush3.bf16.xpose.msra.mxu0 %v2088_v8  ;;  %4264 = vmatprep.mubr.msk.bf16.mxu0 %vm4684_vm2, %v6145_v49 }
 0x523   : > { %v1488_v63 = vmul.f32 %v4546_v23, %v5321_v51  ;;  %4274 = vmatprep.subr.bf16.mxu0 %v6145_v49  ;;  %v2037_v51 = vsel %vm914_vm3, %v2032_v6, 0 }
 0x524   : > { %v2134_v47 = vpop.permute.xlu1 %2133 }
 0x525   : > { %v1496_v14 = vpack.c.bf16 %v1488_v63, %v1487_v56  ;;  %v2139_v53 = vsel %vm914_vm3, %v2134_v47, 0  ;;  %v5458_v56 = vld [vmem:[%s6135_s5 + $0x10] sm:$0xff] }
 0x527   : > { %4235 = vmatmul.mubr.msk.bf16.vlgmr.msra.gmra.mxu1 %vm1312_vm4, %v1496_v14  ;;  %v5466_v14 = vld [vmem:[%s6135_s5 + $0x18] sm:$0xff] }
 0x528   : > { %4245 = vmatpush3.bf16.xpose.msra.mxu1 %v1935_v58  ;;  %v2185_v52 = vpop.permute.xlu1 %2184  ;;  %4246 = vmatprep.mubr.msk.bf16.mxu1 %vm4684_vm2, %v6145_v49 }
 0x529   : > { %v2190_v61 = vsel %vm914_vm3, %v2185_v52, 0  ;;  %4265 = vmatmul.mubr.msk.bf16.vlgmr.msra.gmra.mxu0 %vm914_vm3, %v2081_v24  ;;  %4256 = vmatprep.subr.bf16.mxu1 %v6145_v49 }
 0x52a   : > { %4275 = vmatpush3.bf16.xpose.msra.mxu0 %v2190_v61  ;;  %4276 = vmatprep.mubr.msk.bf16.mxu0 %vm4684_vm2, %v6145_v49 }
 0x52b   : > { %4286 = vmatprep.subr.bf16.mxu0 %v6145_v49 }
 0x52c   : > { %v2236_v54 = vpop.permute.xlu1 %2235 }
 0x52d   : > { %v2241_v42 = vsel %vm914_vm3, %v2236_v54, 0 }
 0x52f   : > { %4247 = vmatmul.mubr.msk.bf16.vlgmr.msra.gmra.mxu1 %vm914_vm3, %v1928_v50 }
 0x530   : > { %4257 = vmatpush3.bf16.xpose.msra.mxu1 %v2037_v51  ;;  %4258 = vmatprep.mubr.msk.bf16.mxu1 %vm4684_vm2, %v6145_v49  ;;  %v2234_v30 = vpop.permute.xlu1 %2233 }
 0x531   : > { %4277 = vmatmul.mubr.msk.bf16.vlgmr.msra.gmra.mxu0 %vm914_vm3, %v2183_v19  ;;  %4268 = vmatprep.subr.bf16.mxu1 %v6145_v49 }
 0x532   : > { %4288 = vmatprep.mubr.msk.bf16.mxu0 %vm4684_vm2, %v6145_v49 }
 0x537   : > { %4259 = vmatmul.mubr.msk.bf16.vlgmr.msra.gmra.mxu1 %vm914_vm3, %v2030_v25 }
 0x538   : > { %4269 = vmatpush3.bf16.xpose.msra.mxu1 %v2139_v53  ;;  %4270 = vmatprep.mubr.msk.bf16.mxu1 %vm4684_vm2, %v6145_v49 }
 0x539   : > { %4280 = vmatprep.subr.bf16.mxu1 %v6145_v49 }
 0x53f   : > { %4271 = vmatmul.mubr.msk.bf16.vlgmr.msra.gmra.mxu1 %vm914_vm3, %v2132_v1 }
 0x540   : > { %4281 = vmatpush3.bf16.xpose.msra.mxu1 %v2241_v42  ;;  %4282 = vmatprep.mubr.msk.bf16.mxu1 %vm4684_vm2, %v6145_v49 }
 0x541   : > { %4292 = vmatprep.subr.bf16.mxu1 %v6145_v49 }
 0x547   : > { %4283 = vmatmul.mubr.msk.bf16.vlgmr.msra.gmra.mxu1 %vm914_vm3, %v2234_v30 }
 0x548   : > { %4294 = vmatprep.mubr.msk.bf16.mxu1 %vm4684_vm2, %v6145_v49 }
 0x55a   : > { %v5431_v62 = vpop.f32.mrf.mxu0 }
 0x55c   : > { %v4194_v34 = vpop.f32.mrf.mxu0 }
 0x55e   : > { %v5433_v9 = vpop.f32.mrf.mxu0 }
 0x560   : > { %v4195_v39 = vpop.f32.mrf.mxu0 }
 0x571   : > { %v5435_v57 = vpop.f32.mrf.mxu1 }
 0x573   : > { %v4200_v41 = vpop.f32.mrf.mxu1 }
 0x575   : > { %v5437_v44 = vpop.f32.mrf.mxu1 }
 0x577   : > { %v4201_v10 = vpop.f32.mrf.mxu1 }
 0x579   : > { %v5439_v20 = vpop.f32.mrf.mxu0 }
 0x57b   : > { %v4206_v48 = vpop.f32.mrf.mxu0 }
 0x57d   : > { %v5441_v43 = vpop.f32.mrf.mxu0  ;;  %v5443_v13 = vpop.f32.mrf.mxu1 }
 0x57f   : > { %v4207_v46 = vpop.f32.mrf.mxu0  ;;  %v4212_v50 = vpop.f32.mrf.mxu1 }
 0x581   : > { %v5445_v15 = vpop.f32.mrf.mxu1  ;;  %v5447_v35 = vpop.f32.mrf.mxu0 }
 0x583   : > { %v4213_v0 = vpop.f32.mrf.mxu1  ;;  %v4218_v33 = vpop.f32.mrf.mxu0 }
 0x585   : > { %v5449_v6 = vpop.f32.mrf.mxu0 }
 0x587   : > { %v4219_v25 = vpop.f32.mrf.mxu0 }
 0x589   : > { %v5451_v59 = vpop.f32.mrf.mxu0 }
 0x58b   : > { %v4230_v45 = vpop.f32.mrf.mxu0 }
 0x58d   : > { %v5453_v8 = vpop.f32.mrf.mxu0 }
 0x58f   : > { %v4231_v23 = vpop.f32.mrf.mxu0 }
 0x5ac   : > { %v1920_v63 = vpop.f32.mrf.mxu0 }
 0x5ad   : > { %v5461_v24 = vadd.f32 %v5458_v56, %v1920_v63 }
 0x5ae   : > { %v4242_v47 = vpop.f32.mrf.mxu0 }
 0x5af   : > { %v2284_v58 = vsel %vm1312_vm4, %v5461_v24, -inf }
 0x5b0   : > { %2285 = vmax.xlane.f32.xlu0 %v2284_v58  ;;  %v1923_v52 = vpop.f32.mrf.mxu0 }
 0x5b1   : > { %v5471_v61 = vadd.f32 %v5466_v14, %v1923_v52 }
 0x5b2   : > { %v5473_v1 = vpop.f32.mrf.mxu1  ;;  %v4243_v51 = vpop.f32.mrf.mxu0 }
 0x5b3   : > { %v2287_v19 = vsel %vm1312_vm4, %v5471_v61, -inf }
 0x5b4   : > { %v4224_v53 = vpop.f32.mrf.mxu1  ;;  %2288 = vmax.xlane.f32.xlu1 %v2287_v19 }
 0x5b6   : > { %v5477_v54 = vpop.f32.mrf.mxu1 }
 0x5b8   : > { %v4225_v42 = vpop.f32.mrf.mxu1 }
 0x5e1   : > { %v2022_v30 = vpop.f32.mrf.mxu0 }
 0x5e3   : > { %v4254_v34 = vpop.f32.mrf.mxu0 }
 0x5e5   : > { %v2025_v39 = vpop.f32.mrf.mxu0 }
 0x5e6   : > { %v5480_v41 = vadd.f32 %v5466_v14, %v2025_v39 }
 0x5e7   : > { %v5482_v10 = vpop.f32.mrf.mxu1  ;;  %v4255_v48 = vpop.f32.mrf.mxu0 }
 0x5e8   : > { %v2299_v46 = vsel %vm1312_vm4, %v5480_v41, -inf }
 0x5e9   : > { %v4236_v50 = vpop.f32.mrf.mxu1  ;;  %2300 = vmax.xlane.f32.xlu1 %v2299_v46  ;;  %v2124_v0 = vpop.f32.mrf.mxu0  ;;  %v5497_v46 = vadd.f32 %v5458_v56, %v2022_v30 }
 0x5eb   : > { %v5486_v33 = vpop.f32.mrf.mxu1  ;;  %v4266_v25 = vpop.f32.mrf.mxu0 }
 0x5ed   : > { %v4237_v45 = vpop.f32.mrf.mxu1  ;;  %v2127_v23 = vpop.f32.mrf.mxu0 }
 0x5ef   : > { %v1971_v63 = vpop.f32.mrf.mxu1  ;;  %v4267_v47 = vpop.f32.mrf.mxu0 }
 0x5f0   : > { %v5489_v58 = vadd.f32 %v5458_v56, %v1971_v63 }
 0x5f1   : > { %v4248_v52 = vpop.f32.mrf.mxu1  ;;  %v2226_v51 = vpop.f32.mrf.mxu0 }
 0x5f2   : > { %v2290_v19 = vsel %vm1312_vm4, %v5489_v58, -inf  ;;  %v2296_v52 = vsel %vm1312_vm4, %v5497_v46, -inf }
 0x5f3   : > { %2291 = vmax.xlane.f32.xlu0 %v2290_v19  ;;  %v1974_v53 = vpop.f32.mrf.mxu1  ;;  %v4278_v42 = vpop.f32.mrf.mxu0 }
 0x5f4   : > { %v5494_v34 = vadd.f32 %v5466_v14, %v1974_v53  ;;  %v5510_v42 = vadd.f32 %v5458_v56, %v2124_v0 }
 0x5f5   : > { %v4249_v39 = vpop.f32.mrf.mxu1  ;;  %v2229_v48 = vpop.f32.mrf.mxu0 }
 0x5f6   : > { %v2293_v50 = vsel %vm1312_vm4, %v5494_v34, -inf  ;;  %v5513_v39 = vadd.f32 %v5466_v14, %v2127_v23  ;;  %v2308_v0 = vsel %vm1312_vm4, %v5510_v42, -inf }
 0x5f7   : > { %2294 = vmax.xlane.f32.xlu0 %v2293_v50  ;;  %v2073_v25 = vpop.f32.mrf.mxu1  ;;  %v4279_v45 = vpop.f32.mrf.mxu0 }
 0x5f8   : > { %v5502_v47 = vadd.f32 %v5458_v56, %v2073_v25  ;;  %v2311_v23 = vsel %vm1312_vm4, %v5513_v39, -inf }
 0x5f9   : > { %v4260_v63 = vpop.f32.mrf.mxu1 }
 0x5fa   : > { %v2302_v50 = vsel %vm1312_vm4, %v5502_v47, -inf }
 0x5fb   : > { %2297 = vmax.xlane.f32.xlu0 %v2296_v52  ;;  %v2076_v19 = vpop.f32.mrf.mxu1 }
 0x5fc   : > { %v5507_v53 = vadd.f32 %v5466_v14, %v2076_v19 }
 0x5fd   : > { %v4261_v30 = vpop.f32.mrf.mxu1 }
 0x5fe   : > { %v2305_v25 = vsel %vm1312_vm4, %v5507_v53, -inf }
 0x5ff   : > { %2303 = vmax.xlane.f32.xlu0 %v2302_v50  ;;  %2306 = vmax.xlane.f32.xlu1 %v2305_v25  ;;  %v2175_v45 = vpop.f32.mrf.mxu1  ;;  %v5530_v50 = vadd.f32 %v5458_v56, %v2226_v51  ;;  %v5533_v25 = vadd.f32 %v5466_v14, %v2229_v48 }
 0x600   : > { %v5520_v52 = vadd.f32 %v5458_v56, %v2175_v45 }
 0x601   : > { %v4272_v63 = vpop.f32.mrf.mxu1  ;;  %v2323_v51 = vsel %vm1312_vm4, %v5533_v25, -inf }
 0x602   : > { %v2314_v45 = vsel %vm1312_vm4, %v5520_v52, -inf }
 0x603   : > { %2309 = vmax.xlane.f32.xlu0 %v2308_v0  ;;  %2312 = vmax.xlane.f32.xlu1 %v2311_v23  ;;  %v2178_v19 = vpop.f32.mrf.mxu1 }
 0x604   : > { %v5527_v30 = vadd.f32 %v5466_v14, %v2178_v19 }
 0x605   : > { %v4273_v49 = vpop.f32.mrf.mxu1 }
 0x606   : > { %v2317_v63 = vsel %vm1312_vm4, %v5527_v30, -inf  ;;  %v2320_v49 = vsel %vm1312_vm4, %v5530_v50, -inf }
 0x607   : > { %2315 = vmax.xlane.f32.xlu0 %v2314_v45  ;;  %2318 = vmax.xlane.f32.xlu1 %v2317_v63  ;;  %v2277_v0 = vpop.f32.mrf.mxu1 }
 0x608   : > { %v5540_v19 = vadd.f32 %v5458_v56, %v2277_v0 }
 0x609   : > { %v4284_v23 = vpop.f32.mrf.mxu1 }
 0x60a   : > { %v2326_v37 = vsel %vm1312_vm4, %v5540_v19, -inf }
 0x60b   : > { %v2280_v48 = vpop.f32.mrf.mxu1  ;;  %2321 = vmax.xlane.f32.xlu0 %v2320_v49  ;;  %2324 = vmax.xlane.f32.xlu1 %v2323_v51 }
 0x60c   : > { %v5560_v45 = vadd.f32 %v5466_v14, %v2280_v48 }
 0x60d   : > { %v4285_v32 = vpop.f32.mrf.mxu1 }
 0x60f   : > { %2327 = vmax.xlane.f32.xlu0 %v2326_v37 }
 0x61c   : > { %2515 = vrot.lane.b32.xlu1 %v5033_v55, %s4689_s27  ;;  %v2329_v55 = vsel %vm1312_vm4, %v5560_v45, -inf }
 0x620   : > { %2562 = vrot.lane.b32.xlu1 %v5041_v7, %s4689_s27 }
 0x624   : > { %2609 = vrot.lane.b32.xlu1 %v5045_v18, %s4689_s27 }
 0x625   : > { %2468 = vrot.lane.b32.xlu0 %v5035_v60, %s4689_s27 }
 0x629   : > { %2656 = vrot.lane.b32.xlu0 %v5049_v28, %s4689_s27 }
 0x639   : > { %v2286_v32 = vpop.xlane.xlu0 %2285 }
 0x63a   : > { %v2332_v56 = vsub.f32 %v5461_v24, %v2286_v32 }
 0x63c   : > { %v2348_v37 = vmul.f32 1.442695, %v2332_v56 }
 0x63d   : > { %v2289_v18 = vpop.xlane.xlu1 %2288 }
 0x63e   : > { %4547 = vpow2.f32 %v2348_v37  ;;  %v2333_v28 = vsub.f32 %v5471_v61, %v2289_v18 }
 0x640   : > { %v2350_v24 = vmul.f32 1.442695, %v2333_v28 }
 0x642   : > { %4549 = vpow2.f32 %v2350_v24 }
 0x648   : > { %2330 = vmax.xlane.f32.xlu1 %v2329_v55 }
 0x64b   : > { %v5564_v7 = vpop.eup %4547 }
 0x64c   : > { %v2380_v60 = vsel %vm1312_vm4, %v5564_v7, 0.0 }
 0x64d   : > { %2381 = vadd.xlane.f32.xlu0 %v2380_v60 }
 0x64f   : > { %v5571_v14 = vpop.eup %4549 }
 0x650   : > { %v2383_v23 = vsel %vm1312_vm4, %v5571_v14, 0.0 }
 0x659   : > { %2703 = vrot.lane.b32.xlu1 %v5051_v29, %s4689_s27 }
 0x672   : > { %v2301_v63 = vpop.xlane.xlu1 %2300 }
 0x673   : > { %v2337_v51 = vsub.f32 %v5480_v41, %v2301_v63 }
 0x675   : > { %v2358_v61 = vmul.f32 1.442695, %v2337_v51 }
 0x67c   : > { %v2292_v0 = vpop.xlane.xlu0 %2291 }
 0x67d   : > { %v2334_v49 = vsub.f32 %v5489_v58, %v2292_v0  ;;  %2384 = vadd.xlane.f32.xlu1 %v2383_v23 }
 0x67f   : > { %v2352_v48 = vmul.f32 1.442695, %v2334_v49 }
 0x680   : > { %v2295_v32 = vpop.xlane.xlu0 %2294 }
 0x681   : > { %4551 = vpow2.f32 %v2352_v48  ;;  %v2335_v29 = vsub.f32 %v5494_v34, %v2295_v32 }
 0x683   : > { %v2354_v56 = vmul.f32 1.442695, %v2335_v29 }
 0x684   : > { %v2298_v37 = vpop.xlane.xlu0 %2297 }
 0x685   : > { %4553 = vpow2.f32 %v2354_v56  ;;  %v2336_v55 = vsub.f32 %v5497_v46, %v2298_v37 }
 0x686   : > { %4555 = vpow2.f32 %v2358_v61 }
 0x687   : > { %v2356_v60 = vmul.f32 1.442695, %v2336_v55 }
 0x688   : > { %v2307_v18 = vpop.xlane.xlu1 %2306  ;;  %v2304_v28 = vpop.xlane.xlu0 %2303 }
 0x689   : > { %4557 = vpow2.f32 %v2356_v60  ;;  %v2339_v58 = vsub.f32 %v5507_v53, %v2307_v18  ;;  %v2338_v41 = vsub.f32 %v5502_v47, %v2304_v28 }
 0x68b   : > { %v2362_v24 = vmul.f32 1.442695, %v2339_v58  ;;  %v2360_v63 = vmul.f32 1.442695, %v2338_v41 }
 0x68c   : > { %v2313_v0 = vpop.xlane.xlu1 %2312  ;;  %v2310_v23 = vpop.xlane.xlu0 %2309 }
 0x68d   : > { %4559 = vpow2.f32 %v2362_v24  ;;  %v2341_v34 = vsub.f32 %v5513_v39, %v2313_v0  ;;  %v2340_v49 = vsub.f32 %v5510_v42, %v2310_v23 }
 0x68e   : > { %v5583_v51 = vpop.eup %4551  ;;  %4561 = vpow2.f32 %v2360_v63 }
 0x68f   : > { %v2366_v46 = vmul.f32 1.442695, %v2341_v34  ;;  %v2364_v48 = vmul.f32 1.442695, %v2340_v49  ;;  %v2386_v32 = vsel %vm1312_vm4, %v5583_v51, 0.0  ;;  %v6151_v34 = vmov 0.0  }
 0x690   : > { %v2319_v53 = vpop.xlane.xlu1 %2318  ;;  %2387 = vadd.xlane.f32.xlu0 %v2386_v32  ;;  %v2316_v47 = vpop.xlane.xlu0 %2315 }
 0x691   : > { %4563 = vpow2.f32 %v2366_v46  ;;  %v2343_v29 = vsub.f32 %v5527_v30, %v2319_v53  ;;  %v2342_v61 = vsub.f32 %v5520_v52, %v2316_v47 }
 0x692   : > { %v5589_v56 = vpop.eup %4553  ;;  %4565 = vpow2.f32 %v2364_v48 }
 0x693   : > { %v2370_v42 = vmul.f32 1.442695, %v2343_v29  ;;  %v2368_v39 = vmul.f32 1.442695, %v2342_v61  ;;  %v2389_v37 = vsel %vm1312_vm4, %v5589_v56, 0.0  ;;  %v5593_v55 = vpop.eup %4555 }
 0x694   : > { %v2325_v60 = vpop.xlane.xlu1 %2324  ;;  %2390 = vadd.xlane.f32.xlu1 %v2389_v37  ;;  %v2322_v18 = vpop.xlane.xlu0 %2321  ;;  %v2395_v24 = vsel %vm1312_vm4, %v5593_v55, 0.0 }
 0x695   : > { %4567 = vpow2.f32 %v2370_v42  ;;  %v2345_v28 = vsub.f32 %v5533_v25, %v2325_v60  ;;  %v2344_v30 = vsub.f32 %v5530_v50, %v2322_v18 }
 0x696   : > { %v5597_v58 = vpop.eup %4557  ;;  %4569 = vpow2.f32 %v2368_v39 }
 0x697   : > { %v2374_v52 = vmul.f32 1.442695, %v2345_v28  ;;  %v2372_v41 = vmul.f32 1.442695, %v2344_v30  ;;  %v2392_v63 = vsel %vm1312_vm4, %v5597_v58, 0.0 }
 0x698   : > { %v2516_v0 = vpop.permute.xlu1 %2515  ;;  %2396 = vadd.xlane.f32.xlu1 %v2395_v24  ;;  %2393 = vadd.xlane.f32.xlu0 %v2392_v63  ;;  %v2328_v23 = vpop.xlane.xlu0 %2327 }
 0x699   : > { %4571 = vpow2.f32 %v2374_v52  ;;  %v2346_v25 = vsub.f32 %v5540_v19, %v2328_v23  ;;  %4293 = vmatpush3.bf16.msra.mxu1 %v2516_v0 }
 0x69a   : > { %v5604_v50 = vpop.eup %4559  ;;  %4573 = vpow2.f32 %v2372_v41  ;;  %4304 = vmatprep.subr.bf16.mxu1 %v6151_v34 }
 0x69b   : > { %v5607_v49 = vpop.eup %4561  ;;  %v2376_v46 = vmul.f32 1.442695, %v2346_v25  ;;  %v2401_v48 = vsel %vm1312_vm4, %v5604_v50, 0.0 }
 0x69c   : > { %2402 = vadd.xlane.f32.xlu1 %v2401_v48  ;;  %v2398_v32 = vsel %vm1312_vm4, %v5607_v49, 0.0  ;;  %v2469_v53 = vpop.permute.xlu0 %2468  ;;  %v2563_v63 = vpop.permute.xlu1 %2562 }
 0x69d   : > { %4575 = vpow2.f32 %v2376_v46  ;;  %2399 = vadd.xlane.f32.xlu0 %v2398_v32  ;;  %4287 = vmatpush3.bf16.msra.mxu0 %v2469_v53 }
 0x69e   : > { %v5613_v19 = vpop.eup %4563  ;;  %4298 = vmatprep.subr.bf16.mxu0 %v6151_v34 }
 0x69f   : > { %v5616_v47 = vpop.eup %4565  ;;  %v2407_v29 = vsel %vm1312_vm4, %v5613_v19, 0.0 }
 0x6a0   : > { %2408 = vadd.xlane.f32.xlu1 %v2407_v29  ;;  %v2404_v61 = vsel %vm1312_vm4, %v5616_v47, 0.0  ;;  %v2610_v0 = vpop.permute.xlu1 %2609  ;;  %v2657_v53 = vpop.permute.xlu0 %2656 }
 0x6a1   : > { %2405 = vadd.xlane.f32.xlu0 %v2404_v61 }
 0x6a2   : > { %v5622_v42 = vpop.eup %4567 }
 0x6a3   : > { %v5624_v39 = vpop.eup %4569  ;;  %v2413_v37 = vsel %vm1312_vm4, %v5622_v42, 0.0 }
 0x6a4   : > { %2414 = vadd.xlane.f32.xlu1 %v2413_v37  ;;  %v2410_v60 = vsel %vm1312_vm4, %v5624_v39, 0.0 }
 0x6a5   : > { %2411 = vadd.xlane.f32.xlu0 %v2410_v60 }
 0x6a6   : > { %v5630_v18 = vpop.eup %4571 }
 0x6a7   : > { %v5632_v28 = vpop.eup %4573  ;;  %v2419_v30 = vsel %vm1312_vm4, %v5630_v18, 0.0 }
 0x6a8   : > { %2420 = vadd.xlane.f32.xlu1 %v2419_v30  ;;  %v2416_v52 = vsel %vm1312_vm4, %v5632_v28, 0.0 }
 0x6a9   : > { %2417 = vadd.xlane.f32.xlu0 %v2416_v52 }
 0x6aa   : > { %v5638_v41 = vpop.eup %4575 }
 0x6ab   : > { %v2422_v24 = vsel %vm1312_vm4, %v5638_v41, 0.0 }
 0x6ad   : > { %2423 = vadd.xlane.f32.xlu0 %v2422_v24 }
 0x6c3   : > { %2750 = vrot.lane.b32.xlu0 %v5059_v40, %s4689_s27 }
 0x6d1   : > { %v2331_v23 = vpop.xlane.xlu1 %2330 }
 0x6d2   : > { %v2347_v25 = vsub.f32 %v5560_v45, %v2331_v23 }
 0x6d4   : > { %v2378_v46 = vmul.f32 1.442695, %v2347_v25 }
 0x6d5   : > { %v5651_v29 = vpop.permute.xlu1 %2703 }
 0x6d6   : > { %4577 = vpow2.f32 %v2378_v46  ;;  %v2382_v40 = vpop.xlane.xlu0 %2381 }
 0x6d7   : > { %4579 = vrcp.f32 %v2382_v40 }
 0x6e3   : > { %v5645_v48 = vpop.eup %4577 }
 0x6e4   : > { %v2425_v32 = vsel %vm1312_vm4, %v5645_v48, 0.0  ;;  %v4580_v37 = vpop.eup %4579 }
 0x6e5   : > { %2426 = vadd.xlane.f32.xlu1 %v2425_v32  ;;  %v2444_v60 = vmul.f32 %v4580_v37, %v5564_v7 }
 0x6f6   : > { %2797 = vrot.lane.b32.xlu1 %v5057_v38, %s4689_s27 }
 0x706   : > { %v2385_v61 = vpop.xlane.xlu1 %2384 }
 0x707   : > { %4581 = vrcp.f32 %v2385_v61 }
 0x714   : > { %v4582_v45 = vpop.eup %4581 }
 0x715   : > { %v2445_v30 = vmul.f32 %v4582_v45, %v5571_v14 }
 0x717   : > { %v2460_v52 = vpack.c.bf16 %v2445_v30, %v2444_v60 }
 0x719   : > { %4289 = vmatmul.mubr.msk.bf16.vlgmr.msra.gmra.mxu0 %vm1312_vm4, %v2460_v52  ;;  %v2388_v24 = vpop.xlane.xlu0 %2387 }
 0x71a   : > { %4299 = vmatpush3.bf16.msra.mxu0 %v2563_v63  ;;  %4300 = vmatprep.mubr.msk.bf16.mxu0 %vm4684_vm2, %v6151_v34  ;;  %4583 = vrcp.f32 %v2388_v24 }
 0x71b   : > { %4310 = vmatprep.subr.bf16.mxu0 %v6151_v34 }
 0x71d   : > { %v2391_v38 = vpop.xlane.xlu1 %2390 }
 0x71e   : > { %4585 = vrcp.f32 %v2391_v38 }
 0x721   : > { %v2397_v23 = vpop.xlane.xlu1 %2396  ;;  %v2394_v25 = vpop.xlane.xlu0 %2393 }
 0x722   : > { %4587 = vrcp.f32 %v2397_v23 }
 0x723   : > { %4589 = vrcp.f32 %v2394_v25 }
 0x725   : > { %v2403_v7 = vpop.xlane.xlu1 %2402 }
 0x726   : > { %4591 = vrcp.f32 %v2403_v7  ;;  %v2400_v14 = vpop.xlane.xlu0 %2399 }
 0x727   : > { %4593 = vrcp.f32 %v2400_v14  ;;  %v4584_v46 = vpop.eup %4583 }
 0x728   : > { %v2446_v61 = vmul.f32 %v4584_v46, %v5583_v51 }
 0x729   : > { %v2409_v32 = vpop.xlane.xlu1 %2408 }
 0x72a   : > { %4595 = vrcp.f32 %v2409_v32  ;;  %v2406_v63 = vpop.xlane.xlu0 %2405 }
 0x72b   : > { %v4586_v40 = vpop.eup %4585  ;;  %4597 = vrcp.f32 %v2406_v63 }
 0x72c   : > { %v2447_v37 = vmul.f32 %v4586_v40, %v5589_v56 }
 0x72d   : > { %v2415_v45 = vpop.xlane.xlu1 %2414 }
 0x72e   : > { %4599 = vrcp.f32 %v2415_v45  ;;  %v2412_v60 = vpop.xlane.xlu0 %2411  ;;  %v2461_v30 = vpack.c.bf16 %v2447_v37, %v2446_v61 }
 0x72f   : > { %v4588_v52 = vpop.eup %4587  ;;  %4601 = vrcp.f32 %v2412_v60 }
 0x730   : > { %v4590_v24 = vpop.eup %4589  ;;  %4295 = vmatmul.mubr.msk.bf16.vlgmr.msra.gmra.mxu1 %vm1312_vm4, %v2461_v30  ;;  %v2449_v38 = vmul.f32 %v4588_v52, %v5593_v55 }
 0x731   : > { %4305 = vmatpush3.bf16.msra.mxu1 %v2610_v0  ;;  %v2421_v23 = vpop.xlane.xlu1 %2420  ;;  %v2448_v25 = vmul.f32 %v4590_v24, %v5597_v58  ;;  %4306 = vmatprep.mubr.msk.bf16.mxu1 %vm4684_vm2, %v6151_v34 }
 0x732   : > { %4603 = vrcp.f32 %v2421_v23  ;;  %v2418_v51 = vpop.xlane.xlu0 %2417  ;;  %4316 = vmatprep.subr.bf16.mxu1 %v6151_v34 }
 0x733   : > { %v4592_v56 = vpop.eup %4591  ;;  %4605 = vrcp.f32 %v2418_v51  ;;  %v2462_v7 = vpack.c.bf16 %v2449_v38, %v2448_v25 }
 0x734   : > { %v4594_v14 = vpop.eup %4593  ;;  %v2451_v46 = vmul.f32 %v4592_v56, %v5604_v50 }
 0x735   : > { %4301 = vmatmul.mubr.msk.bf16.vlgmr.msra.gmra.mxu0 %vm1312_vm4, %v2462_v7  ;;  %v2450_v55 = vmul.f32 %v4594_v14, %v5607_v49 }
 0x736   : > { %4311 = vmatpush3.bf16.msra.mxu0 %v2657_v53  ;;  %4312 = vmatprep.mubr.msk.bf16.mxu0 %vm4684_vm2, %v6151_v34  ;;  %v2424_v0 = vpop.xlane.xlu0 %2423 }
 0x737   : > { %v4596_v58 = vpop.eup %4595  ;;  %v2463_v32 = vpack.c.bf16 %v2451_v46, %v2450_v55  ;;  %4322 = vmatprep.subr.bf16.mxu0 %v6151_v34  ;;  %4607 = vrcp.f32 %v2424_v0  ;;  %v2932_v46 = vld [vmem:[%s6136_s6] sm:$0x3] }
 0x738   : > { %v4598_v63 = vpop.eup %4597  ;;  %v2453_v40 = vmul.f32 %v4596_v58, %v5613_v19 }
 0x739   : > { %4307 = vmatmul.mubr.msk.bf16.vlgmr.msra.gmra.mxu1 %vm1312_vm4, %v2463_v32  ;;  %v2452_v50 = vmul.f32 %v4598_v63, %v5616_v47 }
 0x73a   : > { %4317 = vmatpush3.bf16.msra.mxu1 %v5651_v29  ;;  %4318 = vmatprep.mubr.msk.bf16.mxu1 %vm4684_vm2, %v6151_v34  ;;  %v2751_v45 = vpop.permute.xlu0 %2750 }
 0x73b   : > { %v4600_v49 = vpop.eup %4599  ;;  %v2464_v53 = vpack.c.bf16 %v2453_v40, %v2452_v50  ;;  %4328 = vmatprep.subr.bf16.mxu1 %v6151_v34 }
 0x73c   : > { %v4602_v61 = vpop.eup %4601  ;;  %v2455_v37 = vmul.f32 %v4600_v49, %v5622_v42 }
 0x73d   : > { %4313 = vmatmul.mubr.msk.bf16.vlgmr.msra.gmra.mxu0 %vm1312_vm4, %v2464_v53  ;;  %v2454_v19 = vmul.f32 %v4602_v61, %v5624_v39 }
 0x73e   : > { %4323 = vmatpush3.bf16.msra.mxu0 %v2751_v45  ;;  %4324 = vmatprep.mubr.msk.bf16.mxu0 %vm4684_vm2, %v6151_v34 }
 0x73f   : > { %v4604_v47 = vpop.eup %4603  ;;  %v2465_v29 = vpack.c.bf16 %v2455_v37, %v2454_v19  ;;  %4392 = vmatprep.subr.msk.bf16.mxu0 %vm800_vm1, %v2932_v46 }
 0x740   : > { %v4606_v60 = vpop.eup %4605  ;;  %v2457_v30 = vmul.f32 %v4604_v47, %v5630_v18 }
 0x741   : > { %4319 = vmatmul.mubr.msk.bf16.vlgmr.msra.gmra.mxu1 %vm1312_vm4, %v2465_v29  ;;  %v2456_v52 = vmul.f32 %v4606_v60, %v5632_v28 }
 0x742   : > { %4330 = vmatprep.mubr.msk.bf16.mxu1 %vm4684_vm2, %v6151_v34 }
 0x743   : > { %v2466_v42 = vpack.c.bf16 %v2457_v30, %v2456_v52 }
 0x744   : > { %v4608_v38 = vpop.eup %4607 }
 0x745   : > { %4325 = vmatmul.mubr.msk.bf16.vlgmr.msra.gmra.mxu0 %vm1312_vm4, %v2466_v42  ;;  %v2458_v25 = vmul.f32 %v4608_v38, %v5638_v41  ;;  %v2958_v41 = vsel %vm800_vm1, %v2932_v46, 0 }
 0x746   : > { %4335 = vmatpush3.bf16.msra.mxu0 %v2958_v41 }
 0x76e   : > { %v2427_v39 = vpop.xlane.xlu1 %2426 }
 0x76f   : > { %4609 = vrcp.f32 %v2427_v39 }
 0x772   : > { %v2798_v24 = vpop.permute.xlu1 %2797 }
 0x773   : > { %4329 = vmatpush3.bf16.msra.mxu1 %v2798_v24 }
 0x77c   : > { %v4610_v23 = vpop.eup %4609 }
 0x77d   : > { %v2459_v18 = vmul.f32 %v4610_v23, %v5645_v48 }
 0x77f   : > { %v2467_v51 = vpack.c.bf16 %v2459_v18, %v2458_v25 }
 0x781   : > { %4331 = vmatmul.mubr.msk.bf16.vlgmr.msra.gmra.mxu1 %vm1312_vm4, %v2467_v51 }
 0x7d9   : > { %v2508_v28 = vpop.f32.mrf.mxu0 }
 0x7db   : > { %v4290_v56 = vpop.f32.mrf.mxu0 }
 0x7dd   : > { %v2511_v34 = vpop.f32.mrf.mxu0 }
 0x7de   : > { %v4410_v7 = vpack.i.bf16 %v2511_v34, %v2508_v28 }
 0x7df   : > { %v4291_v14 = vpop.f32.mrf.mxu0 }
 0x7e0   : > { %4411 = vrot.lane.b32.xlu0 %v4410_v7, %s4690_s28 }
 0x7f0   : > { %v2555_v48 = vpop.f32.mrf.mxu1 }
 0x7f2   : > { %v4296_v55 = vpop.f32.mrf.mxu1 }
 0x7f4   : > { %v2558_v58 = vpop.f32.mrf.mxu1 }
 0x7f5   : > { %v4415_v0 = vpack.i.bf16 %v2558_v58, %v2555_v48  ;;  %v2602_v32 = vpop.f32.mrf.mxu0 }
 0x7f6   : > { %v4297_v63 = vpop.f32.mrf.mxu1 }
 0x7f7   : > { %v4302_v40 = vpop.f32.mrf.mxu0  ;;  %4416 = vrot.lane.b32.xlu1 %v4415_v0, %s4690_s28 }
 0x7f9   : > { %v2605_v50 = vpop.f32.mrf.mxu0  ;;  %v2649_v49 = vpop.f32.mrf.mxu1 }
 0x7fa   : > { %v4420_v53 = vpack.i.bf16 %v2605_v50, %v2602_v32 }
 0x7fb   : > { %v4303_v61 = vpop.f32.mrf.mxu0  ;;  %v4308_v37 = vpop.f32.mrf.mxu1 }
 0x7fc   : > { %4421 = vrot.lane.b32.xlu0 %v4420_v53, %s4690_s28 }
 0x7fd   : > { %v2652_v45 = vpop.f32.mrf.mxu1  ;;  %v2696_v19 = vpop.f32.mrf.mxu0 }
 0x7fe   : > { %v4425_v47 = vpack.i.bf16 %v2652_v45, %v2649_v49 }
 0x7ff   : > { %v4309_v29 = vpop.f32.mrf.mxu1  ;;  %v4314_v60 = vpop.f32.mrf.mxu0 }
 0x800   : > { %4426 = vrot.lane.b32.xlu1 %v4425_v47, %s4690_s28 }
 0x801   : > { %v2699_v30 = vpop.f32.mrf.mxu0  ;;  %v2743_v52 = vpop.f32.mrf.mxu1 }
 0x802   : > { %v4430_v42 = vpack.i.bf16 %v2699_v30, %v2696_v19 }
 0x803   : > { %v4315_v39 = vpop.f32.mrf.mxu0  ;;  %v4320_v24 = vpop.f32.mrf.mxu1 }
 0x804   : > { %4431 = vrot.lane.b32.xlu0 %v4430_v42, %s4690_s28 }
 0x805   : > { %v2746_v38 = vpop.f32.mrf.mxu1  ;;  %v2790_v23 = vpop.f32.mrf.mxu0 }
 0x806   : > { %v4435_v25 = vpack.i.bf16 %v2746_v38, %v2743_v52 }
 0x807   : > { %v4321_v18 = vpop.f32.mrf.mxu1  ;;  %v4326_v51 = vpop.f32.mrf.mxu0 }
 0x808   : > { %4436 = vrot.lane.b32.xlu1 %v4435_v25, %s4690_s28 }
 0x809   : > { %v2793_v28 = vpop.f32.mrf.mxu0 }
 0x80a   : > { %v4440_v56 = vpack.i.bf16 %v2793_v28, %v2790_v23 }
 0x80b   : > { %v4327_v34 = vpop.f32.mrf.mxu0 }
 0x80c   : > { %4441 = vrot.lane.b32.xlu0 %v4440_v56, %s4690_s28 }
 0x841   : > { %v2837_v7 = vpop.f32.mrf.mxu1 }
 0x843   : > { %v4332_v14 = vpop.f32.mrf.mxu1 }
 0x845   : > { %v2840_v46 = vpop.f32.mrf.mxu1 }
 0x846   : > { %v4445_v41 = vpack.i.bf16 %v2840_v46, %v2837_v7 }
 0x847   : > { %v4333_v48 = vpop.f32.mrf.mxu1 }
 0x848   : > { %4446 = vrot.lane.b32.xlu1 %v4445_v41, %s4690_s28 }
 0x852   : > { %v4412_v55 = vpop.permute.xlu0 %4411 }
 0x853   : > { %v4414_v58 = vunpack.i.h.bf16 %v4412_v55  ;;  %v4413_v0 = vunpack.i.l.bf16 %v4412_v55 }
 0x855   : > { %v2909_v32 = vsel %vm914_vm3, %v5433_v9, %v4414_v58  ;;  %v2908_v63 = vsel %vm914_vm3, %v5431_v62, %v4413_v0 }
 0x856   : > { %v2924_v40 = vpack.c.bf16 %v2909_v32, %v2908_v63  ;;  %v5752_v63 = vld [vmem:[%s6137_s7] ss:$0 sm:$0xff] }
 0x858   : > { %4336 = vmatprep.mubr.msk.bf16.mxu0 %vm504_vm0, %v2924_v40 }
 0x869   : > { %v4417_v50 = vpop.permute.xlu1 %4416 }
 0x86a   : > { %v4419_v49 = vunpack.i.h.bf16 %v4417_v50  ;;  %v4418_v53 = vunpack.i.l.bf16 %v4417_v50 }
 0x86c   : > { %v2911_v61 = vsel %vm914_vm3, %v5437_v44, %v4419_v49  ;;  %v2910_v37 = vsel %vm914_vm3, %v5435_v57, %v4418_v53 }
 0x86d   : > { %v2925_v45 = vpack.c.bf16 %v2911_v61, %v2910_v37 }
 0x86e   : > { %v4422_v19 = vpop.permute.xlu0 %4421 }
 0x86f   : > { %v4424_v47 = vunpack.i.h.bf16 %v4422_v19  ;;  %v4423_v29 = vunpack.i.l.bf16 %v4422_v19  ;;  %4337 = vmatmul.mubr.msk.bf16.vlgmr.msra.gmra.mxu0 %vm504_vm0, %v2925_v45 }
 0x871   : > { %v2913_v62 = vsel %vm914_vm3, %v5441_v43, %v4424_v47  ;;  %v2912_v9 = vsel %vm914_vm3, %v5439_v20, %v4423_v29 }
 0x872   : > { %v2926_v60 = vpack.c.bf16 %v2913_v62, %v2912_v9  ;;  %v4427_v30 = vpop.permute.xlu1 %4426 }
 0x873   : > { %v4429_v52 = vunpack.i.h.bf16 %v4427_v30  ;;  %v4428_v42 = vunpack.i.l.bf16 %v4427_v30 }
 0x874   : > { %4340 = vmatprep.mubr.msk.bf16.mxu0 %vm504_vm0, %v2926_v60 }
 0x875   : > { %v2915_v57 = vsel %vm914_vm3, %v5445_v15, %v4429_v52  ;;  %v2914_v44 = vsel %vm914_vm3, %v5443_v13, %v4428_v42 }
 0x876   : > { %v2927_v39 = vpack.c.bf16 %v2915_v57, %v2914_v44  ;;  %v4432_v24 = vpop.permute.xlu0 %4431 }
 0x877   : > { %v4434_v38 = vunpack.i.h.bf16 %v4432_v24  ;;  %v4433_v23 = vunpack.i.l.bf16 %v4432_v24 }
 0x878   : > { %4341 = vmatmul.mubr.msk.bf16.gmra.mxu0 %vm504_vm0, %v2927_v39 }
 0x879   : > { %v2917_v20 = vsel %vm914_vm3, %v5449_v6, %v4434_v38  ;;  %v2916_v43 = vsel %vm914_vm3, %v5447_v35, %v4433_v23 }
 0x87a   : > { %v2928_v25 = vpack.c.bf16 %v2917_v20, %v2916_v43  ;;  %v4437_v18 = vpop.permute.xlu1 %4436 }
 0x87b   : > { %v4439_v51 = vunpack.i.h.bf16 %v4437_v18  ;;  %v4438_v28 = vunpack.i.l.bf16 %v4437_v18 }
 0x87c   : > { %4344 = vmatprep.mubr.msk.bf16.mxu0 %vm504_vm0, %v2928_v25 }
 0x87d   : > { %v2919_v13 = vsel %vm914_vm3, %v5477_v54, %v4439_v51  ;;  %v2918_v15 = vsel %vm914_vm3, %v5473_v1, %v4438_v28 }
 0x87e   : > { %v2929_v56 = vpack.c.bf16 %v2919_v13, %v2918_v15  ;;  %v4442_v34 = vpop.permute.xlu0 %4441 }
 0x87f   : > { %v4444_v7 = vunpack.i.h.bf16 %v4442_v34  ;;  %v4443_v14 = vunpack.i.l.bf16 %v4442_v34 }
 0x880   : > { %4345 = vmatmul.mubr.msk.bf16.gmra.mxu0 %vm504_vm0, %v2929_v56 }
 0x881   : > { %v2921_v35 = vsel %vm914_vm3, %v5453_v8, %v4444_v7  ;;  %v2920_v6 = vsel %vm914_vm3, %v5451_v59, %v4443_v14 }
 0x882   : > { %v2930_v46 = vpack.c.bf16 %v2921_v35, %v2920_v6 }
 0x884   : > { %4348 = vmatprep.mubr.msk.bf16.mxu0 %vm504_vm0, %v2930_v46 }
 0x8ba   : > { %v4447_v41 = vpop.permute.xlu1 %4446 }
 0x8bb   : > { %v4449_v54 = vunpack.i.h.bf16 %v4447_v41  ;;  %v4448_v48 = vunpack.i.l.bf16 %v4447_v41 }
 0x8bd   : > { %v2923_v1 = vsel %vm914_vm3, %v5486_v33, %v4449_v54  ;;  %v2922_v55 = vsel %vm914_vm3, %v5482_v10, %v4448_v48  ;;  %v6152_v54 = vld [vmem:[#allocation3_spill] sm:$0xff] }
 0x8be   : > { %v2931_v58 = vpack.c.bf16 %v2923_v1, %v2922_v55  ;;  %v6153_v1 = vld [vmem:[#allocation2_spill] sm:$0xff] }
 0x8c0   : > { %4349 = vmatmul.mubr.msk.bf16.gmra.mxu0 %vm504_vm0, %v2931_v58 }
 0x92f   : > { %v4338_v0 = vpop.f32.mrf.mxu0 }
 0x930   : > { %v3059_v32 = vadd.f32 %v4338_v0, %v4788_v3 }
 0x931   : > { %v2994_v8 = vpop.f32.mrf.mxu0 }
 0x932   : > { %v3057_v59 = vadd.f32 %v4786_v2, %v2994_v8  ;;  %v5758_v10 = vadd.f32 %v5752_v63, %v3059_v32 }
 0x933   : > { %v4339_v40 = vpop.f32.mrf.mxu0 }
 0x934   : > { %v5755_v33 = vadd.f32 %v5752_v63, %v3057_v59  ;;  %v3060_v49 = vadd.f32 %v4339_v40, %v4792_v5  ;;  %v3102_v19 = vsel %vm504_vm0, %v5758_v10, 0.0 }
 0x935   : > { %v2997_v50 = vpop.f32.mrf.mxu0 }
 0x936   : > { %v3058_v53 = vadd.f32 %v4790_v4, %v2997_v50  ;;  %v3096_v2 = vsel %vm504_vm0, %v5755_v33, 0.0  ;;  %v5768_v37 = vadd.f32 %v5752_v63, %v3060_v49 }
 0x937   : > { %3097 = vadd.xlane.f32.xlu0 %v3096_v2 }
 0x938   : > { %v5765_v3 = vadd.f32 %v5752_v63, %v3058_v53  ;;  %v4342_v61 = vpop.f32.mrf.mxu0  ;;  %v3105_v60 = vsel %vm504_vm0, %v5768_v37, 0.0 }
 0x939   : > { %v3063_v29 = vadd.f32 %v4342_v61, %v4812_v16 }
 0x93a   : > { %v3010_v45 = vpop.f32.mrf.mxu0  ;;  %v3099_v5 = vsel %vm504_vm0, %v5765_v3, 0.0 }
 0x93b   : > { %v3061_v4 = vadd.f32 %v4803_v11, %v3010_v45  ;;  %3103 = vadd.xlane.f32.xlu0 %v3102_v19  ;;  %3100 = vadd.xlane.f32.xlu1 %v3099_v5  ;;  %v5787_v57 = vadd.f32 %v5752_v63, %v3063_v29 }
 0x93c   : > { %v4343_v47 = vpop.f32.mrf.mxu0 }
 0x93d   : > { %v5777_v62 = vadd.f32 %v5752_v63, %v3061_v4  ;;  %v3064_v30 = vadd.f32 %v4343_v47, %v4814_v17  ;;  %v3114_v43 = vsel %vm504_vm0, %v5787_v57, 0.0 }
 0x93e   : > { %v3013_v9 = vpop.f32.mrf.mxu0 }
 0x93f   : > { %v3062_v52 = vadd.f32 %v4805_v12, %v3013_v9  ;;  %3106 = vadd.xlane.f32.xlu0 %v3105_v60  ;;  %v3108_v44 = vsel %vm504_vm0, %v5777_v62, 0.0  ;;  %v5792_v39 = vadd.f32 %v5752_v63, %v3064_v30 }
 0x940   : > { %v4346_v42 = vpop.f32.mrf.mxu0 }
 0x941   : > { %v5784_v11 = vadd.f32 %v5752_v63, %v3062_v52  ;;  %v3067_v38 = vadd.f32 %v4346_v42, %v4830_v26 }
 0x942   : > { %v3026_v16 = vpop.f32.mrf.mxu0 }
 0x943   : > { %v3065_v24 = vadd.f32 %v4821_v21, %v3026_v16  ;;  %3109 = vadd.xlane.f32.xlu0 %v3108_v44  ;;  %v3111_v12 = vsel %vm504_vm0, %v5784_v11, 0.0  ;;  %v3117_v21 = vsel %vm504_vm0, %v5792_v39, 0.0  ;;  %v5811_v26 = vadd.f32 %v5752_v63, %v3067_v38 }
 0x944   : > { %3112 = vadd.xlane.f32.xlu1 %v3111_v12  ;;  %v4347_v17 = vpop.f32.mrf.mxu0 }
 0x945   : > { %v5799_v23 = vadd.f32 %v5752_v63, %v3065_v24  ;;  %v3068_v25 = vadd.f32 %v4347_v17, %v4832_v27  ;;  %v3126_v27 = vsel %vm504_vm0, %v5811_v26, 0.0 }
 0x946   : > { %v3029_v20 = vpop.f32.mrf.mxu0 }
 0x947   : > { %v3066_v18 = vadd.f32 %v4823_v22, %v3029_v20  ;;  %3115 = vadd.xlane.f32.xlu0 %v3114_v43  ;;  %v3120_v28 = vsel %vm504_vm0, %v5799_v23, 0.0  ;;  %v5816_v13 = vadd.f32 %v5752_v63, %v3068_v25 }
 0x948   : > { %3118 = vadd.xlane.f32.xlu1 %v3117_v21 }
 0x949   : > { %v5808_v51 = vadd.f32 %v5752_v63, %v3066_v18  ;;  %v3129_v15 = vsel %vm504_vm0, %v5816_v13, 0.0 }
 0x94b   : > { %3121 = vadd.xlane.f32.xlu0 %v3120_v28  ;;  %v3123_v22 = vsel %vm504_vm0, %v5808_v51, 0.0 }
 0x94c   : > { %3124 = vadd.xlane.f32.xlu1 %v3123_v22 }
 0x94f   : > { %3127 = vadd.xlane.f32.xlu0 %v3126_v27 }
 0x950   : > { %3130 = vadd.xlane.f32.xlu1 %v3129_v15 }
 0x980   : > { %v4350_v56 = vpop.f32.mrf.mxu0 }
 0x981   : > { %v3071_v7 = vadd.f32 %v4350_v56, %v4848_v36 }
 0x982   : > { %v3042_v34 = vpop.f32.mrf.mxu0 }
 0x983   : > { %v3069_v14 = vadd.f32 %v4839_v31, %v3042_v34  ;;  %v5830_v41 = vadd.f32 %v5752_v63, %v3071_v7 }
 0x984   : > { %v4351_v35 = vpop.f32.mrf.mxu0 }
 0x985   : > { %v5827_v6 = vadd.f32 %v5752_v63, %v3069_v14  ;;  %v3072_v48 = vadd.f32 %v4351_v35, %v6152_v54  ;;  %v3138_v0 = vsel %vm504_vm0, %v5830_v41, 0.0 }
 0x986   : > { %v3045_v46 = vpop.f32.mrf.mxu0 }
 0x987   : > { %v3070_v55 = vadd.f32 %v6153_v1, %v3045_v46  ;;  %v3132_v58 = vsel %vm504_vm0, %v5827_v6, 0.0  ;;  %v5840_v31 = vadd.f32 %v5752_v63, %v3072_v48 }
 0x988   : > { %3133 = vadd.xlane.f32.xlu0 %v3132_v58 }
 0x989   : > { %v5837_v36 = vadd.f32 %v5752_v63, %v3070_v55  ;;  %v3141_v32 = vsel %vm504_vm0, %v5840_v31, 0.0 }
 0x98b   : > { %v3135_v8 = vsel %vm504_vm0, %v5837_v36, 0.0 }
 0x98c   : > { %3139 = vadd.xlane.f32.xlu0 %v3138_v0  ;;  %3136 = vadd.xlane.f32.xlu1 %v3135_v8 }
 0x990   : > { %3142 = vadd.xlane.f32.xlu1 %v3141_v32 }
 0x9c0   : > { %v3098_v59 = vpop.xlane.xlu0 %3097 }
 0x9c1   : > { %v3144_v40 = vmul.f32 0.25, %v3098_v59 }
 0x9c3   : > { %v5849_v50 = vsub.f32 %v5755_v33, %v3144_v40 }
 0x9c4   : > { %v3104_v49 = vpop.xlane.xlu0 %3103  ;;  %v3101_v63 = vpop.xlane.xlu1 %3100 }
 0x9c5   : > { %v3146_v53 = vmul.f32 0.25, %v3104_v49  ;;  %v3145_v2 = vmul.f32 0.25, %v3101_v63  ;;  %v3176_v61 = vmul.f32 %v5849_v50, %v5849_v50 }
 0x9c7   : > { %v5854_v45 = vsub.f32 %v5758_v10, %v3146_v53  ;;  %v5857_v19 = vsub.f32 %v5765_v3, %v3145_v2  ;;  %v3192_v5 = vsel %vm504_vm0, %v3176_v61, 0.0 }
 0x9c8   : > { %v3107_v4 = vpop.xlane.xlu0 %3106  ;;  %3193 = vadd.xlane.f32.xlu0 %v3192_v5 }
 0x9c9   : > { %v3147_v47 = vmul.f32 0.25, %v3107_v4  ;;  %v3178_v29 = vmul.f32 %v5854_v45, %v5854_v45  ;;  %v3177_v9 = vmul.f32 %v5857_v19, %v5857_v19 }
 0x9cb   : > { %v5865_v60 = vsub.f32 %v5768_v37, %v3147_v47  ;;  %v3198_v30 = vsel %vm504_vm0, %v3178_v29, 0.0  ;;  %v3195_v52 = vsel %vm504_vm0, %v3177_v9, 0.0 }
 0x9cc   : > { %v3110_v42 = vpop.xlane.xlu0 %3109  ;;  %3199 = vadd.xlane.f32.xlu0 %v3198_v30  ;;  %3196 = vadd.xlane.f32.xlu1 %v3195_v52  ;;  %v3358_v30 = vld [vmem:[%s6140_s10] sm:$0x3] }
 0x9cd   : > { %v3148_v16 = vmul.f32 0.25, %v3110_v42  ;;  %v3113_v44 = vpop.xlane.xlu1 %3112  ;;  %v3179_v24 = vmul.f32 %v5865_v60, %v5865_v60  ;;  %4393 = vmatprep.subr.msk.bf16.mxu1 %vm800_vm1, %v3358_v30  ;;  %v3391_v52 = vsel %vm800_vm1, %v3358_v30, 0 }
 0x9ce   : > { %v3149_v12 = vmul.f32 0.25, %v3113_v44  ;;  %4353 = vmatpush3.bf16.msra.mxu1 %v3391_v52 }
 0x9cf   : > { %v5872_v17 = vsub.f32 %v5777_v62, %v3148_v16  ;;  %v3201_v38 = vsel %vm504_vm0, %v3179_v24, 0.0 }
 0x9d0   : > { %v5876_v20 = vsub.f32 %v5784_v11, %v3149_v12  ;;  %v3116_v43 = vpop.xlane.xlu0 %3115  ;;  %3202 = vadd.xlane.f32.xlu1 %v3201_v38 }
 0x9d1   : > { %v3150_v25 = vmul.f32 0.25, %v3116_v43  ;;  %v3119_v18 = vpop.xlane.xlu1 %3118  ;;  %v3180_v21 = vmul.f32 %v5872_v17, %v5872_v17 }
 0x9d2   : > { %v3151_v28 = vmul.f32 0.25, %v3119_v18  ;;  %v3181_v22 = vmul.f32 %v5876_v20, %v5876_v20 }
 0x9d3   : > { %v5883_v27 = vsub.f32 %v5787_v57, %v3150_v25  ;;  %v3204_v15 = vsel %vm504_vm0, %v3180_v21, 0.0 }
 0x9d4   : > { %v5887_v56 = vsub.f32 %v5792_v39, %v3151_v28  ;;  %v3122_v34 = vpop.xlane.xlu0 %3121  ;;  %3205 = vadd.xlane.f32.xlu0 %v3204_v15  ;;  %v3207_v7 = vsel %vm504_vm0, %v3181_v22, 0.0 }
 0x9d5   : > { %v3152_v14 = vmul.f32 0.25, %v3122_v34  ;;  %v3125_v35 = vpop.xlane.xlu1 %3124  ;;  %3208 = vadd.xlane.f32.xlu1 %v3207_v7  ;;  %v3182_v46 = vmul.f32 %v5883_v27, %v5883_v27 }
 0x9d6   : > { %v3153_v54 = vmul.f32 0.25, %v3125_v35  ;;  %v3183_v48 = vmul.f32 %v5887_v56, %v5887_v56 }
 0x9d7   : > { %v5895_v1 = vsub.f32 %v5799_v23, %v3152_v14  ;;  %v3210_v55 = vsel %vm504_vm0, %v3182_v46, 0.0 }
 0x9d8   : > { %v5899_v58 = vsub.f32 %v5808_v51, %v3153_v54  ;;  %v3128_v0 = vpop.xlane.xlu0 %3127  ;;  %3211 = vadd.xlane.f32.xlu0 %v3210_v55  ;;  %v3213_v8 = vsel %vm504_vm0, %v3183_v48, 0.0 }
 0x9d9   : > { %v3154_v32 = vmul.f32 0.25, %v3128_v0  ;;  %v3131_v59 = vpop.xlane.xlu1 %3130  ;;  %3214 = vadd.xlane.f32.xlu1 %v3213_v8  ;;  %v3184_v40 = vmul.f32 %v5895_v1, %v5895_v1 }
 0x9da   : > { %v3155_v49 = vmul.f32 0.25, %v3131_v59  ;;  %v3185_v63 = vmul.f32 %v5899_v58, %v5899_v58 }
 0x9db   : > { %v5907_v53 = vsub.f32 %v5811_v26, %v3154_v32  ;;  %v3216_v2 = vsel %vm504_vm0, %v3184_v40, 0.0 }
 0x9dc   : > { %v5911_v61 = vsub.f32 %v5816_v13, %v3155_v49  ;;  %3217 = vadd.xlane.f32.xlu0 %v3216_v2  ;;  %v3219_v5 = vsel %vm504_vm0, %v3185_v63, 0.0 }
 0x9dd   : > { %3220 = vadd.xlane.f32.xlu1 %v3219_v5  ;;  %v3186_v4 = vmul.f32 %v5907_v53, %v5907_v53 }
 0x9de   : > { %v3187_v47 = vmul.f32 %v5911_v61, %v5911_v61 }
 0x9df   : > { %v3222_v29 = vsel %vm504_vm0, %v3186_v4, 0.0 }
 0x9e0   : > { %3223 = vadd.xlane.f32.xlu0 %v3222_v29  ;;  %v3225_v9 = vsel %vm504_vm0, %v3187_v47, 0.0 }
 0x9e1   : > { %3226 = vadd.xlane.f32.xlu1 %v3225_v9 }
 0xa11   : > { %v3134_v42 = vpop.xlane.xlu0 %3133 }
 0xa12   : > { %v3156_v16 = vmul.f32 0.25, %v3134_v42 }
 0xa14   : > { %v5926_v44 = vsub.f32 %v5827_v6, %v3156_v16 }
 0xa15   : > { %v3140_v24 = vpop.xlane.xlu0 %3139  ;;  %v3137_v12 = vpop.xlane.xlu1 %3136 }
 0xa16   : > { %v3158_v38 = vmul.f32 0.25, %v3140_v24  ;;  %v3157_v43 = vmul.f32 0.25, %v3137_v12  ;;  %v3188_v25 = vmul.f32 %v5926_v44, %v5926_v44 }
 0xa18   : > { %v5931_v18 = vsub.f32 %v5830_v41, %v3158_v38  ;;  %v5934_v21 = vsub.f32 %v5837_v36, %v3157_v43  ;;  %v3228_v28 = vsel %vm504_vm0, %v3188_v25, 0.0 }
 0xa19   : > { %3229 = vadd.xlane.f32.xlu0 %v3228_v28  ;;  %v3143_v22 = vpop.xlane.xlu1 %3142 }
 0xa1a   : > { %v3159_v15 = vmul.f32 0.25, %v3143_v22  ;;  %v3190_v34 = vmul.f32 %v5931_v18, %v5931_v18  ;;  %v3189_v7 = vmul.f32 %v5934_v21, %v5934_v21 }
 0xa1c   : > { %v5942_v14 = vsub.f32 %v5840_v31, %v3159_v15  ;;  %v3234_v35 = vsel %vm504_vm0, %v3190_v34, 0.0  ;;  %v3231_v46 = vsel %vm504_vm0, %v3189_v7, 0.0 }
 0xa1d   : > { %3235 = vadd.xlane.f32.xlu0 %v3234_v35  ;;  %3232 = vadd.xlane.f32.xlu1 %v3231_v46  ;;  %v5953_v46 = vld [vmem:[%s6138_s8] ss:$0 sm:$0xff] }
 0xa1e   : > { %v3191_v54 = vmul.f32 %v5942_v14, %v5942_v14 }
 0xa20   : > { %v3237_v48 = vsel %vm504_vm0, %v3191_v54, 0.0 }
 0xa21   : > { %3238 = vadd.xlane.f32.xlu1 %v3237_v48 }
 0xa51   : > { %v3194_v55 = vpop.xlane.xlu0 %3193 }
 0xa52   : > { %v3240_v0 = vmul.f32 0.25, %v3194_v55 }
 0xa54   : > { %v3256_v8 = vadd.f32 1e-05, %v3240_v0 }
 0xa55   : > { %v3200_v32 = vpop.xlane.xlu0 %3199  ;;  %v3197_v59 = vpop.xlane.xlu1 %3196 }
 0xa56   : > { %4611 = vrsqrt.f32 %v3256_v8  ;;  %v3242_v40 = vmul.f32 0.25, %v3200_v32  ;;  %v3241_v49 = vmul.f32 0.25, %v3197_v59 }
 0xa58   : > { %v3258_v63 = vadd.f32 1e-05, %v3242_v40  ;;  %v3257_v2 = vadd.f32 1e-05, %v3241_v49 }
 0xa59   : > { %v3203_v5 = vpop.xlane.xlu1 %3202 }
 0xa5a   : > { %4613 = vrsqrt.f32 %v3258_v63  ;;  %v3243_v4 = vmul.f32 0.25, %v3203_v5 }
 0xa5b   : > { %4615 = vrsqrt.f32 %v3257_v2  ;;  %v5961_v2 = vld [vmem:[%s6139_s9] ss:$0 sm:$0xff] }
 0xa5c   : > { %v3259_v47 = vadd.f32 1e-05, %v3243_v4 }
 0xa5d   : > { %v3206_v29 = vpop.xlane.xlu0 %3205 }
 0xa5e   : > { %4617 = vrsqrt.f32 %v3259_v47  ;;  %v3244_v9 = vmul.f32 0.25, %v3206_v29  ;;  %v3209_v30 = vpop.xlane.xlu1 %3208 }
 0xa5f   : > { %v3245_v52 = vmul.f32 0.25, %v3209_v30 }
 0xa60   : > { %v3260_v42 = vadd.f32 1e-05, %v3244_v9 }
 0xa61   : > { %v3261_v16 = vadd.f32 1e-05, %v3245_v52  ;;  %v3212_v24 = vpop.xlane.xlu0 %3211 }
 0xa62   : > { %4619 = vrsqrt.f32 %v3260_v42  ;;  %v3246_v12 = vmul.f32 0.25, %v3212_v24  ;;  %v3215_v38 = vpop.xlane.xlu1 %3214 }
 0xa63   : > { %v4612_v43 = vpop.eup %4611  ;;  %4621 = vrsqrt.f32 %v3261_v16  ;;  %v3247_v25 = vmul.f32 0.25, %v3215_v38 }
 0xa64   : > { %v3262_v28 = vadd.f32 1e-05, %v3246_v12  ;;  %v3288_v34 = vmul.f32 %v4612_v43, %v5849_v50 }
 0xa65   : > { %v3263_v22 = vadd.f32 1e-05, %v3247_v25  ;;  %v3218_v15 = vpop.xlane.xlu0 %3217 }
 0xa66   : > { %4623 = vrsqrt.f32 %v3262_v28  ;;  %v3248_v7 = vmul.f32 0.25, %v3218_v15  ;;  %v3221_v35 = vpop.xlane.xlu1 %3220  ;;  %v3311_v50 = vmul.f32 %v5953_v46, %v3288_v34 }
 0xa67   : > { %v4614_v54 = vpop.eup %4613  ;;  %4625 = vrsqrt.f32 %v3263_v22  ;;  %v3249_v48 = vmul.f32 0.25, %v3221_v35 }
 0xa68   : > { %v4616_v55 = vpop.eup %4615  ;;  %v3290_v0 = vmul.f32 %v4614_v54, %v5854_v45  ;;  %v3264_v8 = vadd.f32 1e-05, %v3248_v7  ;;  %v3334_v30 = vadd.f32 %v5961_v2, %v3311_v50 }
 0xa69   : > { %v3265_v32 = vadd.f32 1e-05, %v3249_v48  ;;  %v3224_v59 = vpop.xlane.xlu0 %3223  ;;  %v3289_v40 = vmul.f32 %v4616_v55, %v5857_v19 }
 0xa6a   : > { %4627 = vrsqrt.f32 %v3264_v8  ;;  %v3250_v49 = vmul.f32 0.25, %v3224_v59  ;;  %v3227_v63 = vpop.xlane.xlu1 %3226  ;;  %v3313_v19 = vmul.f32 %v5953_v46, %v3290_v0 }
 0xa6b   : > { %v4618_v5 = vpop.eup %4617  ;;  %4629 = vrsqrt.f32 %v3265_v32  ;;  %v3251_v4 = vmul.f32 0.25, %v3227_v63  ;;  %v3312_v45 = vmul.f32 %v5953_v46, %v3289_v40 }
 0xa6c   : > { %v3291_v47 = vmul.f32 %v4618_v5, %v5865_v60  ;;  %v3266_v29 = vadd.f32 1e-05, %v3250_v49  ;;  %v3336_v38 = vadd.f32 %v5961_v2, %v3313_v19 }
 0xa6d   : > { %v3267_v9 = vadd.f32 1e-05, %v3251_v4  ;;  %v3335_v52 = vadd.f32 %v5961_v2, %v3312_v45 }
 0xa6e   : > { %4631 = vrsqrt.f32 %v3266_v29  ;;  %v3314_v42 = vmul.f32 %v5953_v46, %v3291_v47 }
 0xa6f   : > { %v4620_v16 = vpop.eup %4619  ;;  %4633 = vrsqrt.f32 %v3267_v9  ;;  %v3350_v24 = vpack.c.bf16 %v3335_v52, %v3334_v30 }
 0xa70   : > { %v4622_v12 = vpop.eup %4621  ;;  %v3337_v43 = vadd.f32 %v5961_v2, %v3314_v42  ;;  %v3292_v60 = vmul.f32 %v4620_v16, %v5872_v17 }
 0xa71   : > { %4354 = vmatprep.mubr.msk.bf16.mxu1 %vm504_vm0, %v3350_v24  ;;  %v3293_v25 = vmul.f32 %v4622_v12, %v5876_v20 }
 0xa72   : > { %v3351_v28 = vpack.c.bf16 %v3337_v43, %v3336_v38  ;;  %v3315_v22 = vmul.f32 %v5953_v46, %v3292_v60 }
 0xa73   : > { %v4624_v15 = vpop.eup %4623  ;;  %v3316_v34 = vmul.f32 %v5953_v46, %v3293_v25 }
 0xa74   : > { %v4626_v7 = vpop.eup %4625  ;;  %4355 = vmatmul.mubr.msk.bf16.vlgmr.msra.gmra.mxu1 %vm504_vm0, %v3351_v28  ;;  %v3338_v35 = vadd.f32 %v5961_v2, %v3315_v22  ;;  %v3294_v54 = vmul.f32 %v4624_v15, %v5883_v27 }
 0xa75   : > { %v3339_v48 = vadd.f32 %v5961_v2, %v3316_v34  ;;  %v3295_v17 = vmul.f32 %v4626_v7, %v5887_v56 }
 0xa76   : > { %v3317_v55 = vmul.f32 %v5953_v46, %v3294_v54 }
 0xa77   : > { %v4628_v20 = vpop.eup %4627  ;;  %v3352_v0 = vpack.c.bf16 %v3339_v48, %v3338_v35  ;;  %v3318_v8 = vmul.f32 %v5953_v46, %v3295_v17 }
 0xa78   : > { %v4630_v32 = vpop.eup %4629  ;;  %v3340_v59 = vadd.f32 %v5961_v2, %v3317_v55  ;;  %v3296_v40 = vmul.f32 %v4628_v20, %v5895_v1 }
 0xa79   : > { %4358 = vmatprep.mubr.msk.bf16.mxu1 %vm504_vm0, %v3352_v0  ;;  %v3341_v50 = vadd.f32 %v5961_v2, %v3318_v8  ;;  %v3297_v27 = vmul.f32 %v4630_v32, %v5899_v58 }
 0xa7a   : > { %v3319_v49 = vmul.f32 %v5953_v46, %v3296_v40 }
 0xa7b   : > { %v4632_v56 = vpop.eup %4631  ;;  %v3353_v63 = vpack.c.bf16 %v3341_v50, %v3340_v59  ;;  %v3320_v5 = vmul.f32 %v5953_v46, %v3297_v27 }
 0xa7c   : > { %v4634_v4 = vpop.eup %4633  ;;  %v3342_v45 = vadd.f32 %v5961_v2, %v3319_v49  ;;  %v3298_v47 = vmul.f32 %v4632_v56, %v5907_v53 }
 0xa7d   : > { %4359 = vmatmul.mubr.msk.bf16.gmra.mxu1 %vm504_vm0, %v3353_v63  ;;  %v3343_v1 = vadd.f32 %v5961_v2, %v3320_v5  ;;  %v3299_v29 = vmul.f32 %v4634_v4, %v5911_v61 }
 0xa7e   : > { %v3321_v19 = vmul.f32 %v5953_v46, %v3298_v47 }
 0xa7f   : > { %v3354_v58 = vpack.c.bf16 %v3343_v1, %v3342_v45  ;;  %v3322_v9 = vmul.f32 %v5953_v46, %v3299_v29 }
 0xa80   : > { %v3344_v30 = vadd.f32 %v5961_v2, %v3321_v19 }
 0xa81   : > { %4362 = vmatprep.mubr.msk.bf16.mxu1 %vm504_vm0, %v3354_v58  ;;  %v3345_v52 = vadd.f32 %v5961_v2, %v3322_v9 }
 0xa83   : > { %v3355_v42 = vpack.c.bf16 %v3345_v52, %v3344_v30 }
 0xa85   : > { %4363 = vmatmul.mubr.msk.bf16.gmra.mxu1 %vm504_vm0, %v3355_v42 }
 0xaa2   : > { %v3230_v53 = vpop.xlane.xlu0 %3229 }
 0xaa3   : > { %v3252_v16 = vmul.f32 0.25, %v3230_v53 }
 0xaa5   : > { %v3268_v24 = vadd.f32 1e-05, %v3252_v16 }
 0xaa6   : > { %v3236_v12 = vpop.xlane.xlu0 %3235  ;;  %v3233_v38 = vpop.xlane.xlu1 %3232 }
 0xaa7   : > { %4635 = vrsqrt.f32 %v3268_v24  ;;  %v3254_v61 = vmul.f32 0.25, %v3236_v12  ;;  %v3253_v43 = vmul.f32 0.25, %v3233_v38 }
 0xaa9   : > { %v3270_v60 = vadd.f32 1e-05, %v3254_v61  ;;  %v3269_v25 = vadd.f32 1e-05, %v3253_v43 }
 0xaaa   : > { %v3239_v28 = vpop.xlane.xlu1 %3238 }
 0xaab   : > { %4637 = vrsqrt.f32 %v3270_v60  ;;  %v3255_v22 = vmul.f32 0.25, %v3239_v28 }
 0xaac   : > { %4639 = vrsqrt.f32 %v3269_v25 }
 0xaad   : > { %v3271_v15 = vadd.f32 1e-05, %v3255_v22 }
 0xaaf   : > { %4641 = vrsqrt.f32 %v3271_v15 }
 0xab4   : > { %v4636_v34 = vpop.eup %4635 }
 0xab5   : > { %v3300_v7 = vmul.f32 %v4636_v34, %v5926_v44 }
 0xab7   : > { %v3323_v55 = vmul.f32 %v5953_v46, %v3300_v7 }
 0xab8   : > { %v4638_v35 = vpop.eup %4637 }
 0xab9   : > { %v4640_v54 = vpop.eup %4639  ;;  %v3302_v48 = vmul.f32 %v4638_v35, %v5931_v18  ;;  %v3346_v59 = vadd.f32 %v5961_v2, %v3323_v55 }
 0xaba   : > { %v3301_v17 = vmul.f32 %v4640_v54, %v5934_v21 }
 0xabb   : > { %v3325_v32 = vmul.f32 %v5953_v46, %v3302_v48 }
 0xabc   : > { %v4642_v20 = vpop.eup %4641  ;;  %v3324_v0 = vmul.f32 %v5953_v46, %v3301_v17 }
 0xabd   : > { %v3303_v8 = vmul.f32 %v4642_v20, %v5942_v14  ;;  %v3348_v18 = vadd.f32 %v5961_v2, %v3325_v32  ;;  %v4450_v14 = vld [vmem:[%s6142_s12] sm:$0xff]  }
 0xabe   : > { %v3347_v40 = vadd.f32 %v5961_v2, %v3324_v0  ;;  %4370 = vmatprep.subr.bf16.mxu0 %v4450_v14 }
 0xabf   : > { %v3326_v44 = vmul.f32 %v5953_v46, %v3303_v8  ;;  %4371 = vmatpush3.bf16.msra.mxu0 %v4450_v14  ;;  %v6021_v46 = vld [vmem:[%s6141_s11] ss:$0 sm:$0xff] }
 0xac0   : > { %v3356_v50 = vpack.c.bf16 %v3347_v40, %v3346_v59 }
 0xac1   : > { %v3349_v21 = vadd.f32 %v5961_v2, %v3326_v44 }
 0xac2   : > { %4366 = vmatprep.mubr.msk.bf16.mxu1 %vm504_vm0, %v3356_v50 }
 0xac3   : > { %v3357_v27 = vpack.c.bf16 %v3349_v21, %v3348_v18 }
 0xac5   : > { %4367 = vmatmul.mubr.msk.bf16.gmra.mxu1 %vm504_vm0, %v3357_v27 }
 0xb34   : > { %v4356_v49 = vpop.f32.mrf.mxu1 }
 0xb35   : > { %v3436_v56 = vadd.f32 %v4356_v49, %v6021_v46 }
 0xb36   : > { %v3427_v2 = vpop.f32.mrf.mxu1 }
 0xb37   : > { %v3428_v63 = vadd.f32 %v6021_v46, %v3427_v2  ;;  %v3508_v5 = vmul.f32 0.70710677, %v3436_v56  ;;  %v3492_v14 = vmul.f32 0.5, %v3436_v56 }
 0xb38   : > { %v4357_v4 = vpop.f32.mrf.mxu1 }
 0xb39   : > { %v3506_v45 = vmul.f32 0.70710677, %v3428_v63  ;;  %v3439_v47 = vadd.f32 %v4357_v4, %v6021_v46  ;;  %v3490_v18 = vmul.f32 0.5, %v3428_v63 }
 0xb3a   : > { %v3430_v1 = vpop.f32.mrf.mxu1 }
 0xb3b   : > { %4643 = verf.f32 %v3506_v45  ;;  %v3509_v29 = vmul.f32 0.70710677, %v3439_v47  ;;  %v3431_v19 = vadd.f32 %v6021_v46, %v3430_v1  ;;  %v3493_v0 = vmul.f32 0.5, %v3439_v47 }
 0xb3c   : > { %4645 = verf.f32 %v3508_v5 }
 0xb3d   : > { %4647 = verf.f32 %v3509_v29  ;;  %v3507_v58 = vmul.f32 0.70710677, %v3431_v19  ;;  %v4360_v9 = vpop.f32.mrf.mxu1  ;;  %v3491_v21 = vmul.f32 0.5, %v3431_v19 }
 0xb3e   : > { %v3452_v30 = vadd.f32 %v4360_v9, %v6021_v46 }
 0xb3f   : > { %4649 = verf.f32 %v3507_v58  ;;  %v3443_v52 = vpop.f32.mrf.mxu1 }
 0xb40   : > { %v3444_v42 = vadd.f32 %v6021_v46, %v3443_v52  ;;  %v3512_v53 = vmul.f32 0.70710677, %v3452_v30 }
 0xb41   : > { %v4361_v16 = vpop.f32.mrf.mxu1 }
 0xb42   : > { %v3510_v24 = vmul.f32 0.70710677, %v3444_v42  ;;  %v3455_v12 = vadd.f32 %v4361_v16, %v6021_v46  ;;  %v3494_v16 = vmul.f32 0.5, %v3444_v42 }
 0xb43   : > { %v3446_v38 = vpop.f32.mrf.mxu1 }
 0xb44   : > { %4651 = verf.f32 %v3510_v24  ;;  %v3513_v61 = vmul.f32 0.70710677, %v3455_v12  ;;  %v3447_v43 = vadd.f32 %v6021_v46, %v3446_v38 }
 0xb45   : > { %4653 = verf.f32 %v3512_v53  ;;  %v4364_v60 = vpop.f32.mrf.mxu1  ;;  %v3497_v53 = vmul.f32 0.5, %v3455_v12 }
 0xb46   : > { %4655 = verf.f32 %v3513_v61  ;;  %v3511_v25 = vmul.f32 0.70710677, %v3447_v43  ;;  %v6032_v28 = vadd.f32 %v4364_v60, %v6021_v46  ;;  %v3495_v24 = vmul.f32 0.5, %v3447_v43 }
 0xb47   : > { %v3459_v22 = vpop.f32.mrf.mxu1  ;;  %v3496_v61 = vmul.f32 0.5, %v3452_v30 }
 0xb48   : > { %v4644_v15 = vpop.eup %4643  ;;  %4657 = verf.f32 %v3511_v25  ;;  %v3460_v34 = vadd.f32 %v6021_v46, %v3459_v22  ;;  %v3516_v35 = vmul.f32 0.70710677, %v6032_v28 }
 0xb49   : > { %v4646_v7 = vpop.eup %4645  ;;  %v4365_v54 = vpop.f32.mrf.mxu1  ;;  %v3538_v20 = vadd.f32 1.0, %v4644_v15 }
 0xb4a   : > { %v4648_v48 = vpop.eup %4647  ;;  %v3514_v17 = vmul.f32 0.70710677, %v3460_v34  ;;  %v3471_v55 = vadd.f32 %v4365_v54, %v6021_v46  ;;  %v3540_v40 = vadd.f32 1.0, %v4646_v7  ;;  %v3498_v42 = vmul.f32 0.5, %v3460_v34 }
 0xb4b   : > { %v3541_v8 = vadd.f32 1.0, %v4648_v48  ;;  %v3462_v32 = vpop.f32.mrf.mxu1  ;;  %v3554_v5 = vmul.f32 %v3538_v20, %v3490_v18 }
 0xb4c   : > { %v4650_v59 = vpop.eup %4649  ;;  %4659 = verf.f32 %v3514_v17  ;;  %v3517_v44 = vmul.f32 0.70710677, %v3471_v55  ;;  %v3463_v50 = vadd.f32 %v6021_v46, %v3462_v32  ;;  %v3556_v45 = vmul.f32 %v3540_v40, %v3492_v14 }
 0xb4d   : > { %v3539_v27 = vadd.f32 1.0, %v4650_v59  ;;  %4661 = verf.f32 %v3516_v35  ;;  %v3557_v49 = vmul.f32 %v3541_v8, %v3493_v0  ;;  %v3501_v12 = vmul.f32 0.5, %v3471_v55 }
 0xb4e   : > { %4663 = verf.f32 %v3517_v44  ;;  %v3515_v2 = vmul.f32 0.70710677, %v3463_v50  ;;  %v3499_v30 = vmul.f32 0.5, %v3463_v50  ;;  %v3500_v59 = vmul.f32 0.5, %v6032_v28 }
 0xb4f   : > { %v3555_v4 = vmul.f32 %v3539_v27, %v3491_v21  ;;  %v3571_v58 = vpack.c.bf16 %v3557_v49, %v3556_v45 }
 0xb50   : > { %4665 = verf.f32 %v3515_v2 }
 0xb51   : > { %v4652_v47 = vpop.eup %4651  ;;  %v3570_v1 = vpack.c.bf16 %v3555_v4, %v3554_v5 }
 0xb52   : > { %v4654_v29 = vpop.eup %4653  ;;  %v3542_v52 = vadd.f32 1.0, %v4652_v47 }
 0xb53   : > { %v4656_v9 = vpop.eup %4655  ;;  %4372 = vmatprep.mubr.msk.bf16.mxu0 %vm1312_vm4, %v3570_v1  ;;  %v3544_v56 = vadd.f32 1.0, %v4654_v29 }
 0xb54   : > { %v3545_v63 = vadd.f32 1.0, %v4656_v9  ;;  %4373 = vmatmul.mubr.msk.bf16.vlgmr.msra.gmra.mxu0 %vm1312_vm4, %v3571_v58  ;;  %v3558_v25 = vmul.f32 %v3542_v52, %v3494_v16 }
 0xb55   : > { %v4658_v19 = vpop.eup %4657  ;;  %v3560_v7 = vmul.f32 %v3544_v56, %v3496_v61 }
 0xb56   : > { %v3543_v38 = vadd.f32 1.0, %v4658_v19  ;;  %v3561_v60 = vmul.f32 %v3545_v63, %v3497_v53 }
 0xb58   : > { %v3559_v22 = vmul.f32 %v3543_v38, %v3495_v24  ;;  %v3573_v17 = vpack.c.bf16 %v3561_v60, %v3560_v7 }
 0xb59   : > { %v4660_v15 = vpop.eup %4659 }
 0xb5a   : > { %v4662_v35 = vpop.eup %4661  ;;  %v3572_v54 = vpack.c.bf16 %v3559_v22, %v3558_v25  ;;  %v3546_v20 = vadd.f32 1.0, %v4660_v15 }
 0xb5b   : > { %v4664_v48 = vpop.eup %4663  ;;  %v3548_v32 = vadd.f32 1.0, %v4662_v35 }
 0xb5c   : > { %v3549_v0 = vadd.f32 1.0, %v4664_v48  ;;  %4376 = vmatprep.mubr.msk.bf16.mxu0 %vm1312_vm4, %v3572_v54  ;;  %v3562_v44 = vmul.f32 %v3546_v20, %v3498_v42  ;;  %v6054_v54 = vld [vmem:[%s6143_s13] ss:$0 sm:$0xff] }
 0xb5d   : > { %v4666_v8 = vpop.eup %4665  ;;  %4377 = vmatmul.mubr.msk.bf16.gmra.mxu0 %vm1312_vm4, %v3573_v17  ;;  %v3564_v21 = vmul.f32 %v3548_v32, %v3500_v59 }
 0xb5e   : > { %v3547_v43 = vadd.f32 1.0, %v4666_v8  ;;  %v3565_v40 = vmul.f32 %v3549_v0, %v3501_v12 }
 0xb60   : > { %v3563_v18 = vmul.f32 %v3547_v43, %v3499_v30  ;;  %v3575_v14 = vpack.c.bf16 %v3565_v40, %v3564_v21 }
 0xb62   : > { %v3574_v27 = vpack.c.bf16 %v3563_v18, %v3562_v44 }
 0xb64   : > { %4380 = vmatprep.mubr.msk.bf16.mxu0 %vm1312_vm4, %v3574_v27 }
 0xb65   : > { %4381 = vmatmul.mubr.msk.bf16.gmra.mxu0 %vm1312_vm4, %v3575_v14 }
 0xb85   : > { %v4368_v49 = vpop.f32.mrf.mxu1 }
 0xb86   : > { %v3484_v55 = vadd.f32 %v4368_v49, %v6021_v46 }
 0xb87   : > { %v3475_v2 = vpop.f32.mrf.mxu1 }
 0xb88   : > { %v3476_v34 = vadd.f32 %v6021_v46, %v3475_v2  ;;  %v3520_v50 = vmul.f32 0.70710677, %v3484_v55  ;;  %v3504_v60 = vmul.f32 0.5, %v3484_v55 }
 0xb89   : > { %v4369_v5 = vpop.f32.mrf.mxu1 }
 0xb8a   : > { %v3518_v4 = vmul.f32 0.70710677, %v3476_v34  ;;  %v3487_v28 = vadd.f32 %v4369_v5, %v6021_v46  ;;  %v3502_v24 = vmul.f32 0.5, %v3476_v34 }
 0xb8b   : > { %v3478_v45 = vpop.f32.mrf.mxu1 }
 0xb8c   : > { %4667 = verf.f32 %v3518_v4  ;;  %v3521_v47 = vmul.f32 0.70710677, %v3487_v28  ;;  %v3479_v1 = vadd.f32 %v6021_v46, %v3478_v45  ;;  %v3505_v16 = vmul.f32 0.5, %v3487_v28 }
 0xb8d   : > { %4669 = verf.f32 %v3520_v50 }
 0xb8e   : > { %4671 = verf.f32 %v3521_v47  ;;  %v3519_v29 = vmul.f32 0.70710677, %v3479_v1  ;;  %v3503_v38 = vmul.f32 0.5, %v3479_v1 }
 0xb90   : > { %4673 = verf.f32 %v3519_v29 }
 0xb99   : > { %v4668_v58 = vpop.eup %4667 }
 0xb9a   : > { %v4670_v9 = vpop.eup %4669  ;;  %v3550_v63 = vadd.f32 1.0, %v4668_v58 }
 0xb9b   : > { %v4672_v52 = vpop.eup %4671  ;;  %v3552_v53 = vadd.f32 1.0, %v4670_v9 }
 0xb9c   : > { %v3553_v19 = vadd.f32 1.0, %v4672_v52  ;;  %v3566_v22 = vmul.f32 %v3550_v63, %v3502_v24 }
 0xb9d   : > { %v4674_v56 = vpop.eup %4673  ;;  %v3568_v15 = vmul.f32 %v3552_v53, %v3504_v60 }
 0xb9e   : > { %v3551_v61 = vadd.f32 1.0, %v4674_v56  ;;  %v3569_v25 = vmul.f32 %v3553_v19, %v3505_v16 }
 0xba0   : > { %v3567_v46 = vmul.f32 %v3551_v61, %v3503_v38  ;;  %v3577_v35 = vpack.c.bf16 %v3569_v25, %v3568_v15 }
 0xba2   : > { %v3576_v7 = vpack.c.bf16 %v3567_v46, %v3566_v22 }
 0xba4   : > { %4384 = vmatprep.mubr.msk.bf16.mxu0 %vm1312_vm4, %v3576_v7 }
 0xba5   : > { %4385 = vmatmul.mubr.msk.bf16.gmra.mxu0 %vm1312_vm4, %v3577_v35 }
 0xc14   : > { %v4374_v48 = vpop.f32.mrf.mxu0 }
 0xc15   : > { %v3660_v17 = vadd.f32 %v4374_v48, %v6054_v54 }
 0xc16   : > { %v3651_v20 = vpop.f32.mrf.mxu0 }
 0xc17   : > { %v3716_v0 = vadd.f32 %v3660_v17, %v5758_v10  ;;  %v3652_v8 = vadd.f32 %v6054_v54, %v3651_v20 }
 0xc18   : > { %v4375_v32 = vpop.f32.mrf.mxu0 }
 0xc19   : > { %v3971_v12 = vpack.c.bf16 %v3716_v0, %v3716_v0  ;;  %v3714_v42 = vadd.f32 %v3652_v8, %v5755_v33  ;;  %v3663_v30 = vadd.f32 %v4375_v32, %v6054_v54 }
 0xc1a   : > { %v3654_v10 = vpop.f32.mrf.mxu0 }
 0xc1b   : > { %3797 = vst.msk [vmem:[%s6064_s21 + $0x8] sm:$0xf] %vm3794_vm5, %v3971_v12  ;;  %v3969_v43 = vpack.c.bf16 %v3714_v42, %v3714_v42  ;;  %v3717_v59 = vadd.f32 %v3663_v30, %v5768_v37  ;;  %v3655_v40 = vadd.f32 %v6054_v54, %v3654_v10 }
 0xc1d   : > { %3795 = vst.msk [vmem:[%s6064_s21] sm:$0xf] %vm3794_vm5, %v3969_v43  ;;  %v3972_v44 = vpack.c.bf16 %v3717_v59, %v3717_v59  ;;  %v3715_v18 = vadd.f32 %v3655_v40, %v5765_v3  ;;  %v4378_v21 = vpop.f32.mrf.mxu0 }
 0xc1e   : > { %v3676_v33 = vadd.f32 %v4378_v21, %v6054_v54 }
 0xc1f   : > { %3798 = vst.msk [vmem:[%s6064_s21 + $0xc] sm:$0xf] %vm3794_vm5, %v3972_v44  ;;  %v3970_v27 = vpack.c.bf16 %v3715_v18, %v3715_v18  ;;  %v3667_v14 = vpop.f32.mrf.mxu0 }
 0xc20   : > { %v3720_v49 = vadd.f32 %v3676_v33, %v5787_v57  ;;  %v3668_v37 = vadd.f32 %v6054_v54, %v3667_v14 }
 0xc21   : > { %3796 = vst.msk [vmem:[%s6064_s21 + $0x4] sm:$0xf] %vm3794_vm5, %v3970_v27  ;;  %v4379_v55 = vpop.f32.mrf.mxu0 }
 0xc22   : > { %v3975_v2 = vpack.c.bf16 %v3720_v49, %v3720_v49  ;;  %v3718_v34 = vadd.f32 %v3668_v37, %v5777_v62  ;;  %v3679_v3 = vadd.f32 %v4379_v55, %v6054_v54 }
 0xc23   : > { %v3670_v50 = vpop.f32.mrf.mxu0 }
 0xc24   : > { %3801 = vst.msk [vmem:[%s6064_s21 + $0x18] sm:$0xf] %vm3794_vm5, %v3975_v2  ;;  %v3973_v5 = vpack.c.bf16 %v3718_v34, %v3718_v34  ;;  %v3721_v4 = vadd.f32 %v3679_v3, %v5792_v39  ;;  %v3671_v57 = vadd.f32 %v6054_v54, %v3670_v50 }
 0xc25   : > { %v4382_v28 = vpop.f32.mrf.mxu0 }
 0xc26   : > { %3799 = vst.msk [vmem:[%s6064_s21 + $0x10] sm:$0xf] %vm3794_vm5, %v3973_v5  ;;  %v3976_v45 = vpack.c.bf16 %v3721_v4, %v3721_v4  ;;  %v3719_v47 = vadd.f32 %v3671_v57, %v5784_v11  ;;  %v3692_v62 = vadd.f32 %v4382_v28, %v6054_v54 }
 0xc27   : > { %v3683_v1 = vpop.f32.mrf.mxu0 }
 0xc28   : > { %3802 = vst.msk [vmem:[%s6064_s21 + $0x1c] sm:$0xf] %vm3794_vm5, %v3976_v45  ;;  %v3974_v29 = vpack.c.bf16 %v3719_v47, %v3719_v47  ;;  %v3724_v58 = vadd.f32 %v3692_v62, %v5811_v26  ;;  %v3684_v39 = vadd.f32 %v6054_v54, %v3683_v1 }
 0xc29   : > { %v4383_v9 = vpop.f32.mrf.mxu0 }
 0xc2a   : > { %3800 = vst.msk [vmem:[%s6064_s21 + $0x14] sm:$0xf] %vm3794_vm5, %v3974_v29  ;;  %v3979_v52 = vpack.c.bf16 %v3724_v58, %v3724_v58  ;;  %v3722_v63 = vadd.f32 %v3684_v39, %v5799_v23  ;;  %v3695_v11 = vadd.f32 %v4383_v9, %v6054_v54 }
 0xc2b   : > { %v3686_v19 = vpop.f32.mrf.mxu0 }
 0xc2c   : > { %3805 = vst.msk [vmem:[%s6064_s21 + $0x28] sm:$0xf] %vm3794_vm5, %v3979_v52  ;;  %v3977_v56 = vpack.c.bf16 %v3722_v63, %v3722_v63  ;;  %v3725_v53 = vadd.f32 %v3695_v11, %v5816_v13  ;;  %v3687_v16 = vadd.f32 %v6054_v54, %v3686_v19 }
 0xc2e   : > { %3803 = vst.msk [vmem:[%s6064_s21 + $0x20] sm:$0xf] %vm3794_vm5, %v3977_v56  ;;  %v3980_v26 = vpack.c.bf16 %v3725_v53, %v3725_v53  ;;  %v3723_v24 = vadd.f32 %v3687_v16, %v5808_v51 }
 0xc30   : > { %3806 = vst.msk [vmem:[%s6064_s21 + $0x2c] sm:$0xf] %vm3794_vm5, %v3980_v26  ;;  %v3978_v38 = vpack.c.bf16 %v3723_v24, %v3723_v24 }
 0xc32   : > { %3804 = vst.msk [vmem:[%s6064_s21 + $0x24] sm:$0xf] %vm3794_vm5, %v3978_v38 }
 0xc65   : > { %v4386_v23 = vpop.f32.mrf.mxu0 }
 0xc66   : > { %v3708_v61 = vadd.f32 %v4386_v23, %v6054_v54 }
 0xc67   : > { %v3699_v60 = vpop.f32.mrf.mxu0 }
 0xc68   : > { %v3728_v13 = vadd.f32 %v3708_v61, %v5830_v41  ;;  %v3700_v25 = vadd.f32 %v6054_v54, %v3699_v60 }
 0xc69   : > { %v4387_v22 = vpop.f32.mrf.mxu0 }
 0xc6a   : > { %v3983_v46 = vpack.c.bf16 %v3728_v13, %v3728_v13  ;;  %v3726_v51 = vadd.f32 %v3700_v25, %v5827_v6  ;;  %v3711_v15 = vadd.f32 %v4387_v22, %v6054_v54 }
 0xc6b   : > { %v3702_v7 = vpop.f32.mrf.mxu0 }
 0xc6c   : > { %3809 = vst.msk [vmem:[%s6064_s21 + $0x38] sm:$0xf] %vm3794_vm5, %v3983_v46  ;;  %v3981_v35 = vpack.c.bf16 %v3726_v51, %v3726_v51  ;;  %v3729_v48 = vadd.f32 %v3711_v15, %v5840_v31  ;;  %v3703_v17 = vadd.f32 %v6054_v54, %v3702_v7 }
 0xc6e   : > { %3807 = vst.msk [vmem:[%s6064_s21 + $0x30] sm:$0xf] %vm3794_vm5, %v3981_v35  ;;  %v3984_v41 = vpack.c.bf16 %v3729_v48, %v3729_v48  ;;  %v3727_v20 = vadd.f32 %v3703_v17, %v5837_v36 }
 0xc70   : > { %3810 = vst.msk [vmem:[%s6064_s21 + $0x3c] sm:$0xf] %vm3794_vm5, %v3984_v41  ;;  %v3982_v0 = vpack.c.bf16 %v3727_v20, %v3727_v20 }
 0xc72   : > { %3808 = vst.msk [vmem:[%s6064_s21 + $0x34] sm:$0xf] %vm3794_vm5, %v3982_v0 }
 0xc73 PF: > { %s24_s29 = sadd.s32 1, %s4681_s29  }
 0xc74   : > { %p21_p4 = scmp.ge.s32.totalorder %s24_s29, 6  }
 0xc76   :  { %23 = sbr.rel (!%p21_p4) target bundleno = 1 (0x1), region = 107 }

</bundles_post_ra>
